<compile_context>
chip_gen: v5e
topology: v5e:2x2
jax: 0.10.0
libtpu: 0.0.40
codegen_flags: <defaults>
</compile_context>

<pallas_src>
import functools

import numpy as np

import jax
import jax.numpy as jnp
from jax.experimental import pallas as pl
from jax.experimental.pallas import tpu as pltpu


NPAD = 128  # lane-dense channel width (one full 128-lane vreg row)

IN_CHANNELS = 1
HIDDEN_CHANNELS = 8
CHANNEL_MULTIPLIERS = (1, 2, 3)


def _ceil8(x):
    return (x + 7) // 8 * 8


# -----------------------------------------------------------------------------
# Parameters (PyTorch-layout init).
# -----------------------------------------------------------------------------
def _init_conv(key, cout, cin, k=3):
    wk, bk = jax.random.split(key)
    bound = 1.0 / float(cin * k * k) ** 0.5
    w = jax.random.uniform(wk, (cout, cin, k, k), jnp.float32, -bound, bound)
    b = jax.random.uniform(bk, (cout,), jnp.float32, -bound, bound)
    return w, b


def _init_convT(key, cin, cout, k=3):
    wk, bk = jax.random.split(key)
    bound = 1.0 / float(cout * k * k) ** 0.5
    w = jax.random.uniform(wk, (cin, cout, k, k), jnp.float32, -bound, bound)
    b = jax.random.uniform(bk, (cout,), jnp.float32, -bound, bound)
    return w, b


def build_params(key):
    channels = [IN_CHANNELS] + [HIDDEN_CHANNELS * c for c in CHANNEL_MULTIPLIERS]
    n = len(channels) - 1
    keys = jax.random.split(key, 2 * n)
    params = {}
    for i in range(n):
        params[f"down_{i}"] = _init_conv(keys[i], channels[i + 1], channels[i])
    for i in range(n):
        params[f"up_{i}"] = _init_convT(keys[n + i], channels[i + 1] * 2, channels[i])
    return params, channels


def _phase_tap_map(pad):
    """Output phase a -> {input tap offset dy: kernel index ky} for a stride-2,
    k=3, output_padding=1 ConvTranspose decomposed over the 1-padded input."""
    if pad == 0:
        return {0: {1: 0, 0: 2}, 1: {1: 1}}
    if pad == 1:
        return {0: {0: 1}, 1: {1: 0, 0: 2}}
    raise ValueError("only padding 0 or 1 is supported")


# -----------------------------------------------------------------------------
# One-time host-side packing: matmul-ready weights + 0/1 selection matrices.
# -----------------------------------------------------------------------------
def prepare_params(params, channels, H, W):
    n = len(channels) - 1
    pads = [0 if channels[i] % 2 == 0 else 1 for i in range(n)]

    sizes = []
    h, w = H, W
    for i in range(n):
        p = pads[i]
        h = (h + 2 * p - 3) // 2 + 1
        w = (w + 2 * p - 3) // 2 + 1
        assert h >= 1 and w >= 1, "input spatially too small for this many layers"
        sizes.append((h, w))

    # Per-image activation row counts (deepest padded to a multiple of 8;
    # it is only consumed by up_{n-1}, whose x and skip are the same tensor).
    down_rows = [sizes[i][0] * sizes[i][1] for i in range(n)]
    down_rows[n - 1] = _ceil8(down_rows[n - 1])

    wbig = []  # list of [128,128] f32 blocks, addressed by static index in-kernel

    def add_block(m):
        wbig.append(np.asarray(m, np.float32))
        return len(wbig) - 1

    bias_rows = []
    sel_arrays = []

    # ---- down_0: matmul-ready weight for the externally built patch matrix --
    w0, b0 = [np.asarray(a) for a in params["down_0"]]
    cout0, cin0 = w0.shape[0], w0.shape[1]
    assert cout0 <= NPAD
    K0 = _ceil8(9 * cin0)
    W0 = np.zeros((K0, NPAD), np.float32)
    W0[: 9 * cin0, :cout0] = np.transpose(w0, (2, 3, 1, 0)).reshape(9 * cin0, cout0)
    bias_rows.append(np.pad(b0, (0, NPAD - cout0)))

    # ---- down_1 .. down_{n-1}: per-tap row-selection matrices + weights ------
    down_w_offs = [None] * n
    for i in range(1, n):
        w, b = [np.asarray(a) for a in params[f"down_{i}"]]
        cout, cin = w.shape[0], w.shape[1]
        assert cout <= NPAD and cin <= NPAD
        hi, wi = sizes[i - 1]
        oh, ow = sizes[i]
        p = pads[i]
        ri = down_rows[i - 1]
        mo = down_rows[i]
        S = np.zeros((9, mo, ri), np.float32)
        offs = []
        for ky in range(3):
            for kx in range(3):
                k = ky * 3 + kx
                for oy in range(oh):
                    for ox in range(ow):
                        ih, iw = 2 * oy + ky - p, 2 * ox + kx - p
                        if 0 <= ih < hi and 0 <= iw < wi:
                            S[k, oy * ow + ox, ih * wi + iw] = 1.0
                Wk = np.zeros((NPAD, NPAD), np.float32)
                Wk[:cin, :cout] = w[:, :, ky, kx].T  # [cin, cout]
                offs.append(add_block(Wk))
        sel_arrays.append(S)
        down_w_offs[i] = tuple(offs)
        bias_rows.append(np.pad(b, (0, NPAD - cout)))

    # ---- up_{n-1} .. up_0 (application order) --------------------------------
    up_plan = []
    x_rows = down_rows[n - 1]
    x_h, x_w = sizes[n - 1]
    Mp = Np_ = cout = None
    mo_ph8 = None
    for j, i in enumerate(range(n - 1, -1, -1)):
        w, b = [np.asarray(a) for a in params[f"up_{i}"]]
        cin_tot, cout = w.shape[0], w.shape[1]
        cin_half = cin_tot // 2
        assert cin_half == channels[i + 1]
        # 4 output phases are packed in 128 lanes -> ConvT out_channels <= 32.
        assert 4 * cout <= NPAD, "ConvTranspose out_channels must be <= 32"
        p = pads[i]
        hi, wi = x_h, x_w
        if j > 0:
            assert (hi, wi) == sizes[i], "UNet skip shapes do not line up"
        o0 = 0 if p == 0 else 1
        Mp = hi + 1 if p == 0 else hi
        Np_ = wi + 1 if p == 0 else wi
        mo_ph = Mp * Np_
        mo_ph8 = _ceil8(mo_ph)

        ST = np.zeros((4, mo_ph8, x_rows), np.float32)
        tapmap = _phase_tap_map(p)
        wx_offs, ws_offs = [], []
        for dy in (0, 1):
            for dx in (0, 1):
                k = dy * 2 + dx
                for mp in range(Mp):
                    for nq in range(Np_):
                        ih, iw = o0 + dy + mp - 1, o0 + dx + nq - 1
                        if 0 <= ih < hi and 0 <= iw < wi:
                            ST[k, mp * Np_ + nq, ih * wi + iw] = 1.0
                Wx = np.zeros((NPAD, NPAD), np.float32)
                Ws = np.zeros((NPAD, NPAD), np.float32)
                for a in (0, 1):
                    ky = tapmap[a].get(dy)
                    if ky is None:
                        continue
                    for bb in (0, 1):
                        kx = tapmap[bb].get(dx)
                        if kx is None:
                            continue
                        c0 = (a * 2 + bb) * cout
                        Wx[:cin_half, c0:c0 + cout] = w[:cin_half, :, ky, kx]
                        Ws[:cin_half, c0:c0 + cout] = w[cin_half:, :, ky, kx]
                wx_offs.append(add_block(Wx))
                ws_offs.append(add_block(Ws))
        sel_arrays.append(ST)
        bias_rows.append(np.pad(np.tile(b, 4), (0, NPAD - 4 * cout)))

        out_h, out_w = 2 * Mp, 2 * Np_
        out_rows = out_h * out_w
        l_offs = None
        if j < n - 1:
            assert (out_h, out_w) == sizes[i - 1], "UNet skip shapes do not line up"
            # phase interleave (row scatter + lane regroup) as 4 matmul pairs
            P = np.zeros((4, out_rows, mo_ph8), np.float32)
            l_offs = []
            for a in (0, 1):
                for bb in (0, 1):
                    ph = a * 2 + bb
                    for mp in range(Mp):
                        for nq in range(Np_):
                            P[ph, (2 * mp + a) * out_w + 2 * nq + bb,
                              mp * Np_ + nq] = 1.0
                    Lp = np.zeros((NPAD, NPAD), np.float32)
                    Lp[ph * cout:(ph + 1) * cout, :cout] = np.eye(cout)
                    l_offs.append(add_block(Lp))
            sel_arrays.append(P)
            l_offs = tuple(l_offs)
        else:
            assert (out_h, out_w) == (H, W), "UNet output spatial size mismatch"

        up_plan.append(dict(wx=tuple(wx_offs), ws=tuple(ws_offs), l=l_offs,
                            bias_row=n + j, phase_rows=mo_ph8,
                            out_rows=out_rows, relu=(j < n - 1)))
        x_rows, x_h, x_w = out_rows, out_h, out_w

    nbias = _ceil8(len(bias_rows))
    bias_arr = np.zeros((nbias, NPAD), np.float32)
    bias_arr[: len(bias_rows)] = np.stack(bias_rows)

    plan = dict(n=n, pad0=pads[0], oh0=sizes[0][0], ow0=sizes[0][1],
                cin0=cin0, K0=K0,
                down_rows=tuple(down_rows),
                down_w_offs=tuple(down_w_offs),
                up=tuple(up_plan),
                final_Mp=Mp, final_Np=Np_, final_cout=cout,
                final_phase_rows=mo_ph8)

    arrays = dict(w0=jnp.asarray(W0),
                  bias=jnp.asarray(bias_arr),
                  wbig=jnp.asarray(np.stack(wbig)),
                  sel=tuple(jnp.asarray(s) for s in sel_arrays))
    return dict(plan=plan, arrays=arrays)


# -----------------------------------------------------------------------------
# The single fused Pallas kernel (one image per grid step).
# -----------------------------------------------------------------------------
def make_unet_kernel(plan):
    n = plan["n"]
    down_rows = plan["down_rows"]
    down_w_offs = plan["down_w_offs"]
    up_plan = plan["up"]

    def kernel(*refs):
        out_ref = refs[-1]
        patches_ref, w0_ref, bias_ref, wbig_ref = refs[:4]
        sel_refs = refs[4:-1]

        def mm(a, b):
            return jnp.dot(a, b, preferred_element_type=jnp.float32)

        # ---- down_0: one fused patch-matmul + bias + ReLU -------------------
        acts = []
        a = jnp.maximum(mm(patches_ref[0], w0_ref[...]) + bias_ref[0:1, :], 0.0)
        acts.append(a)

        # ---- down_1 .. down_{n-1}: 9 accumulating per-tap matmuls each ------
        for i in range(1, n):
            s_ref = sel_refs[i - 1]
            acc = jnp.zeros((down_rows[i], NPAD), jnp.float32)
            for k in range(9):
                acc = acc + mm(mm(s_ref[k], a), wbig_ref[down_w_offs[i][k]])
            a = jnp.maximum(acc + bias_ref[i:i + 1, :], 0.0)
            acts.append(a)

        # ---- up_{n-1} .. up_0: skip concat folded into split weight blocks --
        sel_pos = n - 1
        x = acts[-1]
        for j in range(n):
            skip = acts[n - 1 - j]          # == xs.pop() in the PyTorch module
            up = up_plan[j]
            st_ref = sel_refs[sel_pos]
            sel_pos += 1
            acc = jnp.zeros((up["phase_rows"], NPAD), jnp.float32)
            for k in range(4):
                tx = mm(st_ref[k], x)
                ts = tx if skip is x else mm(st_ref[k], skip)
                acc = acc + mm(tx, wbig_ref[up["wx"][k]]) \
                          + mm(ts, wbig_ref[up["ws"][k]])
            ph = acc + bias_ref[up["bias_row"]:up["bias_row"] + 1, :]
            if up["relu"]:
                ph = jnp.maximum(ph, 0.0)
            if up["l"] is None:
                # last layer: phase-major output, interleaved outside the kernel
                out_ref[0] = ph.astype(out_ref.dtype)
            else:
                # in-kernel 2x2 sub-pixel interleave via (row scatter, lane map)
                p_ref = sel_refs[sel_pos]
                sel_pos += 1
                nxt = jnp.zeros((up["out_rows"], NPAD), jnp.float32)
                for p in range(4):
                    nxt = nxt + mm(mm(p_ref[p], ph), wbig_ref[up["l"][p]])
                x = nxt

    return kernel


# -----------------------------------------------------------------------------
# Forward wrapper (NCHW in/out).  One pallas_call; tiny XLA glue on both ends.
# -----------------------------------------------------------------------------
def unet_forward(prep, t, x_nchw):
    del t  # `t` is accepted but unused by the reference module's forward.
    plan, arrays = prep["plan"], prep["arrays"]
    B = x_nchw.shape[0]
    assert x_nchw.shape[1] == plan["cin0"]
    oh, ow = plan["oh0"], plan["ow0"]
    K0, cin = plan["K0"], plan["cin0"]
    p0 = plan["pad0"]

    x = jnp.transpose(x_nchw, (0, 2, 3, 1))               # NCHW -> NHWC
    if p0:
        x = jnp.pad(x, ((0, 0), (p0, p0), (p0, p0), (0, 0)))
    taps = [x[:, ky:ky + 2 * oh - 1:2, kx:kx + 2 * ow - 1:2, :]
            for ky in range(3) for kx in range(3)]
    patches = jnp.concatenate(taps, axis=-1).reshape(B, oh * ow, 9 * cin)
    patches = jnp.pad(patches, ((0, 0), (0, 0), (0, K0 - 9 * cin)))

    const_inputs = (arrays["w0"], arrays["bias"], arrays["wbig"]) + arrays["sel"]
    mo8 = plan["final_phase_rows"]

    in_specs = [pl.BlockSpec((1, oh * ow, K0), lambda b: (b, 0, 0))]
    for arr in const_inputs:
        in_specs.append(pl.BlockSpec(arr.shape,
                                     lambda b, _nd=arr.ndim: (0,) * _nd))
    out_specs = pl.BlockSpec((1, mo8, NPAD), lambda b: (b, 0, 0))

    out = pl.pallas_call(
        make_unet_kernel(plan),
        grid=(B,),
        in_specs=in_specs,
        out_specs=out_specs,
        out_shape=jax.ShapeDtypeStruct((B, mo8, NPAD), jnp.float32),
        compiler_params=pltpu.CompilerParams(
            dimension_semantics=("parallel",)),   # one image per TC on v7x
    )(patches, *const_inputs)

    # final 2x2 phase interleave of up_0's output + back to NCHW
    Mp, Np_, cout = plan["final_Mp"], plan["final_Np"], plan["final_cout"]
    y = out[:, :Mp * Np_, :4 * cout].reshape(B, Mp, Np_, 2, 2, cout)
    y = jnp.transpose(y, (0, 1, 3, 2, 4, 5)).reshape(B, 2 * Mp, 2 * Np_, cout)
    return jnp.transpose(y, (0, 3, 1, 2))


# -----------------------------------------------------------------------------
# Pure-XLA reference of the same module (correctness self-check only).
# -----------------------------------------------------------------------------
def _ref_forward(params, channels, x_nchw):
    n = len(channels) - 1
    x = jnp.transpose(x_nchw, (0, 2, 3, 1))
    xs = []
    for i in range(n):
        w, b = params[f"down_{i}"]
        pad = 0 if channels[i] % 2 == 0 else 1
        y = jax.lax.conv_general_dilated(
            x, jnp.transpose(w, (2, 3, 1, 0)), (2, 2),
            ((pad, pad), (pad, pad)),
            dimension_numbers=("NHWC", "HWIO", "NHWC"),
            precision=jax.lax.Precision.HIGHEST)
        x = jnp.maximum(y + b.reshape(1, 1, 1, -1), 0.0)
        xs.append(x)
    for idx, i in enumerate(range(n - 1, -1, -1)):
        skip = xs.pop()
        x = jnp.concatenate([x, skip], axis=-1)
        w, b = params[f"up_{i}"]
        pad = 0 if channels[i] % 2 == 0 else 1
        wf = jnp.transpose(w[:, :, ::-1, ::-1], (2, 3, 0, 1))   # [3,3,Cin,Cout]
        lo, hi = 2 - pad, 2 - pad + 1                           # k-1-p, +op
        y = jax.lax.conv_general_dilated(
            x, wf, (1, 1), ((lo, hi), (lo, hi)), lhs_dilation=(2, 2),
            dimension_numbers=("NHWC", "HWIO", "NHWC"),
            precision=jax.lax.Precision.HIGHEST)
        x = y + b.reshape(1, 1, 1, -1)
        if idx < n - 1:
            x = jnp.maximum(x, 0.0)
    return jnp.transpose(x, (0, 3, 1, 2))


if __name__ == "__main__":
    key = jax.random.PRNGKey(0)
    pkey, xkey = jax.random.split(key)
    params, channels = build_params(pkey)

    # spatial size chosen so the UNet skip shapes line up (as the module requires)
    B, H, W = 2, 20, 20
    x = jax.random.normal(xkey, (B, IN_CHANNELS, H, W), jnp.float32)
    t = jnp.arange(B, dtype=jnp.int32)

    prep = prepare_params(params, channels, H, W)   # one-time host-side packing
    fwd = jax.jit(functools.partial(unet_forward, prep))
    y = fwd(t, x)
    jax.block_until_ready(y)

    assert y.shape == (B, IN_CHANNELS, H, W), y.shape
    assert bool(jnp.all(jnp.isfinite(y)))

    # correctness self-check (fp32 path -> tight bound; ~50x tighter than before)
    y_ref = _ref_forward(params, channels, x)
    err = float(jnp.max(jnp.abs(y - y_ref)))
    tol = 1e-3 * float(jnp.max(jnp.abs(y_ref))) + 1e-4
    assert err <= tol, (err, tol)

    print("KERNEL_OK")
</pallas_src>

<mosaic_0001>
module attributes {stable_mosaic.version = 11 : i64} {
  func.func @kernel(%arg0: i32, %arg1: memref<1x100x16xf32, #tpu.memory_space<vmem>>, %arg2: memref<16x128xf32, #tpu.memory_space<vmem>>, %arg3: memref<8x128xf32, #tpu.memory_space<vmem>>, %arg4: memref<50x128x128xf32, #tpu.memory_space<vmem>>, %arg5: memref<9x16x100xf32, #tpu.memory_space<vmem>>, %arg6: memref<9x8x16xf32, #tpu.memory_space<vmem>>, %arg7: memref<4x8x8xf32, #tpu.memory_space<vmem>>, %arg8: memref<4x16x8xf32, #tpu.memory_space<vmem>>, %arg9: memref<4x32x16xf32, #tpu.memory_space<vmem>>, %arg10: memref<4x100x32xf32, #tpu.memory_space<vmem>>, %arg11: memref<4x104x100xf32, #tpu.memory_space<vmem>>, %arg12: memref<1x104x128xf32, #tpu.memory_space<vmem>>) attributes {dimension_semantics = [#tpu.dimension_semantics<parallel>], iteration_bounds = array<i64: 2>, scalar_prefetch = 0 : i64, scratch_operands = 0 : i64, tpu.core_type = #tpu.core_type<tc>, window_params = [{transform_indices = @transform_0, window_bounds = array<i64: 1, 100, 16>}, {pipeline_mode = #tpu.pipeline_mode<synchronous>, transform_indices = @transform_1, window_bounds = array<i64: 16, 128>}, {pipeline_mode = #tpu.pipeline_mode<synchronous>, transform_indices = @transform_2, window_bounds = array<i64: 8, 128>}, {pipeline_mode = #tpu.pipeline_mode<synchronous>, transform_indices = @transform_3, window_bounds = array<i64: 50, 128, 128>}, {pipeline_mode = #tpu.pipeline_mode<synchronous>, transform_indices = @transform_4, window_bounds = array<i64: 9, 16, 100>}, {pipeline_mode = #tpu.pipeline_mode<synchronous>, transform_indices = @transform_5, window_bounds = array<i64: 9, 8, 16>}, {pipeline_mode = #tpu.pipeline_mode<synchronous>, transform_indices = @transform_6, window_bounds = array<i64: 4, 8, 8>}, {pipeline_mode = #tpu.pipeline_mode<synchronous>, transform_indices = @transform_7, window_bounds = array<i64: 4, 16, 8>}, {pipeline_mode = #tpu.pipeline_mode<synchronous>, transform_indices = @transform_8, window_bounds = array<i64: 4, 32, 16>}, {pipeline_mode = #tpu.pipeline_mode<synchronous>, transform_indices = @transform_9, window_bounds = array<i64: 4, 100, 32>}, {pipeline_mode = #tpu.pipeline_mode<synchronous>, transform_indices = @transform_10, window_bounds = array<i64: 4, 104, 100>}, {transform_indices = @transform_11, window_bounds = array<i64: 1, 104, 128>}]} {
    %c0 = arith.constant 0 : index
    %c0_0 = arith.constant 0 : index
    %c0_1 = arith.constant 0 : index
    %0 = vector.load %arg1[%c0, %c0_0, %c0_1] : memref<1x100x16xf32, #tpu.memory_space<vmem>>, vector<1x100x16xf32>
    %1 = vector.shape_cast %0 : vector<1x100x16xf32> to vector<100x16xf32>
    %c0_2 = arith.constant 0 : index
    %c0_3 = arith.constant 0 : index
    %2 = vector.load %arg2[%c0_2, %c0_3] : memref<16x128xf32, #tpu.memory_space<vmem>>, vector<16x128xf32>
    %cst = arith.constant dense<0.000000e+00> : vector<100x128xf32>
    %3 = tpu.matmul %1, %2, %cst {dimension_numbers = #tpu.dot_dimension_numbers<[1], [0], [0], [1], [0, 0, 1, 1], [], []>} : vector<100x16xf32>, vector<16x128xf32>, vector<100x128xf32> -> vector<100x128xf32>
    %c0_4 = arith.constant 0 : index
    %c0_5 = arith.constant 0 : index
    %4 = vector.load %arg3[%c0_4, %c0_5] : memref<8x128xf32, #tpu.memory_space<vmem>>, vector<1x128xf32>
    %5 = vector.broadcast %4 : vector<1x128xf32> to vector<100x128xf32>
    %6 = arith.addf %3, %5 : vector<100x128xf32>
    %cst_6 = arith.constant 0.000000e+00 : f32
    %7 = vector.broadcast %cst_6 : f32 to vector<100x128xf32>
    %8 = arith.maximumf %6, %7 : vector<100x128xf32>
    %cst_7 = arith.constant 0.000000e+00 : f32
    %9 = vector.broadcast %cst_7 : f32 to vector<16x128xf32>
    %c0_8 = arith.constant 0 : index
    %c0_9 = arith.constant 0 : index
    %c0_10 = arith.constant 0 : index
    %10 = vector.load %arg5[%c0_8, %c0_9, %c0_10] : memref<9x16x100xf32, #tpu.memory_space<vmem>>, vector<1x16x100xf32>
    %11 = vector.shape_cast %10 : vector<1x16x100xf32> to vector<16x100xf32>
    %cst_11 = arith.constant dense<0.000000e+00> : vector<16x128xf32>
    %12 = tpu.matmul %11, %8, %cst_11 {dimension_numbers = #tpu.dot_dimension_numbers<[1], [0], [0], [1], [0, 0, 1, 1], [], []>} : vector<16x100xf32>, vector<100x128xf32>, vector<16x128xf32> -> vector<16x128xf32>
    %c0_12 = arith.constant 0 : index
    %c0_13 = arith.constant 0 : index
    %c0_14 = arith.constant 0 : index
    %13 = vector.load %arg4[%c0_12, %c0_13, %c0_14] : memref<50x128x128xf32, #tpu.memory_space<vmem>>, vector<1x128x128xf32>
    %14 = vector.shape_cast %13 : vector<1x128x128xf32> to vector<128x128xf32>
    %cst_15 = arith.constant dense<0.000000e+00> : vector<16x128xf32>
    %15 = tpu.matmul %12, %14, %cst_15 {dimension_numbers = #tpu.dot_dimension_numbers<[1], [0], [0], [1], [0, 0, 1, 1], [], []>} : vector<16x128xf32>, vector<128x128xf32>, vector<16x128xf32> -> vector<16x128xf32>
    %16 = arith.addf %9, %15 : vector<16x128xf32>
    %c1 = arith.constant 1 : index
    %c0_16 = arith.constant 0 : index
    %c0_17 = arith.constant 0 : index
    %17 = vector.load %arg5[%c1, %c0_16, %c0_17] : memref<9x16x100xf32, #tpu.memory_space<vmem>>, vector<1x16x100xf32>
    %18 = vector.shape_cast %17 : vector<1x16x100xf32> to vector<16x100xf32>
    %cst_18 = arith.constant dense<0.000000e+00> : vector<16x128xf32>
    %19 = tpu.matmul %18, %8, %cst_18 {dimension_numbers = #tpu.dot_dimension_numbers<[1], [0], [0], [1], [0, 0, 1, 1], [], []>} : vector<16x100xf32>, vector<100x128xf32>, vector<16x128xf32> -> vector<16x128xf32>
    %c1_19 = arith.constant 1 : index
    %c0_20 = arith.constant 0 : index
    %c0_21 = arith.constant 0 : index
    %20 = vector.load %arg4[%c1_19, %c0_20, %c0_21] : memref<50x128x128xf32, #tpu.memory_space<vmem>>, vector<1x128x128xf32>
    %21 = vector.shape_cast %20 : vector<1x128x128xf32> to vector<128x128xf32>
    %cst_22 = arith.constant dense<0.000000e+00> : vector<16x128xf32>
    %22 = tpu.matmul %19, %21, %cst_22 {dimension_numbers = #tpu.dot_dimension_numbers<[1], [0], [0], [1], [0, 0, 1, 1], [], []>} : vector<16x128xf32>, vector<128x128xf32>, vector<16x128xf32> -> vector<16x128xf32>
    %23 = arith.addf %16, %22 : vector<16x128xf32>
    %c2 = arith.constant 2 : index
    %c0_23 = arith.constant 0 : index
    %c0_24 = arith.constant 0 : index
    %24 = vector.load %arg5[%c2, %c0_23, %c0_24] : memref<9x16x100xf32, #tpu.memory_space<vmem>>, vector<1x16x100xf32>
    %25 = vector.shape_cast %24 : vector<1x16x100xf32> to vector<16x100xf32>
    %cst_25 = arith.constant dense<0.000000e+00> : vector<16x128xf32>
    %26 = tpu.matmul %25, %8, %cst_25 {dimension_numbers = #tpu.dot_dimension_numbers<[1], [0], [0], [1], [0, 0, 1, 1], [], []>} : vector<16x100xf32>, vector<100x128xf32>, vector<16x128xf32> -> vector<16x128xf32>
    %c2_26 = arith.constant 2 : index
    %c0_27 = arith.constant 0 : index
    %c0_28 = arith.constant 0 : index
    %27 = vector.load %arg4[%c2_26, %c0_27, %c0_28] : memref<50x128x128xf32, #tpu.memory_space<vmem>>, vector<1x128x128xf32>
    %28 = vector.shape_cast %27 : vector<1x128x128xf32> to vector<128x128xf32>
    %cst_29 = arith.constant dense<0.000000e+00> : vector<16x128xf32>
    %29 = tpu.matmul %26, %28, %cst_29 {dimension_numbers = #tpu.dot_dimension_numbers<[1], [0], [0], [1], [0, 0, 1, 1], [], []>} : vector<16x128xf32>, vector<128x128xf32>, vector<16x128xf32> -> vector<16x128xf32>
    %30 = arith.addf %23, %29 : vector<16x128xf32>
    %c3 = arith.constant 3 : index
    %c0_30 = arith.constant 0 : index
    %c0_31 = arith.constant 0 : index
    %31 = vector.load %arg5[%c3, %c0_30, %c0_31] : memref<9x16x100xf32, #tpu.memory_space<vmem>>, vector<1x16x100xf32>
    %32 = vector.shape_cast %31 : vector<1x16x100xf32> to vector<16x100xf32>
    %cst_32 = arith.constant dense<0.000000e+00> : vector<16x128xf32>
    %33 = tpu.matmul %32, %8, %cst_32 {dimension_numbers = #tpu.dot_dimension_numbers<[1], [0], [0], [1], [0, 0, 1, 1], [], []>} : vector<16x100xf32>, vector<100x128xf32>, vector<16x128xf32> -> vector<16x128xf32>
    %c3_33 = arith.constant 3 : index
    %c0_34 = arith.constant 0 : index
    %c0_35 = arith.constant 0 : index
    %34 = vector.load %arg4[%c3_33, %c0_34, %c0_35] : memref<50x128x128xf32, #tpu.memory_space<vmem>>, vector<1x128x128xf32>
    %35 = vector.shape_cast %34 : vector<1x128x128xf32> to vector<128x128xf32>
    %cst_36 = arith.constant dense<0.000000e+00> : vector<16x128xf32>
    %36 = tpu.matmul %33, %35, %cst_36 {dimension_numbers = #tpu.dot_dimension_numbers<[1], [0], [0], [1], [0, 0, 1, 1], [], []>} : vector<16x128xf32>, vector<128x128xf32>, vector<16x128xf32> -> vector<16x128xf32>
    %37 = arith.addf %30, %36 : vector<16x128xf32>
    %c4 = arith.constant 4 : index
    %c0_37 = arith.constant 0 : index
    %c0_38 = arith.constant 0 : index
    %38 = vector.load %arg5[%c4, %c0_37, %c0_38] : memref<9x16x100xf32, #tpu.memory_space<vmem>>, vector<1x16x100xf32>
    %39 = vector.shape_cast %38 : vector<1x16x100xf32> to vector<16x100xf32>
    %cst_39 = arith.constant dense<0.000000e+00> : vector<16x128xf32>
    %40 = tpu.matmul %39, %8, %cst_39 {dimension_numbers = #tpu.dot_dimension_numbers<[1], [0], [0], [1], [0, 0, 1, 1], [], []>} : vector<16x100xf32>, vector<100x128xf32>, vector<16x128xf32> -> vector<16x128xf32>
    %c4_40 = arith.constant 4 : index
    %c0_41 = arith.constant 0 : index
    %c0_42 = arith.constant 0 : index
    %41 = vector.load %arg4[%c4_40, %c0_41, %c0_42] : memref<50x128x128xf32, #tpu.memory_space<vmem>>, vector<1x128x128xf32>
    %42 = vector.shape_cast %41 : vector<1x128x128xf32> to vector<128x128xf32>
    %cst_43 = arith.constant dense<0.000000e+00> : vector<16x128xf32>
    %43 = tpu.matmul %40, %42, %cst_43 {dimension_numbers = #tpu.dot_dimension_numbers<[1], [0], [0], [1], [0, 0, 1, 1], [], []>} : vector<16x128xf32>, vector<128x128xf32>, vector<16x128xf32> -> vector<16x128xf32>
    %44 = arith.addf %37, %43 : vector<16x128xf32>
    %c5 = arith.constant 5 : index
    %c0_44 = arith.constant 0 : index
    %c0_45 = arith.constant 0 : index
    %45 = vector.load %arg5[%c5, %c0_44, %c0_45] : memref<9x16x100xf32, #tpu.memory_space<vmem>>, vector<1x16x100xf32>
    %46 = vector.shape_cast %45 : vector<1x16x100xf32> to vector<16x100xf32>
    %cst_46 = arith.constant dense<0.000000e+00> : vector<16x128xf32>
    %47 = tpu.matmul %46, %8, %cst_46 {dimension_numbers = #tpu.dot_dimension_numbers<[1], [0], [0], [1], [0, 0, 1, 1], [], []>} : vector<16x100xf32>, vector<100x128xf32>, vector<16x128xf32> -> vector<16x128xf32>
    %c5_47 = arith.constant 5 : index
    %c0_48 = arith.constant 0 : index
    %c0_49 = arith.constant 0 : index
    %48 = vector.load %arg4[%c5_47, %c0_48, %c0_49] : memref<50x128x128xf32, #tpu.memory_space<vmem>>, vector<1x128x128xf32>
    %49 = vector.shape_cast %48 : vector<1x128x128xf32> to vector<128x128xf32>
    %cst_50 = arith.constant dense<0.000000e+00> : vector<16x128xf32>
    %50 = tpu.matmul %47, %49, %cst_50 {dimension_numbers = #tpu.dot_dimension_numbers<[1], [0], [0], [1], [0, 0, 1, 1], [], []>} : vector<16x128xf32>, vector<128x128xf32>, vector<16x128xf32> -> vector<16x128xf32>
    %51 = arith.addf %44, %50 : vector<16x128xf32>
    %c6 = arith.constant 6 : index
    %c0_51 = arith.constant 0 : index
    %c0_52 = arith.constant 0 : index
    %52 = vector.load %arg5[%c6, %c0_51, %c0_52] : memref<9x16x100xf32, #tpu.memory_space<vmem>>, vector<1x16x100xf32>
    %53 = vector.shape_cast %52 : vector<1x16x100xf32> to vector<16x100xf32>
    %cst_53 = arith.constant dense<0.000000e+00> : vector<16x128xf32>
    %54 = tpu.matmul %53, %8, %cst_53 {dimension_numbers = #tpu.dot_dimension_numbers<[1], [0], [0], [1], [0, 0, 1, 1], [], []>} : vector<16x100xf32>, vector<100x128xf32>, vector<16x128xf32> -> vector<16x128xf32>
    %c6_54 = arith.constant 6 : index
    %c0_55 = arith.constant 0 : index
    %c0_56 = arith.constant 0 : index
    %55 = vector.load %arg4[%c6_54, %c0_55, %c0_56] : memref<50x128x128xf32, #tpu.memory_space<vmem>>, vector<1x128x128xf32>
    %56 = vector.shape_cast %55 : vector<1x128x128xf32> to vector<128x128xf32>
    %cst_57 = arith.constant dense<0.000000e+00> : vector<16x128xf32>
    %57 = tpu.matmul %54, %56, %cst_57 {dimension_numbers = #tpu.dot_dimension_numbers<[1], [0], [0], [1], [0, 0, 1, 1], [], []>} : vector<16x128xf32>, vector<128x128xf32>, vector<16x128xf32> -> vector<16x128xf32>
    %58 = arith.addf %51, %57 : vector<16x128xf32>
    %c7 = arith.constant 7 : index
    %c0_58 = arith.constant 0 : index
    %c0_59 = arith.constant 0 : index
    %59 = vector.load %arg5[%c7, %c0_58, %c0_59] : memref<9x16x100xf32, #tpu.memory_space<vmem>>, vector<1x16x100xf32>
    %60 = vector.shape_cast %59 : vector<1x16x100xf32> to vector<16x100xf32>
    %cst_60 = arith.constant dense<0.000000e+00> : vector<16x128xf32>
    %61 = tpu.matmul %60, %8, %cst_60 {dimension_numbers = #tpu.dot_dimension_numbers<[1], [0], [0], [1], [0, 0, 1, 1], [], []>} : vector<16x100xf32>, vector<100x128xf32>, vector<16x128xf32> -> vector<16x128xf32>
    %c7_61 = arith.constant 7 : index
    %c0_62 = arith.constant 0 : index
    %c0_63 = arith.constant 0 : index
    %62 = vector.load %arg4[%c7_61, %c0_62, %c0_63] : memref<50x128x128xf32, #tpu.memory_space<vmem>>, vector<1x128x128xf32>
    %63 = vector.shape_cast %62 : vector<1x128x128xf32> to vector<128x128xf32>
    %cst_64 = arith.constant dense<0.000000e+00> : vector<16x128xf32>
    %64 = tpu.matmul %61, %63, %cst_64 {dimension_numbers = #tpu.dot_dimension_numbers<[1], [0], [0], [1], [0, 0, 1, 1], [], []>} : vector<16x128xf32>, vector<128x128xf32>, vector<16x128xf32> -> vector<16x128xf32>
    %65 = arith.addf %58, %64 : vector<16x128xf32>
    %c8 = arith.constant 8 : index
    %c0_65 = arith.constant 0 : index
    %c0_66 = arith.constant 0 : index
    %66 = vector.load %arg5[%c8, %c0_65, %c0_66] : memref<9x16x100xf32, #tpu.memory_space<vmem>>, vector<1x16x100xf32>
    %67 = vector.shape_cast %66 : vector<1x16x100xf32> to vector<16x100xf32>
    %cst_67 = arith.constant dense<0.000000e+00> : vector<16x128xf32>
    %68 = tpu.matmul %67, %8, %cst_67 {dimension_numbers = #tpu.dot_dimension_numbers<[1], [0], [0], [1], [0, 0, 1, 1], [], []>} : vector<16x100xf32>, vector<100x128xf32>, vector<16x128xf32> -> vector<16x128xf32>
    %c8_68 = arith.constant 8 : index
    %c0_69 = arith.constant 0 : index
    %c0_70 = arith.constant 0 : index
    %69 = vector.load %arg4[%c8_68, %c0_69, %c0_70] : memref<50x128x128xf32, #tpu.memory_space<vmem>>, vector<1x128x128xf32>
    %70 = vector.shape_cast %69 : vector<1x128x128xf32> to vector<128x128xf32>
    %cst_71 = arith.constant dense<0.000000e+00> : vector<16x128xf32>
    %71 = tpu.matmul %68, %70, %cst_71 {dimension_numbers = #tpu.dot_dimension_numbers<[1], [0], [0], [1], [0, 0, 1, 1], [], []>} : vector<16x128xf32>, vector<128x128xf32>, vector<16x128xf32> -> vector<16x128xf32>
    %72 = arith.addf %65, %71 : vector<16x128xf32>
    %c1_72 = arith.constant 1 : index
    %c0_73 = arith.constant 0 : index
    %73 = vector.load %arg3[%c1_72, %c0_73] : memref<8x128xf32, #tpu.memory_space<vmem>>, vector<1x128xf32>
    %74 = vector.broadcast %73 : vector<1x128xf32> to vector<16x128xf32>
    %75 = arith.addf %72, %74 : vector<16x128xf32>
    %cst_74 = arith.constant 0.000000e+00 : f32
    %76 = vector.broadcast %cst_74 : f32 to vector<16x128xf32>
    %77 = arith.maximumf %75, %76 : vector<16x128xf32>
    %cst_75 = arith.constant 0.000000e+00 : f32
    %78 = vector.broadcast %cst_75 : f32 to vector<8x128xf32>
    %c0_76 = arith.constant 0 : index
    %c0_77 = arith.constant 0 : index
    %c0_78 = arith.constant 0 : index
    %79 = vector.load %arg6[%c0_76, %c0_77, %c0_78] : memref<9x8x16xf32, #tpu.memory_space<vmem>>, vector<1x8x16xf32>
    %80 = vector.shape_cast %79 : vector<1x8x16xf32> to vector<8x16xf32>
    %cst_79 = arith.constant dense<0.000000e+00> : vector<8x128xf32>
    %81 = tpu.matmul %80, %77, %cst_79 {dimension_numbers = #tpu.dot_dimension_numbers<[1], [0], [0], [1], [0, 0, 1, 1], [], []>} : vector<8x16xf32>, vector<16x128xf32>, vector<8x128xf32> -> vector<8x128xf32>
    %c9 = arith.constant 9 : index
    %c0_80 = arith.constant 0 : index
    %c0_81 = arith.constant 0 : index
    %82 = vector.load %arg4[%c9, %c0_80, %c0_81] : memref<50x128x128xf32, #tpu.memory_space<vmem>>, vector<1x128x128xf32>
    %83 = vector.shape_cast %82 : vector<1x128x128xf32> to vector<128x128xf32>
    %cst_82 = arith.constant dense<0.000000e+00> : vector<8x128xf32>
    %84 = tpu.matmul %81, %83, %cst_82 {dimension_numbers = #tpu.dot_dimension_numbers<[1], [0], [0], [1], [0, 0, 1, 1], [], []>} : vector<8x128xf32>, vector<128x128xf32>, vector<8x128xf32> -> vector<8x128xf32>
    %85 = arith.addf %78, %84 : vector<8x128xf32>
    %c1_83 = arith.constant 1 : index
    %c0_84 = arith.constant 0 : index
    %c0_85 = arith.constant 0 : index
    %86 = vector.load %arg6[%c1_83, %c0_84, %c0_85] : memref<9x8x16xf32, #tpu.memory_space<vmem>>, vector<1x8x16xf32>
    %87 = vector.shape_cast %86 : vector<1x8x16xf32> to vector<8x16xf32>
    %cst_86 = arith.constant dense<0.000000e+00> : vector<8x128xf32>
    %88 = tpu.matmul %87, %77, %cst_86 {dimension_numbers = #tpu.dot_dimension_numbers<[1], [0], [0], [1], [0, 0, 1, 1], [], []>} : vector<8x16xf32>, vector<16x128xf32>, vector<8x128xf32> -> vector<8x128xf32>
    %c10 = arith.constant 10 : index
    %c0_87 = arith.constant 0 : index
    %c0_88 = arith.constant 0 : index
    %89 = vector.load %arg4[%c10, %c0_87, %c0_88] : memref<50x128x128xf32, #tpu.memory_space<vmem>>, vector<1x128x128xf32>
    %90 = vector.shape_cast %89 : vector<1x128x128xf32> to vector<128x128xf32>
    %cst_89 = arith.constant dense<0.000000e+00> : vector<8x128xf32>
    %91 = tpu.matmul %88, %90, %cst_89 {dimension_numbers = #tpu.dot_dimension_numbers<[1], [0], [0], [1], [0, 0, 1, 1], [], []>} : vector<8x128xf32>, vector<128x128xf32>, vector<8x128xf32> -> vector<8x128xf32>
    %92 = arith.addf %85, %91 : vector<8x128xf32>
    %c2_90 = arith.constant 2 : index
    %c0_91 = arith.constant 0 : index
    %c0_92 = arith.constant 0 : index
    %93 = vector.load %arg6[%c2_90, %c0_91, %c0_92] : memref<9x8x16xf32, #tpu.memory_space<vmem>>, vector<1x8x16xf32>
    %94 = vector.shape_cast %93 : vector<1x8x16xf32> to vector<8x16xf32>
    %cst_93 = arith.constant dense<0.000000e+00> : vector<8x128xf32>
    %95 = tpu.matmul %94, %77, %cst_93 {dimension_numbers = #tpu.dot_dimension_numbers<[1], [0], [0], [1], [0, 0, 1, 1], [], []>} : vector<8x16xf32>, vector<16x128xf32>, vector<8x128xf32> -> vector<8x128xf32>
    %c11 = arith.constant 11 : index
    %c0_94 = arith.constant 0 : index
    %c0_95 = arith.constant 0 : index
    %96 = vector.load %arg4[%c11, %c0_94, %c0_95] : memref<50x128x128xf32, #tpu.memory_space<vmem>>, vector<1x128x128xf32>
    %97 = vector.shape_cast %96 : vector<1x128x128xf32> to vector<128x128xf32>
    %cst_96 = arith.constant dense<0.000000e+00> : vector<8x128xf32>
    %98 = tpu.matmul %95, %97, %cst_96 {dimension_numbers = #tpu.dot_dimension_numbers<[1], [0], [0], [1], [0, 0, 1, 1], [], []>} : vector<8x128xf32>, vector<128x128xf32>, vector<8x128xf32> -> vector<8x128xf32>
    %99 = arith.addf %92, %98 : vector<8x128xf32>
    %c3_97 = arith.constant 3 : index
    %c0_98 = arith.constant 0 : index
    %c0_99 = arith.constant 0 : index
    %100 = vector.load %arg6[%c3_97, %c0_98, %c0_99] : memref<9x8x16xf32, #tpu.memory_space<vmem>>, vector<1x8x16xf32>
    %101 = vector.shape_cast %100 : vector<1x8x16xf32> to vector<8x16xf32>
    %cst_100 = arith.constant dense<0.000000e+00> : vector<8x128xf32>
    %102 = tpu.matmul %101, %77, %cst_100 {dimension_numbers = #tpu.dot_dimension_numbers<[1], [0], [0], [1], [0, 0, 1, 1], [], []>} : vector<8x16xf32>, vector<16x128xf32>, vector<8x128xf32> -> vector<8x128xf32>
    %c12 = arith.constant 12 : index
    %c0_101 = arith.constant 0 : index
    %c0_102 = arith.constant 0 : index
    %103 = vector.load %arg4[%c12, %c0_101, %c0_102] : memref<50x128x128xf32, #tpu.memory_space<vmem>>, vector<1x128x128xf32>
    %104 = vector.shape_cast %103 : vector<1x128x128xf32> to vector<128x128xf32>
    %cst_103 = arith.constant dense<0.000000e+00> : vector<8x128xf32>
    %105 = tpu.matmul %102, %104, %cst_103 {dimension_numbers = #tpu.dot_dimension_numbers<[1], [0], [0], [1], [0, 0, 1, 1], [], []>} : vector<8x128xf32>, vector<128x128xf32>, vector<8x128xf32> -> vector<8x128xf32>
    %106 = arith.addf %99, %105 : vector<8x128xf32>
    %c4_104 = arith.constant 4 : index
    %c0_105 = arith.constant 0 : index
    %c0_106 = arith.constant 0 : index
    %107 = vector.load %arg6[%c4_104, %c0_105, %c0_106] : memref<9x8x16xf32, #tpu.memory_space<vmem>>, vector<1x8x16xf32>
    %108 = vector.shape_cast %107 : vector<1x8x16xf32> to vector<8x16xf32>
    %cst_107 = arith.constant dense<0.000000e+00> : vector<8x128xf32>
    %109 = tpu.matmul %108, %77, %cst_107 {dimension_numbers = #tpu.dot_dimension_numbers<[1], [0], [0], [1], [0, 0, 1, 1], [], []>} : vector<8x16xf32>, vector<16x128xf32>, vector<8x128xf32> -> vector<8x128xf32>
    %c13 = arith.constant 13 : index
    %c0_108 = arith.constant 0 : index
    %c0_109 = arith.constant 0 : index
    %110 = vector.load %arg4[%c13, %c0_108, %c0_109] : memref<50x128x128xf32, #tpu.memory_space<vmem>>, vector<1x128x128xf32>
    %111 = vector.shape_cast %110 : vector<1x128x128xf32> to vector<128x128xf32>
    %cst_110 = arith.constant dense<0.000000e+00> : vector<8x128xf32>
    %112 = tpu.matmul %109, %111, %cst_110 {dimension_numbers = #tpu.dot_dimension_numbers<[1], [0], [0], [1], [0, 0, 1, 1], [], []>} : vector<8x128xf32>, vector<128x128xf32>, vector<8x128xf32> -> vector<8x128xf32>
    %113 = arith.addf %106, %112 : vector<8x128xf32>
    %c5_111 = arith.constant 5 : index
    %c0_112 = arith.constant 0 : index
    %c0_113 = arith.constant 0 : index
    %114 = vector.load %arg6[%c5_111, %c0_112, %c0_113] : memref<9x8x16xf32, #tpu.memory_space<vmem>>, vector<1x8x16xf32>
    %115 = vector.shape_cast %114 : vector<1x8x16xf32> to vector<8x16xf32>
    %cst_114 = arith.constant dense<0.000000e+00> : vector<8x128xf32>
    %116 = tpu.matmul %115, %77, %cst_114 {dimension_numbers = #tpu.dot_dimension_numbers<[1], [0], [0], [1], [0, 0, 1, 1], [], []>} : vector<8x16xf32>, vector<16x128xf32>, vector<8x128xf32> -> vector<8x128xf32>
    %c14 = arith.constant 14 : index
    %c0_115 = arith.constant 0 : index
    %c0_116 = arith.constant 0 : index
    %117 = vector.load %arg4[%c14, %c0_115, %c0_116] : memref<50x128x128xf32, #tpu.memory_space<vmem>>, vector<1x128x128xf32>
    %118 = vector.shape_cast %117 : vector<1x128x128xf32> to vector<128x128xf32>
    %cst_117 = arith.constant dense<0.000000e+00> : vector<8x128xf32>
    %119 = tpu.matmul %116, %118, %cst_117 {dimension_numbers = #tpu.dot_dimension_numbers<[1], [0], [0], [1], [0, 0, 1, 1], [], []>} : vector<8x128xf32>, vector<128x128xf32>, vector<8x128xf32> -> vector<8x128xf32>
    %120 = arith.addf %113, %119 : vector<8x128xf32>
    %c6_118 = arith.constant 6 : index
    %c0_119 = arith.constant 0 : index
    %c0_120 = arith.constant 0 : index
    %121 = vector.load %arg6[%c6_118, %c0_119, %c0_120] : memref<9x8x16xf32, #tpu.memory_space<vmem>>, vector<1x8x16xf32>
    %122 = vector.shape_cast %121 : vector<1x8x16xf32> to vector<8x16xf32>
    %cst_121 = arith.constant dense<0.000000e+00> : vector<8x128xf32>
    %123 = tpu.matmul %122, %77, %cst_121 {dimension_numbers = #tpu.dot_dimension_numbers<[1], [0], [0], [1], [0, 0, 1, 1], [], []>} : vector<8x16xf32>, vector<16x128xf32>, vector<8x128xf32> -> vector<8x128xf32>
    %c15 = arith.constant 15 : index
    %c0_122 = arith.constant 0 : index
    %c0_123 = arith.constant 0 : index
    %124 = vector.load %arg4[%c15, %c0_122, %c0_123] : memref<50x128x128xf32, #tpu.memory_space<vmem>>, vector<1x128x128xf32>
    %125 = vector.shape_cast %124 : vector<1x128x128xf32> to vector<128x128xf32>
    %cst_124 = arith.constant dense<0.000000e+00> : vector<8x128xf32>
    %126 = tpu.matmul %123, %125, %cst_124 {dimension_numbers = #tpu.dot_dimension_numbers<[1], [0], [0], [1], [0, 0, 1, 1], [], []>} : vector<8x128xf32>, vector<128x128xf32>, vector<8x128xf32> -> vector<8x128xf32>
    %127 = arith.addf %120, %126 : vector<8x128xf32>
    %c7_125 = arith.constant 7 : index
    %c0_126 = arith.constant 0 : index
    %c0_127 = arith.constant 0 : index
    %128 = vector.load %arg6[%c7_125, %c0_126, %c0_127] : memref<9x8x16xf32, #tpu.memory_space<vmem>>, vector<1x8x16xf32>
    %129 = vector.shape_cast %128 : vector<1x8x16xf32> to vector<8x16xf32>
    %cst_128 = arith.constant dense<0.000000e+00> : vector<8x128xf32>
    %130 = tpu.matmul %129, %77, %cst_128 {dimension_numbers = #tpu.dot_dimension_numbers<[1], [0], [0], [1], [0, 0, 1, 1], [], []>} : vector<8x16xf32>, vector<16x128xf32>, vector<8x128xf32> -> vector<8x128xf32>
    %c16 = arith.constant 16 : index
    %c0_129 = arith.constant 0 : index
    %c0_130 = arith.constant 0 : index
    %131 = vector.load %arg4[%c16, %c0_129, %c0_130] : memref<50x128x128xf32, #tpu.memory_space<vmem>>, vector<1x128x128xf32>
    %132 = vector.shape_cast %131 : vector<1x128x128xf32> to vector<128x128xf32>
    %cst_131 = arith.constant dense<0.000000e+00> : vector<8x128xf32>
    %133 = tpu.matmul %130, %132, %cst_131 {dimension_numbers = #tpu.dot_dimension_numbers<[1], [0], [0], [1], [0, 0, 1, 1], [], []>} : vector<8x128xf32>, vector<128x128xf32>, vector<8x128xf32> -> vector<8x128xf32>
    %134 = arith.addf %127, %133 : vector<8x128xf32>
    %c8_132 = arith.constant 8 : index
    %c0_133 = arith.constant 0 : index
    %c0_134 = arith.constant 0 : index
    %135 = vector.load %arg6[%c8_132, %c0_133, %c0_134] : memref<9x8x16xf32, #tpu.memory_space<vmem>>, vector<1x8x16xf32>
    %136 = vector.shape_cast %135 : vector<1x8x16xf32> to vector<8x16xf32>
    %cst_135 = arith.constant dense<0.000000e+00> : vector<8x128xf32>
    %137 = tpu.matmul %136, %77, %cst_135 {dimension_numbers = #tpu.dot_dimension_numbers<[1], [0], [0], [1], [0, 0, 1, 1], [], []>} : vector<8x16xf32>, vector<16x128xf32>, vector<8x128xf32> -> vector<8x128xf32>
    %c17 = arith.constant 17 : index
    %c0_136 = arith.constant 0 : index
    %c0_137 = arith.constant 0 : index
    %138 = vector.load %arg4[%c17, %c0_136, %c0_137] : memref<50x128x128xf32, #tpu.memory_space<vmem>>, vector<1x128x128xf32>
    %139 = vector.shape_cast %138 : vector<1x128x128xf32> to vector<128x128xf32>
    %cst_138 = arith.constant dense<0.000000e+00> : vector<8x128xf32>
    %140 = tpu.matmul %137, %139, %cst_138 {dimension_numbers = #tpu.dot_dimension_numbers<[1], [0], [0], [1], [0, 0, 1, 1], [], []>} : vector<8x128xf32>, vector<128x128xf32>, vector<8x128xf32> -> vector<8x128xf32>
    %141 = arith.addf %134, %140 : vector<8x128xf32>
    %c2_139 = arith.constant 2 : index
    %c0_140 = arith.constant 0 : index
    %142 = vector.load %arg3[%c2_139, %c0_140] : memref<8x128xf32, #tpu.memory_space<vmem>>, vector<1x128xf32>
    %143 = vector.broadcast %142 : vector<1x128xf32> to vector<8x128xf32>
    %144 = arith.addf %141, %143 : vector<8x128xf32>
    %cst_141 = arith.constant 0.000000e+00 : f32
    %145 = vector.broadcast %cst_141 : f32 to vector<8x128xf32>
    %146 = arith.maximumf %144, %145 : vector<8x128xf32>
    %cst_142 = arith.constant 0.000000e+00 : f32
    %147 = vector.broadcast %cst_142 : f32 to vector<8x128xf32>
    %c0_143 = arith.constant 0 : index
    %c0_144 = arith.constant 0 : index
    %c0_145 = arith.constant 0 : index
    %148 = vector.load %arg7[%c0_143, %c0_144, %c0_145] : memref<4x8x8xf32, #tpu.memory_space<vmem>>, vector<1x8x8xf32>
    %149 = vector.shape_cast %148 : vector<1x8x8xf32> to vector<8x8xf32>
    %cst_146 = arith.constant dense<0.000000e+00> : vector<8x128xf32>
    %150 = tpu.matmul %149, %146, %cst_146 {dimension_numbers = #tpu.dot_dimension_numbers<[1], [0], [0], [1], [0, 0, 1, 1], [], []>} : vector<8x8xf32>, vector<8x128xf32>, vector<8x128xf32> -> vector<8x128xf32>
    %c18 = arith.constant 18 : index
    %c0_147 = arith.constant 0 : index
    %c0_148 = arith.constant 0 : index
    %151 = vector.load %arg4[%c18, %c0_147, %c0_148] : memref<50x128x128xf32, #tpu.memory_space<vmem>>, vector<1x128x128xf32>
    %152 = vector.shape_cast %151 : vector<1x128x128xf32> to vector<128x128xf32>
    %cst_149 = arith.constant dense<0.000000e+00> : vector<8x128xf32>
    %153 = tpu.matmul %150, %152, %cst_149 {dimension_numbers = #tpu.dot_dimension_numbers<[1], [0], [0], [1], [0, 0, 1, 1], [], []>} : vector<8x128xf32>, vector<128x128xf32>, vector<8x128xf32> -> vector<8x128xf32>
    %154 = arith.addf %147, %153 : vector<8x128xf32>
    %c19 = arith.constant 19 : index
    %c0_150 = arith.constant 0 : index
    %c0_151 = arith.constant 0 : index
    %155 = vector.load %arg4[%c19, %c0_150, %c0_151] : memref<50x128x128xf32, #tpu.memory_space<vmem>>, vector<1x128x128xf32>
    %156 = vector.shape_cast %155 : vector<1x128x128xf32> to vector<128x128xf32>
    %cst_152 = arith.constant dense<0.000000e+00> : vector<8x128xf32>
    %157 = tpu.matmul %150, %156, %cst_152 {dimension_numbers = #tpu.dot_dimension_numbers<[1], [0], [0], [1], [0, 0, 1, 1], [], []>} : vector<8x128xf32>, vector<128x128xf32>, vector<8x128xf32> -> vector<8x128xf32>
    %158 = arith.addf %154, %157 : vector<8x128xf32>
    %c1_153 = arith.constant 1 : index
    %c0_154 = arith.constant 0 : index
    %c0_155 = arith.constant 0 : index
    %159 = vector.load %arg7[%c1_153, %c0_154, %c0_155] : memref<4x8x8xf32, #tpu.memory_space<vmem>>, vector<1x8x8xf32>
    %160 = vector.shape_cast %159 : vector<1x8x8xf32> to vector<8x8xf32>
    %cst_156 = arith.constant dense<0.000000e+00> : vector<8x128xf32>
    %161 = tpu.matmul %160, %146, %cst_156 {dimension_numbers = #tpu.dot_dimension_numbers<[1], [0], [0], [1], [0, 0, 1, 1], [], []>} : vector<8x8xf32>, vector<8x128xf32>, vector<8x128xf32> -> vector<8x128xf32>
    %c20 = arith.constant 20 : index
    %c0_157 = arith.constant 0 : index
    %c0_158 = arith.constant 0 : index
    %162 = vector.load %arg4[%c20, %c0_157, %c0_158] : memref<50x128x128xf32, #tpu.memory_space<vmem>>, vector<1x128x128xf32>
    %163 = vector.shape_cast %162 : vector<1x128x128xf32> to vector<128x128xf32>
    %cst_159 = arith.constant dense<0.000000e+00> : vector<8x128xf32>
    %164 = tpu.matmul %161, %163, %cst_159 {dimension_numbers = #tpu.dot_dimension_numbers<[1], [0], [0], [1], [0, 0, 1, 1], [], []>} : vector<8x128xf32>, vector<128x128xf32>, vector<8x128xf32> -> vector<8x128xf32>
    %165 = arith.addf %158, %164 : vector<8x128xf32>
    %c21 = arith.constant 21 : index
    %c0_160 = arith.constant 0 : index
    %c0_161 = arith.constant 0 : index
    %166 = vector.load %arg4[%c21, %c0_160, %c0_161] : memref<50x128x128xf32, #tpu.memory_space<vmem>>, vector<1x128x128xf32>
    %167 = vector.shape_cast %166 : vector<1x128x128xf32> to vector<128x128xf32>
    %cst_162 = arith.constant dense<0.000000e+00> : vector<8x128xf32>
    %168 = tpu.matmul %161, %167, %cst_162 {dimension_numbers = #tpu.dot_dimension_numbers<[1], [0], [0], [1], [0, 0, 1, 1], [], []>} : vector<8x128xf32>, vector<128x128xf32>, vector<8x128xf32> -> vector<8x128xf32>
    %169 = arith.addf %165, %168 : vector<8x128xf32>
    %c2_163 = arith.constant 2 : index
    %c0_164 = arith.constant 0 : index
    %c0_165 = arith.constant 0 : index
    %170 = vector.load %arg7[%c2_163, %c0_164, %c0_165] : memref<4x8x8xf32, #tpu.memory_space<vmem>>, vector<1x8x8xf32>
    %171 = vector.shape_cast %170 : vector<1x8x8xf32> to vector<8x8xf32>
    %cst_166 = arith.constant dense<0.000000e+00> : vector<8x128xf32>
    %172 = tpu.matmul %171, %146, %cst_166 {dimension_numbers = #tpu.dot_dimension_numbers<[1], [0], [0], [1], [0, 0, 1, 1], [], []>} : vector<8x8xf32>, vector<8x128xf32>, vector<8x128xf32> -> vector<8x128xf32>
    %c22 = arith.constant 22 : index
    %c0_167 = arith.constant 0 : index
    %c0_168 = arith.constant 0 : index
    %173 = vector.load %arg4[%c22, %c0_167, %c0_168] : memref<50x128x128xf32, #tpu.memory_space<vmem>>, vector<1x128x128xf32>
    %174 = vector.shape_cast %173 : vector<1x128x128xf32> to vector<128x128xf32>
    %cst_169 = arith.constant dense<0.000000e+00> : vector<8x128xf32>
    %175 = tpu.matmul %172, %174, %cst_169 {dimension_numbers = #tpu.dot_dimension_numbers<[1], [0], [0], [1], [0, 0, 1, 1], [], []>} : vector<8x128xf32>, vector<128x128xf32>, vector<8x128xf32> -> vector<8x128xf32>
    %176 = arith.addf %169, %175 : vector<8x128xf32>
    %c23 = arith.constant 23 : index
    %c0_170 = arith.constant 0 : index
    %c0_171 = arith.constant 0 : index
    %177 = vector.load %arg4[%c23, %c0_170, %c0_171] : memref<50x128x128xf32, #tpu.memory_space<vmem>>, vector<1x128x128xf32>
    %178 = vector.shape_cast %177 : vector<1x128x128xf32> to vector<128x128xf32>
    %cst_172 = arith.constant dense<0.000000e+00> : vector<8x128xf32>
    %179 = tpu.matmul %172, %178, %cst_172 {dimension_numbers = #tpu.dot_dimension_numbers<[1], [0], [0], [1], [0, 0, 1, 1], [], []>} : vector<8x128xf32>, vector<128x128xf32>, vector<8x128xf32> -> vector<8x128xf32>
    %180 = arith.addf %176, %179 : vector<8x128xf32>
    %c3_173 = arith.constant 3 : index
    %c0_174 = arith.constant 0 : index
    %c0_175 = arith.constant 0 : index
    %181 = vector.load %arg7[%c3_173, %c0_174, %c0_175] : memref<4x8x8xf32, #tpu.memory_space<vmem>>, vector<1x8x8xf32>
    %182 = vector.shape_cast %181 : vector<1x8x8xf32> to vector<8x8xf32>
    %cst_176 = arith.constant dense<0.000000e+00> : vector<8x128xf32>
    %183 = tpu.matmul %182, %146, %cst_176 {dimension_numbers = #tpu.dot_dimension_numbers<[1], [0], [0], [1], [0, 0, 1, 1], [], []>} : vector<8x8xf32>, vector<8x128xf32>, vector<8x128xf32> -> vector<8x128xf32>
    %c24 = arith.constant 24 : index
    %c0_177 = arith.constant 0 : index
    %c0_178 = arith.constant 0 : index
    %184 = vector.load %arg4[%c24, %c0_177, %c0_178] : memref<50x128x128xf32, #tpu.memory_space<vmem>>, vector<1x128x128xf32>
    %185 = vector.shape_cast %184 : vector<1x128x128xf32> to vector<128x128xf32>
    %cst_179 = arith.constant dense<0.000000e+00> : vector<8x128xf32>
    %186 = tpu.matmul %183, %185, %cst_179 {dimension_numbers = #tpu.dot_dimension_numbers<[1], [0], [0], [1], [0, 0, 1, 1], [], []>} : vector<8x128xf32>, vector<128x128xf32>, vector<8x128xf32> -> vector<8x128xf32>
    %187 = arith.addf %180, %186 : vector<8x128xf32>
    %c25 = arith.constant 25 : index
    %c0_180 = arith.constant 0 : index
    %c0_181 = arith.constant 0 : index
    %188 = vector.load %arg4[%c25, %c0_180, %c0_181] : memref<50x128x128xf32, #tpu.memory_space<vmem>>, vector<1x128x128xf32>
    %189 = vector.shape_cast %188 : vector<1x128x128xf32> to vector<128x128xf32>
    %cst_182 = arith.constant dense<0.000000e+00> : vector<8x128xf32>
    %190 = tpu.matmul %183, %189, %cst_182 {dimension_numbers = #tpu.dot_dimension_numbers<[1], [0], [0], [1], [0, 0, 1, 1], [], []>} : vector<8x128xf32>, vector<128x128xf32>, vector<8x128xf32> -> vector<8x128xf32>
    %191 = arith.addf %187, %190 : vector<8x128xf32>
    %c3_183 = arith.constant 3 : index
    %c0_184 = arith.constant 0 : index
    %192 = vector.load %arg3[%c3_183, %c0_184] : memref<8x128xf32, #tpu.memory_space<vmem>>, vector<1x128xf32>
    %193 = vector.broadcast %192 : vector<1x128xf32> to vector<8x128xf32>
    %194 = arith.addf %191, %193 : vector<8x128xf32>
    %cst_185 = arith.constant 0.000000e+00 : f32
    %195 = vector.broadcast %cst_185 : f32 to vector<8x128xf32>
    %196 = arith.maximumf %194, %195 : vector<8x128xf32>
    %cst_186 = arith.constant 0.000000e+00 : f32
    %197 = vector.broadcast %cst_186 : f32 to vector<16x128xf32>
    %c0_187 = arith.constant 0 : index
    %c0_188 = arith.constant 0 : index
    %c0_189 = arith.constant 0 : index
    %198 = vector.load %arg8[%c0_187, %c0_188, %c0_189] : memref<4x16x8xf32, #tpu.memory_space<vmem>>, vector<1x16x8xf32>
    %199 = vector.shape_cast %198 : vector<1x16x8xf32> to vector<16x8xf32>
    %cst_190 = arith.constant dense<0.000000e+00> : vector<16x128xf32>
    %200 = tpu.matmul %199, %196, %cst_190 {dimension_numbers = #tpu.dot_dimension_numbers<[1], [0], [0], [1], [0, 0, 1, 1], [], []>} : vector<16x8xf32>, vector<8x128xf32>, vector<16x128xf32> -> vector<16x128xf32>
    %c26 = arith.constant 26 : index
    %c0_191 = arith.constant 0 : index
    %c0_192 = arith.constant 0 : index
    %201 = vector.load %arg4[%c26, %c0_191, %c0_192] : memref<50x128x128xf32, #tpu.memory_space<vmem>>, vector<1x128x128xf32>
    %202 = vector.shape_cast %201 : vector<1x128x128xf32> to vector<128x128xf32>
    %cst_193 = arith.constant dense<0.000000e+00> : vector<16x128xf32>
    %203 = tpu.matmul %200, %202, %cst_193 {dimension_numbers = #tpu.dot_dimension_numbers<[1], [0], [0], [1], [0, 0, 1, 1], [], []>} : vector<16x128xf32>, vector<128x128xf32>, vector<16x128xf32> -> vector<16x128xf32>
    %204 = arith.addf %197, %203 : vector<16x128xf32>
    %c1_194 = arith.constant 1 : index
    %c0_195 = arith.constant 0 : index
    %c0_196 = arith.constant 0 : index
    %205 = vector.load %arg8[%c1_194, %c0_195, %c0_196] : memref<4x16x8xf32, #tpu.memory_space<vmem>>, vector<1x16x8xf32>
    %206 = vector.shape_cast %205 : vector<1x16x8xf32> to vector<16x8xf32>
    %cst_197 = arith.constant dense<0.000000e+00> : vector<16x128xf32>
    %207 = tpu.matmul %206, %196, %cst_197 {dimension_numbers = #tpu.dot_dimension_numbers<[1], [0], [0], [1], [0, 0, 1, 1], [], []>} : vector<16x8xf32>, vector<8x128xf32>, vector<16x128xf32> -> vector<16x128xf32>
    %c27 = arith.constant 27 : index
    %c0_198 = arith.constant 0 : index
    %c0_199 = arith.constant 0 : index
    %208 = vector.load %arg4[%c27, %c0_198, %c0_199] : memref<50x128x128xf32, #tpu.memory_space<vmem>>, vector<1x128x128xf32>
    %209 = vector.shape_cast %208 : vector<1x128x128xf32> to vector<128x128xf32>
    %cst_200 = arith.constant dense<0.000000e+00> : vector<16x128xf32>
    %210 = tpu.matmul %207, %209, %cst_200 {dimension_numbers = #tpu.dot_dimension_numbers<[1], [0], [0], [1], [0, 0, 1, 1], [], []>} : vector<16x128xf32>, vector<128x128xf32>, vector<16x128xf32> -> vector<16x128xf32>
    %211 = arith.addf %204, %210 : vector<16x128xf32>
    %c2_201 = arith.constant 2 : index
    %c0_202 = arith.constant 0 : index
    %c0_203 = arith.constant 0 : index
    %212 = vector.load %arg8[%c2_201, %c0_202, %c0_203] : memref<4x16x8xf32, #tpu.memory_space<vmem>>, vector<1x16x8xf32>
    %213 = vector.shape_cast %212 : vector<1x16x8xf32> to vector<16x8xf32>
    %cst_204 = arith.constant dense<0.000000e+00> : vector<16x128xf32>
    %214 = tpu.matmul %213, %196, %cst_204 {dimension_numbers = #tpu.dot_dimension_numbers<[1], [0], [0], [1], [0, 0, 1, 1], [], []>} : vector<16x8xf32>, vector<8x128xf32>, vector<16x128xf32> -> vector<16x128xf32>
    %c28 = arith.constant 28 : index
    %c0_205 = arith.constant 0 : index
    %c0_206 = arith.constant 0 : index
    %215 = vector.load %arg4[%c28, %c0_205, %c0_206] : memref<50x128x128xf32, #tpu.memory_space<vmem>>, vector<1x128x128xf32>
    %216 = vector.shape_cast %215 : vector<1x128x128xf32> to vector<128x128xf32>
    %cst_207 = arith.constant dense<0.000000e+00> : vector<16x128xf32>
    %217 = tpu.matmul %214, %216, %cst_207 {dimension_numbers = #tpu.dot_dimension_numbers<[1], [0], [0], [1], [0, 0, 1, 1], [], []>} : vector<16x128xf32>, vector<128x128xf32>, vector<16x128xf32> -> vector<16x128xf32>
    %218 = arith.addf %211, %217 : vector<16x128xf32>
    %c3_208 = arith.constant 3 : index
    %c0_209 = arith.constant 0 : index
    %c0_210 = arith.constant 0 : index
    %219 = vector.load %arg8[%c3_208, %c0_209, %c0_210] : memref<4x16x8xf32, #tpu.memory_space<vmem>>, vector<1x16x8xf32>
    %220 = vector.shape_cast %219 : vector<1x16x8xf32> to vector<16x8xf32>
    %cst_211 = arith.constant dense<0.000000e+00> : vector<16x128xf32>
    %221 = tpu.matmul %220, %196, %cst_211 {dimension_numbers = #tpu.dot_dimension_numbers<[1], [0], [0], [1], [0, 0, 1, 1], [], []>} : vector<16x8xf32>, vector<8x128xf32>, vector<16x128xf32> -> vector<16x128xf32>
    %c29 = arith.constant 29 : index
    %c0_212 = arith.constant 0 : index
    %c0_213 = arith.constant 0 : index
    %222 = vector.load %arg4[%c29, %c0_212, %c0_213] : memref<50x128x128xf32, #tpu.memory_space<vmem>>, vector<1x128x128xf32>
    %223 = vector.shape_cast %222 : vector<1x128x128xf32> to vector<128x128xf32>
    %cst_214 = arith.constant dense<0.000000e+00> : vector<16x128xf32>
    %224 = tpu.matmul %221, %223, %cst_214 {dimension_numbers = #tpu.dot_dimension_numbers<[1], [0], [0], [1], [0, 0, 1, 1], [], []>} : vector<16x128xf32>, vector<128x128xf32>, vector<16x128xf32> -> vector<16x128xf32>
    %225 = arith.addf %218, %224 : vector<16x128xf32>
    %cst_215 = arith.constant 0.000000e+00 : f32
    %226 = vector.broadcast %cst_215 : f32 to vector<32x128xf32>
    %c0_216 = arith.constant 0 : index
    %c0_217 = arith.constant 0 : index
    %c0_218 = arith.constant 0 : index
    %227 = vector.load %arg9[%c0_216, %c0_217, %c0_218] : memref<4x32x16xf32, #tpu.memory_space<vmem>>, vector<1x32x16xf32>
    %228 = vector.shape_cast %227 : vector<1x32x16xf32> to vector<32x16xf32>
    %cst_219 = arith.constant dense<0.000000e+00> : vector<32x128xf32>
    %229 = tpu.matmul %228, %225, %cst_219 {dimension_numbers = #tpu.dot_dimension_numbers<[1], [0], [0], [1], [0, 0, 1, 1], [], []>} : vector<32x16xf32>, vector<16x128xf32>, vector<32x128xf32> -> vector<32x128xf32>
    %c0_220 = arith.constant 0 : index
    %c0_221 = arith.constant 0 : index
    %c0_222 = arith.constant 0 : index
    %230 = vector.load %arg9[%c0_220, %c0_221, %c0_222] : memref<4x32x16xf32, #tpu.memory_space<vmem>>, vector<1x32x16xf32>
    %231 = vector.shape_cast %230 : vector<1x32x16xf32> to vector<32x16xf32>
    %cst_223 = arith.constant dense<0.000000e+00> : vector<32x128xf32>
    %232 = tpu.matmul %231, %77, %cst_223 {dimension_numbers = #tpu.dot_dimension_numbers<[1], [0], [0], [1], [0, 0, 1, 1], [], []>} : vector<32x16xf32>, vector<16x128xf32>, vector<32x128xf32> -> vector<32x128xf32>
    %c30 = arith.constant 30 : index
    %c0_224 = arith.constant 0 : index
    %c0_225 = arith.constant 0 : index
    %233 = vector.load %arg4[%c30, %c0_224, %c0_225] : memref<50x128x128xf32, #tpu.memory_space<vmem>>, vector<1x128x128xf32>
    %234 = vector.shape_cast %233 : vector<1x128x128xf32> to vector<128x128xf32>
    %cst_226 = arith.constant dense<0.000000e+00> : vector<32x128xf32>
    %235 = tpu.matmul %229, %234, %cst_226 {dimension_numbers = #tpu.dot_dimension_numbers<[1], [0], [0], [1], [0, 0, 1, 1], [], []>} : vector<32x128xf32>, vector<128x128xf32>, vector<32x128xf32> -> vector<32x128xf32>
    %236 = arith.addf %226, %235 : vector<32x128xf32>
    %c31 = arith.constant 31 : index
    %c0_227 = arith.constant 0 : index
    %c0_228 = arith.constant 0 : index
    %237 = vector.load %arg4[%c31, %c0_227, %c0_228] : memref<50x128x128xf32, #tpu.memory_space<vmem>>, vector<1x128x128xf32>
    %238 = vector.shape_cast %237 : vector<1x128x128xf32> to vector<128x128xf32>
    %cst_229 = arith.constant dense<0.000000e+00> : vector<32x128xf32>
    %239 = tpu.matmul %232, %238, %cst_229 {dimension_numbers = #tpu.dot_dimension_numbers<[1], [0], [0], [1], [0, 0, 1, 1], [], []>} : vector<32x128xf32>, vector<128x128xf32>, vector<32x128xf32> -> vector<32x128xf32>
    %240 = arith.addf %236, %239 : vector<32x128xf32>
    %c1_230 = arith.constant 1 : index
    %c0_231 = arith.constant 0 : index
    %c0_232 = arith.constant 0 : index
    %241 = vector.load %arg9[%c1_230, %c0_231, %c0_232] : memref<4x32x16xf32, #tpu.memory_space<vmem>>, vector<1x32x16xf32>
    %242 = vector.shape_cast %241 : vector<1x32x16xf32> to vector<32x16xf32>
    %cst_233 = arith.constant dense<0.000000e+00> : vector<32x128xf32>
    %243 = tpu.matmul %242, %225, %cst_233 {dimension_numbers = #tpu.dot_dimension_numbers<[1], [0], [0], [1], [0, 0, 1, 1], [], []>} : vector<32x16xf32>, vector<16x128xf32>, vector<32x128xf32> -> vector<32x128xf32>
    %c1_234 = arith.constant 1 : index
    %c0_235 = arith.constant 0 : index
    %c0_236 = arith.constant 0 : index
    %244 = vector.load %arg9[%c1_234, %c0_235, %c0_236] : memref<4x32x16xf32, #tpu.memory_space<vmem>>, vector<1x32x16xf32>
    %245 = vector.shape_cast %244 : vector<1x32x16xf32> to vector<32x16xf32>
    %cst_237 = arith.constant dense<0.000000e+00> : vector<32x128xf32>
    %246 = tpu.matmul %245, %77, %cst_237 {dimension_numbers = #tpu.dot_dimension_numbers<[1], [0], [0], [1], [0, 0, 1, 1], [], []>} : vector<32x16xf32>, vector<16x128xf32>, vector<32x128xf32> -> vector<32x128xf32>
    %c32 = arith.constant 32 : index
    %c0_238 = arith.constant 0 : index
    %c0_239 = arith.constant 0 : index
    %247 = vector.load %arg4[%c32, %c0_238, %c0_239] : memref<50x128x128xf32, #tpu.memory_space<vmem>>, vector<1x128x128xf32>
    %248 = vector.shape_cast %247 : vector<1x128x128xf32> to vector<128x128xf32>
    %cst_240 = arith.constant dense<0.000000e+00> : vector<32x128xf32>
    %249 = tpu.matmul %243, %248, %cst_240 {dimension_numbers = #tpu.dot_dimension_numbers<[1], [0], [0], [1], [0, 0, 1, 1], [], []>} : vector<32x128xf32>, vector<128x128xf32>, vector<32x128xf32> -> vector<32x128xf32>
    %250 = arith.addf %240, %249 : vector<32x128xf32>
    %c33 = arith.constant 33 : index
    %c0_241 = arith.constant 0 : index
    %c0_242 = arith.constant 0 : index
    %251 = vector.load %arg4[%c33, %c0_241, %c0_242] : memref<50x128x128xf32, #tpu.memory_space<vmem>>, vector<1x128x128xf32>
    %252 = vector.shape_cast %251 : vector<1x128x128xf32> to vector<128x128xf32>
    %cst_243 = arith.constant dense<0.000000e+00> : vector<32x128xf32>
    %253 = tpu.matmul %246, %252, %cst_243 {dimension_numbers = #tpu.dot_dimension_numbers<[1], [0], [0], [1], [0, 0, 1, 1], [], []>} : vector<32x128xf32>, vector<128x128xf32>, vector<32x128xf32> -> vector<32x128xf32>
    %254 = arith.addf %250, %253 : vector<32x128xf32>
    %c2_244 = arith.constant 2 : index
    %c0_245 = arith.constant 0 : index
    %c0_246 = arith.constant 0 : index
    %255 = vector.load %arg9[%c2_244, %c0_245, %c0_246] : memref<4x32x16xf32, #tpu.memory_space<vmem>>, vector<1x32x16xf32>
    %256 = vector.shape_cast %255 : vector<1x32x16xf32> to vector<32x16xf32>
    %cst_247 = arith.constant dense<0.000000e+00> : vector<32x128xf32>
    %257 = tpu.matmul %256, %225, %cst_247 {dimension_numbers = #tpu.dot_dimension_numbers<[1], [0], [0], [1], [0, 0, 1, 1], [], []>} : vector<32x16xf32>, vector<16x128xf32>, vector<32x128xf32> -> vector<32x128xf32>
    %c2_248 = arith.constant 2 : index
    %c0_249 = arith.constant 0 : index
    %c0_250 = arith.constant 0 : index
    %258 = vector.load %arg9[%c2_248, %c0_249, %c0_250] : memref<4x32x16xf32, #tpu.memory_space<vmem>>, vector<1x32x16xf32>
    %259 = vector.shape_cast %258 : vector<1x32x16xf32> to vector<32x16xf32>
    %cst_251 = arith.constant dense<0.000000e+00> : vector<32x128xf32>
    %260 = tpu.matmul %259, %77, %cst_251 {dimension_numbers = #tpu.dot_dimension_numbers<[1], [0], [0], [1], [0, 0, 1, 1], [], []>} : vector<32x16xf32>, vector<16x128xf32>, vector<32x128xf32> -> vector<32x128xf32>
    %c34 = arith.constant 34 : index
    %c0_252 = arith.constant 0 : index
    %c0_253 = arith.constant 0 : index
    %261 = vector.load %arg4[%c34, %c0_252, %c0_253] : memref<50x128x128xf32, #tpu.memory_space<vmem>>, vector<1x128x128xf32>
    %262 = vector.shape_cast %261 : vector<1x128x128xf32> to vector<128x128xf32>
    %cst_254 = arith.constant dense<0.000000e+00> : vector<32x128xf32>
    %263 = tpu.matmul %257, %262, %cst_254 {dimension_numbers = #tpu.dot_dimension_numbers<[1], [0], [0], [1], [0, 0, 1, 1], [], []>} : vector<32x128xf32>, vector<128x128xf32>, vector<32x128xf32> -> vector<32x128xf32>
    %264 = arith.addf %254, %263 : vector<32x128xf32>
    %c35 = arith.constant 35 : index
    %c0_255 = arith.constant 0 : index
    %c0_256 = arith.constant 0 : index
    %265 = vector.load %arg4[%c35, %c0_255, %c0_256] : memref<50x128x128xf32, #tpu.memory_space<vmem>>, vector<1x128x128xf32>
    %266 = vector.shape_cast %265 : vector<1x128x128xf32> to vector<128x128xf32>
    %cst_257 = arith.constant dense<0.000000e+00> : vector<32x128xf32>
    %267 = tpu.matmul %260, %266, %cst_257 {dimension_numbers = #tpu.dot_dimension_numbers<[1], [0], [0], [1], [0, 0, 1, 1], [], []>} : vector<32x128xf32>, vector<128x128xf32>, vector<32x128xf32> -> vector<32x128xf32>
    %268 = arith.addf %264, %267 : vector<32x128xf32>
    %c3_258 = arith.constant 3 : index
    %c0_259 = arith.constant 0 : index
    %c0_260 = arith.constant 0 : index
    %269 = vector.load %arg9[%c3_258, %c0_259, %c0_260] : memref<4x32x16xf32, #tpu.memory_space<vmem>>, vector<1x32x16xf32>
    %270 = vector.shape_cast %269 : vector<1x32x16xf32> to vector<32x16xf32>
    %cst_261 = arith.constant dense<0.000000e+00> : vector<32x128xf32>
    %271 = tpu.matmul %270, %225, %cst_261 {dimension_numbers = #tpu.dot_dimension_numbers<[1], [0], [0], [1], [0, 0, 1, 1], [], []>} : vector<32x16xf32>, vector<16x128xf32>, vector<32x128xf32> -> vector<32x128xf32>
    %c3_262 = arith.constant 3 : index
    %c0_263 = arith.constant 0 : index
    %c0_264 = arith.constant 0 : index
    %272 = vector.load %arg9[%c3_262, %c0_263, %c0_264] : memref<4x32x16xf32, #tpu.memory_space<vmem>>, vector<1x32x16xf32>
    %273 = vector.shape_cast %272 : vector<1x32x16xf32> to vector<32x16xf32>
    %cst_265 = arith.constant dense<0.000000e+00> : vector<32x128xf32>
    %274 = tpu.matmul %273, %77, %cst_265 {dimension_numbers = #tpu.dot_dimension_numbers<[1], [0], [0], [1], [0, 0, 1, 1], [], []>} : vector<32x16xf32>, vector<16x128xf32>, vector<32x128xf32> -> vector<32x128xf32>
    %c36 = arith.constant 36 : index
    %c0_266 = arith.constant 0 : index
    %c0_267 = arith.constant 0 : index
    %275 = vector.load %arg4[%c36, %c0_266, %c0_267] : memref<50x128x128xf32, #tpu.memory_space<vmem>>, vector<1x128x128xf32>
    %276 = vector.shape_cast %275 : vector<1x128x128xf32> to vector<128x128xf32>
    %cst_268 = arith.constant dense<0.000000e+00> : vector<32x128xf32>
    %277 = tpu.matmul %271, %276, %cst_268 {dimension_numbers = #tpu.dot_dimension_numbers<[1], [0], [0], [1], [0, 0, 1, 1], [], []>} : vector<32x128xf32>, vector<128x128xf32>, vector<32x128xf32> -> vector<32x128xf32>
    %278 = arith.addf %268, %277 : vector<32x128xf32>
    %c37 = arith.constant 37 : index
    %c0_269 = arith.constant 0 : index
    %c0_270 = arith.constant 0 : index
    %279 = vector.load %arg4[%c37, %c0_269, %c0_270] : memref<50x128x128xf32, #tpu.memory_space<vmem>>, vector<1x128x128xf32>
    %280 = vector.shape_cast %279 : vector<1x128x128xf32> to vector<128x128xf32>
    %cst_271 = arith.constant dense<0.000000e+00> : vector<32x128xf32>
    %281 = tpu.matmul %274, %280, %cst_271 {dimension_numbers = #tpu.dot_dimension_numbers<[1], [0], [0], [1], [0, 0, 1, 1], [], []>} : vector<32x128xf32>, vector<128x128xf32>, vector<32x128xf32> -> vector<32x128xf32>
    %282 = arith.addf %278, %281 : vector<32x128xf32>
    %c4_272 = arith.constant 4 : index
    %c0_273 = arith.constant 0 : index
    %283 = vector.load %arg3[%c4_272, %c0_273] : memref<8x128xf32, #tpu.memory_space<vmem>>, vector<1x128xf32>
    %284 = vector.broadcast %283 : vector<1x128xf32> to vector<32x128xf32>
    %285 = arith.addf %282, %284 : vector<32x128xf32>
    %cst_274 = arith.constant 0.000000e+00 : f32
    %286 = vector.broadcast %cst_274 : f32 to vector<32x128xf32>
    %287 = arith.maximumf %285, %286 : vector<32x128xf32>
    %cst_275 = arith.constant 0.000000e+00 : f32
    %288 = vector.broadcast %cst_275 : f32 to vector<100x128xf32>
    %c0_276 = arith.constant 0 : index
    %c0_277 = arith.constant 0 : index
    %c0_278 = arith.constant 0 : index
    %289 = vector.load %arg10[%c0_276, %c0_277, %c0_278] : memref<4x100x32xf32, #tpu.memory_space<vmem>>, vector<1x100x32xf32>
    %290 = vector.shape_cast %289 : vector<1x100x32xf32> to vector<100x32xf32>
    %cst_279 = arith.constant dense<0.000000e+00> : vector<100x128xf32>
    %291 = tpu.matmul %290, %287, %cst_279 {dimension_numbers = #tpu.dot_dimension_numbers<[1], [0], [0], [1], [0, 0, 1, 1], [], []>} : vector<100x32xf32>, vector<32x128xf32>, vector<100x128xf32> -> vector<100x128xf32>
    %c38 = arith.constant 38 : index
    %c0_280 = arith.constant 0 : index
    %c0_281 = arith.constant 0 : index
    %292 = vector.load %arg4[%c38, %c0_280, %c0_281] : memref<50x128x128xf32, #tpu.memory_space<vmem>>, vector<1x128x128xf32>
    %293 = vector.shape_cast %292 : vector<1x128x128xf32> to vector<128x128xf32>
    %cst_282 = arith.constant dense<0.000000e+00> : vector<100x128xf32>
    %294 = tpu.matmul %291, %293, %cst_282 {dimension_numbers = #tpu.dot_dimension_numbers<[1], [0], [0], [1], [0, 0, 1, 1], [], []>} : vector<100x128xf32>, vector<128x128xf32>, vector<100x128xf32> -> vector<100x128xf32>
    %295 = arith.addf %288, %294 : vector<100x128xf32>
    %c1_283 = arith.constant 1 : index
    %c0_284 = arith.constant 0 : index
    %c0_285 = arith.constant 0 : index
    %296 = vector.load %arg10[%c1_283, %c0_284, %c0_285] : memref<4x100x32xf32, #tpu.memory_space<vmem>>, vector<1x100x32xf32>
    %297 = vector.shape_cast %296 : vector<1x100x32xf32> to vector<100x32xf32>
    %cst_286 = arith.constant dense<0.000000e+00> : vector<100x128xf32>
    %298 = tpu.matmul %297, %287, %cst_286 {dimension_numbers = #tpu.dot_dimension_numbers<[1], [0], [0], [1], [0, 0, 1, 1], [], []>} : vector<100x32xf32>, vector<32x128xf32>, vector<100x128xf32> -> vector<100x128xf32>
    %c39 = arith.constant 39 : index
    %c0_287 = arith.constant 0 : index
    %c0_288 = arith.constant 0 : index
    %299 = vector.load %arg4[%c39, %c0_287, %c0_288] : memref<50x128x128xf32, #tpu.memory_space<vmem>>, vector<1x128x128xf32>
    %300 = vector.shape_cast %299 : vector<1x128x128xf32> to vector<128x128xf32>
    %cst_289 = arith.constant dense<0.000000e+00> : vector<100x128xf32>
    %301 = tpu.matmul %298, %300, %cst_289 {dimension_numbers = #tpu.dot_dimension_numbers<[1], [0], [0], [1], [0, 0, 1, 1], [], []>} : vector<100x128xf32>, vector<128x128xf32>, vector<100x128xf32> -> vector<100x128xf32>
    %302 = arith.addf %295, %301 : vector<100x128xf32>
    %c2_290 = arith.constant 2 : index
    %c0_291 = arith.constant 0 : index
    %c0_292 = arith.constant 0 : index
    %303 = vector.load %arg10[%c2_290, %c0_291, %c0_292] : memref<4x100x32xf32, #tpu.memory_space<vmem>>, vector<1x100x32xf32>
    %304 = vector.shape_cast %303 : vector<1x100x32xf32> to vector<100x32xf32>
    %cst_293 = arith.constant dense<0.000000e+00> : vector<100x128xf32>
    %305 = tpu.matmul %304, %287, %cst_293 {dimension_numbers = #tpu.dot_dimension_numbers<[1], [0], [0], [1], [0, 0, 1, 1], [], []>} : vector<100x32xf32>, vector<32x128xf32>, vector<100x128xf32> -> vector<100x128xf32>
    %c40 = arith.constant 40 : index
    %c0_294 = arith.constant 0 : index
    %c0_295 = arith.constant 0 : index
    %306 = vector.load %arg4[%c40, %c0_294, %c0_295] : memref<50x128x128xf32, #tpu.memory_space<vmem>>, vector<1x128x128xf32>
    %307 = vector.shape_cast %306 : vector<1x128x128xf32> to vector<128x128xf32>
    %cst_296 = arith.constant dense<0.000000e+00> : vector<100x128xf32>
    %308 = tpu.matmul %305, %307, %cst_296 {dimension_numbers = #tpu.dot_dimension_numbers<[1], [0], [0], [1], [0, 0, 1, 1], [], []>} : vector<100x128xf32>, vector<128x128xf32>, vector<100x128xf32> -> vector<100x128xf32>
    %309 = arith.addf %302, %308 : vector<100x128xf32>
    %c3_297 = arith.constant 3 : index
    %c0_298 = arith.constant 0 : index
    %c0_299 = arith.constant 0 : index
    %310 = vector.load %arg10[%c3_297, %c0_298, %c0_299] : memref<4x100x32xf32, #tpu.memory_space<vmem>>, vector<1x100x32xf32>
    %311 = vector.shape_cast %310 : vector<1x100x32xf32> to vector<100x32xf32>
    %cst_300 = arith.constant dense<0.000000e+00> : vector<100x128xf32>
    %312 = tpu.matmul %311, %287, %cst_300 {dimension_numbers = #tpu.dot_dimension_numbers<[1], [0], [0], [1], [0, 0, 1, 1], [], []>} : vector<100x32xf32>, vector<32x128xf32>, vector<100x128xf32> -> vector<100x128xf32>
    %c41 = arith.constant 41 : index
    %c0_301 = arith.constant 0 : index
    %c0_302 = arith.constant 0 : index
    %313 = vector.load %arg4[%c41, %c0_301, %c0_302] : memref<50x128x128xf32, #tpu.memory_space<vmem>>, vector<1x128x128xf32>
    %314 = vector.shape_cast %313 : vector<1x128x128xf32> to vector<128x128xf32>
    %cst_303 = arith.constant dense<0.000000e+00> : vector<100x128xf32>
    %315 = tpu.matmul %312, %314, %cst_303 {dimension_numbers = #tpu.dot_dimension_numbers<[1], [0], [0], [1], [0, 0, 1, 1], [], []>} : vector<100x128xf32>, vector<128x128xf32>, vector<100x128xf32> -> vector<100x128xf32>
    %316 = arith.addf %309, %315 : vector<100x128xf32>
    %cst_304 = arith.constant 0.000000e+00 : f32
    %317 = vector.broadcast %cst_304 : f32 to vector<104x128xf32>
    %c0_305 = arith.constant 0 : index
    %c0_306 = arith.constant 0 : index
    %c0_307 = arith.constant 0 : index
    %318 = vector.load %arg11[%c0_305, %c0_306, %c0_307] : memref<4x104x100xf32, #tpu.memory_space<vmem>>, vector<1x104x100xf32>
    %319 = vector.shape_cast %318 : vector<1x104x100xf32> to vector<104x100xf32>
    %cst_308 = arith.constant dense<0.000000e+00> : vector<104x128xf32>
    %320 = tpu.matmul %319, %316, %cst_308 {dimension_numbers = #tpu.dot_dimension_numbers<[1], [0], [0], [1], [0, 0, 1, 1], [], []>} : vector<104x100xf32>, vector<100x128xf32>, vector<104x128xf32> -> vector<104x128xf32>
    %c0_309 = arith.constant 0 : index
    %c0_310 = arith.constant 0 : index
    %c0_311 = arith.constant 0 : index
    %321 = vector.load %arg11[%c0_309, %c0_310, %c0_311] : memref<4x104x100xf32, #tpu.memory_space<vmem>>, vector<1x104x100xf32>
    %322 = vector.shape_cast %321 : vector<1x104x100xf32> to vector<104x100xf32>
    %cst_312 = arith.constant dense<0.000000e+00> : vector<104x128xf32>
    %323 = tpu.matmul %322, %8, %cst_312 {dimension_numbers = #tpu.dot_dimension_numbers<[1], [0], [0], [1], [0, 0, 1, 1], [], []>} : vector<104x100xf32>, vector<100x128xf32>, vector<104x128xf32> -> vector<104x128xf32>
    %c42 = arith.constant 42 : index
    %c0_313 = arith.constant 0 : index
    %c0_314 = arith.constant 0 : index
    %324 = vector.load %arg4[%c42, %c0_313, %c0_314] : memref<50x128x128xf32, #tpu.memory_space<vmem>>, vector<1x128x128xf32>
    %325 = vector.shape_cast %324 : vector<1x128x128xf32> to vector<128x128xf32>
    %cst_315 = arith.constant dense<0.000000e+00> : vector<104x128xf32>
    %326 = tpu.matmul %320, %325, %cst_315 {dimension_numbers = #tpu.dot_dimension_numbers<[1], [0], [0], [1], [0, 0, 1, 1], [], []>} : vector<104x128xf32>, vector<128x128xf32>, vector<104x128xf32> -> vector<104x128xf32>
    %327 = arith.addf %317, %326 : vector<104x128xf32>
    %c43 = arith.constant 43 : index
    %c0_316 = arith.constant 0 : index
    %c0_317 = arith.constant 0 : index
    %328 = vector.load %arg4[%c43, %c0_316, %c0_317] : memref<50x128x128xf32, #tpu.memory_space<vmem>>, vector<1x128x128xf32>
    %329 = vector.shape_cast %328 : vector<1x128x128xf32> to vector<128x128xf32>
    %cst_318 = arith.constant dense<0.000000e+00> : vector<104x128xf32>
    %330 = tpu.matmul %323, %329, %cst_318 {dimension_numbers = #tpu.dot_dimension_numbers<[1], [0], [0], [1], [0, 0, 1, 1], [], []>} : vector<104x128xf32>, vector<128x128xf32>, vector<104x128xf32> -> vector<104x128xf32>
    %331 = arith.addf %327, %330 : vector<104x128xf32>
    %c1_319 = arith.constant 1 : index
    %c0_320 = arith.constant 0 : index
    %c0_321 = arith.constant 0 : index
    %332 = vector.load %arg11[%c1_319, %c0_320, %c0_321] : memref<4x104x100xf32, #tpu.memory_space<vmem>>, vector<1x104x100xf32>
    %333 = vector.shape_cast %332 : vector<1x104x100xf32> to vector<104x100xf32>
    %cst_322 = arith.constant dense<0.000000e+00> : vector<104x128xf32>
    %334 = tpu.matmul %333, %316, %cst_322 {dimension_numbers = #tpu.dot_dimension_numbers<[1], [0], [0], [1], [0, 0, 1, 1], [], []>} : vector<104x100xf32>, vector<100x128xf32>, vector<104x128xf32> -> vector<104x128xf32>
    %c1_323 = arith.constant 1 : index
    %c0_324 = arith.constant 0 : index
    %c0_325 = arith.constant 0 : index
    %335 = vector.load %arg11[%c1_323, %c0_324, %c0_325] : memref<4x104x100xf32, #tpu.memory_space<vmem>>, vector<1x104x100xf32>
    %336 = vector.shape_cast %335 : vector<1x104x100xf32> to vector<104x100xf32>
    %cst_326 = arith.constant dense<0.000000e+00> : vector<104x128xf32>
    %337 = tpu.matmul %336, %8, %cst_326 {dimension_numbers = #tpu.dot_dimension_numbers<[1], [0], [0], [1], [0, 0, 1, 1], [], []>} : vector<104x100xf32>, vector<100x128xf32>, vector<104x128xf32> -> vector<104x128xf32>
    %c44 = arith.constant 44 : index
    %c0_327 = arith.constant 0 : index
    %c0_328 = arith.constant 0 : index
    %338 = vector.load %arg4[%c44, %c0_327, %c0_328] : memref<50x128x128xf32, #tpu.memory_space<vmem>>, vector<1x128x128xf32>
    %339 = vector.shape_cast %338 : vector<1x128x128xf32> to vector<128x128xf32>
    %cst_329 = arith.constant dense<0.000000e+00> : vector<104x128xf32>
    %340 = tpu.matmul %334, %339, %cst_329 {dimension_numbers = #tpu.dot_dimension_numbers<[1], [0], [0], [1], [0, 0, 1, 1], [], []>} : vector<104x128xf32>, vector<128x128xf32>, vector<104x128xf32> -> vector<104x128xf32>
    %341 = arith.addf %331, %340 : vector<104x128xf32>
    %c45 = arith.constant 45 : index
    %c0_330 = arith.constant 0 : index
    %c0_331 = arith.constant 0 : index
    %342 = vector.load %arg4[%c45, %c0_330, %c0_331] : memref<50x128x128xf32, #tpu.memory_space<vmem>>, vector<1x128x128xf32>
    %343 = vector.shape_cast %342 : vector<1x128x128xf32> to vector<128x128xf32>
    %cst_332 = arith.constant dense<0.000000e+00> : vector<104x128xf32>
    %344 = tpu.matmul %337, %343, %cst_332 {dimension_numbers = #tpu.dot_dimension_numbers<[1], [0], [0], [1], [0, 0, 1, 1], [], []>} : vector<104x128xf32>, vector<128x128xf32>, vector<104x128xf32> -> vector<104x128xf32>
    %345 = arith.addf %341, %344 : vector<104x128xf32>
    %c2_333 = arith.constant 2 : index
    %c0_334 = arith.constant 0 : index
    %c0_335 = arith.constant 0 : index
    %346 = vector.load %arg11[%c2_333, %c0_334, %c0_335] : memref<4x104x100xf32, #tpu.memory_space<vmem>>, vector<1x104x100xf32>
    %347 = vector.shape_cast %346 : vector<1x104x100xf32> to vector<104x100xf32>
    %cst_336 = arith.constant dense<0.000000e+00> : vector<104x128xf32>
    %348 = tpu.matmul %347, %316, %cst_336 {dimension_numbers = #tpu.dot_dimension_numbers<[1], [0], [0], [1], [0, 0, 1, 1], [], []>} : vector<104x100xf32>, vector<100x128xf32>, vector<104x128xf32> -> vector<104x128xf32>
    %c2_337 = arith.constant 2 : index
    %c0_338 = arith.constant 0 : index
    %c0_339 = arith.constant 0 : index
    %349 = vector.load %arg11[%c2_337, %c0_338, %c0_339] : memref<4x104x100xf32, #tpu.memory_space<vmem>>, vector<1x104x100xf32>
    %350 = vector.shape_cast %349 : vector<1x104x100xf32> to vector<104x100xf32>
    %cst_340 = arith.constant dense<0.000000e+00> : vector<104x128xf32>
    %351 = tpu.matmul %350, %8, %cst_340 {dimension_numbers = #tpu.dot_dimension_numbers<[1], [0], [0], [1], [0, 0, 1, 1], [], []>} : vector<104x100xf32>, vector<100x128xf32>, vector<104x128xf32> -> vector<104x128xf32>
    %c46 = arith.constant 46 : index
    %c0_341 = arith.constant 0 : index
    %c0_342 = arith.constant 0 : index
    %352 = vector.load %arg4[%c46, %c0_341, %c0_342] : memref<50x128x128xf32, #tpu.memory_space<vmem>>, vector<1x128x128xf32>
    %353 = vector.shape_cast %352 : vector<1x128x128xf32> to vector<128x128xf32>
    %cst_343 = arith.constant dense<0.000000e+00> : vector<104x128xf32>
    %354 = tpu.matmul %348, %353, %cst_343 {dimension_numbers = #tpu.dot_dimension_numbers<[1], [0], [0], [1], [0, 0, 1, 1], [], []>} : vector<104x128xf32>, vector<128x128xf32>, vector<104x128xf32> -> vector<104x128xf32>
    %355 = arith.addf %345, %354 : vector<104x128xf32>
    %c47 = arith.constant 47 : index
    %c0_344 = arith.constant 0 : index
    %c0_345 = arith.constant 0 : index
    %356 = vector.load %arg4[%c47, %c0_344, %c0_345] : memref<50x128x128xf32, #tpu.memory_space<vmem>>, vector<1x128x128xf32>
    %357 = vector.shape_cast %356 : vector<1x128x128xf32> to vector<128x128xf32>
    %cst_346 = arith.constant dense<0.000000e+00> : vector<104x128xf32>
    %358 = tpu.matmul %351, %357, %cst_346 {dimension_numbers = #tpu.dot_dimension_numbers<[1], [0], [0], [1], [0, 0, 1, 1], [], []>} : vector<104x128xf32>, vector<128x128xf32>, vector<104x128xf32> -> vector<104x128xf32>
    %359 = arith.addf %355, %358 : vector<104x128xf32>
    %c3_347 = arith.constant 3 : index
    %c0_348 = arith.constant 0 : index
    %c0_349 = arith.constant 0 : index
    %360 = vector.load %arg11[%c3_347, %c0_348, %c0_349] : memref<4x104x100xf32, #tpu.memory_space<vmem>>, vector<1x104x100xf32>
    %361 = vector.shape_cast %360 : vector<1x104x100xf32> to vector<104x100xf32>
    %cst_350 = arith.constant dense<0.000000e+00> : vector<104x128xf32>
    %362 = tpu.matmul %361, %316, %cst_350 {dimension_numbers = #tpu.dot_dimension_numbers<[1], [0], [0], [1], [0, 0, 1, 1], [], []>} : vector<104x100xf32>, vector<100x128xf32>, vector<104x128xf32> -> vector<104x128xf32>
    %c3_351 = arith.constant 3 : index
    %c0_352 = arith.constant 0 : index
    %c0_353 = arith.constant 0 : index
    %363 = vector.load %arg11[%c3_351, %c0_352, %c0_353] : memref<4x104x100xf32, #tpu.memory_space<vmem>>, vector<1x104x100xf32>
    %364 = vector.shape_cast %363 : vector<1x104x100xf32> to vector<104x100xf32>
    %cst_354 = arith.constant dense<0.000000e+00> : vector<104x128xf32>
    %365 = tpu.matmul %364, %8, %cst_354 {dimension_numbers = #tpu.dot_dimension_numbers<[1], [0], [0], [1], [0, 0, 1, 1], [], []>} : vector<104x100xf32>, vector<100x128xf32>, vector<104x128xf32> -> vector<104x128xf32>
    %c48 = arith.constant 48 : index
    %c0_355 = arith.constant 0 : index
    %c0_356 = arith.constant 0 : index
    %366 = vector.load %arg4[%c48, %c0_355, %c0_356] : memref<50x128x128xf32, #tpu.memory_space<vmem>>, vector<1x128x128xf32>
    %367 = vector.shape_cast %366 : vector<1x128x128xf32> to vector<128x128xf32>
    %cst_357 = arith.constant dense<0.000000e+00> : vector<104x128xf32>
    %368 = tpu.matmul %362, %367, %cst_357 {dimension_numbers = #tpu.dot_dimension_numbers<[1], [0], [0], [1], [0, 0, 1, 1], [], []>} : vector<104x128xf32>, vector<128x128xf32>, vector<104x128xf32> -> vector<104x128xf32>
    %369 = arith.addf %359, %368 : vector<104x128xf32>
    %c49 = arith.constant 49 : index
    %c0_358 = arith.constant 0 : index
    %c0_359 = arith.constant 0 : index
    %370 = vector.load %arg4[%c49, %c0_358, %c0_359] : memref<50x128x128xf32, #tpu.memory_space<vmem>>, vector<1x128x128xf32>
    %371 = vector.shape_cast %370 : vector<1x128x128xf32> to vector<128x128xf32>
    %cst_360 = arith.constant dense<0.000000e+00> : vector<104x128xf32>
    %372 = tpu.matmul %365, %371, %cst_360 {dimension_numbers = #tpu.dot_dimension_numbers<[1], [0], [0], [1], [0, 0, 1, 1], [], []>} : vector<104x128xf32>, vector<128x128xf32>, vector<104x128xf32> -> vector<104x128xf32>
    %373 = arith.addf %369, %372 : vector<104x128xf32>
    %c5_361 = arith.constant 5 : index
    %c0_362 = arith.constant 0 : index
    %374 = vector.load %arg3[%c5_361, %c0_362] : memref<8x128xf32, #tpu.memory_space<vmem>>, vector<1x128xf32>
    %375 = vector.broadcast %374 : vector<1x128xf32> to vector<104x128xf32>
    %376 = arith.addf %373, %375 : vector<104x128xf32>
    %c0_363 = arith.constant 0 : index
    %c0_364 = arith.constant 0 : index
    %c0_365 = arith.constant 0 : index
    %377 = vector.load %arg12[%c0_363, %c0_364, %c0_365] : memref<1x104x128xf32, #tpu.memory_space<vmem>>, vector<1x104x128xf32>
    %378 = vector.shape_cast %377 : vector<1x104x128xf32> to vector<104x128xf32>
    %379 = vector.shape_cast %376 : vector<104x128xf32> to vector<1x104x128xf32>
    tpu.vector_store %arg12[%c0_363, %c0_364, %c0_365], %379 {strides = array<i32>} : memref<1x104x128xf32, #tpu.memory_space<vmem>>, vector<1x104x128xf32>,
    return
  }
  func.func @transform_0(%arg0: i32) -> (i32, i32, i32) {
    %c0_i32 = arith.constant 0 : i32
    %c0_i32_0 = arith.constant 0 : i32
    %c0_i32_1 = arith.constant 0 : i32
    return %arg0, %c0_i32, %c0_i32_0 : i32, i32, i32
  }
  func.func @transform_1(%arg0: i32) -> (i32, i32) {
    %c0_i32 = arith.constant 0 : i32
    %c0_i32_0 = arith.constant 0 : i32
    %c0_i32_1 = arith.constant 0 : i32
    return %c0_i32, %c0_i32_0 : i32, i32
  }
  func.func @transform_2(%arg0: i32) -> (i32, i32) {
    %c0_i32 = arith.constant 0 : i32
    %c0_i32_0 = arith.constant 0 : i32
    %c0_i32_1 = arith.constant 0 : i32
    return %c0_i32, %c0_i32_0 : i32, i32
  }
  func.func @transform_3(%arg0: i32) -> (i32, i32, i32) {
    %c0_i32 = arith.constant 0 : i32
    %c0_i32_0 = arith.constant 0 : i32
    %c0_i32_1 = arith.constant 0 : i32
    %c0_i32_2 = arith.constant 0 : i32
    return %c0_i32, %c0_i32_0, %c0_i32_1 : i32, i32, i32
  }
  func.func @transform_4(%arg0: i32) -> (i32, i32, i32) {
    %c0_i32 = arith.constant 0 : i32
    %c0_i32_0 = arith.constant 0 : i32
    %c0_i32_1 = arith.constant 0 : i32
    %c0_i32_2 = arith.constant 0 : i32
    return %c0_i32, %c0_i32_0, %c0_i32_1 : i32, i32, i32
  }
  func.func @transform_5(%arg0: i32) -> (i32, i32, i32) {
    %c0_i32 = arith.constant 0 : i32
    %c0_i32_0 = arith.constant 0 : i32
    %c0_i32_1 = arith.constant 0 : i32
    %c0_i32_2 = arith.constant 0 : i32
    return %c0_i32, %c0_i32_0, %c0_i32_1 : i32, i32, i32
  }
  func.func @transform_6(%arg0: i32) -> (i32, i32, i32) {
    %c0_i32 = arith.constant 0 : i32
    %c0_i32_0 = arith.constant 0 : i32
    %c0_i32_1 = arith.constant 0 : i32
    %c0_i32_2 = arith.constant 0 : i32
    return %c0_i32, %c0_i32_0, %c0_i32_1 : i32, i32, i32
  }
  func.func @transform_7(%arg0: i32) -> (i32, i32, i32) {
    %c0_i32 = arith.constant 0 : i32
    %c0_i32_0 = arith.constant 0 : i32
    %c0_i32_1 = arith.constant 0 : i32
    %c0_i32_2 = arith.constant 0 : i32
    return %c0_i32, %c0_i32_0, %c0_i32_1 : i32, i32, i32
  }
  func.func @transform_8(%arg0: i32) -> (i32, i32, i32) {
    %c0_i32 = arith.constant 0 : i32
    %c0_i32_0 = arith.constant 0 : i32
    %c0_i32_1 = arith.constant 0 : i32
    %c0_i32_2 = arith.constant 0 : i32
    return %c0_i32, %c0_i32_0, %c0_i32_1 : i32, i32, i32
  }
  func.func @transform_9(%arg0: i32) -> (i32, i32, i32) {
    %c0_i32 = arith.constant 0 : i32
    %c0_i32_0 = arith.constant 0 : i32
    %c0_i32_1 = arith.constant 0 : i32
    %c0_i32_2 = arith.constant 0 : i32
    return %c0_i32, %c0_i32_0, %c0_i32_1 : i32, i32, i32
  }
  func.func @transform_10(%arg0: i32) -> (i32, i32, i32) {
    %c0_i32 = arith.constant 0 : i32
    %c0_i32_0 = arith.constant 0 : i32
    %c0_i32_1 = arith.constant 0 : i32
    %c0_i32_2 = arith.constant 0 : i32
    return %c0_i32, %c0_i32_0, %c0_i32_1 : i32, i32, i32
  }
  func.func @transform_11(%arg0: i32) -> (i32, i32, i32) {
    %c0_i32 = arith.constant 0 : i32
    %c0_i32_0 = arith.constant 0 : i32
    %c0_i32_1 = arith.constant 0 : i32
    return %arg0, %c0_i32, %c0_i32_0 : i32, i32, i32
  }
}

</mosaic_0001>

<bundles_post_ra>
// kernel: unet_forward.1
= control target key start
LH: loop header
LB: loop body
LE: loop exit
PB: predicated region body
PF: predicated region fallthrough
CT: control target
= control target key end

     0   :  { %16 = vsyncpa [#allocation3], 0  ;;  %s7568_s0 = inlined_call_operand.vmem [shape: f32[2,100,16], index: 0, kind: input, shape index: {}]   ;;  %s7569_s1 = inlined_call_operand.hbm [shape: f32[16,128], index: 1, kind: input, shape index: {}]   ;;  %s7570_s2 = inlined_call_operand.hbm [shape: f32[8,128], index: 2, kind: input, shape index: {}]   ;;  %s7571_s3 = inlined_call_operand.hbm [shape: f32[50,128,128], index: 3, kind: input, shape index: {}]   ;;  %s7572_s4 = inlined_call_operand.hbm [shape: f32[9,16,100], index: 4, kind: input, shape index: {}]   ;;  %s7573_s5 = inlined_call_operand.hbm [shape: f32[9,8,16], index: 5, kind: input, shape index: {}]   ;;  %s7574_s6 = inlined_call_operand.hbm [shape: f32[4,8,8], index: 6, kind: input, shape index: {}]   ;;  %s7575_s7 = inlined_call_operand.hbm [shape: f32[4,16,8], index: 7, kind: input, shape index: {}]   ;;  %s7576_s8 = inlined_call_operand.hbm [shape: f32[4,32,16], index: 8, kind: input, shape index: {}]   ;;  %s7577_s9 = inlined_call_operand.hbm [shape: f32[4,100,32], index: 9, kind: input, shape index: {}]   ;;  %s7578_s10 = inlined_call_operand.hbm [shape: f32[4,104,100], index: 10, kind: input, shape index: {}]   ;;  %s7579_s11 = inlined_call_operand.vmem [shape: f32[2,104,128], index: 11, kind: output, shape index: {}]  }
   0x1   :  { %17 = vsyncpa [#allocation5], 0 }
   0x2   :  { %18 = vsyncpa [#allocation8], 0 }
   0x3   :  { %19 = vsyncpa [#allocation11], 0 }
   0x4   :  { %20 = vsyncpa [#allocation14], 0 }
   0x5   :  { %21 = vsyncpa [#allocation17], 0  ;;  %s6381_s17 = smov 0  }
   0x6 LB: > { %s320_s20 = sshll.u32 %s7570_s2, 4  ;;  %s6390_s21 = sadd.s32 4294967295, %s6307_s17   ;;  %s6307_s17 = sphi %s6381_s17, %s27_s17   ;;  %s321_s20 = int_to_ptr.hbm [resolvable:$true] %s320_s20 }
   0x7   : > { %p5575_p0 = scmp.ge.s32.totalorder %s6307_s17, 1  ;;  %p294_p1 = scmp.lt.s32.totalorder %s6307_s17, 3 }
   0x8   : > { %p5931_p2 = scmp.eq.s32.totalorder %s6390_s21, 0  ;;  %s6309_s23 = smov [#allocation4]  }
   0x9   : > { %p6395_p3 = pnand %p5575_p0, %p294_p1  ;;  %s322_s24 = sshll.u32 %s6309_s23, 4  ;;  %s323_s24 = int_to_ptr.vmem [resolvable:$true] %s322_s24 }
   0xa   : > { %s345_s27 = sshll.u32 %s7572_s4, 4  ;;  %s6310_s29 = smov [#allocation7]   ;;  %s346_s27 = int_to_ptr.hbm [resolvable:$true] %s345_s27 }
   0xb   : > { %p5900_p4 = pneg %p6395_p3  ;;  %s347_s30 = sshll.u32 %s6310_s29, 4  ;;  %s348_s30 = int_to_ptr.vmem [resolvable:$true] %s347_s30 }
   0xc   : > { %s373_s14 = sshll.u32 %s7574_s6, 4  ;;  %s6311_s15 = smov 128   ;;  %s374_s14 = int_to_ptr.hbm [resolvable:$true] %s373_s14 }
   0xd   : > { %p6406_p5 = pnand %p5931_p2, %p5900_p4  ;;  %s6312_s16 = smov 8  }
   0xe   : > { %s6313_s18 = smov [#allocation10]   ;;  %s401_s26 = sshll.u32 %s7576_s8, 4  ;;  %s402_s26 = int_to_ptr.hbm [resolvable:$true] %s401_s26 }
   0xf   : > { %5906 = dma.hbm_to_vmem [thread:$0]  (!%p6406_p5), %s321_s20, 128, %s323_s24, [#allocation5]  }
  0x10   : > { %5912 = dma.hbm_to_vmem [thread:$0]  (!%p6406_p5), %s346_s27, 2304, %s348_s30, [#allocation8], %s6311_s15, %s6311_s15, %s6312_s16  }
  0x11   : > { %s375_s19 = sshll.u32 %s6313_s18, 4  ;;  %s305_s29 = sshll.u32 %s7569_s1, 4  ;;  %s376_s19 = int_to_ptr.vmem [resolvable:$true] %s375_s19  ;;  %s306_s29 = int_to_ptr.hbm [resolvable:$true] %s305_s29 }
  0x12   : > { %5918 = dma.hbm_to_vmem [thread:$0]  (!%p6406_p5), %s374_s14, 512, %s376_s19, [#allocation11], %s6311_s15, %s6311_s15, %s6312_s16  }
  0x13   : > { %s6314_s27 = smov [#allocation13]   ;;  %s6315_s12 = smov [#allocation2]  }
  0x14   : > { %s403_s30 = sshll.u32 %s6314_s27, 4  ;;  %s307_s13 = sshll.u32 %s6315_s12, 4  ;;  %s404_s30 = int_to_ptr.vmem [resolvable:$true] %s403_s30  ;;  %s308_s13 = int_to_ptr.vmem [resolvable:$true] %s307_s13 }
  0x15   : > { %5924 = dma.hbm_to_vmem [thread:$0]  (!%p6406_p5), %s402_s26, 2048, %s404_s30, [#allocation14], %s6311_s15, %s6311_s15, %s6312_s16  }
  0x16   : > { %s331_s14 = sshll.u32 %s7571_s3, 4  ;;  %s359_s20 = sshll.u32 %s7573_s5, 4  ;;  %s332_s14 = int_to_ptr.hbm [resolvable:$true] %s331_s14  ;;  %s360_s20 = int_to_ptr.hbm [resolvable:$true] %s359_s20 }
  0x17   : > { %5903 = dma.hbm_to_vmem [thread:$0]  (!%p6406_p5), %s306_s29, 256, %s308_s13, [#allocation3], %s6311_s15, %s6311_s15, %s6312_s16  }
  0x18   : > { %s6316_s24 = smov [#allocation6]   ;;  %s6317_s27 = smov [#allocation9]  }
  0x19   : > { %s333_s26 = sshll.u32 %s6316_s24, 4  ;;  %s361_s30 = sshll.u32 %s6317_s27, 4  ;;  %s334_s26 = int_to_ptr.vmem [resolvable:$true] %s333_s26  ;;  %s362_s30 = int_to_ptr.vmem [resolvable:$true] %s361_s30 }
  0x1a   : > { %5909 = dma.hbm_to_vmem [thread:$0]  (!%p6406_p5), %s332_s14, 102400, %s334_s26, [#allocation5], %s6311_s15, %s6311_s15, %s6312_s16  }
  0x1b   : > { %s387_s29 = sshll.u32 %s7575_s7, 4  ;;  %s415_s19 = sshll.u32 %s7577_s9, 4  ;;  %s388_s29 = int_to_ptr.hbm [resolvable:$true] %s387_s29  ;;  %s416_s19 = int_to_ptr.hbm [resolvable:$true] %s415_s19 }
  0x1c   : > { %5915 = dma.hbm_to_vmem [thread:$0]  (!%p6406_p5), %s360_s20, 1152, %s362_s30, [#allocation8], %s6311_s15, %s6311_s15, %s6312_s16  }
  0x1d   : > { %s6318_s14 = smov [#allocation12]   ;;  %s6319_s24 = smov [#allocation15]  }
  0x1e   : > { %s389_s25 = sshll.u32 %s6318_s14, 4  ;;  %s417_s26 = sshll.u32 %s6319_s24, 4  ;;  %s390_s25 = int_to_ptr.vmem [resolvable:$true] %s389_s25  ;;  %s418_s26 = int_to_ptr.vmem [resolvable:$true] %s417_s26 }
  0x1f   : > { %5921 = dma.hbm_to_vmem [thread:$0]  (!%p6406_p5), %s388_s29, 1024, %s390_s25, [#allocation11], %s6311_s15, %s6311_s15, %s6312_s16  }
  0x20   : > { %s429_s20 = sshll.u32 %s7578_s10, 4  ;;  %s6320_s30 = smov [#allocation16]   ;;  %s430_s20 = int_to_ptr.hbm [resolvable:$true] %s429_s20 }
  0x21   : > { %5927 = dma.hbm_to_vmem [thread:$0]  (!%p6406_p5), %s416_s19, 6656, %s418_s26, [#allocation14], %s6311_s15, %s6311_s15, %s6312_s16  }
  0x22   : > { %s431_s18 = sshll.u32 %s6320_s30, 4  ;;  %455 = sbr.rel (%p6395_p3) target bundleno = 3977 (0xf89), region = 64  ;;  %s432_s18 = int_to_ptr.vmem [resolvable:$true] %s431_s18 }
  0x23   : > { %5930 = dma.hbm_to_vmem [thread:$0]  (!%p6406_p5), %s430_s20, 6656, %s432_s18, [#allocation17], %s6311_s15, %s6311_s15, %s6312_s16  }
  0x27   : > { %6282 = dma.done.wait (%p5931_p2), [#allocation3], 256  }
  0x28   : > { %6284 = vsyncadd (%p5931_p2), [#allocation3], 4294967040 }
  0x29   : > { %6286 = dma.done.wait (%p5931_p2), [#allocation5], 102528  }
  0x2a   : > { %6288 = vsyncadd (%p5931_p2), [#allocation5], 4294864768 }
  0x2b   : > { %6290 = dma.done.wait (%p5931_p2), [#allocation8], 3456  }
  0x2c   : > { %6292 = vsyncadd (%p5931_p2), [#allocation8], 4294963840 }
  0x2d   : > { %6294 = dma.done.wait (%p5931_p2), [#allocation11], 1536  }
  0x2e   : > { %6296 = vsyncadd (%p5931_p2), [#allocation11], 4294965760 }
  0x2f   : > { %6298 = dma.done.wait (%p5931_p2), [#allocation14], 8704  }
  0x30   : > { %6300 = vsyncadd (%p5931_p2), [#allocation14], 4294958592 }
  0x31   : > { %6302 = dma.done.wait (%p5931_p2), [#allocation17], 6656  }
  0x32   : > { %6304 = vsyncadd (%p5931_p2), [#allocation17], 4294960640  ;;  %p541_p6 = scmp.lt.s32.totalorder %s6390_s21, 1  ;;  %v565_v0 = vld [vmem:[#allocation2 + $0x8] sm:$0xff]  ;;  %v564_v1 = vld [vmem:[#allocation2] sm:$0xff]  ;;  %vm568_vm0 = vcmask 130048  }
  0x33   : > { %622 = vmatpush.msra.mxu0 %v565_v0  ;;  %v1020_v20 = vld [vmem:[#allocation6 + $0x278] sm:$0xff]  ;;  %v1019_v21 = vld [vmem:[#allocation6 + $0x270] sm:$0xff]  ;;  %v1018_v23 = vld [vmem:[#allocation6 + $0x268] sm:$0xff]  ;;  %vm686_vm1 = vcmask 1043456   ;;  %vm679_vm2 = vcmask 818176   ;;  %vm1917_vm3 = vcmask 64512  }
  0x34   : > { %s7619_s21 = smov (!%p541_p6, %s6390_s21), 1  ;;  %v1017_v24 = vld [vmem:[#allocation6 + $0x260] sm:$0xff]  ;;  %v1016_v25 = vld [vmem:[#allocation6 + $0x258] sm:$0xff]  ;;  %v1015_v26 = vld [vmem:[#allocation6 + $0x250] sm:$0xff]  ;;  %vm3327_vm4 = vcmask 261120  }
  0x35   : > { %s5859_s22 = smul.u32 104, %s7619_s21  ;;  %623 = vmatpush.msra.mxu0 %v564_v1  ;;  %v1014_v28 = vld [vmem:[#allocation6 + $0x248] sm:$0xff]  ;;  %v1013_v29 = vld [vmem:[#allocation6 + $0x240] sm:$0xff]  ;;  %v1012_v30 = vld [vmem:[#allocation6 + $0x238] sm:$0xff] }
  0x36   : > { %v1011_v31 = vld [vmem:[#allocation6 + $0x230] sm:$0xff]  ;;  %v1010_v33 = vld [vmem:[#allocation6 + $0x228] sm:$0xff]  ;;  %v1009_v34 = vld [vmem:[#allocation6 + $0x220] sm:$0xff] }
  0x37   : > { %s545_s16 = scalar_lea.vmem %s7568_s0, %s5859_s22  ;;  %1021 = vmatpush.msrb.mxu0 %v1020_v20  ;;  %v1008_v35 = vld [vmem:[#allocation6 + $0x218] sm:$0xff]  ;;  %v1007_v36 = vld [vmem:[#allocation6 + $0x210] sm:$0xff]  ;;  %v1006_v38 = vld [vmem:[#allocation6 + $0x208] sm:$0xff]  ;;  %s7525_s23 = scalar_lea.vmem %s7579_s11, %s5859_s22 }
  0x38   : > { %v551_v2 = vld [vmem:[%s545_s16] sm:$0xff]  ;;  %v552_v3 = vld [vmem:[%s545_s16 + $0x8] sm:$0xff]  ;;  %v553_v4 = vld [vmem:[%s545_s16 + $0x10] sm:$0xff] }
  0x39   : > { %5600 = vmatmul.msk.f32.vlgmr.msra.gmra.mxu0 %vm568_vm0, %v551_v2  ;;  %v554_v5 = vld [vmem:[%s545_s16 + $0x18] sm:$0xff]  ;;  %v555_v6 = vld [vmem:[%s545_s16 + $0x20] sm:$0xff]  ;;  %v556_v7 = vld [vmem:[%s545_s16 + $0x28] sm:$0xff] }
  0x3a   : > { %v557_v8 = vld [vmem:[%s545_s16 + $0x30] sm:$0xff]  ;;  %v558_v9 = vld [vmem:[%s545_s16 + $0x38] sm:$0xff]  ;;  %v559_v10 = vld [vmem:[%s545_s16 + $0x40] sm:$0xff]  ;;  %1022 = vmatpush.msrb.mxu0 %v1019_v21 }
  0x3b   : > { %v560_v11 = vld [vmem:[%s545_s16 + $0x48] sm:$0xff]  ;;  %v561_v12 = vld [vmem:[%s545_s16 + $0x50] sm:$0xff]  ;;  %v562_v13 = vld [vmem:[%s545_s16 + $0x58] sm:$0xff] }
  0x3c   : > { %v563_v14 = vld [vmem:[%s545_s16 + $0x60] sm:$0xf]  ;;  %1023 = vmatpush.msrb.mxu0 %v1018_v23  ;;  %v1005_v39 = vld [vmem:[#allocation6 + $0x200] sm:$0xff]  ;;  %v5971_v43 = vld [vmem:[#allocation4] ss:$0 sm:$0xff] }
  0x3d   : > { %v727_v20 = vld [vmem:[#allocation6 + $0x70] sm:$0xff]  ;;  %v726_v23 = vld [vmem:[#allocation6 + $0x68] sm:$0xff] }
  0x3e   : > { %1024 = vmatpush.msrb.mxu0 %v1017_v24  ;;  %v899_v21 = vld [vmem:[#allocation7 + $0x30] sm:$0xff]  ;;  %v770_v24 = vld [vmem:[#allocation6 + $0xc0] sm:$0xff] }
  0x40   : > { %1025 = vmatpush.msrb.mxu0 %v1016_v25  ;;  %v725_v25 = vld [vmem:[#allocation6 + $0x60] sm:$0xff] }
  0x41   : > { %5601 = vmatmul.msk.f32.gmra.mxu0 %vm568_vm0, %v552_v3 }
  0x42   : > { %1026 = vmatpush.msrb.mxu0 %v1015_v26  ;;  %v769_v26 = vld [vmem:[#allocation6 + $0xb8] sm:$0xff] }
  0x44   : > { %1027 = vmatpush.msrb.mxu0 %v1014_v28  ;;  %v768_v28 = vld [vmem:[#allocation6 + $0xb0] sm:$0xff] }
  0x46   : > { %1028 = vmatpush.msrb.mxu0 %v1013_v29  ;;  %v723_v29 = vld [vmem:[#allocation6 + $0x50] sm:$0xff] }
  0x48   : > { %1029 = vmatpush.msrb.mxu0 %v1012_v30  ;;  %v900_v30 = vld [vmem:[#allocation7 + $0x38] sm:$0xff] }
  0x49   : > { %5602 = vmatmul.msk.f32.gmra.mxu0 %vm568_vm0, %v553_v4 }
  0x4a   : > { %1030 = vmatpush.msrb.mxu0 %v1011_v31  ;;  %v767_v31 = vld [vmem:[#allocation6 + $0xa8] sm:$0xff] }
  0x4c   : > { %1031 = vmatpush.msrb.mxu0 %v1010_v33  ;;  %v766_v33 = vld [vmem:[#allocation6 + $0xa0] sm:$0xff] }
  0x4e   : > { %1032 = vmatpush.msrb.mxu0 %v1009_v34  ;;  %v721_v34 = vld [vmem:[#allocation6 + $0x40] sm:$0xff] }
  0x50   : > { %1033 = vmatpush.msrb.mxu0 %v1008_v35  ;;  %v765_v35 = vld [vmem:[#allocation6 + $0x98] sm:$0xff] }
  0x51   : > { %5603 = vmatmul.msk.f32.gmra.mxu0 %vm568_vm0, %v554_v5 }
  0x52   : > { %1034 = vmatpush.msrb.mxu0 %v1007_v36  ;;  %v720_v36 = vld [vmem:[#allocation6 + $0x38] sm:$0xff] }
  0x54   : > { %1035 = vmatpush.msrb.mxu0 %v1006_v38  ;;  %v719_v38 = vld [vmem:[#allocation6 + $0x30] sm:$0xff] }
  0x56   : > { %1036 = vmatpush.msrb.mxu0 %v1005_v39  ;;  %v763_v39 = vld [vmem:[#allocation6 + $0x88] sm:$0xff] }
  0x59   : > { %5604 = vmatmul.msk.f32.gmra.mxu0 %vm568_vm0, %v555_v6 }
  0x61   : > { %5605 = vmatmul.msk.f32.gmra.mxu0 %vm568_vm0, %v556_v7  ;;  %v730_v7 = vld [vmem:[#allocation7 + $0x10] sm:$0xff] }
  0x69   : > { %5606 = vmatmul.msk.f32.gmra.mxu0 %vm568_vm0, %v557_v8  ;;  %v677_v8 = vld [vmem:[#allocation7] sm:$0xff] }
  0x71   : > { %5607 = vmatmul.msk.f32.gmra.mxu0 %vm568_vm0, %v558_v9  ;;  %v731_v9 = vld [vmem:[#allocation7 + $0x18] sm:$0xff] }
  0x79   : > { %5608 = vmatmul.msk.f32.gmra.mxu0 %vm568_vm0, %v559_v10  ;;  %v678_v10 = vld [vmem:[#allocation7 + $0x8] sm:$0xff] }
  0x81   : > { %5609 = vmatmul.msk.f32.gmra.mxu0 %vm568_vm0, %v560_v11  ;;  %v825_v11 = vld [vmem:[#allocation7 + $0x20] sm:$0xff] }
  0x89   : > { %5610 = vmatmul.msk.f32.gmra.mxu0 %vm568_vm0, %v561_v12  ;;  %v826_v12 = vld [vmem:[#allocation7 + $0x28] sm:$0xff] }
  0x91   : > { %5611 = vmatmul.msk.f32.gmra.mxu0 %vm568_vm0, %v562_v13  ;;  %v777_v13 = vld [vmem:[#allocation6 + $0xf8] sm:$0xff] }
  0x92   : > { %778 = vmatpush.msra.mxu3 %v777_v13  ;;  %v861_v13 = vld [vmem:[#allocation6 + $0x120] sm:$0xff] }
  0x99   : > { %5612 = vmatmul.msk.f32.gmra.mxu0 %vm568_vm0, %v563_v14  ;;  %v776_v14 = vld [vmem:[#allocation6 + $0xf0] sm:$0xff] }
  0x9a   : > { %779 = vmatpush.msra.mxu3 %v776_v14  ;;  %v860_v14 = vld [vmem:[#allocation6 + $0x118] sm:$0xff] }
  0xb6   : > { %v6530_v15 = vpop.f32.mrf.mxu0 }
  0xb7   : > { %v626_v3 = vadd.f32 %v5971_v43, %v6530_v15  ;;  %v775_v15 = vld [vmem:[#allocation6 + $0xe8] sm:$0xff] }
  0xb8   : > { %780 = vmatpush.msra.mxu3 %v775_v15  ;;  %v859_v15 = vld [vmem:[#allocation6 + $0x110] sm:$0xff] }
  0xb9   : > { %v6608_v6 = vmax.f32 %v626_v3, 0.0  ;;  %v944_v3 = vld [vmem:[#allocation6 + $0x1e8] sm:$0xff] }
  0xbe   : > { %v6532_v16 = vpop.f32.mrf.mxu0 }
  0xbf   : > { %v629_v1 = vadd.f32 %v5971_v43, %v6532_v16  ;;  %v774_v16 = vld [vmem:[#allocation6 + $0xe0] sm:$0xff] }
  0xc0   : > { %781 = vmatpush.msra.mxu3 %v774_v16  ;;  %v858_v16 = vld [vmem:[#allocation6 + $0x108] sm:$0xff] }
  0xc1   : > { %v6603_v5 = vmax.f32 %v629_v1, 0.0  ;;  %v865_v1 = vld [vmem:[#allocation6 + $0x140] sm:$0xff] }
  0xc6   : > { %v6534_v17 = vpop.f32.mrf.mxu0 }
  0xc7   : > { %v632_v63 = vadd.f32 %v5971_v43, %v6534_v17  ;;  %v773_v17 = vld [vmem:[#allocation6 + $0xd8] sm:$0xff] }
  0xc8   : > { %782 = vmatpush.msra.mxu3 %v773_v17  ;;  %v857_v17 = vld [vmem:[#allocation6 + $0x100] sm:$0xff] }
  0xc9   : > { %v6598_v4 = vmax.f32 %v632_v63, 0.0  ;;  %v945_v63 = vld [vmem:[#allocation6 + $0x1f0] sm:$0xff] }
  0xce   : > { %v6536_v18 = vpop.f32.mrf.mxu0 }
  0xcf   : > { %v635_v61 = vadd.f32 %v5971_v43, %v6536_v18  ;;  %v772_v18 = vld [vmem:[#allocation6 + $0xd0] sm:$0xff] }
  0xd0   : > { %783 = vmatpush.msra.mxu3 %v772_v18  ;;  %v940_v18 = vld [vmem:[#allocation6 + $0x1c8] sm:$0xff] }
  0xd1   : > { %v6592_v2 = vmax.f32 %v635_v61, 0.0  ;;  %v866_v61 = vld [vmem:[#allocation6 + $0x148] sm:$0xff] }
  0xd6   : > { %v6538_v19 = vpop.f32.mrf.mxu0 }
  0xd7   : > { %v638_v59 = vadd.f32 %v5971_v43, %v6538_v19  ;;  %v728_v19 = vld [vmem:[#allocation6 + $0x78] sm:$0xff] }
  0xd9   : > { %v6586_v0 = vmax.f32 %v638_v59, 0.0  ;;  %v946_v59 = vld [vmem:[#allocation6 + $0x1f8] sm:$0xff] }
  0xde   : > { %v6540_v22 = vpop.f32.mrf.mxu0 }
  0xdf   : > { %v641_v57 = vadd.f32 %v5971_v43, %v6540_v22  ;;  %v771_v22 = vld [vmem:[#allocation6 + $0xc8] sm:$0xff] }
  0xe0   : > { %784 = vmatpush.msra.mxu3 %v771_v22  ;;  %v936_v22 = vld [vmem:[#allocation6 + $0x1a8] sm:$0xff] }
  0xe1   : > { %v6580_v62 = vmax.f32 %v641_v57, 0.0  ;;  %v867_v57 = vld [vmem:[#allocation6 + $0x150] sm:$0xff] }
  0xe2   : > { %785 = vmatpush.msra.mxu3 %v770_v24  ;;  %v934_v24 = vld [vmem:[#allocation6 + $0x198] sm:$0xff] }
  0xe4   : > { %786 = vmatpush.msra.mxu3 %v769_v26  ;;  %v932_v26 = vld [vmem:[#allocation6 + $0x188] sm:$0xff] }
  0xe6   : > { %v643_v27 = vpop.f32.mrf.mxu0  ;;  %787 = vmatpush.msra.mxu3 %v768_v28  ;;  %v1094_v28 = vld [vmem:[#allocation6 + $0x2f8] sm:$0xff] }
  0xe7   : > { %v644_v55 = vadd.f32 %v5971_v43, %v643_v27  ;;  %v724_v27 = vld [vmem:[#allocation6 + $0x58] sm:$0xff] }
  0xe8   : > { %788 = vmatpush.msra.mxu3 %v767_v31  ;;  %v1092_v31 = vld [vmem:[#allocation6 + $0x2e8] sm:$0xff] }
  0xe9   : > { %v6574_v60 = vmax.f32 %v644_v55, 0.0  ;;  %v713_v55 = vld [vmem:[#allocation6] sm:$0xff] }
  0xea   : > { %789 = vmatpush.msra.mxu3 %v766_v33  ;;  %v1091_v33 = vld [vmem:[#allocation6 + $0x2e0] sm:$0xff] }
  0xec   : > { %790 = vmatpush.msra.mxu3 %v765_v35 }
  0xee   : > { %v646_v32 = vpop.f32.mrf.mxu0 }
  0xef   : > { %v647_v53 = vadd.f32 %v5971_v43, %v646_v32  ;;  %v722_v32 = vld [vmem:[#allocation6 + $0x48] sm:$0xff] }
  0xf1   : > { %v6568_v58 = vmax.f32 %v647_v53, 0.0  ;;  %v868_v53 = vld [vmem:[#allocation6 + $0x158] sm:$0xff] }
  0xf6   : > { %v649_v37 = vpop.f32.mrf.mxu0 }
  0xf7   : > { %v650_v51 = vadd.f32 %v5971_v43, %v649_v37  ;;  %v764_v37 = vld [vmem:[#allocation6 + $0x90] sm:$0xff] }
  0xf8   : > { %791 = vmatpush.msra.mxu3 %v764_v37  ;;  %v1088_v37 = vld [vmem:[#allocation6 + $0x2c8] sm:$0xff] }
  0xf9   : > { %v6562_v56 = vmax.f32 %v650_v51, 0.0  ;;  %v714_v51 = vld [vmem:[#allocation6 + $0x8] sm:$0xff] }
  0xfa   : > { %792 = vmatpush.msra.mxu3 %v763_v39  ;;  %v1087_v39 = vld [vmem:[#allocation6 + $0x2c0] sm:$0xff] }
  0xfe   : > { %v652_v40 = vpop.f32.mrf.mxu0 }
  0xff   : > { %v653_v49 = vadd.f32 %v5971_v43, %v652_v40  ;;  %v718_v40 = vld [vmem:[#allocation6 + $0x28] sm:$0xff] }
 0x101   : > { %v6557_v54 = vmax.f32 %v653_v49, 0.0  ;;  %v869_v49 = vld [vmem:[#allocation6 + $0x160] sm:$0xff] }
 0x106   : > { %v655_v41 = vpop.f32.mrf.mxu0 }
 0x107   : > { %v656_v47 = vadd.f32 %v5971_v43, %v655_v41  ;;  %v762_v41 = vld [vmem:[#allocation6 + $0x80] sm:$0xff] }
 0x108   : > { %793 = vmatpush.msra.mxu3 %v762_v41  ;;  %v1085_v41 = vld [vmem:[#allocation6 + $0x2b0] sm:$0xff] }
 0x109   : > { %v6552_v52 = vmax.f32 %v656_v47, 0.0  ;;  %v715_v47 = vld [vmem:[#allocation6 + $0x10] sm:$0xff] }
 0x10e   : > { %v658_v42 = vpop.f32.mrf.mxu0 }
 0x10f   : > { %v659_v45 = vadd.f32 %v5971_v43, %v658_v42  ;;  %v872_v42 = vld [vmem:[#allocation6 + $0x178] sm:$0xff] }
 0x110   : > { %873 = vmatpush.msrb.mxu3 %v872_v42  ;;  %v1047_v42 = vld [vmem:[#allocation7 + $0x50] sm:$0xff] }
 0x111   : > { %v6544_v50 = vmax.f32 %v659_v45, 0.0  ;;  %v716_v45 = vld [vmem:[#allocation6 + $0x18] sm:$0xff] }
 0x116   : > { %v661_v44 = vpop.f32.mrf.mxu0 }
 0x117   : > { %v662_v46 = vadd.f32 %v5971_v43, %v661_v44  ;;  %v717_v43 = vld [vmem:[#allocation6 + $0x20] sm:$0xff]  ;;  %v871_v44 = vld [vmem:[#allocation6 + $0x170] sm:$0xff] }
 0x118   : > { %874 = vmatpush.msrb.mxu3 %v871_v44  ;;  %v1083_v44 = vld [vmem:[#allocation6 + $0x2a0] sm:$0xff] }
 0x119   : > { %v6542_v48 = vmax.f32 %v662_v46, 0.0  ;;  %v870_v46 = vld [vmem:[#allocation6 + $0x168] sm:$0xff] }
 0x11a   : > { %875 = vmatpush.msrb.mxu3 %v870_v46  ;;  %v1081_v46 = vld [vmem:[#allocation6 + $0x290] sm:$0xff] }
 0x11b   : > { %5613 = vmatpush.msk.msra.mxu1 %vm686_vm1, %v6542_v48  ;;  %5616 = vmatpush.msk.msra.mxu2 %vm686_vm1, %v6542_v48 }
 0x11c   : > { %5634 = vmatpush.msk.msra.mxu0 %vm686_vm1, %v6542_v48  ;;  %876 = vmatpush.msrb.mxu3 %v869_v49  ;;  %v1048_v49 = vld [vmem:[#allocation7 + $0x58] sm:$0xff] }
 0x11d   : > { %694 = vmatpush.msra.mxu1 %v6544_v50  ;;  %742 = vmatpush.msra.mxu2 %v6544_v50 }
 0x11e   : > { %1207 = vmatpush.msra.mxu0 %v6544_v50  ;;  %877 = vmatpush.msrb.mxu3 %v868_v53 }
 0x11f   : > { %695 = vmatpush.msra.mxu1 %v6552_v52  ;;  %743 = vmatpush.msra.mxu2 %v6552_v52 }
 0x120   : > { %1208 = vmatpush.msra.mxu0 %v6552_v52  ;;  %878 = vmatpush.msrb.mxu3 %v867_v57  ;;  %v973_v57 = vld [vmem:[#allocation7 + $0x40] sm:$0xff] }
 0x121   : > { %696 = vmatpush.msra.mxu1 %v6557_v54  ;;  %744 = vmatpush.msra.mxu2 %v6557_v54 }
 0x122   : > { %1209 = vmatpush.msra.mxu0 %v6557_v54  ;;  %879 = vmatpush.msrb.mxu3 %v866_v61 }
 0x123   : > { %697 = vmatpush.msra.mxu1 %v6562_v56  ;;  %745 = vmatpush.msra.mxu2 %v6562_v56 }
 0x124   : > { %1210 = vmatpush.msra.mxu0 %v6562_v56  ;;  %880 = vmatpush.msrb.mxu3 %v865_v1 }
 0x125   : > { %698 = vmatpush.msra.mxu1 %v6568_v58  ;;  %746 = vmatpush.msra.mxu2 %v6568_v58 }
 0x126   : > { %1211 = vmatpush.msra.mxu0 %v6568_v58 }
 0x127   : > { %699 = vmatpush.msra.mxu1 %v6574_v60  ;;  %747 = vmatpush.msra.mxu2 %v6574_v60 }
 0x128   : > { %1212 = vmatpush.msra.mxu0 %v6574_v60 }
 0x129   : > { %700 = vmatpush.msra.mxu1 %v6580_v62  ;;  %748 = vmatpush.msra.mxu2 %v6580_v62 }
 0x12a   : > { %1213 = vmatpush.msra.mxu0 %v6580_v62 }
 0x12b   : > { %701 = vmatpush.msra.mxu1 %v6586_v0  ;;  %749 = vmatpush.msra.mxu2 %v6586_v0 }
 0x12c   : > { %1214 = vmatpush.msra.mxu0 %v6586_v0 }
 0x12d   : > { %702 = vmatpush.msra.mxu1 %v6592_v2  ;;  %750 = vmatpush.msra.mxu2 %v6592_v2 }
 0x12e   : > { %1215 = vmatpush.msra.mxu0 %v6592_v2 }
 0x12f   : > { %703 = vmatpush.msra.mxu1 %v6598_v4  ;;  %751 = vmatpush.msra.mxu2 %v6598_v4 }
 0x130   : > { %1216 = vmatpush.msra.mxu0 %v6598_v4 }
 0x131   : > { %704 = vmatpush.msra.mxu1 %v6603_v5  ;;  %752 = vmatpush.msra.mxu2 %v6603_v5 }
 0x132   : > { %1217 = vmatpush.msra.mxu0 %v6603_v5 }
 0x133   : > { %705 = vmatpush.msra.mxu1 %v6608_v6  ;;  %753 = vmatpush.msra.mxu2 %v6608_v6 }
 0x134   : > { %1218 = vmatpush.msra.mxu0 %v6608_v6  ;;  %5617 = vmatmul.msk.f32.vlgmr.msra.gmra.mxu2 %vm679_vm2, %v730_v7  ;;  %v864_v7 = vld [vmem:[#allocation6 + $0x138] sm:$0xff] }
 0x135   : > { %5619 = vmatpush.msk.msrb.mxu2 %vm686_vm1, %v6542_v48  ;;  %5614 = vmatmul.msk.f32.vlgmr.msra.gmra.mxu1 %vm679_vm2, %v677_v8  ;;  %v943_v8 = vld [vmem:[#allocation6 + $0x1e0] sm:$0xff] }
 0x136   : > { %801 = vmatpush.msrb.mxu1 %v728_v19  ;;  %881 = vmatpush.msrb.mxu3 %v864_v7  ;;  %v939_v19 = vld [vmem:[#allocation6 + $0x1c0] sm:$0xff]  ;;  %v1168_v7 = vld [vmem:[#allocation6 + $0x378] sm:$0xff] }
 0x137   : > { %837 = vmatpush.msrb.mxu2 %v6544_v50 }
 0x138   : > { %802 = vmatpush.msrb.mxu1 %v727_v20  ;;  %v938_v20 = vld [vmem:[#allocation6 + $0x1b8] sm:$0xff] }
 0x139   : > { %838 = vmatpush.msrb.mxu2 %v6552_v52 }
 0x13a   : > { %803 = vmatpush.msrb.mxu1 %v726_v23  ;;  %v935_v23 = vld [vmem:[#allocation6 + $0x1a0] sm:$0xff] }
 0x13b   : > { %839 = vmatpush.msrb.mxu2 %v6557_v54 }
 0x13c   : > { %5618 = vmatmul.msk.f32.gmra.mxu2 %vm679_vm2, %v731_v9  ;;  %804 = vmatpush.msrb.mxu1 %v725_v25  ;;  %v863_v9 = vld [vmem:[#allocation6 + $0x130] sm:$0xff] }
 0x13d   : > { %840 = vmatpush.msrb.mxu2 %v6562_v56  ;;  %5615 = vmatmul.msk.f32.gmra.mxu1 %vm679_vm2, %v678_v10  ;;  %v942_v10 = vld [vmem:[#allocation6 + $0x1d8] sm:$0xff]  ;;  %v933_v25 = vld [vmem:[#allocation6 + $0x190] sm:$0xff] }
 0x13e   : > { %805 = vmatpush.msrb.mxu1 %v724_v27  ;;  %882 = vmatpush.msrb.mxu3 %v863_v9  ;;  %v931_v27 = vld [vmem:[#allocation6 + $0x180] sm:$0xff]  ;;  %v1166_v9 = vld [vmem:[#allocation6 + $0x368] sm:$0xff] }
 0x13f   : > { %841 = vmatpush.msrb.mxu2 %v6568_v58 }
 0x140   : > { %806 = vmatpush.msrb.mxu1 %v723_v29 }
 0x141   : > { %842 = vmatpush.msrb.mxu2 %v6574_v60 }
 0x142   : > { %807 = vmatpush.msrb.mxu1 %v722_v32 }
 0x143   : > { %843 = vmatpush.msrb.mxu2 %v6580_v62 }
 0x144   : > { %808 = vmatpush.msrb.mxu1 %v721_v34  ;;  %v1090_v34 = vld [vmem:[#allocation6 + $0x2d8] sm:$0xff] }
 0x145   : > { %844 = vmatpush.msrb.mxu2 %v6586_v0 }
 0x146   : > { %809 = vmatpush.msrb.mxu1 %v720_v36  ;;  %v1089_v36 = vld [vmem:[#allocation6 + $0x2d0] sm:$0xff] }
 0x147   : > { %845 = vmatpush.msrb.mxu2 %v6592_v2 }
 0x148   : > { %810 = vmatpush.msrb.mxu1 %v719_v38 }
 0x149   : > { %846 = vmatpush.msrb.mxu2 %v6598_v4 }
 0x14a   : > { %811 = vmatpush.msrb.mxu1 %v718_v40  ;;  %v1086_v40 = vld [vmem:[#allocation6 + $0x2b8] sm:$0xff] }
 0x14b   : > { %847 = vmatpush.msrb.mxu2 %v6603_v5 }
 0x14c   : > { %812 = vmatpush.msrb.mxu1 %v717_v43  ;;  %v1084_v43 = vld [vmem:[#allocation6 + $0x2a8] sm:$0xff] }
 0x14d   : > { %848 = vmatpush.msrb.mxu2 %v6608_v6 }
 0x14e   : > { %5620 = vmatmul.msk.f32.vlgmr.msrb.gmra.mxu2 %vm679_vm2, %v825_v11  ;;  %813 = vmatpush.msrb.mxu1 %v716_v45  ;;  %v862_v11 = vld [vmem:[#allocation6 + $0x128] sm:$0xff]  ;;  %v1082_v45 = vld [vmem:[#allocation6 + $0x298] sm:$0xff] }
 0x14f   : > { %5622 = vmatpush.msk.msra.mxu2 %vm686_vm1, %v6542_v48  ;;  %883 = vmatpush.msrb.mxu3 %v862_v11  ;;  %v1164_v11 = vld [vmem:[#allocation6 + $0x358] sm:$0xff] }
 0x150   : > { %814 = vmatpush.msrb.mxu1 %v715_v47  ;;  %v1080_v47 = vld [vmem:[#allocation6 + $0x288] sm:$0xff] }
 0x151   : > { %911 = vmatpush.msra.mxu2 %v6544_v50  ;;  %884 = vmatpush.msrb.mxu3 %v861_v13 }
 0x152   : > { %815 = vmatpush.msrb.mxu1 %v714_v51  ;;  %v1079_v51 = vld [vmem:[#allocation6 + $0x280] sm:$0xff] }
 0x153   : > { %912 = vmatpush.msra.mxu2 %v6552_v52  ;;  %885 = vmatpush.msrb.mxu3 %v860_v14  ;;  %v1162_v14 = vld [vmem:[#allocation6 + $0x348] sm:$0xff] }
 0x154   : > { %816 = vmatpush.msrb.mxu1 %v713_v55 }
 0x155   : > { %913 = vmatpush.msra.mxu2 %v6557_v54  ;;  %886 = vmatpush.msrb.mxu3 %v859_v15  ;;  %v1161_v15 = vld [vmem:[#allocation6 + $0x340] sm:$0xff] }
 0x156   : > { %5621 = vmatmul.msk.f32.gmra.mxu2 %vm679_vm2, %v826_v12  ;;  %947 = vmatpush.msra.mxu1 %v946_v59  ;;  %v941_v12 = vld [vmem:[#allocation6 + $0x1d0] sm:$0xff]  ;;  %v974_v59 = vld [vmem:[#allocation7 + $0x48] sm:$0xff] }
 0x157   : > { %914 = vmatpush.msra.mxu2 %v6562_v56  ;;  %887 = vmatpush.msrb.mxu3 %v858_v16  ;;  %v1160_v16 = vld [vmem:[#allocation6 + $0x338] sm:$0xff] }
 0x158   : > { %948 = vmatpush.msra.mxu1 %v945_v63  ;;  %v1121_v63 = vld [vmem:[#allocation7 + $0x60] sm:$0xff] }
 0x159   : > { %915 = vmatpush.msra.mxu2 %v6568_v58  ;;  %888 = vmatpush.msrb.mxu3 %v857_v17 }
 0x15a   : > { %949 = vmatpush.msra.mxu1 %v944_v3  ;;  %v1122_v3 = vld [vmem:[#allocation7 + $0x68] sm:$0xff] }
 0x15b   : > { %916 = vmatpush.msra.mxu2 %v6574_v60 }
 0x15c   : > { %950 = vmatpush.msra.mxu1 %v943_v8  ;;  %v1167_v8 = vld [vmem:[#allocation6 + $0x370] sm:$0xff] }
 0x15d   : > { %917 = vmatpush.msra.mxu2 %v6580_v62 }
 0x15e   : > { %951 = vmatpush.msra.mxu1 %v942_v10  ;;  %v1165_v10 = vld [vmem:[#allocation6 + $0x360] sm:$0xff] }
 0x15f   : > { %918 = vmatpush.msra.mxu2 %v6586_v0 }
 0x160   : > { %952 = vmatpush.msra.mxu1 %v941_v12  ;;  %v1163_v12 = vld [vmem:[#allocation6 + $0x350] sm:$0xff] }
 0x161   : > { %919 = vmatpush.msra.mxu2 %v6592_v2 }
 0x162   : > { %953 = vmatpush.msra.mxu1 %v940_v18  ;;  %v1159_v18 = vld [vmem:[#allocation6 + $0x330] sm:$0xff] }
 0x163   : > { %920 = vmatpush.msra.mxu2 %v6598_v4 }
 0x164   : > { %954 = vmatpush.msra.mxu1 %v939_v19  ;;  %v1158_v19 = vld [vmem:[#allocation6 + $0x328] sm:$0xff] }
 0x165   : > { %921 = vmatpush.msra.mxu2 %v6603_v5 }
 0x166   : > { %955 = vmatpush.msra.mxu1 %v938_v20 }
 0x167   : > { %922 = vmatpush.msra.mxu2 %v6608_v6 }
 0x168   : > { %5623 = vmatmul.msk.f32.vlgmr.msra.gmra.mxu2 %vm679_vm2, %v899_v21  ;;  %v937_v21 = vld [vmem:[#allocation6 + $0x1b0] sm:$0xff] }
 0x169   : > { %5628 = vmatpush.msk.msrb.mxu2 %vm686_vm1, %v6542_v48  ;;  %956 = vmatpush.msra.mxu1 %v937_v21  ;;  %v1157_v21 = vld [vmem:[#allocation6 + $0x320] sm:$0xff] }
 0x16b   : > { %1059 = vmatpush.msrb.mxu2 %v6544_v50  ;;  %957 = vmatpush.msra.mxu1 %v936_v22  ;;  %v1156_v22 = vld [vmem:[#allocation6 + $0x318] sm:$0xff] }
 0x16d   : > { %1060 = vmatpush.msrb.mxu2 %v6552_v52  ;;  %958 = vmatpush.msra.mxu1 %v935_v23 }
 0x16f   : > { %1061 = vmatpush.msrb.mxu2 %v6557_v54  ;;  %959 = vmatpush.msra.mxu1 %v934_v24  ;;  %v1155_v24 = vld [vmem:[#allocation6 + $0x310] sm:$0xff] }
 0x170   : > { %5624 = vmatmul.msk.f32.gmra.mxu2 %vm679_vm2, %v900_v30  ;;  %v1093_v30 = vld [vmem:[#allocation6 + $0x2f0] sm:$0xff] }
 0x171   : > { %1062 = vmatpush.msrb.mxu2 %v6562_v56  ;;  %960 = vmatpush.msra.mxu1 %v933_v25  ;;  %v1154_v25 = vld [vmem:[#allocation6 + $0x308] sm:$0xff] }
 0x173   : > { %1063 = vmatpush.msrb.mxu2 %v6568_v58  ;;  %961 = vmatpush.msra.mxu1 %v932_v26 }
 0x175   : > { %1064 = vmatpush.msrb.mxu2 %v6574_v60  ;;  %962 = vmatpush.msra.mxu1 %v931_v27  ;;  %v1153_v27 = vld [vmem:[#allocation6 + $0x300] sm:$0xff] }
 0x177   : > { %1065 = vmatpush.msrb.mxu2 %v6580_v62 }
 0x179   : > { %1066 = vmatpush.msrb.mxu2 %v6586_v0 }
 0x17b   : > { %1067 = vmatpush.msrb.mxu2 %v6592_v2 }
 0x17d   : > { %1068 = vmatpush.msrb.mxu2 %v6598_v4 }
 0x17f   : > { %1069 = vmatpush.msrb.mxu2 %v6603_v5 }
 0x181   : > { %1070 = vmatpush.msrb.mxu2 %v6608_v6 }
 0x182   : > { %5629 = vmatmul.msk.f32.vlgmr.msrb.gmra.mxu2 %vm679_vm2, %v1047_v42 }
 0x183   : > { %1169 = vmatpush.msra.mxu2 %v1168_v7  ;;  %v1310_v7 = vld [vmem:[#allocation6 + $0x448] sm:$0xff] }
 0x185   : > { %1170 = vmatpush.msra.mxu2 %v1167_v8 }
 0x187   : > { %1171 = vmatpush.msra.mxu2 %v1166_v9  ;;  %v1231_v9 = vld [vmem:[#allocation6 + $0x3a0] sm:$0xff] }
 0x189   : > { %1172 = vmatpush.msra.mxu2 %v1165_v10  ;;  %v1309_v10 = vld [vmem:[#allocation6 + $0x440] sm:$0xff] }
 0x18a   : > { %5630 = vmatmul.msk.f32.gmra.mxu2 %vm679_vm2, %v1048_v49 }
 0x18b   : > { %1173 = vmatpush.msra.mxu2 %v1164_v11  ;;  %v1230_v11 = vld [vmem:[#allocation6 + $0x398] sm:$0xff] }
 0x18d   : > { %1174 = vmatpush.msra.mxu2 %v1163_v12  ;;  %v1308_v12 = vld [vmem:[#allocation6 + $0x438] sm:$0xff] }
 0x18f   : > { %1175 = vmatpush.msra.mxu2 %v1162_v14  ;;  %v1229_v14 = vld [vmem:[#allocation6 + $0x390] sm:$0xff] }
 0x191   : > { %1176 = vmatpush.msra.mxu2 %v1161_v15  ;;  %v1307_v15 = vld [vmem:[#allocation6 + $0x430] sm:$0xff] }
 0x193   : > { %1177 = vmatpush.msra.mxu2 %v1160_v16  ;;  %v1228_v16 = vld [vmem:[#allocation6 + $0x388] sm:$0xff] }
 0x195   : > { %1178 = vmatpush.msra.mxu2 %v1159_v18  ;;  %v1227_v18 = vld [vmem:[#allocation6 + $0x380] sm:$0xff] }
 0x197   : > { %1179 = vmatpush.msra.mxu2 %v1158_v19  ;;  %v1305_v19 = vld [vmem:[#allocation6 + $0x420] sm:$0xff] }
 0x199   : > { %1180 = vmatpush.msra.mxu2 %v1157_v21 }
 0x19b   : > { %1181 = vmatpush.msra.mxu2 %v1156_v22  ;;  %v1304_v22 = vld [vmem:[#allocation6 + $0x418] sm:$0xff] }
 0x19d   : > { %1182 = vmatpush.msra.mxu2 %v1155_v24  ;;  %v1302_v24 = vld [vmem:[#allocation6 + $0x408] sm:$0xff] }
 0x19f   : > { %1183 = vmatpush.msra.mxu2 %v1154_v25  ;;  %v1301_v25 = vld [vmem:[#allocation6 + $0x400] sm:$0xff] }
 0x1a1   : > { %1184 = vmatpush.msra.mxu2 %v1153_v27 }
 0x1b2   : > { %v707_v29 = vpop.f32.mrf.mxu1 }
 0x1b3   : > { %817 = vmatmul.f32.vlgmr.msrb.gmra.mxu1 %v707_v29  ;;  %v1269_v29 = vld [vmem:[#allocation7 + $0x80] sm:$0xff] }
 0x1b4   : > { %1095 = vmatpush.msrb.mxu1 %v1094_v28 }
 0x1b6   : > { %1096 = vmatpush.msrb.mxu1 %v1093_v30  ;;  %v1242_v30 = vld [vmem:[#allocation6 + $0x3f8] sm:$0xff] }
 0x1b7   : > { %v755_v32 = vpop.f32.mrf.mxu2 }
 0x1b8   : > { %794 = vmatmul.f32.vlgmr.msra.gmra.mxu3 %v755_v32  ;;  %1097 = vmatpush.msrb.mxu1 %v1092_v31  ;;  %v1241_v31 = vld [vmem:[#allocation6 + $0x3f0] sm:$0xff]  ;;  %v1240_v32 = vld [vmem:[#allocation6 + $0x3e8] sm:$0xff] }
 0x1b9   : > { %5625 = vmatpush.msk.msra.mxu3 %vm686_vm1, %v6542_v48 }
 0x1ba   : > { %v710_v35 = vpop.f32.mrf.mxu1  ;;  %1098 = vmatpush.msrb.mxu1 %v1091_v33  ;;  %v1239_v33 = vld [vmem:[#allocation6 + $0x3e0] sm:$0xff] }
 0x1bb   : > { %985 = vmatpush.msra.mxu3 %v6544_v50  ;;  %820 = vmatmul.f32.gmra.mxu1 %v710_v35  ;;  %v1316_v35 = vld [vmem:[#allocation6 + $0x478] sm:$0xff] }
 0x1bc   : > { %1099 = vmatpush.msrb.mxu1 %v1090_v34  ;;  %v1270_v34 = vld [vmem:[#allocation7 + $0x88] sm:$0xff] }
 0x1bd   : > { %986 = vmatpush.msra.mxu3 %v6552_v52 }
 0x1be   : > { %1100 = vmatpush.msrb.mxu1 %v1089_v36 }
 0x1bf   : > { %987 = vmatpush.msra.mxu3 %v6557_v54  ;;  %v758_v38 = vpop.f32.mrf.mxu2 }
 0x1c0   : > { %797 = vmatmul.f32.gmra.mxu3 %v758_v38  ;;  %1101 = vmatpush.msrb.mxu1 %v1088_v37  ;;  %v1238_v37 = vld [vmem:[#allocation6 + $0x3d8] sm:$0xff]  ;;  %v1315_v38 = vld [vmem:[#allocation6 + $0x470] sm:$0xff] }
 0x1c1   : > { %988 = vmatpush.msra.mxu3 %v6562_v56 }
 0x1c2   : > { %1102 = vmatpush.msrb.mxu1 %v1087_v39  ;;  %v1237_v39 = vld [vmem:[#allocation6 + $0x3d0] sm:$0xff] }
 0x1c3   : > { %989 = vmatpush.msra.mxu3 %v6568_v58 }
 0x1c4   : > { %1103 = vmatpush.msrb.mxu1 %v1086_v40  ;;  %v1314_v40 = vld [vmem:[#allocation6 + $0x468] sm:$0xff] }
 0x1c5   : > { %990 = vmatpush.msra.mxu3 %v6574_v60 }
 0x1c6   : > { %1104 = vmatpush.msrb.mxu1 %v1085_v41  ;;  %v1236_v41 = vld [vmem:[#allocation6 + $0x3c8] sm:$0xff] }
 0x1c7   : > { %991 = vmatpush.msra.mxu3 %v6580_v62 }
 0x1c8   : > { %1105 = vmatpush.msrb.mxu1 %v1084_v43  ;;  %v1195_v43 = vld [vmem:[#allocation7 + $0x70] sm:$0xff] }
 0x1c9   : > { %992 = vmatpush.msra.mxu3 %v6586_v0 }
 0x1ca   : > { %1106 = vmatpush.msrb.mxu1 %v1083_v44 }
 0x1cb   : > { %993 = vmatpush.msra.mxu3 %v6592_v2 }
 0x1cc   : > { %1107 = vmatpush.msrb.mxu1 %v1082_v45  ;;  %v1196_v45 = vld [vmem:[#allocation7 + $0x78] sm:$0xff] }
 0x1cd   : > { %994 = vmatpush.msra.mxu3 %v6598_v4 }
 0x1ce   : > { %1108 = vmatpush.msrb.mxu1 %v1081_v46 }
 0x1cf   : > { %995 = vmatpush.msra.mxu3 %v6603_v5 }
 0x1d0   : > { %1109 = vmatpush.msrb.mxu1 %v1080_v47 }
 0x1d1   : > { %v850_v53 = vpop.f32.mrf.mxu2  ;;  %996 = vmatpush.msra.mxu3 %v6608_v6 }
 0x1d2   : > { %889 = vmatmul.f32.vlgmr.msrb.gmra.mxu3 %v850_v53  ;;  %1110 = vmatpush.msrb.mxu1 %v1079_v51 }
 0x1d3   : > { %5631 = vmatpush.msk.msrb.mxu3 %vm686_vm1, %v6542_v48 }
 0x1d5   : > { %1133 = vmatpush.msrb.mxu3 %v6544_v50 }
 0x1d7   : > { %1134 = vmatpush.msrb.mxu3 %v6552_v52 }
 0x1d9   : > { %1135 = vmatpush.msrb.mxu3 %v6557_v54  ;;  %v853_v55 = vpop.f32.mrf.mxu2 }
 0x1da   : > { %892 = vmatmul.f32.gmra.mxu3 %v853_v55  ;;  %v1235_v55 = vld [vmem:[#allocation6 + $0x3c0] sm:$0xff] }
 0x1db   : > { %1136 = vmatpush.msrb.mxu3 %v6562_v56 }
 0x1dd   : > { %1137 = vmatpush.msrb.mxu3 %v6568_v58 }
 0x1df   : > { %1138 = vmatpush.msrb.mxu3 %v6574_v60 }
 0x1e1   : > { %1139 = vmatpush.msrb.mxu3 %v6580_v62 }
 0x1e2   : > { %5626 = vmatmul.msk.f32.vlgmr.msra.gmra.mxu3 %vm679_vm2, %v973_v57  ;;  %v1313_v57 = vld [vmem:[#allocation6 + $0x460] sm:$0xff] }
 0x1e3   : > { %1140 = vmatpush.msrb.mxu3 %v6586_v0 }
 0x1e5   : > { %1141 = vmatpush.msrb.mxu3 %v6592_v2 }
 0x1e7   : > { %1142 = vmatpush.msrb.mxu3 %v6598_v4 }
 0x1e9   : > { %1143 = vmatpush.msrb.mxu3 %v6603_v5 }
 0x1ea   : > { %5627 = vmatmul.msk.f32.gmra.mxu3 %vm679_vm2, %v974_v59  ;;  %v1234_v59 = vld [vmem:[#allocation6 + $0x3b8] sm:$0xff] }
 0x1eb   : > { %v924_v61 = vpop.f32.mrf.mxu2  ;;  %1144 = vmatpush.msrb.mxu3 %v6608_v6 }
 0x1ec   : > { %963 = vmatmul.f32.vlgmr.msra.gmra.mxu1 %v924_v61  ;;  %v1312_v61 = vld [vmem:[#allocation6 + $0x458] sm:$0xff] }
 0x1ed   : > { %5637 = vmatpush.msk.msra.mxu1 %vm686_vm1, %v6542_v48  ;;  %1243 = vmatpush.msra.mxu3 %v1242_v30  ;;  %v1429_v30 = vld [vmem:[#allocation6 + $0x570] sm:$0xff] }
 0x1ef   : > { %1281 = vmatpush.msra.mxu1 %v6544_v50  ;;  %1244 = vmatpush.msra.mxu3 %v1241_v31 }
 0x1f1   : > { %1282 = vmatpush.msra.mxu1 %v6552_v52  ;;  %1245 = vmatpush.msra.mxu3 %v1240_v32 }
 0x1f2   : > { %5632 = vmatmul.msk.f32.vlgmr.msrb.gmra.mxu3 %vm679_vm2, %v1121_v63  ;;  %v1233_v63 = vld [vmem:[#allocation6 + $0x3b0] sm:$0xff] }
 0x1f3   : > { %1283 = vmatpush.msra.mxu1 %v6557_v54  ;;  %v927_v1 = vpop.f32.mrf.mxu2  ;;  %1246 = vmatpush.msra.mxu3 %v1239_v33  ;;  %v1428_v33 = vld [vmem:[#allocation6 + $0x568] sm:$0xff] }
 0x1f4   : > { %966 = vmatmul.f32.gmra.mxu1 %v927_v1  ;;  %v1311_v1 = vld [vmem:[#allocation6 + $0x450] sm:$0xff] }
 0x1f5   : > { %1284 = vmatpush.msra.mxu1 %v6562_v56  ;;  %1247 = vmatpush.msra.mxu3 %v1238_v37 }
 0x1f7   : > { %1285 = vmatpush.msra.mxu1 %v6568_v58  ;;  %1248 = vmatpush.msra.mxu3 %v1237_v39 }
 0x1f9   : > { %1286 = vmatpush.msra.mxu1 %v6574_v60  ;;  %1249 = vmatpush.msra.mxu3 %v1236_v41  ;;  %v1423_v41 = vld [vmem:[#allocation6 + $0x540] sm:$0xff] }
 0x1fa   : > { %5633 = vmatmul.msk.f32.gmra.mxu3 %vm679_vm2, %v1122_v3  ;;  %v1232_v3 = vld [vmem:[#allocation6 + $0x3a8] sm:$0xff] }
 0x1fb   : > { %1287 = vmatpush.msra.mxu1 %v6580_v62  ;;  %1250 = vmatpush.msra.mxu3 %v1235_v55  ;;  %v1417_v55 = vld [vmem:[#allocation6 + $0x510] sm:$0xff] }
 0x1fd   : > { %1288 = vmatpush.msra.mxu1 %v6586_v0  ;;  %1251 = vmatpush.msra.mxu3 %v1234_v59  ;;  %v1415_v59 = vld [vmem:[#allocation6 + $0x500] sm:$0xff] }
 0x1ff   : > { %1289 = vmatpush.msra.mxu1 %v6592_v2  ;;  %1252 = vmatpush.msra.mxu3 %v1233_v63 }
 0x201   : > { %1290 = vmatpush.msra.mxu1 %v6598_v4  ;;  %1253 = vmatpush.msra.mxu3 %v1232_v3 }
 0x203   : > { %1291 = vmatpush.msra.mxu1 %v6603_v5  ;;  %1254 = vmatpush.msra.mxu3 %v1231_v9 }
 0x205   : > { %1292 = vmatpush.msra.mxu1 %v6608_v6  ;;  %v1072_v17 = vpop.f32.mrf.mxu2  ;;  %1255 = vmatpush.msra.mxu3 %v1230_v11 }
 0x206   : > { %1111 = vmatmul.f32.vlgmr.msrb.gmra.mxu1 %v1072_v17  ;;  %v1306_v17 = vld [vmem:[#allocation6 + $0x428] sm:$0xff] }
 0x207   : > { %1256 = vmatpush.msra.mxu3 %v1229_v14 }
 0x209   : > { %1257 = vmatpush.msra.mxu3 %v1228_v16 }
 0x20b   : > { %1258 = vmatpush.msra.mxu3 %v1227_v18 }
 0x20d   : > { %v1075_v23 = vpop.f32.mrf.mxu2 }
 0x20e   : > { %1114 = vmatmul.f32.gmra.mxu1 %v1075_v23  ;;  %v1303_v23 = vld [vmem:[#allocation6 + $0x410] sm:$0xff] }
 0x216   : > { %5638 = vmatmul.msk.f32.vlgmr.msra.gmra.mxu1 %vm679_vm2, %v1269_v29  ;;  %v1430_v29 = vld [vmem:[#allocation6 + $0x578] sm:$0xff] }
 0x217   : > { %1431 = vmatpush.msrb.mxu1 %v1430_v29  ;;  %v1575_v29 = vld [vmem:[#allocation6 + $0x678] sm:$0xff] }
 0x219   : > { %1432 = vmatpush.msrb.mxu1 %v1429_v30  ;;  %v1574_v30 = vld [vmem:[#allocation6 + $0x670] sm:$0xff] }
 0x21b   : > { %1433 = vmatpush.msrb.mxu1 %v1428_v33  ;;  %v1387_v33 = vld [vmem:[#allocation6 + $0x4f0] sm:$0xff] }
 0x21e   : > { %5639 = vmatmul.msk.f32.gmra.mxu1 %vm679_vm2, %v1270_v34  ;;  %v1427_v34 = vld [vmem:[#allocation6 + $0x560] sm:$0xff] }
 0x21f   : > { %1434 = vmatpush.msrb.mxu1 %v1427_v34  ;;  %v1572_v34 = vld [vmem:[#allocation6 + $0x660] sm:$0xff] }
 0x230   : > { %v6726_v47 = vpop.f32.mrf.mxu1 }
 0x238   : > { %v6728_v49 = vpop.f32.mrf.mxu1 }
 0x23b   : > { %v6714_v13 = vpop.f32.mrf.mxu3 }
 0x243   : > { %v6716_v20 = vpop.f32.mrf.mxu3 }
 0x244   : > { %v822_v3 = vadd.f32 %v6728_v49, %v6716_v20 }
 0x255   : > { %v6718_v26 = vpop.f32.mrf.mxu3 }
 0x25d   : > { %v6720_v28 = vpop.f32.mrf.mxu3 }
 0x25e   : > { %v897_v9 = vadd.f32 %v6720_v28, %v822_v3  ;;  %v1506_v3 = vld [vmem:[#allocation6 + $0x5c8] sm:$0xff] }
 0x265   : > { %v998_v36 = vpop.f32.mrf.mxu3 }
 0x266   : > { %1037 = vmatmul.f32.vlgmr.msrb.gmra.mxu0 %v998_v36  ;;  %v1425_v36 = vld [vmem:[#allocation6 + $0x550] sm:$0xff] }
 0x267   : > { %1317 = vmatpush.msrb.mxu0 %v1316_v35  ;;  %v1426_v35 = vld [vmem:[#allocation6 + $0x558] sm:$0xff] }
 0x268   : > { %1435 = vmatpush.msrb.mxu1 %v1426_v35  ;;  %v1386_v35 = vld [vmem:[#allocation6 + $0x4e8] sm:$0xff] }
 0x269   : > { %1318 = vmatpush.msrb.mxu0 %v1315_v38  ;;  %v6730_v51 = vpop.f32.mrf.mxu1  ;;  %v1424_v38 = vld [vmem:[#allocation6 + $0x548] sm:$0xff] }
 0x26a   : > { %1436 = vmatpush.msrb.mxu1 %v1425_v36  ;;  %v1535_v36 = vld [vmem:[#allocation9 + $0x18] sm:$0xff] }
 0x26b   : > { %1319 = vmatpush.msrb.mxu0 %v1314_v40 }
 0x26c   : > { %1437 = vmatpush.msrb.mxu1 %v1424_v38  ;;  %v1511_v38 = vld [vmem:[#allocation6 + $0x5f0] sm:$0xff] }
 0x26d   : > { %v1001_v42 = vpop.f32.mrf.mxu3  ;;  %1320 = vmatpush.msrb.mxu0 %v1313_v57  ;;  %v1416_v57 = vld [vmem:[#allocation6 + $0x508] sm:$0xff] }
 0x26e   : > { %1040 = vmatmul.f32.gmra.mxu0 %v1001_v42  ;;  %1438 = vmatpush.msrb.mxu1 %v1423_v41  ;;  %v1422_v42 = vld [vmem:[#allocation6 + $0x538] sm:$0xff]  ;;  %v1510_v41 = vld [vmem:[#allocation6 + $0x5e8] sm:$0xff] }
 0x26f   : > { %1321 = vmatpush.msrb.mxu0 %v1312_v61  ;;  %v819_v61 = vadd.f32 %v6726_v47, %v6714_v13 }
 0x270   : > { %1439 = vmatpush.msrb.mxu1 %v1422_v42  ;;  %v1570_v42 = vld [vmem:[#allocation6 + $0x650] sm:$0xff] }
 0x271   : > { %v6732_v53 = vpop.f32.mrf.mxu1  ;;  %1322 = vmatpush.msrb.mxu0 %v1311_v1  ;;  %v896_v63 = vadd.f32 %v6718_v26, %v819_v61  ;;  %v1507_v61 = vld [vmem:[#allocation6 + $0x5d0] sm:$0xff] }
 0x273   : > { %1323 = vmatpush.msrb.mxu0 %v1310_v7  ;;  %v970_v7 = vadd.f32 %v6730_v51, %v896_v63  ;;  %v5972_v51 = vld [vmem:[#allocation4 + $0x1] ss:$0 sm:$0xff] }
 0x274   : > { %v1567_v63 = vld [vmem:[#allocation6 + $0x638] sm:$0xff] }
 0x275   : > { %v1146_v44 = vpop.f32.mrf.mxu3  ;;  %1324 = vmatpush.msrb.mxu0 %v1309_v10 }
 0x276   : > { %1185 = vmatmul.f32.vlgmr.msra.gmra.mxu2 %v1146_v44  ;;  %5635 = vmatmul.msk.f32.vlgmr.msra.gmra.mxu0 %vm679_vm2, %v1195_v43  ;;  %v1421_v43 = vld [vmem:[#allocation6 + $0x530] sm:$0xff]  ;;  %v1420_v44 = vld [vmem:[#allocation6 + $0x528] sm:$0xff] }
 0x277   : > { %1325 = vmatpush.msrb.mxu0 %v1308_v12  ;;  %1440 = vmatpush.msrb.mxu1 %v1421_v43  ;;  %v971_v12 = vadd.f32 %v6732_v53, %v897_v9  ;;  %v1384_v43 = vld [vmem:[#allocation6 + $0x4d8] sm:$0xff] }
 0x278   : > { %v1380_v9 = vld [vmem:[#allocation6 + $0x4b8] sm:$0xff] }
 0x279   : > { %1326 = vmatpush.msrb.mxu0 %v1307_v15  ;;  %1441 = vmatpush.msrb.mxu1 %v1420_v44  ;;  %v1509_v44 = vld [vmem:[#allocation6 + $0x5e0] sm:$0xff] }
 0x27b   : > { %1327 = vmatpush.msrb.mxu0 %v1306_v17 }
 0x27d   : > { %v1149_v46 = vpop.f32.mrf.mxu3  ;;  %1328 = vmatpush.msrb.mxu0 %v1305_v19 }
 0x27e   : > { %1188 = vmatmul.f32.gmra.mxu2 %v1149_v46  ;;  %5636 = vmatmul.msk.f32.gmra.mxu0 %vm679_vm2, %v1196_v45  ;;  %v1419_v45 = vld [vmem:[#allocation6 + $0x520] sm:$0xff]  ;;  %v1418_v46 = vld [vmem:[#allocation6 + $0x518] sm:$0xff] }
 0x27f   : > { %1329 = vmatpush.msrb.mxu0 %v1304_v22  ;;  %1442 = vmatpush.msrb.mxu1 %v1419_v45  ;;  %v1569_v45 = vld [vmem:[#allocation6 + $0x648] sm:$0xff] }
 0x281   : > { %1330 = vmatpush.msrb.mxu0 %v1303_v23  ;;  %1443 = vmatpush.msrb.mxu1 %v1418_v46  ;;  %v1383_v46 = vld [vmem:[#allocation6 + $0x4d0] sm:$0xff] }
 0x283   : > { %v6734_v8 = vpop.f32.mrf.mxu1  ;;  %1331 = vmatpush.msrb.mxu0 %v1302_v24  ;;  %1444 = vmatpush.msrb.mxu1 %v1417_v55  ;;  %v1508_v55 = vld [vmem:[#allocation6 + $0x5d8] sm:$0xff] }
 0x285   : > { %1332 = vmatpush.msrb.mxu0 %v1301_v25  ;;  %1445 = vmatpush.msrb.mxu1 %v1416_v57  ;;  %v1568_v57 = vld [vmem:[#allocation6 + $0x640] sm:$0xff] }
 0x287   : > { %1446 = vmatpush.msrb.mxu1 %v1415_v59  ;;  %v1382_v59 = vld [vmem:[#allocation6 + $0x4c8] sm:$0xff] }
 0x28b   : > { %v6736_v21 = vpop.f32.mrf.mxu1 }
 0x293   : > { %v1294_v27 = vpop.f32.mrf.mxu1 }
 0x294   : > { %1333 = vmatmul.f32.vlgmr.msrb.gmra.mxu0 %v1294_v27  ;;  %v1472_v27 = vld [vmem:[#allocation9 + $0x10] sm:$0xff] }
 0x29b   : > { %v1297_v32 = vpop.f32.mrf.mxu1 }
 0x29c   : > { %1336 = vmatmul.f32.gmra.mxu0 %v1297_v32  ;;  %v1388_v32 = vld [vmem:[#allocation6 + $0x4f8] sm:$0xff] }
 0x29d   : > { %1451 = vmatpush.msrb.mxu3 %v1388_v32 }
 0x29f   : > { %1452 = vmatpush.msrb.mxu3 %v1387_v33  ;;  %v1638_v33 = vld [vmem:[#allocation6 + $0x6f8] sm:$0xff] }
 0x2a1   : > { %1453 = vmatpush.msrb.mxu3 %v1386_v35  ;;  %v1701_v35 = vld [vmem:[#allocation6 + $0x778] sm:$0xff] }
 0x2e3   : > { %v1038_v31 = vpop.f32.mrf.mxu0 }
 0x2e4   : > { %v1044_v10 = vadd.f32 %v1038_v31, %v970_v7  ;;  %v1573_v31 = vld [vmem:[#allocation6 + $0x668] sm:$0xff]  ;;  %v1566_v7 = vld [vmem:[#allocation6 + $0x630] sm:$0xff] }
 0x2e6   : > { %v1118_v15 = vadd.f32 %v6734_v8, %v1044_v10  ;;  %v1348_v8 = vld [vmem:[#allocation9] sm:$0xff]  ;;  %v1565_v10 = vld [vmem:[#allocation6 + $0x628] sm:$0xff] }
 0x2eb   : > { %v1041_v37 = vpop.f32.mrf.mxu0 }
 0x2ec   : > { %v1045_v16 = vadd.f32 %v1041_v37, %v971_v12  ;;  %v1512_v37 = vld [vmem:[#allocation6 + $0x5f8] sm:$0xff]  ;;  %v1564_v12 = vld [vmem:[#allocation6 + $0x620] sm:$0xff] }
 0x2ed   : > { %1513 = vmatpush.msra.mxu0 %v1512_v37  ;;  %v1700_v37 = vld [vmem:[#allocation6 + $0x770] sm:$0xff] }
 0x2ee   : > { %v1119_v26 = vadd.f32 %v6736_v21, %v1045_v16  ;;  %v1390_v21 = vld [vmem:[#allocation9 + $0x8] sm:$0xff]  ;;  %v1377_v16 = vld [vmem:[#allocation6 + $0x4a0] sm:$0xff] }
 0x2ef   : > { %1514 = vmatpush.msra.mxu0 %v1511_v38  ;;  %v1699_v38 = vld [vmem:[#allocation6 + $0x768] sm:$0xff] }
 0x2f1   : > { %1515 = vmatpush.msra.mxu0 %v1510_v41  ;;  %v1634_v41 = vld [vmem:[#allocation6 + $0x6d8] sm:$0xff] }
 0x2f3   : > { %v1220_v39 = vpop.f32.mrf.mxu0  ;;  %1516 = vmatpush.msra.mxu0 %v1509_v44  ;;  %v1633_v44 = vld [vmem:[#allocation6 + $0x6d0] sm:$0xff] }
 0x2f4   : > { %1259 = vmatmul.f32.vlgmr.msra.gmra.mxu3 %v1220_v39  ;;  %v1571_v39 = vld [vmem:[#allocation6 + $0x658] sm:$0xff] }
 0x2f5   : > { %1517 = vmatpush.msra.mxu0 %v1508_v55  ;;  %v1696_v55 = vld [vmem:[#allocation6 + $0x750] sm:$0xff] }
 0x2f7   : > { %1518 = vmatpush.msra.mxu0 %v1507_v61  ;;  %v1630_v61 = vld [vmem:[#allocation6 + $0x6b8] sm:$0xff] }
 0x2f9   : > { %v1186_v1 = vpop.f32.mrf.mxu2  ;;  %1519 = vmatpush.msra.mxu0 %v1506_v3  ;;  %v1787_v3 = vld [vmem:[#allocation9 + $0x38] sm:$0xff] }
 0x2fa   : > { %v1192_v17 = vadd.f32 %v1186_v1, %v1118_v15  ;;  %v1381_v1 = vld [vmem:[#allocation6 + $0x4c0] sm:$0xff]  ;;  %v1563_v15 = vld [vmem:[#allocation6 + $0x618] sm:$0xff] }
 0x2fb   : > { %v1223_v40 = vpop.f32.mrf.mxu0 }
 0x2fc   : > { %1262 = vmatmul.f32.gmra.mxu3 %v1223_v40  ;;  %v1385_v40 = vld [vmem:[#allocation6 + $0x4e0] sm:$0xff] }
 0x2fd   : > { %1454 = vmatpush.msrb.mxu3 %v1385_v40  ;;  %v1661_v40 = vld [vmem:[#allocation9 + $0x28] sm:$0xff] }
 0x2ff   : > { %1455 = vmatpush.msrb.mxu3 %v1384_v43  ;;  %v1698_v43 = vld [vmem:[#allocation6 + $0x760] sm:$0xff] }
 0x301   : > { %v1189_v13 = vpop.f32.mrf.mxu2  ;;  %1456 = vmatpush.msrb.mxu3 %v1383_v46  ;;  %v1632_v46 = vld [vmem:[#allocation6 + $0x6c8] sm:$0xff] }
 0x302   : > { %v1193_v18 = vadd.f32 %v1189_v13, %v1119_v26  ;;  %v1376_v13 = vld [vmem:[#allocation6 + $0x498] sm:$0xff]  ;;  %v1561_v26 = vld [vmem:[#allocation6 + $0x608] sm:$0xff] }
 0x303   : > { %1457 = vmatpush.msrb.mxu3 %v1382_v59  ;;  %v1724_v59 = vld [vmem:[#allocation9 + $0x30] sm:$0xff] }
 0x305   : > { %1458 = vmatpush.msrb.mxu3 %v1381_v1  ;;  %v1628_v1 = vld [vmem:[#allocation6 + $0x6a8] sm:$0xff] }
 0x307   : > { %1459 = vmatpush.msrb.mxu3 %v1380_v9  ;;  %v1695_v9 = vld [vmem:[#allocation6 + $0x748] sm:$0xff] }
 0x311   : > { %v1334_v11 = vpop.f32.mrf.mxu0 }
 0x319   : > { %v1337_v20 = vpop.f32.mrf.mxu0 }
 0x377   : > { %v1260_v14 = vpop.f32.mrf.mxu3 }
 0x378   : > { %v1266_v47 = vadd.f32 %v1260_v14, %v1192_v17  ;;  %v1378_v14 = vld [vmem:[#allocation6 + $0x4a8] sm:$0xff]  ;;  %v1562_v17 = vld [vmem:[#allocation6 + $0x610] sm:$0xff] }
 0x37a   : > { %v1340_v49 = vadd.f32 %v1334_v11, %v1266_v47  ;;  %v1379_v11 = vld [vmem:[#allocation6 + $0x4b0] sm:$0xff] }
 0x37b   : > { %1460 = vmatpush.msrb.mxu3 %v1379_v11  ;;  %v1375_v47 = vld [vmem:[#allocation6 + $0x490] sm:$0xff]  ;;  %v1694_v11 = vld [vmem:[#allocation6 + $0x740] sm:$0xff] }
 0x37c   : > { %v1344_v23 = vadd.f32 %v5972_v51, %v1340_v49  ;;  %v1505_v49 = vld [vmem:[#allocation6 + $0x5c0] sm:$0xff] }
 0x37d   : > { %1461 = vmatpush.msrb.mxu3 %v1378_v14  ;;  %1520 = vmatpush.msra.mxu0 %v1505_v49  ;;  %v1626_v14 = vld [vmem:[#allocation6 + $0x698] sm:$0xff]  ;;  %v1690_v49 = vld [vmem:[#allocation6 + $0x720] sm:$0xff] }
 0x37e   : > { %v6750_v53 = vmax.f32 %v1344_v23, 0.0  ;;  %v1501_v23 = vld [vmem:[#allocation6 + $0x5a0] sm:$0xff] }
 0x37f   : > { %v1263_v19 = vpop.f32.mrf.mxu3  ;;  %1462 = vmatpush.msrb.mxu3 %v1377_v16  ;;  %v1763_v16 = vld [vmem:[#allocation6 + $0x7f0] sm:$0xff] }
 0x380   : > { %v1267_v22 = vadd.f32 %v1263_v19, %v1193_v18  ;;  %v1560_v18 = vld [vmem:[#allocation6 + $0x600] sm:$0xff]  ;;  %v1374_v19 = vld [vmem:[#allocation6 + $0x488] sm:$0xff] }
 0x381   : > { %1463 = vmatpush.msrb.mxu3 %v1376_v13  ;;  %v1692_v13 = vld [vmem:[#allocation6 + $0x730] sm:$0xff] }
 0x382   : > { %v1341_v28 = vadd.f32 %v1337_v20, %v1267_v22  ;;  %v1373_v20 = vld [vmem:[#allocation6 + $0x480] sm:$0xff]  ;;  %v1503_v22 = vld [vmem:[#allocation6 + $0x5b0] sm:$0xff] }
 0x383   : > { %1464 = vmatpush.msrb.mxu3 %v1375_v47  ;;  %v1624_v47 = vld [vmem:[#allocation6 + $0x688] sm:$0xff] }
 0x384   : > { %v1345_v24 = vadd.f32 %v5972_v51, %v1341_v28  ;;  %v1504_v51 = vld [vmem:[#allocation6 + $0x5b8] sm:$0xff]  ;;  %v1502_v28 = vld [vmem:[#allocation6 + $0x5a8] sm:$0xff] }
 0x385   : > { %1465 = vmatpush.msrb.mxu3 %v1374_v19  ;;  %1521 = vmatpush.msra.mxu0 %v1504_v51  ;;  %v1761_v19 = vld [vmem:[#allocation6 + $0x7e0] sm:$0xff]  ;;  %v1760_v51 = vld [vmem:[#allocation6 + $0x7d8] sm:$0xff] }
 0x386   : > { %v6748_v25 = vmax.f32 %v1345_v24, 0.0  ;;  %v1500_v24 = vld [vmem:[#allocation6 + $0x598] sm:$0xff] }
 0x387   : > { %1466 = vmatpush.msrb.mxu3 %v1373_v20  ;;  %1522 = vmatpush.msra.mxu0 %v1503_v22  ;;  %v1623_v20 = vld [vmem:[#allocation6 + $0x680] sm:$0xff]  ;;  %v1827_v22 = vld [vmem:[#allocation6 + $0x878] sm:$0xff] }
 0x388   : > { %1366 = vmatpush.msrb.mxu2 %v6748_v25  ;;  %1616 = vmatpush.msra.mxu1 %v6748_v25 }
 0x389   : > { %1523 = vmatpush.msra.mxu0 %v1502_v28  ;;  %1639 = vmatpush.msra.mxu3 %v1638_v33  ;;  %v1689_v28 = vld [vmem:[#allocation6 + $0x718] sm:$0xff] }
 0x38a   : > { %1367 = vmatpush.msrb.mxu2 %v6750_v53  ;;  %1617 = vmatpush.msra.mxu1 %v6750_v53  ;;  %v1756_v33 = vld [vmem:[#allocation6 + $0x7b8] sm:$0xff] }
 0x38b   : > { %5640 = vmatmul.msk.f32.vlgmr.msrb.gmra.mxu2 %vm568_vm0, %v1348_v8  ;;  %1524 = vmatpush.msra.mxu0 %v1501_v23  ;;  %v1499_v8 = vld [vmem:[#allocation6 + $0x590] sm:$0xff] }
 0x38c   : > { %1408 = vmatpush.msra.mxu2 %v6748_v25  ;;  %v1759_v23 = vld [vmem:[#allocation6 + $0x7d0] sm:$0xff] }
 0x38d   : > { %1525 = vmatpush.msra.mxu0 %v1500_v24  ;;  %v1826_v24 = vld [vmem:[#allocation6 + $0x870] sm:$0xff] }
 0x38e   : > { %1409 = vmatpush.msra.mxu2 %v6750_v53 }
 0x38f   : > { %1526 = vmatpush.msra.mxu0 %v1499_v8  ;;  %v1688_v8 = vld [vmem:[#allocation6 + $0x710] sm:$0xff] }
 0x390   : > { %1490 = vmatpush.msrb.mxu2 %v6748_v25 }
 0x392   : > { %1491 = vmatpush.msrb.mxu2 %v6750_v53 }
 0x393   : > { %5641 = vmatmul.msk.f32.vlgmr.msra.gmra.mxu2 %vm568_vm0, %v1390_v21  ;;  %v1498_v21 = vld [vmem:[#allocation6 + $0x588] sm:$0xff] }
 0x394   : > { %1553 = vmatpush.msra.mxu2 %v6748_v25  ;;  %1527 = vmatpush.msra.mxu0 %v1498_v21  ;;  %v1758_v21 = vld [vmem:[#allocation6 + $0x7c8] sm:$0xff] }
 0x396   : > { %1554 = vmatpush.msra.mxu2 %v6750_v53 }
 0x39b   : > { %5642 = vmatmul.msk.f32.vlgmr.msrb.gmra.mxu2 %vm568_vm0, %v1472_v27  ;;  %v1497_v27 = vld [vmem:[#allocation6 + $0x580] sm:$0xff] }
 0x39c   : > { %1576 = vmatpush.msrb.mxu2 %v1575_v29  ;;  %1528 = vmatpush.msra.mxu0 %v1497_v27  ;;  %v1825_v27 = vld [vmem:[#allocation6 + $0x868] sm:$0xff] }
 0x39e   : > { %1577 = vmatpush.msrb.mxu2 %v1574_v30 }
 0x3a0   : > { %1578 = vmatpush.msrb.mxu2 %v1573_v31  ;;  %v1598_v31 = vld [vmem:[#allocation9 + $0x20] sm:$0xff] }
 0x3a2   : > { %1579 = vmatpush.msrb.mxu2 %v1572_v34  ;;  %v1637_v34 = vld [vmem:[#allocation6 + $0x6f0] sm:$0xff] }
 0x3a3   : > { %5643 = vmatmul.msk.f32.vlgmr.msra.gmra.mxu2 %vm568_vm0, %v1535_v36  ;;  %v1636_v36 = vld [vmem:[#allocation6 + $0x6e8] sm:$0xff]  ;;  %1640 = vmatpush.msra.mxu3 %v1637_v34  ;;  %v1823_v34 = vld [vmem:[#allocation6 + $0x858] sm:$0xff] }
 0x3a4   : > { %1580 = vmatpush.msrb.mxu2 %v1571_v39  ;;  %v1635_v39 = vld [vmem:[#allocation6 + $0x6e0] sm:$0xff] }
 0x3a5   : > { %1641 = vmatpush.msra.mxu3 %v1636_v36  ;;  %v1755_v36 = vld [vmem:[#allocation6 + $0x7b0] sm:$0xff] }
 0x3a6   : > { %1581 = vmatpush.msrb.mxu2 %v1570_v42 }
 0x3a7   : > { %1642 = vmatpush.msra.mxu3 %v1635_v39  ;;  %v1754_v39 = vld [vmem:[#allocation6 + $0x7a8] sm:$0xff] }
 0x3a8   : > { %1582 = vmatpush.msrb.mxu2 %v1569_v45  ;;  %v1697_v45 = vld [vmem:[#allocation6 + $0x758] sm:$0xff] }
 0x3a9   : > { %1643 = vmatpush.msra.mxu3 %v1634_v41  ;;  %v1888_v41 = vld [vmem:[#allocation6 + $0x8e8] sm:$0xff] }
 0x3aa   : > { %1583 = vmatpush.msrb.mxu2 %v1568_v57  ;;  %v1631_v57 = vld [vmem:[#allocation6 + $0x6c0] sm:$0xff] }
 0x3ab   : > { %1644 = vmatpush.msra.mxu3 %v1633_v44  ;;  %v1887_v44 = vld [vmem:[#allocation6 + $0x8e0] sm:$0xff] }
 0x3ac   : > { %1584 = vmatpush.msrb.mxu2 %v1567_v63  ;;  %v1629_v63 = vld [vmem:[#allocation6 + $0x6b0] sm:$0xff] }
 0x3ad   : > { %1645 = vmatpush.msra.mxu3 %v1632_v46  ;;  %v1819_v46 = vld [vmem:[#allocation6 + $0x838] sm:$0xff] }
 0x3ae   : > { %1585 = vmatpush.msrb.mxu2 %v1566_v7  ;;  %v1850_v7 = vld [vmem:[#allocation9 + $0x40] sm:$0xff] }
 0x3af   : > { %1646 = vmatpush.msra.mxu3 %v1631_v57  ;;  %v1751_v57 = vld [vmem:[#allocation6 + $0x790] sm:$0xff] }
 0x3b0   : > { %1586 = vmatpush.msrb.mxu2 %v1565_v10  ;;  %v1627_v10 = vld [vmem:[#allocation6 + $0x6a0] sm:$0xff] }
 0x3b1   : > { %1647 = vmatpush.msra.mxu3 %v1630_v61  ;;  %v1885_v61 = vld [vmem:[#allocation6 + $0x8d0] sm:$0xff] }
 0x3b2   : > { %1587 = vmatpush.msrb.mxu2 %v1564_v12  ;;  %v1764_v12 = vld [vmem:[#allocation6 + $0x7f8] sm:$0xff] }
 0x3b3   : > { %1648 = vmatpush.msra.mxu3 %v1629_v63  ;;  %1765 = vmatpush.msrb.mxu0 %v1764_v12  ;;  %v1750_v63 = vld [vmem:[#allocation6 + $0x788] sm:$0xff]  ;;  %v1815_v12 = vld [vmem:[#allocation6 + $0x818] sm:$0xff] }
 0x3b4   : > { %1588 = vmatpush.msrb.mxu2 %v1563_v15  ;;  %v1693_v15 = vld [vmem:[#allocation6 + $0x738] sm:$0xff] }
 0x3b5   : > { %1649 = vmatpush.msra.mxu3 %v1628_v1  ;;  %1766 = vmatpush.msrb.mxu0 %v1763_v16  ;;  %v1817_v1 = vld [vmem:[#allocation6 + $0x828] sm:$0xff]  ;;  %v1881_v16 = vld [vmem:[#allocation6 + $0x8b0] sm:$0xff] }
 0x3b6   : > { %1589 = vmatpush.msrb.mxu2 %v1562_v17  ;;  %v1625_v17 = vld [vmem:[#allocation6 + $0x690] sm:$0xff] }
 0x3b7   : > { %1650 = vmatpush.msra.mxu3 %v1627_v10  ;;  %v1883_v10 = vld [vmem:[#allocation6 + $0x8c0] sm:$0xff] }
 0x3b8   : > { %1590 = vmatpush.msrb.mxu2 %v1561_v26  ;;  %v1762_v26 = vld [vmem:[#allocation6 + $0x7e8] sm:$0xff] }
 0x3b9   : > { %1651 = vmatpush.msra.mxu3 %v1626_v14  ;;  %1767 = vmatpush.msrb.mxu0 %v1762_v26  ;;  %v1882_v14 = vld [vmem:[#allocation6 + $0x8b8] sm:$0xff]  ;;  %v1879_v26 = vld [vmem:[#allocation6 + $0x8a0] sm:$0xff] }
 0x3ba   : > { %1591 = vmatpush.msrb.mxu2 %v1560_v18  ;;  %v1691_v18 = vld [vmem:[#allocation6 + $0x728] sm:$0xff] }
 0x3bb   : > { %1652 = vmatpush.msra.mxu3 %v1625_v17  ;;  %1768 = vmatpush.msrb.mxu0 %v1761_v19  ;;  %v1813_v17 = vld [vmem:[#allocation6 + $0x808] sm:$0xff]  ;;  %v1878_v19 = vld [vmem:[#allocation6 + $0x898] sm:$0xff] }
 0x3bc   : > { %1742 = vmatpush.msra.mxu2 %v6748_v25 }
 0x3bd   : > { %1653 = vmatpush.msra.mxu3 %v1624_v47  ;;  %1769 = vmatpush.msrb.mxu0 %v1760_v51  ;;  %v1812_v47 = vld [vmem:[#allocation6 + $0x800] sm:$0xff] }
 0x3be   : > { %1743 = vmatpush.msra.mxu2 %v6750_v53  ;;  %v1875_v51 = vld [vmem:[#allocation6 + $0x880] sm:$0xff] }
 0x3bf   : > { %1654 = vmatpush.msra.mxu3 %v1623_v20  ;;  %1770 = vmatpush.msrb.mxu0 %v1759_v23  ;;  %v1877_v20 = vld [vmem:[#allocation6 + $0x890] sm:$0xff] }
 0x3c1   : > { %1771 = vmatpush.msrb.mxu0 %v1758_v21  ;;  %v2056_v21 = vld [vmem:[#allocation6 + $0xa78] sm:$0xff] }
 0x40e   : > { %v1369_v29 = vpop.f32.mrf.mxu2 }
 0x40f   : > { %1467 = vmatmul.f32.vlgmr.msrb.gmra.mxu3 %v1369_v29  ;;  %v1687_v29 = vld [vmem:[#allocation6 + $0x708] sm:$0xff] }
 0x410   : > { %1828 = vmatpush.msrb.mxu3 %v1827_v22 }
 0x412   : > { %1829 = vmatpush.msrb.mxu3 %v1826_v24 }
 0x414   : > { %1830 = vmatpush.msrb.mxu3 %v1825_v27  ;;  %v2055_v27 = vld [vmem:[#allocation6 + $0xa70] sm:$0xff] }
 0x416   : > { %v1411_v30 = vpop.f32.mrf.mxu2 }
 0x417   : > { %1447 = vmatmul.f32.vlgmr.msrb.gmra.mxu1 %v1411_v30  ;;  %v1757_v30 = vld [vmem:[#allocation6 + $0x7c0] sm:$0xff] }
 0x418   : > { %1679 = vmatpush.msrb.mxu1 %v6748_v25  ;;  %1772 = vmatpush.msrb.mxu0 %v1757_v30  ;;  %v2053_v30 = vld [vmem:[#allocation6 + $0xa60] sm:$0xff] }
 0x41a   : > { %1680 = vmatpush.msrb.mxu1 %v6750_v53  ;;  %1773 = vmatpush.msrb.mxu0 %v1756_v33  ;;  %v2050_v33 = vld [vmem:[#allocation6 + $0xa48] sm:$0xff] }
 0x41c   : > { %1774 = vmatpush.msrb.mxu0 %v1755_v36  ;;  %v2047_v36 = vld [vmem:[#allocation6 + $0xa30] sm:$0xff] }
 0x41e   : > { %v1493_v32 = vpop.f32.mrf.mxu2  ;;  %1775 = vmatpush.msrb.mxu0 %v1754_v39  ;;  %v2044_v39 = vld [vmem:[#allocation6 + $0xa18] sm:$0xff] }
 0x41f   : > { %1529 = vmatmul.f32.vlgmr.msra.gmra.mxu0 %v1493_v32  ;;  %5644 = vmatmul.msk.f32.vlgmr.msra.gmra.mxu1 %vm568_vm0, %v1598_v31  ;;  %v1824_v31 = vld [vmem:[#allocation6 + $0x860] sm:$0xff] }
 0x420   : > { %1702 = vmatpush.msra.mxu1 %v1701_v35  ;;  %v1686_v32 = vld [vmem:[#allocation6 + $0x700] sm:$0xff]  ;;  %1831 = vmatpush.msrb.mxu3 %v1824_v31  ;;  %v1890_v35 = vld [vmem:[#allocation6 + $0x8f8] sm:$0xff] }
 0x421   : > { %v2052_v31 = vld [vmem:[#allocation6 + $0xa58] sm:$0xff] }
 0x422   : > { %1703 = vmatpush.msra.mxu1 %v1700_v37  ;;  %v1822_v37 = vld [vmem:[#allocation6 + $0x850] sm:$0xff]  ;;  %1832 = vmatpush.msrb.mxu3 %v1823_v34  ;;  %v2049_v34 = vld [vmem:[#allocation6 + $0xa40] sm:$0xff] }
 0x424   : > { %1704 = vmatpush.msra.mxu1 %v1699_v38  ;;  %v1889_v38 = vld [vmem:[#allocation6 + $0x8f0] sm:$0xff]  ;;  %1833 = vmatpush.msrb.mxu3 %v1822_v37  ;;  %v2046_v37 = vld [vmem:[#allocation6 + $0xa28] sm:$0xff] }
 0x426   : > { %v1556_v42 = vpop.f32.mrf.mxu2  ;;  %1705 = vmatpush.msra.mxu1 %v1698_v43  ;;  %v1820_v43 = vld [vmem:[#allocation6 + $0x840] sm:$0xff] }
 0x427   : > { %1592 = vmatmul.f32.vlgmr.msrb.gmra.mxu2 %v1556_v42  ;;  %5645 = vmatmul.msk.f32.vlgmr.msrb.gmra.mxu1 %vm568_vm0, %v1661_v40  ;;  %v1821_v40 = vld [vmem:[#allocation6 + $0x848] sm:$0xff]  ;;  %v1753_v42 = vld [vmem:[#allocation6 + $0x7a0] sm:$0xff] }
 0x428   : > { %1805 = vmatpush.msrb.mxu2 %v6748_v25  ;;  %1706 = vmatpush.msra.mxu1 %v1697_v45  ;;  %v1752_v45 = vld [vmem:[#allocation6 + $0x798] sm:$0xff] }
 0x429   : > { %1834 = vmatpush.msrb.mxu3 %v1821_v40  ;;  %1776 = vmatpush.msrb.mxu0 %v1753_v42  ;;  %v2043_v40 = vld [vmem:[#allocation6 + $0xa10] sm:$0xff]  ;;  %v2041_v42 = vld [vmem:[#allocation6 + $0xa00] sm:$0xff] }
 0x42a   : > { %1806 = vmatpush.msrb.mxu2 %v6750_v53  ;;  %1707 = vmatpush.msra.mxu1 %v1696_v55  ;;  %v1886_v55 = vld [vmem:[#allocation6 + $0x8d8] sm:$0xff] }
 0x42b   : > { %1835 = vmatpush.msrb.mxu3 %v1820_v43  ;;  %1777 = vmatpush.msrb.mxu0 %v1752_v45 }
 0x42c   : > { %1708 = vmatpush.msra.mxu1 %v1695_v9  ;;  %v1816_v9 = vld [vmem:[#allocation6 + $0x820] sm:$0xff] }
 0x42d   : > { %1836 = vmatpush.msrb.mxu3 %v1819_v46  ;;  %1778 = vmatpush.msrb.mxu0 %v1751_v57 }
 0x42e   : > { %1709 = vmatpush.msra.mxu1 %v1694_v11 }
 0x42f   : > { %5646 = vmatmul.msk.f32.vlgmr.msra.gmra.mxu2 %vm568_vm0, %v1724_v59  ;;  %v1818_v59 = vld [vmem:[#allocation6 + $0x830] sm:$0xff]  ;;  %1779 = vmatpush.msrb.mxu0 %v1750_v63 }
 0x430   : > { %1868 = vmatpush.msra.mxu2 %v6748_v25  ;;  %1710 = vmatpush.msra.mxu1 %v1693_v15  ;;  %v1814_v15 = vld [vmem:[#allocation6 + $0x810] sm:$0xff] }
 0x431   : > { %1837 = vmatpush.msrb.mxu3 %v1818_v59 }
 0x432   : > { %1869 = vmatpush.msra.mxu2 %v6750_v53  ;;  %1711 = vmatpush.msra.mxu1 %v1692_v13  ;;  %v1880_v13 = vld [vmem:[#allocation6 + $0x8a8] sm:$0xff] }
 0x433   : > { %1838 = vmatpush.msrb.mxu3 %v1817_v1 }
 0x434   : > { %1712 = vmatpush.msra.mxu1 %v1691_v18 }
 0x435   : > { %1839 = vmatpush.msrb.mxu3 %v1816_v9 }
 0x436   : > { %1713 = vmatpush.msra.mxu1 %v1690_v49  ;;  %v1876_v49 = vld [vmem:[#allocation6 + $0x888] sm:$0xff] }
 0x437   : > { %5647 = vmatmul.msk.f32.vlgmr.msrb.gmra.mxu2 %vm568_vm0, %v1787_v3  ;;  %v1884_v3 = vld [vmem:[#allocation6 + $0x8c8] sm:$0xff]  ;;  %1840 = vmatpush.msrb.mxu3 %v1815_v12 }
 0x438   : > { %1714 = vmatpush.msra.mxu1 %v1689_v28  ;;  %1891 = vmatpush.msrb.mxu2 %v1890_v35  ;;  %v2048_v35 = vld [vmem:[#allocation6 + $0xa38] sm:$0xff] }
 0x439   : > { %1841 = vmatpush.msrb.mxu3 %v1814_v15 }
 0x43a   : > { %1715 = vmatpush.msra.mxu1 %v1688_v8  ;;  %1892 = vmatpush.msrb.mxu2 %v1889_v38  ;;  %v2045_v38 = vld [vmem:[#allocation6 + $0xa20] sm:$0xff] }
 0x43b   : > { %1842 = vmatpush.msrb.mxu3 %v1813_v17  ;;  %v1916_v17 = vld [vmem:[#allocation10] sm:$0xff] }
 0x43c   : > { %1716 = vmatpush.msra.mxu1 %v1687_v29  ;;  %1893 = vmatpush.msrb.mxu2 %v1888_v41  ;;  %v2054_v29 = vld [vmem:[#allocation6 + $0xa68] sm:$0xff] }
 0x43d   : > { %1843 = vmatpush.msrb.mxu3 %v1812_v47  ;;  %v2042_v41 = vld [vmem:[#allocation6 + $0xa08] sm:$0xff]  ;;  %v1956_v47 = vld [vmem:[#allocation6 + $0x970] sm:$0xff] }
 0x43e   : > { %1717 = vmatpush.msra.mxu1 %v1686_v32  ;;  %1894 = vmatpush.msrb.mxu2 %v1887_v44  ;;  %v2051_v32 = vld [vmem:[#allocation6 + $0xa50] sm:$0xff] }
 0x43f   : > { %5648 = vmatmul.msk.f32.vlgmr.msra.gmra.mxu2 %vm568_vm0, %v1850_v7  ;;  %v1749_v7 = vld [vmem:[#allocation6 + $0x780] sm:$0xff] }
 0x440   : > { %1895 = vmatpush.msrb.mxu2 %v1886_v55  ;;  %1780 = vmatpush.msrb.mxu0 %v1749_v7 }
 0x442   : > { %1896 = vmatpush.msrb.mxu2 %v1885_v61 }
 0x444   : > { %1897 = vmatpush.msrb.mxu2 %v1884_v3 }
 0x446   : > { %1898 = vmatpush.msrb.mxu2 %v1883_v10  ;;  %v5973_v10 = vld [vmem:[#allocation4 + $0x2] ss:$0 sm:$0xff] }
 0x448   : > { %1899 = vmatpush.msrb.mxu2 %v1882_v14 }
 0x44a   : > { %1900 = vmatpush.msrb.mxu2 %v1881_v16 }
 0x44c   : > { %1901 = vmatpush.msrb.mxu2 %v1880_v13  ;;  %v1974_v13 = vld [vmem:[#allocation6 + $0x9f8] sm:$0xff] }
 0x44e   : > { %1902 = vmatpush.msrb.mxu2 %v1879_v26  ;;  %v1957_v26 = vld [vmem:[#allocation6 + $0x978] sm:$0xff] }
 0x44f   : > { %1995 = vmatpush.msra.mxu0 %v1957_v26  ;;  %v2016_v26 = vld [vmem:[#allocation10 + $0x8] sm:$0xff] }
 0x450   : > { %1903 = vmatpush.msrb.mxu2 %v1878_v19  ;;  %v1955_v19 = vld [vmem:[#allocation6 + $0x968] sm:$0xff] }
 0x451   : > { %1996 = vmatpush.msra.mxu0 %v1956_v47  ;;  %v2195_v47 = vld [vmem:[#allocation6 + $0xbf8] sm:$0xff] }
 0x452   : > { %1904 = vmatpush.msrb.mxu2 %v1877_v20  ;;  %v1971_v20 = vld [vmem:[#allocation6 + $0x9e0] sm:$0xff] }
 0x453   : > { %1997 = vmatpush.msra.mxu0 %v1955_v19  ;;  %v2193_v19 = vld [vmem:[#allocation6 + $0xbe8] sm:$0xff] }
 0x454   : > { %1905 = vmatpush.msrb.mxu2 %v1876_v49  ;;  %v1954_v49 = vld [vmem:[#allocation6 + $0x960] sm:$0xff] }
 0x455   : > { %1998 = vmatpush.msra.mxu0 %v1954_v49  ;;  %v2117_v49 = vld [vmem:[#allocation10 + $0x10] sm:$0xff] }
 0x456   : > { %1906 = vmatpush.msrb.mxu2 %v1875_v51  ;;  %v1970_v51 = vld [vmem:[#allocation6 + $0x9d8] sm:$0xff] }
 0x492   : > { %v1468_v43 = vpop.f32.mrf.mxu3 }
 0x494   : > { %v6779_v11 = vpop.f32.mrf.mxu1 }
 0x495   : > { %v1469_v45 = vadd.f32 %v1468_v43, %v6779_v11  ;;  %v1973_v11 = vld [vmem:[#allocation6 + $0x9f0] sm:$0xff]  ;;  %v1959_v43 = vld [vmem:[#allocation6 + $0x980] sm:$0xff] }
 0x49c   : > { %v1619_v18 = vpop.f32.mrf.mxu1  ;;  %v1530_v44 = vpop.f32.mrf.mxu0 }
 0x49d   : > { %1655 = vmatmul.f32.vlgmr.msra.gmra.mxu3 %v1619_v18  ;;  %v1533_v46 = vadd.f32 %v1530_v44, %v1469_v45  ;;  %v1972_v18 = vld [vmem:[#allocation6 + $0x9e8] sm:$0xff]  ;;  %v1942_v44 = vld [vmem:[#allocation6 + $0x900] sm:$0xff]  ;;  %v2094_v45 = vld [vmem:[#allocation6 + $0xaf8] sm:$0xff] }
 0x49e   : > { %2057 = vmatpush.msra.mxu3 %v2056_v21  ;;  %v1967_v21 = vld [vmem:[#allocation6 + $0x9c0] sm:$0xff]  ;;  %2095 = vmatpush.msra.mxu2 %v2094_v45  ;;  %v2181_v45 = vld [vmem:[#allocation6 + $0xb88] sm:$0xff] }
 0x4a0   : > { %2058 = vmatpush.msra.mxu3 %v2055_v27  ;;  %v1950_v27 = vld [vmem:[#allocation6 + $0x940] sm:$0xff] }
 0x4a2   : > { %2059 = vmatpush.msra.mxu3 %v2054_v29  ;;  %v1966_v29 = vld [vmem:[#allocation6 + $0x9b8] sm:$0xff] }
 0x4a4   : > { %v1682_v22 = vpop.f32.mrf.mxu1  ;;  %2060 = vmatpush.msra.mxu3 %v2053_v30  ;;  %v1949_v30 = vld [vmem:[#allocation6 + $0x938] sm:$0xff] }
 0x4a5   : > { %1718 = vmatmul.f32.vlgmr.msra.gmra.mxu1 %v1682_v22  ;;  %v1953_v22 = vld [vmem:[#allocation6 + $0x958] sm:$0xff] }
 0x4a6   : > { %2061 = vmatpush.msra.mxu3 %v2052_v31  ;;  %1999 = vmatpush.msra.mxu0 %v1953_v22  ;;  %v1965_v31 = vld [vmem:[#allocation6 + $0x9b0] sm:$0xff]  ;;  %v2151_v22 = vld [vmem:[#allocation6 + $0xb48] sm:$0xff] }
 0x4a8   : > { %2062 = vmatpush.msra.mxu3 %v2051_v32  ;;  %v1948_v32 = vld [vmem:[#allocation6 + $0x930] sm:$0xff] }
 0x4aa   : > { %v1593_v28 = vpop.f32.mrf.mxu2  ;;  %2063 = vmatpush.msra.mxu3 %v2050_v33  ;;  %v1964_v33 = vld [vmem:[#allocation6 + $0x9a8] sm:$0xff] }
 0x4ab   : > { %v1596_v57 = vadd.f32 %v1593_v28, %v1533_v46  ;;  %v1969_v28 = vld [vmem:[#allocation6 + $0x9d0] sm:$0xff] }
 0x4ac   : > { %2064 = vmatpush.msra.mxu3 %v2049_v34  ;;  %v1947_v34 = vld [vmem:[#allocation6 + $0x928] sm:$0xff]  ;;  %v2093_v46 = vld [vmem:[#allocation6 + $0xaf0] sm:$0xff] }
 0x4ad   : > { %2096 = vmatpush.msra.mxu2 %v2093_v46  ;;  %v2258_v46 = vld [vmem:[#allocation6 + $0xc78] sm:$0xff] }
 0x4ae   : > { %2065 = vmatpush.msra.mxu3 %v2048_v35  ;;  %v1963_v35 = vld [vmem:[#allocation6 + $0x9a0] sm:$0xff] }
 0x4b0   : > { %2066 = vmatpush.msra.mxu3 %v2047_v36  ;;  %v1946_v36 = vld [vmem:[#allocation6 + $0x920] sm:$0xff] }
 0x4b2   : > { %v1745_v23 = vpop.f32.mrf.mxu2  ;;  %2067 = vmatpush.msra.mxu3 %v2046_v37  ;;  %v1962_v37 = vld [vmem:[#allocation6 + $0x998] sm:$0xff] }
 0x4b3   : > { %1781 = vmatmul.f32.vlgmr.msrb.gmra.mxu0 %v1745_v23  ;;  %v1952_v23 = vld [vmem:[#allocation6 + $0x950] sm:$0xff] }
 0x4b4   : > { %2068 = vmatpush.msra.mxu3 %v2045_v38  ;;  %2000 = vmatpush.msra.mxu0 %v1952_v23  ;;  %v1945_v38 = vld [vmem:[#allocation6 + $0x918] sm:$0xff] }
 0x4b5   : > { %v2082_v23 = vld [vmem:[#allocation6 + $0xa98] sm:$0xff] }
 0x4b6   : > { %2069 = vmatpush.msra.mxu3 %v2044_v39  ;;  %v1961_v39 = vld [vmem:[#allocation6 + $0x990] sm:$0xff] }
 0x4b8   : > { %2070 = vmatpush.msra.mxu3 %v2043_v40  ;;  %v1944_v40 = vld [vmem:[#allocation6 + $0x910] sm:$0xff] }
 0x4ba   : > { %v1808_v24 = vpop.f32.mrf.mxu2  ;;  %2071 = vmatpush.msra.mxu3 %v2042_v41  ;;  %v1960_v41 = vld [vmem:[#allocation6 + $0x988] sm:$0xff] }
 0x4bb   : > { %1844 = vmatmul.f32.vlgmr.msrb.gmra.mxu3 %v1808_v24  ;;  %v1968_v24 = vld [vmem:[#allocation6 + $0x9c8] sm:$0xff] }
 0x4bc   : > { %2072 = vmatpush.msra.mxu3 %v2041_v42  ;;  %v1943_v42 = vld [vmem:[#allocation6 + $0x908] sm:$0xff] }
 0x4c2   : > { %v1871_v8 = vpop.f32.mrf.mxu2 }
 0x4c3   : > { %1907 = vmatmul.f32.vlgmr.msrb.gmra.mxu2 %v1871_v8  ;;  %v1951_v8 = vld [vmem:[#allocation6 + $0x948] sm:$0xff] }
 0x4c4   : > { %2001 = vmatpush.msra.mxu0 %v1951_v8  ;;  %v2189_v8 = vld [vmem:[#allocation6 + $0xbc8] sm:$0xff] }
 0x4c6   : > { %2002 = vmatpush.msra.mxu0 %v1950_v27  ;;  %v2149_v27 = vld [vmem:[#allocation6 + $0xb38] sm:$0xff] }
 0x4c8   : > { %2003 = vmatpush.msra.mxu0 %v1949_v30  ;;  %v2080_v30 = vld [vmem:[#allocation6 + $0xa88] sm:$0xff] }
 0x4ca   : > { %2004 = vmatpush.msra.mxu0 %v1948_v32  ;;  %v2187_v32 = vld [vmem:[#allocation6 + $0xbb8] sm:$0xff] }
 0x4cc   : > { %2005 = vmatpush.msra.mxu0 %v1947_v34  ;;  %v2147_v34 = vld [vmem:[#allocation6 + $0xb28] sm:$0xff] }
 0x4ce   : > { %2006 = vmatpush.msra.mxu0 %v1946_v36  ;;  %v2146_v36 = vld [vmem:[#allocation6 + $0xb20] sm:$0xff] }
 0x4d0   : > { %2007 = vmatpush.msra.mxu0 %v1945_v38  ;;  %v2145_v38 = vld [vmem:[#allocation6 + $0xb18] sm:$0xff] }
 0x4d2   : > { %2008 = vmatpush.msra.mxu0 %v1944_v40  ;;  %v2144_v40 = vld [vmem:[#allocation6 + $0xb10] sm:$0xff] }
 0x4d4   : > { %2009 = vmatpush.msra.mxu0 %v1943_v42  ;;  %v2143_v42 = vld [vmem:[#allocation6 + $0xb08] sm:$0xff] }
 0x4d6   : > { %2010 = vmatpush.msra.mxu0 %v1942_v44  ;;  %v2142_v44 = vld [vmem:[#allocation6 + $0xb00] sm:$0xff] }
 0x520   : > { %v1656_v55 = vpop.f32.mrf.mxu3 }
 0x521   : > { %v1659_v59 = vadd.f32 %v1656_v55, %v1596_v57  ;;  %v2092_v55 = vld [vmem:[#allocation6 + $0xae8] sm:$0xff]  ;;  %v2157_v57 = vld [vmem:[#allocation6 + $0xb78] sm:$0xff] }
 0x522   : > { %v1719_v61 = vpop.f32.mrf.mxu1  ;;  %2158 = vmatpush.msrb.mxu0 %v2157_v57  ;;  %2097 = vmatpush.msra.mxu2 %v2092_v55  ;;  %v2257_v55 = vld [vmem:[#allocation6 + $0xc70] sm:$0xff]  ;;  %v2180_v57 = vld [vmem:[#allocation6 + $0xb80] sm:$0xff] }
 0x523   : > { %v1722_v1 = vadd.f32 %v1719_v61, %v1659_v59  ;;  %v2156_v59 = vld [vmem:[#allocation6 + $0xb70] sm:$0xff]  ;;  %v2091_v61 = vld [vmem:[#allocation6 + $0xae0] sm:$0xff] }
 0x524   : > { %2159 = vmatpush.msrb.mxu0 %v2156_v59  ;;  %2098 = vmatpush.msra.mxu2 %v2091_v61  ;;  %v2256_v59 = vld [vmem:[#allocation6 + $0xc68] sm:$0xff]  ;;  %v2255_v61 = vld [vmem:[#allocation6 + $0xc60] sm:$0xff] }
 0x530   : > { %v1782_v63 = vpop.f32.mrf.mxu0 }
 0x531   : > { %v1785_v7 = vadd.f32 %v1782_v63, %v1722_v1  ;;  %v2155_v63 = vld [vmem:[#allocation6 + $0xb68] sm:$0xff]  ;;  %v2090_v1 = vld [vmem:[#allocation6 + $0xad8] sm:$0xff] }
 0x532   : > { %2160 = vmatpush.msrb.mxu0 %v2155_v63  ;;  %2099 = vmatpush.msra.mxu2 %v2090_v1  ;;  %v2254_v63 = vld [vmem:[#allocation6 + $0xc58] sm:$0xff]  ;;  %v2253_v1 = vld [vmem:[#allocation6 + $0xc50] sm:$0xff] }
 0x53e   : > { %v1845_v3 = vpop.f32.mrf.mxu3 }
 0x53f   : > { %v1848_v9 = vadd.f32 %v1845_v3, %v1785_v7  ;;  %v2154_v3 = vld [vmem:[#allocation6 + $0xb60] sm:$0xff]  ;;  %v2089_v7 = vld [vmem:[#allocation6 + $0xad0] sm:$0xff] }
 0x540   : > { %2161 = vmatpush.msrb.mxu0 %v2154_v3  ;;  %2100 = vmatpush.msra.mxu2 %v2089_v7  ;;  %v2252_v3 = vld [vmem:[#allocation6 + $0xc48] sm:$0xff]  ;;  %v2251_v7 = vld [vmem:[#allocation6 + $0xc40] sm:$0xff] }
 0x546   : > { %v1908_v12 = vpop.f32.mrf.mxu2 }
 0x547   : > { %v1911_v14 = vadd.f32 %v1908_v12, %v1848_v9  ;;  %v2153_v9 = vld [vmem:[#allocation6 + $0xb58] sm:$0xff]  ;;  %v2152_v12 = vld [vmem:[#allocation6 + $0xb50] sm:$0xff] }
 0x548   : > { %2162 = vmatpush.msrb.mxu0 %v2153_v9 }
 0x549   : > { %v1914_v15 = vadd.f32 %v5973_v10, %v1911_v14  ;;  %v2088_v10 = vld [vmem:[#allocation6 + $0xac8] sm:$0xff]  ;;  %v2087_v14 = vld [vmem:[#allocation6 + $0xac0] sm:$0xff] }
 0x54a   : > { %2101 = vmatpush.msra.mxu2 %v2088_v10  ;;  %2163 = vmatpush.msrb.mxu0 %v2152_v12  ;;  %v2250_v10 = vld [vmem:[#allocation6 + $0xc38] sm:$0xff]  ;;  %v2249_v12 = vld [vmem:[#allocation6 + $0xc30] sm:$0xff] }
 0x54b   : > { %v6782_v16 = vmax.f32 %v1914_v15, 0.0  ;;  %v2086_v15 = vld [vmem:[#allocation6 + $0xab8] sm:$0xff] }
 0x54c   : > { %2102 = vmatpush.msra.mxu2 %v2087_v14  ;;  %2164 = vmatpush.msrb.mxu0 %v2151_v22  ;;  %v2248_v14 = vld [vmem:[#allocation6 + $0xc28] sm:$0xff]  ;;  %v2287_v22 = vld [vmem:[#allocation6 + $0xcb0] sm:$0xff] }
 0x54d   : > { %1936 = vmatpush.msrb.mxu1 %v6782_v16  ;;  %2237 = vmatpush.msrb.mxu3 %v6782_v16 }
 0x54e   : > { %5649 = vmatmul.msk.f32.vlgmr.msrb.gmra.mxu1 %vm1917_vm3, %v1916_v17  ;;  %2103 = vmatpush.msra.mxu2 %v2086_v15  ;;  %v2296_v15 = vld [vmem:[#allocation6 + $0xcf8] sm:$0xff] }
 0x54f   : > { %1975 = vmatpush.msra.mxu1 %v1974_v13  ;;  %v2085_v13 = vld [vmem:[#allocation6 + $0xab0] sm:$0xff] }
 0x550   : > { %2104 = vmatpush.msra.mxu2 %v2085_v13  ;;  %v2295_v13 = vld [vmem:[#allocation6 + $0xcf0] sm:$0xff] }
 0x551   : > { %1976 = vmatpush.msra.mxu1 %v1973_v11  ;;  %v2084_v11 = vld [vmem:[#allocation6 + $0xaa8] sm:$0xff] }
 0x552   : > { %2105 = vmatpush.msra.mxu2 %v2084_v11  ;;  %v2294_v11 = vld [vmem:[#allocation6 + $0xce8] sm:$0xff] }
 0x553   : > { %1977 = vmatpush.msra.mxu1 %v1972_v18  ;;  %v2194_v18 = vld [vmem:[#allocation6 + $0xbf0] sm:$0xff] }
 0x555   : > { %1978 = vmatpush.msra.mxu1 %v1971_v20  ;;  %v2192_v20 = vld [vmem:[#allocation6 + $0xbe0] sm:$0xff] }
 0x557   : > { %1979 = vmatpush.msra.mxu1 %v1970_v51  ;;  %v2191_v51 = vld [vmem:[#allocation6 + $0xbd8] sm:$0xff] }
 0x559   : > { %1980 = vmatpush.msra.mxu1 %v1969_v28  ;;  %v2190_v28 = vld [vmem:[#allocation6 + $0xbd0] sm:$0xff] }
 0x55b   : > { %1981 = vmatpush.msra.mxu1 %v1968_v24  ;;  %v2150_v24 = vld [vmem:[#allocation6 + $0xb40] sm:$0xff] }
 0x55c   : > { %2165 = vmatpush.msrb.mxu0 %v2150_v24  ;;  %v2285_v24 = vld [vmem:[#allocation6 + $0xca0] sm:$0xff] }
 0x55d   : > { %1982 = vmatpush.msra.mxu1 %v1967_v21  ;;  %v2081_v21 = vld [vmem:[#allocation6 + $0xa90] sm:$0xff] }
 0x55e   : > { %2166 = vmatpush.msrb.mxu0 %v2149_v27  ;;  %v2245_v27 = vld [vmem:[#allocation6 + $0xc10] sm:$0xff] }
 0x55f   : > { %1983 = vmatpush.msra.mxu1 %v1966_v29  ;;  %v2188_v29 = vld [vmem:[#allocation6 + $0xbc0] sm:$0xff] }
 0x561   : > { %1984 = vmatpush.msra.mxu1 %v1965_v31  ;;  %v2148_v31 = vld [vmem:[#allocation6 + $0xb30] sm:$0xff] }
 0x562   : > { %2167 = vmatpush.msrb.mxu0 %v2148_v31  ;;  %v2282_v31 = vld [vmem:[#allocation6 + $0xc88] sm:$0xff] }
 0x563   : > { %1985 = vmatpush.msra.mxu1 %v1964_v33  ;;  %v2079_v33 = vld [vmem:[#allocation6 + $0xa80] sm:$0xff] }
 0x564   : > { %2168 = vmatpush.msrb.mxu0 %v2147_v34 }
 0x565   : > { %1986 = vmatpush.msra.mxu1 %v1963_v35  ;;  %v2186_v35 = vld [vmem:[#allocation6 + $0xbb0] sm:$0xff] }
 0x566   : > { %2169 = vmatpush.msrb.mxu0 %v2146_v36 }
 0x567   : > { %1987 = vmatpush.msra.mxu1 %v1962_v37  ;;  %v2185_v37 = vld [vmem:[#allocation6 + $0xba8] sm:$0xff] }
 0x568   : > { %2170 = vmatpush.msrb.mxu0 %v2145_v38 }
 0x569   : > { %1988 = vmatpush.msra.mxu1 %v1961_v39  ;;  %v2184_v39 = vld [vmem:[#allocation6 + $0xba0] sm:$0xff] }
 0x56a   : > { %2171 = vmatpush.msrb.mxu0 %v2144_v40 }
 0x56b   : > { %1989 = vmatpush.msra.mxu1 %v1960_v41  ;;  %v2183_v41 = vld [vmem:[#allocation6 + $0xb98] sm:$0xff] }
 0x56c   : > { %2172 = vmatpush.msrb.mxu0 %v2143_v42 }
 0x56d   : > { %1990 = vmatpush.msra.mxu1 %v1959_v43  ;;  %v2182_v43 = vld [vmem:[#allocation6 + $0xb90] sm:$0xff] }
 0x56e   : > { %2173 = vmatpush.msrb.mxu0 %v2142_v44 }
 0x56f   : > { %2035 = vmatpush.msrb.mxu1 %v6782_v16 }
 0x5cb   : > { %v1938_v17 = vpop.f32.mrf.mxu1 }
 0x5cc   : > { %1991 = vmatmul.f32.vlgmr.msra.gmra.mxu1 %v1938_v17  ;;  %2011 = vmatmul.f32.vlgmr.msra.gmra.mxu0 %v1938_v17 }
 0x5cd   : > { %2136 = vmatpush.msra.mxu1 %v6782_v16  ;;  %v2083_v16 = vld [vmem:[#allocation6 + $0xaa0] sm:$0xff] }
 0x5ce   : > { %2106 = vmatpush.msra.mxu2 %v2083_v16  ;;  %v2288_v16 = vld [vmem:[#allocation6 + $0xcb8] sm:$0xff] }
 0x5d0   : > { %2107 = vmatpush.msra.mxu2 %v2082_v23  ;;  %v2247_v23 = vld [vmem:[#allocation6 + $0xc20] sm:$0xff] }
 0x5d2   : > { %2108 = vmatpush.msra.mxu2 %v2081_v21  ;;  %v2284_v21 = vld [vmem:[#allocation6 + $0xc98] sm:$0xff] }
 0x5d4   : > { %5650 = vmatmul.msk.f32.vlgmr.msrb.gmra.mxu1 %vm1917_vm3, %v2016_v26  ;;  %2109 = vmatpush.msra.mxu2 %v2080_v30  ;;  %v2293_v26 = vld [vmem:[#allocation6 + $0xce0] sm:$0xff]  ;;  %v2244_v30 = vld [vmem:[#allocation6 + $0xc08] sm:$0xff] }
 0x5d5   : > { %2196 = vmatpush.msrb.mxu1 %v2195_v47  ;;  %v2218_v47 = vld [vmem:[#allocation10 + $0x18] sm:$0xff] }
 0x5d6   : > { %2110 = vmatpush.msra.mxu2 %v2079_v33  ;;  %v2281_v33 = vld [vmem:[#allocation6 + $0xc80] sm:$0xff] }
 0x5d7   : > { %2197 = vmatpush.msrb.mxu1 %v2194_v18  ;;  %v2292_v18 = vld [vmem:[#allocation6 + $0xcd8] sm:$0xff] }
 0x5d8   : > { %2259 = vmatpush.msrb.mxu2 %v2258_v46 }
 0x5d9   : > { %2198 = vmatpush.msrb.mxu1 %v2193_v19 }
 0x5da   : > { %2260 = vmatpush.msrb.mxu2 %v2257_v55  ;;  %v5974_v55 = vld [vmem:[#allocation4 + $0x3] ss:$0 sm:$0xff] }
 0x5db   : > { %2199 = vmatpush.msrb.mxu1 %v2192_v20  ;;  %v2291_v20 = vld [vmem:[#allocation6 + $0xcd0] sm:$0xff] }
 0x5dc   : > { %5651 = vmatmul.msk.f32.vlgmr.msra.gmra.mxu1 %vm1917_vm3, %v2117_v49  ;;  %2261 = vmatpush.msrb.mxu2 %v2256_v59  ;;  %v2290_v49 = vld [vmem:[#allocation6 + $0xcc8] sm:$0xff] }
 0x5dd   : > { %2200 = vmatpush.msrb.mxu1 %v2191_v51  ;;  %v2289_v51 = vld [vmem:[#allocation6 + $0xcc0] sm:$0xff] }
 0x5de   : > { %2262 = vmatpush.msrb.mxu2 %v2255_v61 }
 0x5df   : > { %2201 = vmatpush.msrb.mxu1 %v2190_v28  ;;  %v2286_v28 = vld [vmem:[#allocation6 + $0xca8] sm:$0xff] }
 0x5e0   : > { %2263 = vmatpush.msrb.mxu2 %v2254_v63 }
 0x5e1   : > { %2202 = vmatpush.msrb.mxu1 %v2189_v8  ;;  %v2246_v8 = vld [vmem:[#allocation6 + $0xc18] sm:$0xff] }
 0x5e2   : > { %2264 = vmatpush.msrb.mxu2 %v2253_v1  ;;  %v2322_v1 = vld [vmem:[#allocation12] sm:$0xff] }
 0x5e3   : > { %2203 = vmatpush.msrb.mxu1 %v2188_v29  ;;  %v2283_v29 = vld [vmem:[#allocation6 + $0xc90] sm:$0xff] }
 0x5e4   : > { %2265 = vmatpush.msrb.mxu2 %v2252_v3  ;;  %v2369_v3 = vld [vmem:[#allocation6 + $0xd78] sm:$0xff] }
 0x5e5   : > { %2204 = vmatpush.msrb.mxu1 %v2187_v32  ;;  %v2243_v32 = vld [vmem:[#allocation6 + $0xc00] sm:$0xff] }
 0x5e6   : > { %2266 = vmatpush.msrb.mxu2 %v2251_v7  ;;  %v2466_v7 = vld [vmem:[#allocation12 + $0x20] sm:$0xff] }
 0x5e7   : > { %2205 = vmatpush.msrb.mxu1 %v2186_v35 }
 0x5e8   : > { %2267 = vmatpush.msrb.mxu2 %v2250_v10  ;;  %v2368_v10 = vld [vmem:[#allocation6 + $0xd70] sm:$0xff] }
 0x5e9   : > { %2206 = vmatpush.msrb.mxu1 %v2185_v37 }
 0x5ea   : > { %2268 = vmatpush.msrb.mxu2 %v2249_v12  ;;  %v2367_v12 = vld [vmem:[#allocation6 + $0xd68] sm:$0xff] }
 0x5eb   : > { %2207 = vmatpush.msrb.mxu1 %v2184_v39 }
 0x5ec   : > { %2269 = vmatpush.msrb.mxu2 %v2248_v14  ;;  %v2418_v14 = vld [vmem:[#allocation6 + $0xdf8] sm:$0xff] }
 0x5ed   : > { %2208 = vmatpush.msrb.mxu1 %v2183_v41 }
 0x5ee   : > { %2270 = vmatpush.msrb.mxu2 %v2247_v23  ;;  %v2510_v23 = vld [vmem:[#allocation6 + $0xe60] sm:$0xff] }
 0x5ef   : > { %2209 = vmatpush.msrb.mxu1 %v2182_v43 }
 0x5f0   : > { %2271 = vmatpush.msrb.mxu2 %v2246_v8  ;;  %v2362_v8 = vld [vmem:[#allocation6 + $0xd40] sm:$0xff] }
 0x5f1   : > { %2210 = vmatpush.msrb.mxu1 %v2181_v45 }
 0x5f2   : > { %2272 = vmatpush.msrb.mxu2 %v2245_v27  ;;  %v2412_v27 = vld [vmem:[#allocation6 + $0xdc8] sm:$0xff] }
 0x5f3   : > { %2211 = vmatpush.msrb.mxu1 %v2180_v57 }
 0x5f4   : > { %2273 = vmatpush.msrb.mxu2 %v2244_v30  ;;  %v2540_v30 = vld [vmem:[#allocation12 + $0x30] sm:$0xff] }
 0x5f6   : > { %2274 = vmatpush.msrb.mxu2 %v2243_v32  ;;  %v2508_v32 = vld [vmem:[#allocation6 + $0xe50] sm:$0xff] }
 0x649   : > { %v6791_v9 = vpop.f32.mrf.mxu1  ;;  %v2012_v36 = vpop.f32.mrf.mxu0 }
 0x64a   : > { %v2013_v37 = vadd.f32 %v2012_v36, %v6791_v9  ;;  %v2371_v9 = vld [vmem:[#allocation12 + $0x10] sm:$0xff] }
 0x64b   : > { %v2359_v36 = vld [vmem:[#allocation6 + $0xd28] sm:$0xff] }
 0x651   : > { %v2037_v17 = vpop.f32.mrf.mxu1 }
 0x652   : > { %2073 = vmatmul.f32.vlgmr.msra.gmra.mxu3 %v2037_v17  ;;  %2111 = vmatmul.f32.vlgmr.msra.gmra.mxu2 %v2037_v17  ;;  %v2366_v17 = vld [vmem:[#allocation6 + $0xd60] sm:$0xff] }
 0x653   : > { %2297 = vmatpush.msra.mxu3 %v2296_v15  ;;  %v2417_v15 = vld [vmem:[#allocation6 + $0xdf0] sm:$0xff] }
 0x655   : > { %2298 = vmatpush.msra.mxu3 %v2295_v13  ;;  %v2416_v13 = vld [vmem:[#allocation6 + $0xde8] sm:$0xff] }
 0x657   : > { %2299 = vmatpush.msra.mxu3 %v2294_v11  ;;  %v2513_v11 = vld [vmem:[#allocation6 + $0xe78] sm:$0xff] }
 0x659   : > { %v2138_v19 = vpop.f32.mrf.mxu1  ;;  %2300 = vmatpush.msra.mxu3 %v2293_v26  ;;  %v2323_v26 = vld [vmem:[#allocation12 + $0x8] sm:$0xff] }
 0x65a   : > { %5652 = vmatmul.msk.f32.vlgmr.msrb.gmra.mxu3 %vm1917_vm3, %v2218_v47  ;;  %2174 = vmatmul.f32.vlgmr.msrb.gmra.mxu0 %v2138_v19  ;;  %v2512_v47 = vld [vmem:[#allocation6 + $0xe70] sm:$0xff] }
 0x65b   : > { %2212 = vmatmul.f32.vlgmr.msrb.gmra.mxu1 %v2138_v19  ;;  %2301 = vmatpush.msra.mxu3 %v2292_v18  ;;  %v2365_v18 = vld [vmem:[#allocation6 + $0xd58] sm:$0xff]  ;;  %v2467_v19 = vld [vmem:[#allocation12 + $0x28] sm:$0xff] }
 0x65d   : > { %2302 = vmatpush.msra.mxu3 %v2291_v20  ;;  %v2372_v20 = vld [vmem:[#allocation12 + $0x18] sm:$0xff] }
 0x65f   : > { %2303 = vmatpush.msra.mxu3 %v2290_v49  ;;  %v2415_v49 = vld [vmem:[#allocation6 + $0xde0] sm:$0xff] }
 0x661   : > { %2304 = vmatpush.msra.mxu3 %v2289_v51  ;;  %v2364_v51 = vld [vmem:[#allocation6 + $0xd50] sm:$0xff] }
 0x663   : > { %2305 = vmatpush.msra.mxu3 %v2288_v16  ;;  %v2511_v16 = vld [vmem:[#allocation6 + $0xe68] sm:$0xff] }
 0x665   : > { %2306 = vmatpush.msra.mxu3 %v2287_v22  ;;  %v2414_v22 = vld [vmem:[#allocation6 + $0xdd8] sm:$0xff] }
 0x667   : > { %2307 = vmatpush.msra.mxu3 %v2286_v28  ;;  %v2363_v28 = vld [vmem:[#allocation6 + $0xd48] sm:$0xff] }
 0x669   : > { %2308 = vmatpush.msra.mxu3 %v2285_v24  ;;  %v2413_v24 = vld [vmem:[#allocation6 + $0xdd0] sm:$0xff] }
 0x66b   : > { %2309 = vmatpush.msra.mxu3 %v2284_v21  ;;  %v2509_v21 = vld [vmem:[#allocation6 + $0xe58] sm:$0xff] }
 0x66d   : > { %2310 = vmatpush.msra.mxu3 %v2283_v29  ;;  %v2361_v29 = vld [vmem:[#allocation6 + $0xd38] sm:$0xff] }
 0x66f   : > { %2311 = vmatpush.msra.mxu3 %v2282_v31  ;;  %v2411_v31 = vld [vmem:[#allocation6 + $0xdc0] sm:$0xff] }
 0x671   : > { %2312 = vmatpush.msra.mxu3 %v2281_v33  ;;  %v2360_v33 = vld [vmem:[#allocation6 + $0xd30] sm:$0xff] }
 0x673   : > { %2514 = vmatpush.msrb.mxu3 %v2513_v11  ;;  %v2582_v11 = vld [vmem:[#allocation6 + $0xed0] sm:$0xff] }
 0x675   : > { %2515 = vmatpush.msrb.mxu3 %v2512_v47  ;;  %v2581_v47 = vld [vmem:[#allocation6 + $0xec8] sm:$0xff] }
 0x677   : > { %2516 = vmatpush.msrb.mxu3 %v2511_v16  ;;  %v2576_v16 = vld [vmem:[#allocation6 + $0xea0] sm:$0xff] }
 0x679   : > { %2517 = vmatpush.msrb.mxu3 %v2510_v23  ;;  %v2573_v23 = vld [vmem:[#allocation6 + $0xe88] sm:$0xff] }
 0x67b   : > { %2518 = vmatpush.msrb.mxu3 %v2509_v21 }
 0x67d   : > { %2519 = vmatpush.msrb.mxu3 %v2508_v32 }
 0x6d5   : > { %v2074_v34 = vpop.f32.mrf.mxu3  ;;  %v2112_v39 = vpop.f32.mrf.mxu2 }
 0x6d6   : > { %v2077_v38 = vadd.f32 %v2074_v34, %v2013_v37  ;;  %v2410_v34 = vld [vmem:[#allocation6 + $0xdb8] sm:$0xff]  ;;  %v2409_v37 = vld [vmem:[#allocation6 + $0xdb0] sm:$0xff] }
 0x6d7   : > { %v2175_v41 = vpop.f32.mrf.mxu0 }
 0x6d8   : > { %v2115_v40 = vadd.f32 %v2112_v39, %v2077_v38  ;;  %v2213_v43 = vpop.f32.mrf.mxu1  ;;  %v2506_v38 = vld [vmem:[#allocation6 + $0xe40] sm:$0xff] }
 0x6d9   : > { %v2358_v39 = vld [vmem:[#allocation6 + $0xd20] sm:$0xff] }
 0x6da   : > { %v2178_v42 = vadd.f32 %v2175_v41, %v2115_v40  ;;  %v2408_v40 = vld [vmem:[#allocation6 + $0xda8] sm:$0xff]  ;;  %v2505_v41 = vld [vmem:[#allocation6 + $0xe38] sm:$0xff] }
 0x6dc   : > { %v2216_v44 = vadd.f32 %v2213_v43, %v2178_v42  ;;  %v2357_v42 = vld [vmem:[#allocation6 + $0xd18] sm:$0xff]  ;;  %v2541_v43 = vld [vmem:[#allocation12 + $0x38] sm:$0xff] }
 0x6dd   : > { %v2239_v35 = vpop.f32.mrf.mxu3 }
 0x6de   : > { %2275 = vmatmul.f32.vlgmr.msrb.gmra.mxu2 %v2239_v35  ;;  %2313 = vmatmul.f32.vlgmr.msra.gmra.mxu3 %v2239_v35  ;;  %v2507_v35 = vld [vmem:[#allocation6 + $0xe48] sm:$0xff] }
 0x6df   : > { %2520 = vmatpush.msrb.mxu3 %v2507_v35  ;;  %v6811_v35 = vld [vmem:[#allocation13 + $0x10] sm:$0xff] }
 0x6e1   : > { %2521 = vmatpush.msrb.mxu3 %v2506_v38  ;;  %v2780_v38 = vld [vmem:[#allocation13 + $0x20] sm:$0xff] }
 0x6e3   : > { %2522 = vmatpush.msrb.mxu3 %v2505_v41 }
 0x761   : > { %v2276_v45 = vpop.f32.mrf.mxu2  ;;  %v2314_v57 = vpop.f32.mrf.mxu3 }
 0x762   : > { %v2279_v46 = vadd.f32 %v2276_v45, %v2216_v44  ;;  %v2407_v44 = vld [vmem:[#allocation6 + $0xda0] sm:$0xff]  ;;  %v2504_v45 = vld [vmem:[#allocation6 + $0xe30] sm:$0xff] }
 0x763   : > { %2523 = vmatpush.msrb.mxu3 %v2504_v45 }
 0x764   : > { %v2317_v59 = vadd.f32 %v2314_v57, %v2279_v46  ;;  %v2356_v46 = vld [vmem:[#allocation6 + $0xd10] sm:$0xff]  ;;  %v2503_v57 = vld [vmem:[#allocation6 + $0xe28] sm:$0xff] }
 0x765   : > { %2524 = vmatpush.msrb.mxu3 %v2503_v57  ;;  %v2782_v57 = vld [vmem:[#allocation13 + $0x30] sm:$0xff] }
 0x766   : > { %v2320_v61 = vadd.f32 %v5974_v55, %v2317_v59  ;;  %v2406_v55 = vld [vmem:[#allocation6 + $0xd98] sm:$0xff]  ;;  %v2355_v59 = vld [vmem:[#allocation6 + $0xd08] sm:$0xff] }
 0x768   : > { %v2321_v63 = vmax.f32 %v2320_v61, 0.0  ;;  %v2405_v61 = vld [vmem:[#allocation6 + $0xd90] sm:$0xff] }
 0x76a   : > { %2345 = vmatpush.msra.mxu0 %v2321_v63  ;;  %2394 = vmatpush.msra.mxu1 %v2321_v63 }
 0x76b   : > { %2489 = vmatpush.msra.mxu2 %v2321_v63  ;;  %5653 = vmatmul.msk.f32.vlgmr.msra.gmra.mxu0 %vm1917_vm3, %v2322_v1  ;;  %v2354_v1 = vld [vmem:[#allocation6 + $0xd00] sm:$0xff] }
 0x76c   : > { %2442 = vmatpush.msrb.mxu1 %v2369_v3  ;;  %5657 = vmatmul.msk.f32.vlgmr.msra.gmra.mxu2 %vm1917_vm3, %v2466_v7  ;;  %v2404_v3 = vld [vmem:[#allocation6 + $0xd88] sm:$0xff]  ;;  %v2403_v7 = vld [vmem:[#allocation6 + $0xd80] sm:$0xff] }
 0x76d   : > { %2563 = vmatpush.msrb.mxu2 %v2321_v63  ;;  %5655 = vmatmul.msk.f32.vlgmr.msra.gmra.mxu1 %vm1917_vm3, %v2371_v9  ;;  %v2502_v63 = vld [vmem:[#allocation6 + $0xe20] sm:$0xff]  ;;  %v2587_v9 = vld [vmem:[#allocation6 + $0xef8] sm:$0xff] }
 0x76e   : > { %2443 = vmatpush.msrb.mxu1 %v2368_v10  ;;  %2419 = vmatpush.msrb.mxu0 %v2418_v14  ;;  %v2586_v10 = vld [vmem:[#allocation6 + $0xef0] sm:$0xff]  ;;  %v2584_v14 = vld [vmem:[#allocation6 + $0xee0] sm:$0xff] }
 0x76f   : > { %2525 = vmatpush.msrb.mxu3 %v2502_v63 }
 0x770   : > { %2444 = vmatpush.msrb.mxu1 %v2367_v12  ;;  %2420 = vmatpush.msrb.mxu0 %v2417_v15  ;;  %v2585_v12 = vld [vmem:[#allocation6 + $0xee8] sm:$0xff]  ;;  %v2501_v15 = vld [vmem:[#allocation6 + $0xe18] sm:$0xff] }
 0x771   : > { %2526 = vmatpush.msrb.mxu3 %v2501_v15  ;;  %v2700_v15 = vld [vmem:[#allocation6 + $0xf60] sm:$0xff] }
 0x772   : > { %2445 = vmatpush.msrb.mxu1 %v2366_v17  ;;  %2421 = vmatpush.msrb.mxu0 %v2416_v13  ;;  %v2583_v17 = vld [vmem:[#allocation6 + $0xed8] sm:$0xff]  ;;  %v2500_v13 = vld [vmem:[#allocation6 + $0xe10] sm:$0xff] }
 0x773   : > { %5654 = vmatmul.msk.f32.gmra.mxu0 %vm1917_vm3, %v2323_v26  ;;  %2527 = vmatpush.msrb.mxu3 %v2500_v13  ;;  %v2499_v26 = vld [vmem:[#allocation6 + $0xe08] sm:$0xff]  ;;  %v2699_v13 = vld [vmem:[#allocation6 + $0xf58] sm:$0xff] }
 0x774   : > { %2446 = vmatpush.msrb.mxu1 %v2365_v18  ;;  %5658 = vmatmul.msk.f32.gmra.mxu2 %vm1917_vm3, %v2467_v19  ;;  %v2498_v18 = vld [vmem:[#allocation6 + $0xe00] sm:$0xff] }
 0x775   : > { %5656 = vmatmul.msk.f32.gmra.mxu1 %vm1917_vm3, %v2372_v20  ;;  %2422 = vmatpush.msrb.mxu0 %v2415_v49  ;;  %v2580_v19 = vld [vmem:[#allocation6 + $0xec0] sm:$0xff]  ;;  %v2579_v20 = vld [vmem:[#allocation6 + $0xeb8] sm:$0xff]  ;;  %v2578_v49 = vld [vmem:[#allocation6 + $0xeb0] sm:$0xff] }
 0x776   : > { %2447 = vmatpush.msrb.mxu1 %v2364_v51  ;;  %2528 = vmatpush.msrb.mxu3 %v2499_v26  ;;  %v2577_v51 = vld [vmem:[#allocation6 + $0xea8] sm:$0xff]  ;;  %v2698_v26 = vld [vmem:[#allocation6 + $0xf50] sm:$0xff] }
 0x777   : > { %2423 = vmatpush.msrb.mxu0 %v2414_v22  ;;  %v2575_v22 = vld [vmem:[#allocation6 + $0xe98] sm:$0xff] }
 0x778   : > { %2448 = vmatpush.msrb.mxu1 %v2363_v28  ;;  %2529 = vmatpush.msrb.mxu3 %v2498_v18  ;;  %v2574_v28 = vld [vmem:[#allocation6 + $0xe90] sm:$0xff]  ;;  %v2697_v18 = vld [vmem:[#allocation6 + $0xf48] sm:$0xff] }
 0x779   : > { %2424 = vmatpush.msrb.mxu0 %v2413_v24  ;;  %v2572_v24 = vld [vmem:[#allocation6 + $0xe80] sm:$0xff] }
 0x77a   : > { %2449 = vmatpush.msrb.mxu1 %v2362_v8 }
 0x77b   : > { %2425 = vmatpush.msrb.mxu0 %v2412_v27 }
 0x77c   : > { %2450 = vmatpush.msrb.mxu1 %v2361_v29  ;;  %5659 = vmatmul.msk.f32.vlgmr.msrb.gmra.mxu2 %vm1917_vm3, %v2540_v30 }
 0x77d   : > { %2426 = vmatpush.msrb.mxu0 %v2411_v31  ;;  %v2613_v31 = vld [vmem:[#allocation13] sm:$0xff] }
 0x77e   : > { %2451 = vmatpush.msrb.mxu1 %v2360_v33  ;;  %v2614_v33 = vld [vmem:[#allocation13 + $0x8] sm:$0xff] }
 0x77f   : > { %2427 = vmatpush.msrb.mxu0 %v2410_v34 }
 0x780   : > { %2452 = vmatpush.msrb.mxu1 %v2359_v36 }
 0x781   : > { %2428 = vmatpush.msrb.mxu0 %v2409_v37  ;;  %v6815_v37 = vld [vmem:[#allocation13 + $0x18] sm:$0xff] }
 0x782   : > { %2453 = vmatpush.msrb.mxu1 %v2358_v39 }
 0x783   : > { %2429 = vmatpush.msrb.mxu0 %v2408_v40 }
 0x784   : > { %2454 = vmatpush.msrb.mxu1 %v2357_v42  ;;  %5660 = vmatmul.msk.f32.gmra.mxu2 %vm1917_vm3, %v2541_v43  ;;  %v2781_v43 = vld [vmem:[#allocation13 + $0x28] sm:$0xff] }
 0x785   : > { %2430 = vmatpush.msrb.mxu0 %v2407_v44 }
 0x786   : > { %2455 = vmatpush.msrb.mxu1 %v2356_v46 }
 0x787   : > { %2431 = vmatpush.msrb.mxu0 %v2406_v55 }
 0x788   : > { %2456 = vmatpush.msrb.mxu1 %v2355_v59 }
 0x789   : > { %2432 = vmatpush.msrb.mxu0 %v2405_v61 }
 0x78a   : > { %2457 = vmatpush.msrb.mxu1 %v2354_v1 }
 0x78b   : > { %2433 = vmatpush.msrb.mxu0 %v2404_v3  ;;  %v2703_v3 = vld [vmem:[#allocation6 + $0xf78] sm:$0xff] }
 0x78c   : > { %2672 = vmatpush.msra.mxu1 %v6748_v25 }
 0x78d   : > { %2434 = vmatpush.msrb.mxu0 %v2403_v7  ;;  %v2702_v7 = vld [vmem:[#allocation6 + $0xf70] sm:$0xff] }
 0x78e   : > { %2673 = vmatpush.msra.mxu1 %v6750_v53 }
 0x78f   : > { %2588 = vmatpush.msra.mxu0 %v2587_v9  ;;  %v6834_v9 = vld [vmem:[#allocation13 + $0x38] sm:$0xff] }
 0x791   : > { %2589 = vmatpush.msra.mxu0 %v2586_v10  ;;  %v2701_v10 = vld [vmem:[#allocation6 + $0xf68] sm:$0xff] }
 0x793   : > { %2590 = vmatpush.msra.mxu0 %v2585_v12  ;;  %v2720_v12 = vld [vmem:[#allocation6 + $0xff8] sm:$0xff] }
 0x794   : > { %2721 = vmatpush.msra.mxu3 %v2720_v12  ;;  %v2863_v12 = vld [vmem:[#allocation6 + $0x1040] sm:$0xff] }
 0x795   : > { %2591 = vmatpush.msra.mxu0 %v2584_v14  ;;  %v2719_v14 = vld [vmem:[#allocation6 + $0xff0] sm:$0xff] }
 0x796   : > { %2722 = vmatpush.msra.mxu3 %v2719_v14  ;;  %v2862_v14 = vld [vmem:[#allocation6 + $0x1038] sm:$0xff] }
 0x797   : > { %2592 = vmatpush.msra.mxu0 %v2583_v17  ;;  %v2718_v17 = vld [vmem:[#allocation6 + $0xfe8] sm:$0xff] }
 0x798   : > { %2723 = vmatpush.msra.mxu3 %v2718_v17  ;;  %v2860_v17 = vld [vmem:[#allocation6 + $0x1028] sm:$0xff] }
 0x799   : > { %2593 = vmatpush.msra.mxu0 %v2582_v11  ;;  %v2717_v11 = vld [vmem:[#allocation6 + $0xfe0] sm:$0xff] }
 0x79a   : > { %2724 = vmatpush.msra.mxu3 %v2717_v11 }
 0x79b   : > { %2594 = vmatpush.msra.mxu0 %v2581_v47  ;;  %v2716_v47 = vld [vmem:[#allocation6 + $0xfd8] sm:$0xff] }
 0x79c   : > { %2725 = vmatpush.msra.mxu3 %v2716_v47  ;;  %v2857_v47 = vld [vmem:[#allocation6 + $0x1010] sm:$0xff] }
 0x79d   : > { %2595 = vmatpush.msra.mxu0 %v2580_v19  ;;  %v2715_v19 = vld [vmem:[#allocation6 + $0xfd0] sm:$0xff] }
 0x79e   : > { %2726 = vmatpush.msra.mxu3 %v2715_v19  ;;  %v2910_v19 = vld [vmem:[#allocation6 + $0x10a8] sm:$0xff] }
 0x79f   : > { %2596 = vmatpush.msra.mxu0 %v2579_v20  ;;  %v2920_v20 = vld [vmem:[#allocation6 + $0x10f8] sm:$0xff] }
 0x7a1   : > { %2597 = vmatpush.msra.mxu0 %v2578_v49  ;;  %v2696_v49 = vld [vmem:[#allocation6 + $0xf40] sm:$0xff] }
 0x7a3   : > { %2598 = vmatpush.msra.mxu0 %v2577_v51  ;;  %v2714_v51 = vld [vmem:[#allocation6 + $0xfc8] sm:$0xff] }
 0x7a4   : > { %2727 = vmatpush.msra.mxu3 %v2714_v51  ;;  %v2908_v51 = vld [vmem:[#allocation6 + $0x1098] sm:$0xff] }
 0x7a5   : > { %2599 = vmatpush.msra.mxu0 %v2576_v16  ;;  %v2919_v16 = vld [vmem:[#allocation6 + $0x10f0] sm:$0xff] }
 0x7a7   : > { %2600 = vmatpush.msra.mxu0 %v2575_v22  ;;  %v2695_v22 = vld [vmem:[#allocation6 + $0xf38] sm:$0xff] }
 0x7a9   : > { %2601 = vmatpush.msra.mxu0 %v2574_v28  ;;  %v2713_v28 = vld [vmem:[#allocation6 + $0xfc0] sm:$0xff] }
 0x7aa   : > { %2728 = vmatpush.msra.mxu3 %v2713_v28 }
 0x7ab   : > { %2602 = vmatpush.msra.mxu0 %v2573_v23  ;;  %v2918_v23 = vld [vmem:[#allocation6 + $0x10e8] sm:$0xff] }
 0x7ad   : > { %2603 = vmatpush.msra.mxu0 %v2572_v24  ;;  %v2694_v24 = vld [vmem:[#allocation6 + $0xf30] sm:$0xff] }
 0x7e8   : > { %v2347_v8 = vpop.f32.mrf.mxu0 }
 0x7e9   : > { %2458 = vmatmul.f32.vlgmr.msrb.gmra.mxu1 %v2347_v8  ;;  %v2712_v8 = vld [vmem:[#allocation6 + $0xfb8] sm:$0xff] }
 0x7ea   : > { %2839 = vmatpush.msrb.mxu1 %v6748_v25  ;;  %v2396_v21 = vpop.f32.mrf.mxu1  ;;  %2729 = vmatpush.msra.mxu3 %v2712_v8 }
 0x7eb   : > { %2435 = vmatmul.f32.vlgmr.msrb.gmra.mxu0 %v2396_v21  ;;  %v2917_v21 = vld [vmem:[#allocation6 + $0x10e0] sm:$0xff] }
 0x7ec   : > { %2840 = vmatpush.msrb.mxu1 %v6750_v53 }
 0x7ef   : > { %v2491_v27 = vpop.f32.mrf.mxu2 }
 0x7f0   : > { %2530 = vmatmul.f32.vlgmr.msrb.gmra.mxu3 %v2491_v27  ;;  %v2350_v29 = vpop.f32.mrf.mxu0  ;;  %v2693_v27 = vld [vmem:[#allocation6 + $0xf28] sm:$0xff] }
 0x7f1   : > { %2461 = vmatmul.f32.gmra.mxu1 %v2350_v29  ;;  %v2711_v29 = vld [vmem:[#allocation6 + $0xfb0] sm:$0xff] }
 0x7f2   : > { %v2399_v30 = vpop.f32.mrf.mxu1  ;;  %2730 = vmatpush.msra.mxu3 %v2711_v29 }
 0x7f3   : > { %2438 = vmatmul.f32.gmra.mxu0 %v2399_v30  ;;  %v2916_v30 = vld [vmem:[#allocation6 + $0x10d8] sm:$0xff] }
 0x7f7   : > { %v2494_v32 = vpop.f32.mrf.mxu2 }
 0x7f8   : > { %2533 = vmatmul.f32.gmra.mxu3 %v2494_v32  ;;  %v2710_v32 = vld [vmem:[#allocation6 + $0xfa8] sm:$0xff] }
 0x7f9   : > { %5665 = vmatmul.msk.f32.vlgmr.msra.gmra.mxu1 %vm568_vm0, %v2613_v31  ;;  %2731 = vmatpush.msra.mxu3 %v2710_v32 }
 0x7fa   : > { %3014 = vmatpush.msra.mxu1 %v6748_v25 }
 0x7fc   : > { %3015 = vmatpush.msra.mxu1 %v6750_v53 }
 0x7ff   : > { %v2565_v34 = vpop.f32.mrf.mxu2 }
 0x800   : > { %2604 = vmatmul.f32.vlgmr.msra.gmra.mxu0 %v2565_v34  ;;  %v2709_v34 = vld [vmem:[#allocation6 + $0xfa0] sm:$0xff] }
 0x801   : > { %5666 = vmatmul.msk.f32.gmra.mxu1 %vm568_vm0, %v2614_v33  ;;  %2732 = vmatpush.msra.mxu3 %v2709_v34  ;;  %v2957_v34 = vld [vmem:[#allocation13 + $0x50] sm:$0xff] }
 0x807   : > { %v2568_v36 = vpop.f32.mrf.mxu2 }
 0x808   : > { %2607 = vmatmul.f32.gmra.mxu0 %v2568_v36  ;;  %v2690_v36 = vld [vmem:[#allocation6 + $0xf10] sm:$0xff] }
 0x809   : > { %5667 = vmatmul.msk.f32.gmra.mxu1 %vm568_vm0, %v6811_v35 }
 0x811   : > { %5668 = vmatmul.msk.f32.gmra.mxu1 %vm568_vm0, %v6815_v37 }
 0x819   : > { %5673 = vmatmul.msk.f32.vlgmr.msrb.gmra.mxu1 %vm568_vm0, %v2780_v38 }
 0x81a   : > { %3189 = vmatpush.msrb.mxu1 %v6748_v25 }
 0x81c   : > { %3190 = vmatpush.msrb.mxu1 %v6750_v53 }
 0x821   : > { %5674 = vmatmul.msk.f32.gmra.mxu1 %vm568_vm0, %v2781_v43 }
 0x829   : > { %5675 = vmatmul.msk.f32.gmra.mxu1 %vm568_vm0, %v2782_v57 }
 0x831   : > { %5676 = vmatmul.msk.f32.gmra.mxu1 %vm568_vm0, %v6834_v9 }
 0x866   : > { %v2459_v41 = vpop.f32.mrf.mxu1 }
 0x868   : > { %v2436_v39 = vpop.f32.mrf.mxu0 }
 0x869   : > { %v2460_v59 = vadd.f32 %v2459_v41, %v2436_v39  ;;  %v2689_v41 = vld [vmem:[#allocation6 + $0xf08] sm:$0xff] }
 0x86e   : > { %v2462_v45 = vpop.f32.mrf.mxu1 }
 0x870   : > { %v2439_v40 = vpop.f32.mrf.mxu0 }
 0x871   : > { %v2463_v55 = vadd.f32 %v2462_v45, %v2439_v40  ;;  %v2914_v40 = vld [vmem:[#allocation6 + $0x10c8] sm:$0xff] }
 0x872   : > { %v2706_v45 = vld [vmem:[#allocation6 + $0xf88] sm:$0xff] }
 0x873   : > { %v2531_v42 = vpop.f32.mrf.mxu3 }
 0x874   : > { %v2537_v25 = vadd.f32 %v2531_v42, %v2460_v59  ;;  %v2707_v42 = vld [vmem:[#allocation6 + $0xf90] sm:$0xff] }
 0x875   : > { %v2869_v59 = vld [vmem:[#allocation6 + $0x1070] sm:$0xff] }
 0x876   : > { %v2675_v39 = vpop.f32.mrf.mxu1 }
 0x87b   : > { %v2534_v46 = vpop.f32.mrf.mxu3 }
 0x87c   : > { %v2538_v61 = vadd.f32 %v2534_v46, %v2463_v55  ;;  %v2705_v46 = vld [vmem:[#allocation6 + $0xf80] sm:$0xff]  ;;  %v2870_v55 = vld [vmem:[#allocation6 + $0x1078] sm:$0xff] }
 0x87d   : > { %v2605_v44 = vpop.f32.mrf.mxu0 }
 0x87e   : > { %v6826_v53 = vadd.f32 %v2605_v44, %v2537_v25  ;;  %v2688_v44 = vld [vmem:[#allocation6 + $0xf00] sm:$0xff] }
 0x87f   : > { %v2867_v25 = vld [vmem:[#allocation6 + $0x1060] sm:$0xff] }
 0x885   : > { %v2608_v63 = vpop.f32.mrf.mxu0 }
 0x886   : > { %v6824_v1 = vadd.f32 %v2608_v63, %v2538_v61  ;;  %v2678_v61 = vpop.f32.mrf.mxu1  ;;  %v2868_v63 = vld [vmem:[#allocation6 + $0x1068] sm:$0xff] }
 0x888   : > { %2643 = vmatpush.msra.mxu2 %v6824_v1  ;;  %2810 = vmatpush.msrb.mxu0 %v6824_v1 }
 0x88a   : > { %2644 = vmatpush.msra.mxu2 %v6826_v53  ;;  %2811 = vmatpush.msrb.mxu0 %v6826_v53 }
 0x88b   : > { %5661 = vmatmul.msk.f32.vlgmr.msra.gmra.mxu2 %vm568_vm0, %v2613_v31  ;;  %5669 = vmatmul.msk.f32.vlgmr.msrb.gmra.mxu0 %vm568_vm0, %v2780_v38  ;;  %v2692_v31 = vld [vmem:[#allocation6 + $0xf20] sm:$0xff]  ;;  %v2708_v38 = vld [vmem:[#allocation6 + $0xf98] sm:$0xff] }
 0x88c   : > { %2750 = vmatpush.msrb.mxu2 %v2703_v3  ;;  %2921 = vmatpush.msra.mxu0 %v2920_v20  ;;  %v2866_v3 = vld [vmem:[#allocation6 + $0x1058] sm:$0xff]  ;;  %v2855_v20 = vld [vmem:[#allocation6 + $0x1000] sm:$0xff] }
 0x88d   : > { %2733 = vmatpush.msra.mxu3 %v2708_v38  ;;  %v2958_v38 = vld [vmem:[#allocation13 + $0x58] sm:$0xff] }
 0x88e   : > { %2751 = vmatpush.msrb.mxu2 %v2702_v7  ;;  %2922 = vmatpush.msra.mxu0 %v2919_v16  ;;  %v2865_v7 = vld [vmem:[#allocation6 + $0x1050] sm:$0xff] }
 0x88f   : > { %2734 = vmatpush.msra.mxu3 %v2707_v42  ;;  %v2907_v16 = vld [vmem:[#allocation6 + $0x1090] sm:$0xff] }
 0x890   : > { %2752 = vmatpush.msrb.mxu2 %v2701_v10  ;;  %2923 = vmatpush.msra.mxu0 %v2918_v23  ;;  %v2681_v10 = vpop.f32.mrf.mxu1  ;;  %v2905_v23 = vld [vmem:[#allocation6 + $0x1080] sm:$0xff]  ;;  %v3133_v42 = vld [vmem:[#allocation13 + $0x78] sm:$0xff] }
 0x891   : > { %2735 = vmatpush.msra.mxu3 %v2706_v45  ;;  %v3043_v45 = vld [vmem:[#allocation6 + $0x1168] sm:$0xff] }
 0x892   : > { %2753 = vmatpush.msrb.mxu2 %v2700_v15  ;;  %2924 = vmatpush.msra.mxu0 %v2917_v21  ;;  %v2861_v15 = vld [vmem:[#allocation6 + $0x1030] sm:$0xff]  ;;  %v2955_v21 = vld [vmem:[#allocation13 + $0x40] sm:$0xff] }
 0x893   : > { %5662 = vmatmul.msk.f32.gmra.mxu2 %vm568_vm0, %v2614_v33  ;;  %5670 = vmatmul.msk.f32.gmra.mxu0 %vm568_vm0, %v2781_v43  ;;  %v2691_v33 = vld [vmem:[#allocation6 + $0xf18] sm:$0xff]  ;;  %v2913_v43 = vld [vmem:[#allocation6 + $0x10c0] sm:$0xff] }
 0x894   : > { %2754 = vmatpush.msrb.mxu2 %v2699_v13  ;;  %2925 = vmatpush.msra.mxu0 %v2916_v30  ;;  %v2859_v13 = vld [vmem:[#allocation6 + $0x1020] sm:$0xff] }
 0x895   : > { %2736 = vmatpush.msra.mxu3 %v2705_v46  ;;  %5681 = vmatmul.msk.f32.vlgmr.msra.gmra.mxu1 %vm568_vm0, %v2955_v21  ;;  %v3041_v46 = vld [vmem:[#allocation6 + $0x1158] sm:$0xff] }
 0x896   : > { %2755 = vmatpush.msrb.mxu2 %v2698_v26  ;;  %2737 = vmatmul.f32.vlgmr.msra.gmra.mxu3 %v2675_v39  ;;  %v2858_v26 = vld [vmem:[#allocation6 + $0x1018] sm:$0xff] }
 0x897   : > { %2871 = vmatpush.msrb.mxu3 %v2870_v55  ;;  %v3095_v55 = vld [vmem:[#allocation6 + $0x11f8] sm:$0xff] }
 0x898   : > { %2756 = vmatpush.msrb.mxu2 %v2697_v18  ;;  %v2684_v11 = vpop.f32.mrf.mxu1  ;;  %v2856_v18 = vld [vmem:[#allocation6 + $0x1008] sm:$0xff] }
 0x899   : > { %2872 = vmatpush.msrb.mxu3 %v2869_v59  ;;  %v3094_v59 = vld [vmem:[#allocation6 + $0x11f0] sm:$0xff] }
 0x89a   : > { %2757 = vmatpush.msrb.mxu2 %v2696_v49  ;;  %v2909_v49 = vld [vmem:[#allocation6 + $0x10a0] sm:$0xff] }
 0x89b   : > { %5663 = vmatmul.msk.f32.gmra.mxu2 %vm568_vm0, %v6811_v35  ;;  %5671 = vmatmul.msk.f32.gmra.mxu0 %vm568_vm0, %v2782_v57  ;;  %v2915_v35 = vld [vmem:[#allocation6 + $0x10d0] sm:$0xff] }
 0x89c   : > { %2758 = vmatpush.msrb.mxu2 %v2695_v22  ;;  %2926 = vmatpush.msra.mxu0 %v2915_v35  ;;  %v2911_v57 = vld [vmem:[#allocation6 + $0x10b0] sm:$0xff]  ;;  %v2906_v22 = vld [vmem:[#allocation6 + $0x1088] sm:$0xff] }
 0x89d   : > { %2873 = vmatpush.msrb.mxu3 %v2868_v63  ;;  %v3093_v63 = vld [vmem:[#allocation6 + $0x11e8] sm:$0xff] }
 0x89e   : > { %2759 = vmatpush.msrb.mxu2 %v2694_v24  ;;  %2927 = vmatpush.msra.mxu0 %v2914_v40  ;;  %v3130_v40 = vld [vmem:[#allocation13 + $0x60] sm:$0xff] }
 0x89f   : > { %2874 = vmatpush.msrb.mxu3 %v2867_v25  ;;  %v3038_v25 = vld [vmem:[#allocation6 + $0x1140] sm:$0xff] }
 0x8a0   : > { %2760 = vmatpush.msrb.mxu2 %v2693_v27  ;;  %2928 = vmatpush.msra.mxu0 %v2913_v43  ;;  %v2842_v28 = vpop.f32.mrf.mxu1  ;;  %v3045_v43 = vld [vmem:[#allocation6 + $0x1178] sm:$0xff] }
 0x8a1   : > { %2740 = vmatmul.f32.gmra.mxu3 %v2678_v61  ;;  %v3039_v61 = vld [vmem:[#allocation6 + $0x1148] sm:$0xff] }
 0x8a2   : > { %2761 = vmatpush.msrb.mxu2 %v2692_v31  ;;  %2875 = vmatpush.msrb.mxu3 %v2866_v3  ;;  %v2956_v31 = vld [vmem:[#allocation13 + $0x48] sm:$0xff] }
 0x8a3   : > { %5664 = vmatmul.msk.f32.gmra.mxu2 %vm568_vm0, %v6815_v37  ;;  %5672 = vmatmul.msk.f32.gmra.mxu0 %vm568_vm0, %v6834_v9  ;;  %v2912_v37 = vld [vmem:[#allocation6 + $0x10b8] sm:$0xff]  ;;  %v2864_v9 = vld [vmem:[#allocation6 + $0x1048] sm:$0xff]  ;;  %v3092_v3 = vld [vmem:[#allocation6 + $0x11e0] sm:$0xff] }
 0x8a4   : > { %2762 = vmatpush.msrb.mxu2 %v2691_v33  ;;  %2929 = vmatpush.msra.mxu0 %v2912_v37  ;;  %v3042_v37 = vld [vmem:[#allocation6 + $0x1160] sm:$0xff] }
 0x8a5   : > { %2876 = vmatpush.msrb.mxu3 %v2865_v7  ;;  %5682 = vmatmul.msk.f32.gmra.mxu1 %vm568_vm0, %v2956_v31  ;;  %v3037_v7 = vld [vmem:[#allocation6 + $0x1138] sm:$0xff] }
 0x8a6   : > { %2763 = vmatpush.msrb.mxu2 %v2690_v36  ;;  %2930 = vmatpush.msra.mxu0 %v2911_v57  ;;  %v3040_v57 = vld [vmem:[#allocation6 + $0x1150] sm:$0xff] }
 0x8a7   : > { %2877 = vmatpush.msrb.mxu3 %v2864_v9  ;;  %v3091_v9 = vld [vmem:[#allocation6 + $0x11d8] sm:$0xff] }
 0x8a8   : > { %2764 = vmatpush.msrb.mxu2 %v2689_v41  ;;  %2931 = vmatpush.msra.mxu0 %v2910_v19  ;;  %v2845_v24 = vpop.f32.mrf.mxu1  ;;  %v3132_v41 = vld [vmem:[#allocation13 + $0x70] sm:$0xff] }
 0x8a9   : > { %2878 = vmatpush.msrb.mxu3 %v2863_v12  ;;  %v3090_v12 = vld [vmem:[#allocation6 + $0x11d0] sm:$0xff]  ;;  %v3031_v19 = vld [vmem:[#allocation6 + $0x1108] sm:$0xff] }
 0x8aa   : > { %2765 = vmatpush.msrb.mxu2 %v2688_v44  ;;  %2743 = vmatmul.f32.gmra.mxu3 %v2681_v10  ;;  %v3044_v44 = vld [vmem:[#allocation6 + $0x1170] sm:$0xff] }
 0x8ab   : > { %2879 = vmatpush.msrb.mxu3 %v2862_v14  ;;  %2932 = vmatpush.msra.mxu0 %v2909_v49  ;;  %v3036_v10 = vld [vmem:[#allocation6 + $0x1130] sm:$0xff]  ;;  %v3035_v14 = vld [vmem:[#allocation6 + $0x1128] sm:$0xff] }
 0x8ac   : > { %2985 = vmatpush.msra.mxu2 %v6824_v1 }
 0x8ad   : > { %2880 = vmatpush.msrb.mxu3 %v2861_v15  ;;  %2933 = vmatpush.msra.mxu0 %v2908_v51  ;;  %v3089_v15 = vld [vmem:[#allocation6 + $0x11c8] sm:$0xff]  ;;  %v3030_v51 = vld [vmem:[#allocation6 + $0x1100] sm:$0xff] }
 0x8ae   : > { %2986 = vmatpush.msra.mxu2 %v6826_v53  ;;  %5683 = vmatmul.msk.f32.gmra.mxu1 %vm568_vm0, %v2957_v34 }
 0x8af   : > { %2881 = vmatpush.msrb.mxu3 %v2860_v17  ;;  %2934 = vmatpush.msra.mxu0 %v2907_v16  ;;  %v3034_v17 = vld [vmem:[#allocation6 + $0x1120] sm:$0xff] }
 0x8b0   : > { %v2848_v8 = vpop.f32.mrf.mxu1  ;;  %v3084_v16 = vld [vmem:[#allocation6 + $0x11a0] sm:$0xff] }
 0x8b1   : > { %2882 = vmatpush.msrb.mxu3 %v2859_v13  ;;  %2935 = vmatpush.msra.mxu0 %v2906_v22  ;;  %v3088_v13 = vld [vmem:[#allocation6 + $0x11c0] sm:$0xff]  ;;  %v3083_v22 = vld [vmem:[#allocation6 + $0x1198] sm:$0xff] }
 0x8b2   : > { %2746 = vmatmul.f32.gmra.mxu3 %v2684_v11  ;;  %v3033_v11 = vld [vmem:[#allocation6 + $0x1118] sm:$0xff] }
 0x8b3   : > { %2883 = vmatpush.msrb.mxu3 %v2858_v26  ;;  %2936 = vmatpush.msra.mxu0 %v2905_v23  ;;  %v3087_v26 = vld [vmem:[#allocation6 + $0x11b8] sm:$0xff]  ;;  %v3082_v23 = vld [vmem:[#allocation6 + $0x1190] sm:$0xff] }
 0x8b4   : > { %2937 = vmatmul.f32.vlgmr.msra.gmra.mxu0 %v2842_v28  ;;  %v3220_v28 = vld [vmem:[#allocation6 + $0x1278] sm:$0xff] }
 0x8b5   : > { %2884 = vmatpush.msrb.mxu3 %v2857_v47  ;;  %3096 = vmatpush.msrb.mxu0 %v3095_v55  ;;  %v3032_v47 = vld [vmem:[#allocation6 + $0x1110] sm:$0xff] }
 0x8b6   : > { %5684 = vmatmul.msk.f32.gmra.mxu1 %vm568_vm0, %v2958_v38 }
 0x8b7   : > { %2885 = vmatpush.msrb.mxu3 %v2856_v18  ;;  %3097 = vmatpush.msrb.mxu0 %v3094_v59  ;;  %v3086_v18 = vld [vmem:[#allocation6 + $0x11b0] sm:$0xff]  ;;  %v3263_v59 = vld [vmem:[#allocation6 + $0x12c0] sm:$0xff] }
 0x8b8   : > { %v2851_v30 = vpop.f32.mrf.mxu1 }
 0x8b9   : > { %2886 = vmatpush.msrb.mxu3 %v2855_v20  ;;  %3098 = vmatpush.msrb.mxu0 %v3093_v63  ;;  %v3085_v20 = vld [vmem:[#allocation6 + $0x11a8] sm:$0xff]  ;;  %v3262_v63 = vld [vmem:[#allocation6 + $0x12b8] sm:$0xff] }
 0x8bb   : > { %3046 = vmatpush.msra.mxu3 %v3045_v43  ;;  %3099 = vmatpush.msrb.mxu0 %v3092_v3  ;;  %v3211_v43 = vld [vmem:[#allocation6 + $0x1230] sm:$0xff] }
 0x8bc   : > { %2940 = vmatmul.f32.gmra.mxu0 %v2845_v24  ;;  %v3219_v24 = vld [vmem:[#allocation6 + $0x1270] sm:$0xff] }
 0x8bd   : > { %3047 = vmatpush.msra.mxu3 %v3044_v44  ;;  %3100 = vmatpush.msrb.mxu0 %v3091_v9  ;;  %v3265_v44 = vld [vmem:[#allocation6 + $0x12d0] sm:$0xff]  ;;  %v3260_v9 = vld [vmem:[#allocation6 + $0x12a8] sm:$0xff] }
 0x8be   : > { %5689 = vmatmul.msk.f32.vlgmr.msrb.gmra.mxu1 %vm568_vm0, %v3130_v40  ;;  %v3261_v3 = vld [vmem:[#allocation6 + $0x12b0] sm:$0xff] }
 0x8bf   : > { %3048 = vmatpush.msra.mxu3 %v3043_v45  ;;  %3101 = vmatpush.msrb.mxu0 %v3090_v12  ;;  %v3210_v45 = vld [vmem:[#allocation6 + $0x1228] sm:$0xff] }
 0x8c1   : > { %3049 = vmatpush.msra.mxu3 %v3042_v37  ;;  %3102 = vmatpush.msrb.mxu0 %v3089_v15  ;;  %v3264_v37 = vld [vmem:[#allocation6 + $0x12c8] sm:$0xff]  ;;  %v3259_v15 = vld [vmem:[#allocation6 + $0x12a0] sm:$0xff] }
 0x8c3   : > { %3050 = vmatpush.msra.mxu3 %v3041_v46  ;;  %3103 = vmatpush.msrb.mxu0 %v3088_v13  ;;  %v3257_v13 = vld [vmem:[#allocation6 + $0x1290] sm:$0xff] }
 0x8c4   : > { %2943 = vmatmul.f32.gmra.mxu0 %v2848_v8  ;;  %v3218_v8 = vld [vmem:[#allocation6 + $0x1268] sm:$0xff] }
 0x8c5   : > { %3051 = vmatpush.msra.mxu3 %v3040_v57  ;;  %3104 = vmatpush.msrb.mxu0 %v3087_v26  ;;  %v3209_v57 = vld [vmem:[#allocation6 + $0x1220] sm:$0xff] }
 0x8c7   : > { %3052 = vmatpush.msra.mxu3 %v3039_v61  ;;  %3105 = vmatpush.msrb.mxu0 %v3086_v18  ;;  %v3208_v61 = vld [vmem:[#allocation6 + $0x1218] sm:$0xff]  ;;  %v3255_v18 = vld [vmem:[#allocation6 + $0x1280] sm:$0xff] }
 0x8c9   : > { %3053 = vmatpush.msra.mxu3 %v3038_v25  ;;  %3106 = vmatpush.msrb.mxu0 %v3085_v20  ;;  %v3207_v25 = vld [vmem:[#allocation6 + $0x1210] sm:$0xff] }
 0x8cb   : > { %3054 = vmatpush.msra.mxu3 %v3037_v7  ;;  %3107 = vmatpush.msrb.mxu0 %v3084_v16  ;;  %v3206_v7 = vld [vmem:[#allocation6 + $0x1208] sm:$0xff] }
 0x8cc   : > { %2946 = vmatmul.f32.gmra.mxu0 %v2851_v30  ;;  %v3080_v30 = vld [vmem:[#allocation6 + $0x1180] sm:$0xff] }
 0x8cd   : > { %3055 = vmatpush.msra.mxu3 %v3036_v10  ;;  %3108 = vmatpush.msrb.mxu0 %v3083_v22 }
 0x8cf   : > { %3056 = vmatpush.msra.mxu3 %v3035_v14  ;;  %3109 = vmatpush.msrb.mxu0 %v3082_v23  ;;  %v3205_v14 = vld [vmem:[#allocation6 + $0x1200] sm:$0xff] }
 0x8d1   : > { %3057 = vmatpush.msra.mxu3 %v3034_v17  ;;  %v3258_v17 = vld [vmem:[#allocation6 + $0x1298] sm:$0xff] }
 0x8d3   : > { %3058 = vmatpush.msra.mxu3 %v3033_v11  ;;  %v3256_v11 = vld [vmem:[#allocation6 + $0x1288] sm:$0xff] }
 0x8d5   : > { %3059 = vmatpush.msra.mxu3 %v3032_v47 }
 0x8d7   : > { %3060 = vmatpush.msra.mxu3 %v3031_v19 }
 0x8d9   : > { %3061 = vmatpush.msra.mxu3 %v3030_v51 }
 0x908   : > { %v2813_v27 = vpop.f32.mrf.mxu0 }
 0x909   : > { %2887 = vmatmul.f32.vlgmr.msrb.gmra.mxu3 %v2813_v27 }
 0x90a   : > { %3221 = vmatpush.msrb.mxu3 %v3220_v28 }
 0x90c   : > { %3222 = vmatpush.msrb.mxu3 %v3219_v24 }
 0x90e   : > { %v2646_v29 = vpop.f32.mrf.mxu2  ;;  %3223 = vmatpush.msrb.mxu3 %v3218_v8 }
 0x90f   : > { %2766 = vmatmul.f32.vlgmr.msrb.gmra.mxu2 %v2646_v29 }
 0x910   : > { %3160 = vmatpush.msrb.mxu2 %v6824_v1  ;;  %v2816_v32 = vpop.f32.mrf.mxu0 }
 0x911   : > { %2890 = vmatmul.f32.gmra.mxu3 %v2816_v32  ;;  %v3216_v32 = vld [vmem:[#allocation6 + $0x1258] sm:$0xff] }
 0x912   : > { %3161 = vmatpush.msrb.mxu2 %v6826_v53  ;;  %v3131_v53 = vld [vmem:[#allocation13 + $0x68] sm:$0xff]  ;;  %v3017_v29 = vpop.f32.mrf.mxu1 }
 0x913   : > { %5690 = vmatmul.msk.f32.gmra.mxu1 %vm568_vm0, %v3131_v53 }
 0x916   : > { %v2649_v33 = vpop.f32.mrf.mxu2 }
 0x917   : > { %2769 = vmatmul.f32.gmra.mxu2 %v2649_v33  ;;  %v3270_v33 = vld [vmem:[#allocation6 + $0x12f8] sm:$0xff] }
 0x918   : > { %v2819_v35 = vpop.f32.mrf.mxu0 }
 0x919   : > { %2893 = vmatmul.f32.gmra.mxu3 %v2819_v35  ;;  %v3269_v35 = vld [vmem:[#allocation6 + $0x12f0] sm:$0xff]  ;;  %v2738_v8 = vpop.f32.mrf.mxu3 }
 0x91b   : > { %5691 = vmatmul.msk.f32.gmra.mxu1 %vm568_vm0, %v3132_v41 }
 0x91e   : > { %v2652_v36 = vpop.f32.mrf.mxu2 }
 0x91f   : > { %2772 = vmatmul.f32.gmra.mxu2 %v2652_v36  ;;  %v3214_v36 = vld [vmem:[#allocation6 + $0x1248] sm:$0xff] }
 0x920   : > { %v2822_v39 = vpop.f32.mrf.mxu0 }
 0x921   : > { %2896 = vmatmul.f32.gmra.mxu3 %v2822_v39 }
 0x923   : > { %5692 = vmatmul.msk.f32.gmra.mxu1 %vm568_vm0, %v3133_v42 }
 0x926   : > { %v2655_v1 = vpop.f32.mrf.mxu2 }
 0x927   : > { %2775 = vmatmul.f32.gmra.mxu2 %v2655_v1  ;;  %v3020_v1 = vpop.f32.mrf.mxu1 }
 0x92f   : > { %5677 = vmatmul.msk.f32.vlgmr.msra.gmra.mxu2 %vm568_vm0, %v2955_v21  ;;  %v3081_v21 = vld [vmem:[#allocation6 + $0x1188] sm:$0xff]  ;;  %v3023_v55 = vpop.f32.mrf.mxu1 }
 0x930   : > { %3110 = vmatpush.msrb.mxu0 %v3081_v21 }
 0x932   : > { %3111 = vmatpush.msrb.mxu0 %v3080_v30 }
 0x933   : > { %3112 = vmatmul.f32.vlgmr.msrb.gmra.mxu0 %v3017_v29  ;;  %v2741_v29 = vpop.f32.mrf.mxu3 }
 0x934   : > { %3271 = vmatpush.msra.mxu0 %v3270_v33 }
 0x936   : > { %3272 = vmatpush.msra.mxu0 %v3269_v35 }
 0x937   : > { %5678 = vmatmul.msk.f32.gmra.mxu2 %vm568_vm0, %v2956_v31  ;;  %v3217_v31 = vld [vmem:[#allocation6 + $0x1260] sm:$0xff]  ;;  %v3026_v12 = vpop.f32.mrf.mxu1 }
 0x938   : > { %3224 = vmatpush.msrb.mxu3 %v3217_v31  ;;  %v6875_v31 = vpop.f32.mrf.mxu0 }
 0x93a   : > { %3225 = vmatpush.msrb.mxu3 %v3216_v32 }
 0x93b   : > { %3115 = vmatmul.f32.gmra.mxu0 %v3020_v1  ;;  %v2744_v30 = vpop.f32.mrf.mxu3 }
 0x93f   : > { %5679 = vmatmul.msk.f32.gmra.mxu2 %vm568_vm0, %v2957_v34  ;;  %v3215_v34 = vld [vmem:[#allocation6 + $0x1250] sm:$0xff]  ;;  %v3192_v47 = vpop.f32.mrf.mxu1 }
 0x940   : > { %3226 = vmatpush.msrb.mxu3 %v3215_v34  ;;  %v2941_v33 = vpop.f32.mrf.mxu0 }
 0x942   : > { %3227 = vmatpush.msrb.mxu3 %v3214_v36 }
 0x943   : > { %3118 = vmatmul.f32.gmra.mxu0 %v3023_v55  ;;  %v2747_v32 = vpop.f32.mrf.mxu3 }
 0x947   : > { %5680 = vmatmul.msk.f32.gmra.mxu2 %vm568_vm0, %v2958_v38  ;;  %v3268_v38 = vld [vmem:[#allocation6 + $0x12e8] sm:$0xff] }
 0x948   : > { %3273 = vmatpush.msra.mxu0 %v3268_v38  ;;  %v2944_v35 = vpop.f32.mrf.mxu0 }
 0x94b   : > { %3121 = vmatmul.f32.gmra.mxu0 %v3026_v12  ;;  %v3555_v12 = vld [vmem:[#allocation6 + $0x13a8] sm:$0xff] }
 0x94f   : > { %5685 = vmatmul.msk.f32.vlgmr.msrb.gmra.mxu2 %vm568_vm0, %v3130_v40  ;;  %v3213_v40 = vld [vmem:[#allocation6 + $0x1240] sm:$0xff] }
 0x950   : > { %3228 = vmatpush.msrb.mxu3 %v3213_v40  ;;  %v2947_v38 = vpop.f32.mrf.mxu0 }
 0x957   : > { %5686 = vmatmul.msk.f32.gmra.mxu2 %vm568_vm0, %v3131_v53  ;;  %v3267_v53 = vld [vmem:[#allocation6 + $0x12e0] sm:$0xff] }
 0x958   : > { %3274 = vmatpush.msra.mxu0 %v3267_v53 }
 0x95f   : > { %5687 = vmatmul.msk.f32.gmra.mxu2 %vm568_vm0, %v3132_v41  ;;  %v3212_v41 = vld [vmem:[#allocation6 + $0x1238] sm:$0xff] }
 0x960   : > { %3229 = vmatpush.msrb.mxu3 %v3212_v41 }
 0x962   : > { %3230 = vmatpush.msrb.mxu3 %v3211_v43  ;;  %v3565_v43 = vld [vmem:[#allocation6 + $0x13f8] sm:$0xff] }
 0x964   : > { %3231 = vmatpush.msrb.mxu3 %v3210_v45 }
 0x966   : > { %3232 = vmatpush.msrb.mxu3 %v3209_v57  ;;  %v3562_v57 = vld [vmem:[#allocation6 + $0x13e0] sm:$0xff] }
 0x967   : > { %5688 = vmatmul.msk.f32.gmra.mxu2 %vm568_vm0, %v3133_v42  ;;  %v3266_v42 = vld [vmem:[#allocation6 + $0x12d8] sm:$0xff] }
 0x968   : > { %3275 = vmatpush.msra.mxu0 %v3266_v42  ;;  %3233 = vmatpush.msrb.mxu3 %v3208_v61  ;;  %v3560_v61 = vld [vmem:[#allocation6 + $0x13d0] sm:$0xff] }
 0x96a   : > { %3276 = vmatpush.msra.mxu0 %v3265_v44  ;;  %3234 = vmatpush.msrb.mxu3 %v3207_v25  ;;  %v3564_v44 = vld [vmem:[#allocation6 + $0x13f0] sm:$0xff] }
 0x96c   : > { %3277 = vmatpush.msra.mxu0 %v3264_v37  ;;  %3235 = vmatpush.msrb.mxu3 %v3206_v7  ;;  %v3563_v37 = vld [vmem:[#allocation6 + $0x13e8] sm:$0xff]  ;;  %v3558_v7 = vld [vmem:[#allocation6 + $0x13c0] sm:$0xff] }
 0x96e   : > { %3278 = vmatpush.msra.mxu0 %v3263_v59  ;;  %3236 = vmatpush.msrb.mxu3 %v3205_v14  ;;  %v3561_v59 = vld [vmem:[#allocation6 + $0x13d8] sm:$0xff] }
 0x970   : > { %3279 = vmatpush.msra.mxu0 %v3262_v63  ;;  %v3559_v63 = vld [vmem:[#allocation6 + $0x13c8] sm:$0xff] }
 0x972   : > { %3280 = vmatpush.msra.mxu0 %v3261_v3 }
 0x974   : > { %3281 = vmatpush.msra.mxu0 %v3260_v9  ;;  %v3557_v9 = vld [vmem:[#allocation6 + $0x13b8] sm:$0xff] }
 0x976   : > { %3282 = vmatpush.msra.mxu0 %v3259_v15  ;;  %v3554_v15 = vld [vmem:[#allocation6 + $0x13a0] sm:$0xff] }
 0x978   : > { %3283 = vmatpush.msra.mxu0 %v3258_v17 }
 0x97a   : > { %3284 = vmatpush.msra.mxu0 %v3257_v13  ;;  %v3553_v13 = vld [vmem:[#allocation6 + $0x1398] sm:$0xff] }
 0x97c   : > { %3285 = vmatpush.msra.mxu0 %v3256_v11  ;;  %v3552_v11 = vld [vmem:[#allocation6 + $0x1390] sm:$0xff] }
 0x97e   : > { %3286 = vmatpush.msra.mxu0 %v3255_v18 }
 0x97f   : > { %3287 = vmatmul.f32.vlgmr.msra.gmra.mxu0 %v3192_v47  ;;  %v3550_v47 = vld [vmem:[#allocation6 + $0x1380] sm:$0xff] }
 0x98c   : > { %v2888_v34 = vpop.f32.mrf.mxu3 }
 0x990   : > { %v3195_v20 = vpop.f32.mrf.mxu1 }
 0x991   : > { %3290 = vmatmul.f32.gmra.mxu0 %v3195_v20 }
 0x992   : > { %v6867_v49 = vpop.f32.mrf.mxu2 }
 0x994   : > { %v2891_v36 = vpop.f32.mrf.mxu3 }
 0x998   : > { %v3198_v16 = vpop.f32.mrf.mxu1 }
 0x999   : > { %3293 = vmatmul.f32.gmra.mxu0 %v3198_v16 }
 0x99a   : > { %v6869_v27 = vpop.f32.mrf.mxu2 }
 0x99c   : > { %v2894_v1 = vpop.f32.mrf.mxu3 }
 0x9a0   : > { %v3201_v28 = vpop.f32.mrf.mxu1 }
 0x9a1   : > { %3296 = vmatmul.f32.gmra.mxu0 %v3201_v28 }
 0x9a2   : > { %v6871_v39 = vpop.f32.mrf.mxu2 }
 0x9a3   : > { %v2774_v20 = vadd.f32 %v6871_v39, %v2744_v30 }
 0x9a4   : > { %v2897_v53 = vpop.f32.mrf.mxu3 }
 0x9a5   : > { %v2902_v28 = vadd.f32 %v2894_v1, %v2774_v20  ;;  %v3798_v20 = vld [vmem:[#allocation6 + $0x1450] sm:$0xff] }
 0x9aa   : > { %v6873_v46 = vpop.f32.mrf.mxu2 }
 0x9b0   : > { %v6877_v40 = vpop.f32.mrf.mxu0 }
 0x9b2   : > { %v2988_v10 = vpop.f32.mrf.mxu2 }
 0x9b3   : > { %3062 = vmatmul.f32.vlgmr.msra.gmra.mxu3 %v2988_v10  ;;  %v3556_v10 = vld [vmem:[#allocation6 + $0x13b0] sm:$0xff] }
 0x9b4   : > { %3566 = vmatpush.msra.mxu3 %v3565_v43  ;;  %v2952_v43 = vadd.f32 %v2944_v35, %v2902_v28  ;;  %v3443_v28 = vld [vmem:[#allocation15 + $0x78] sm:$0xff] }
 0x9b6   : > { %3567 = vmatpush.msra.mxu3 %v3564_v44 }
 0x9b8   : > { %v3116_v41 = vpop.f32.mrf.mxu0  ;;  %3568 = vmatpush.msra.mxu3 %v3563_v37 }
 0x9ba   : > { %v2991_v26 = vpop.f32.mrf.mxu2  ;;  %3569 = vmatpush.msra.mxu3 %v3562_v57 }
 0x9bb   : > { %3065 = vmatmul.f32.gmra.mxu3 %v2991_v26  ;;  %v3551_v26 = vld [vmem:[#allocation6 + $0x1388] sm:$0xff] }
 0x9bc   : > { %3570 = vmatpush.msra.mxu3 %v3561_v59 }
 0x9be   : > { %3571 = vmatpush.msra.mxu3 %v3560_v61 }
 0x9c0   : > { %v3119_v45 = vpop.f32.mrf.mxu0  ;;  %3572 = vmatpush.msra.mxu3 %v3559_v63 }
 0x9c2   : > { %v2994_v19 = vpop.f32.mrf.mxu2  ;;  %3573 = vmatpush.msra.mxu3 %v3558_v7 }
 0x9c3   : > { %3068 = vmatmul.f32.gmra.mxu3 %v2994_v19 }
 0x9c4   : > { %3574 = vmatpush.msra.mxu3 %v3557_v9 }
 0x9c6   : > { %3575 = vmatpush.msra.mxu3 %v3556_v10 }
 0x9c8   : > { %v3122_v3 = vpop.f32.mrf.mxu0  ;;  %3576 = vmatpush.msra.mxu3 %v3555_v12 }
 0x9ca   : > { %v2997_v51 = vpop.f32.mrf.mxu2  ;;  %3577 = vmatpush.msra.mxu3 %v3554_v15  ;;  %v3441_v15 = vld [vmem:[#allocation15 + $0x68] sm:$0xff] }
 0x9cb   : > { %3071 = vmatmul.f32.gmra.mxu3 %v2997_v51  ;;  %v2771_v51 = vadd.f32 %v6869_v27, %v2741_v29 }
 0x9cc   : > { %3578 = vmatpush.msra.mxu3 %v3553_v13  ;;  %v3802_v13 = vld [vmem:[#allocation6 + $0x1470] sm:$0xff] }
 0x9ce   : > { %3579 = vmatpush.msra.mxu3 %v3552_v11  ;;  %v3801_v11 = vld [vmem:[#allocation6 + $0x1468] sm:$0xff] }
 0x9d0   : > { %3580 = vmatpush.msra.mxu3 %v3551_v26  ;;  %v3800_v26 = vld [vmem:[#allocation6 + $0x1460] sm:$0xff] }
 0x9d2   : > { %v3163_v22 = vpop.f32.mrf.mxu2  ;;  %3581 = vmatpush.msra.mxu3 %v3550_v47  ;;  %v3315_v47 = vld [vmem:[#allocation15 + $0x8] sm:$0xff] }
 0x9d3   : > { %3237 = vmatmul.f32.vlgmr.msrb.gmra.mxu3 %v3163_v22  ;;  %v2768_v22 = vadd.f32 %v6867_v49, %v2738_v8 }
 0x9da   : > { %v3166_v23 = vpop.f32.mrf.mxu2 }
 0x9db   : > { %3240 = vmatmul.f32.gmra.mxu3 %v3166_v23  ;;  %v2777_v23 = vadd.f32 %v6873_v46, %v2747_v32 }
 0x9dd   : > { %v2903_v44 = vadd.f32 %v2897_v53, %v2777_v23  ;;  %v5975_v53 = vld [vmem:[#allocation4 + $0x4] ss:$0 sm:$0xff] }
 0x9de   : > { %v3795_v23 = vld [vmem:[#allocation6 + $0x1438] sm:$0xff] }
 0x9df   : > { %v2953_v7 = vadd.f32 %v2947_v38, %v2903_v44  ;;  %v3317_v44 = vld [vmem:[#allocation15 + $0x18] sm:$0xff] }
 0x9e2   : > { %v3169_v24 = vpop.f32.mrf.mxu2 }
 0x9e3   : > { %3243 = vmatmul.f32.gmra.mxu3 %v3169_v24  ;;  %v2901_v24 = vadd.f32 %v2891_v36, %v2771_v51  ;;  %v3797_v51 = vld [vmem:[#allocation6 + $0x1448] sm:$0xff] }
 0x9e5   : > { %v2951_v57 = vadd.f32 %v2941_v33, %v2901_v24  ;;  %v3794_v24 = vld [vmem:[#allocation6 + $0x1430] sm:$0xff] }
 0x9ea   : > { %v3172_v21 = vpop.f32.mrf.mxu2 }
 0x9eb   : > { %3246 = vmatmul.f32.gmra.mxu3 %v3172_v21  ;;  %v2900_v21 = vadd.f32 %v2888_v34, %v2768_v22  ;;  %v3316_v22 = vld [vmem:[#allocation15 + $0x10] sm:$0xff] }
 0x9ed   : > { %v2950_v63 = vadd.f32 %v6875_v31, %v2900_v21  ;;  %v3793_v21 = vld [vmem:[#allocation6 + $0x1428] sm:$0xff] }
 0x9fc   : > { %v3288_v17 = vpop.f32.mrf.mxu0 }
 0xa0e   : > { %v3291_v19 = vpop.f32.mrf.mxu0 }
 0xa16   : > { %v3294_v37 = vpop.f32.mrf.mxu0 }
 0xa1e   : > { %v3297_v35 = vpop.f32.mrf.mxu0 }
 0xa36   : > { %v3063_v42 = vpop.f32.mrf.mxu3 }
 0xa37   : > { %v3075_v30 = vadd.f32 %v3063_v42, %v2950_v63  ;;  %v3788_v63 = vld [vmem:[#allocation6 + $0x1400] sm:$0xff] }
 0xa39   : > { %v3125_v8 = vadd.f32 %v6877_v40, %v3075_v30  ;;  %v3319_v30 = vld [vmem:[#allocation15 + $0x28] sm:$0xff] }
 0xa3e   : > { %v3066_v55 = vpop.f32.mrf.mxu3 }
 0xa3f   : > { %v3076_v39 = vadd.f32 %v3066_v55, %v2951_v57  ;;  %v3791_v57 = vld [vmem:[#allocation6 + $0x1418] sm:$0xff] }
 0xa41   : > { %v3126_v9 = vadd.f32 %v3116_v41, %v3076_v39  ;;  %v3445_v39 = vld [vmem:[#allocation15 + $0x88] sm:$0xff] }
 0xa46   : > { %v3069_v25 = vpop.f32.mrf.mxu3 }
 0xa47   : > { %v3077_v59 = vadd.f32 %v3069_v25, %v2952_v43  ;;  %v3792_v43 = vld [vmem:[#allocation6 + $0x1420] sm:$0xff] }
 0xa49   : > { %v3127_v27 = vadd.f32 %v3119_v45, %v3077_v59  ;;  %v3790_v59 = vld [vmem:[#allocation6 + $0x1410] sm:$0xff] }
 0xa4e   : > { %v3072_v14 = vpop.f32.mrf.mxu3 }
 0xa4f   : > { %v3078_v29 = vadd.f32 %v3072_v14, %v2953_v7  ;;  %v3314_v14 = vld [vmem:[#allocation15] sm:$0xff] }
 0xa50   : > { %v3318_v7 = vld [vmem:[#allocation15 + $0x20] sm:$0xff] }
 0xa51   : > { %v3128_v46 = vadd.f32 %v3122_v3, %v3078_v29  ;;  %v3320_v29 = vld [vmem:[#allocation15 + $0x30] sm:$0xff] }
 0xa56   : > { %v3238_v18 = vpop.f32.mrf.mxu3 }
 0xa57   : > { %v3250_v36 = vadd.f32 %v3238_v18, %v3125_v8  ;;  %v3442_v18 = vld [vmem:[#allocation15 + $0x70] sm:$0xff]  ;;  %v3448_v8 = vld [vmem:[#allocation15 + $0xa0] sm:$0xff] }
 0xa59   : > { %v3300_v31 = vadd.f32 %v3288_v17, %v3250_v36  ;;  %v3803_v17 = vld [vmem:[#allocation6 + $0x1478] sm:$0xff]  ;;  %v3323_v36 = vld [vmem:[#allocation15 + $0x48] sm:$0xff] }
 0xa5b   : > { %v3306_v12 = vadd.f32 %v5975_v53, %v3300_v31  ;;  %v3324_v31 = vld [vmem:[#allocation15 + $0x50] sm:$0xff] }
 0xa5d   : > { %v3310_v3 = vmax.f32 %v3306_v12, 0.0  ;;  %v3430_v12 = vld [vmem:[#allocation6 + $0x1330] sm:$0xff] }
 0xa5e   : > { %v3241_v16 = vpop.f32.mrf.mxu3 }
 0xa5f   : > { %v3251_v32 = vadd.f32 %v3241_v16, %v3126_v9  ;;  %v3796_v16 = vld [vmem:[#allocation6 + $0x1440] sm:$0xff]  ;;  %v3447_v9 = vld [vmem:[#allocation15 + $0x98] sm:$0xff] }
 0xa61   : > { %v3301_v25 = vadd.f32 %v3291_v19, %v3251_v32  ;;  %v3799_v19 = vld [vmem:[#allocation6 + $0x1458] sm:$0xff]  ;;  %v3449_v32 = vld [vmem:[#allocation15 + $0xa8] sm:$0xff] }
 0xa63   : > { %v3307_v42 = vadd.f32 %v5975_v53, %v3301_v25  ;;  %v3435_v25 = vld [vmem:[#allocation6 + $0x1358] sm:$0xff] }
 0xa65   : > { %v3311_v40 = vmax.f32 %v3307_v42, 0.0  ;;  %v3432_v42 = vld [vmem:[#allocation6 + $0x1340] sm:$0xff] }
 0xa66   : > { %v3244_v61 = vpop.f32.mrf.mxu3 }
 0xa67   : > { %v3252_v49 = vadd.f32 %v3244_v61, %v3127_v27  ;;  %v3789_v61 = vld [vmem:[#allocation6 + $0x1408] sm:$0xff] }
 0xa68   : > { %v3446_v27 = vld [vmem:[#allocation15 + $0x90] sm:$0xff] }
 0xa69   : > { %v3302_v1 = vadd.f32 %v3294_v37, %v3252_v49  ;;  %v3444_v37 = vld [vmem:[#allocation15 + $0x80] sm:$0xff]  ;;  %v3321_v49 = vld [vmem:[#allocation15 + $0x38] sm:$0xff] }
 0xa6b   : > { %v3308_v38 = vadd.f32 %v5975_v53, %v3302_v1  ;;  %v3450_v1 = vld [vmem:[#allocation15 + $0xb0] sm:$0xff] }
 0xa6d   : > { %v3312_v41 = vmax.f32 %v3308_v38, 0.0  ;;  %v3451_v38 = vld [vmem:[#allocation15 + $0xb8] sm:$0xff] }
 0xa6e   : > { %v3247_v34 = vpop.f32.mrf.mxu3 }
 0xa6f   : > { %v3253_v33 = vadd.f32 %v3247_v34, %v3128_v46  ;;  %v3322_v46 = vld [vmem:[#allocation15 + $0x40] sm:$0xff] }
 0xa70   : > { %v3439_v34 = vld [vmem:[#allocation6 + $0x1378] sm:$0xff] }
 0xa71   : > { %v3303_v10 = vadd.f32 %v3297_v35, %v3253_v33  ;;  %v3438_v35 = vld [vmem:[#allocation6 + $0x1370] sm:$0xff]  ;;  %3622 = vmatpush.msrb.mxu0 %v3439_v34  ;;  %v3437_v33 = vld [vmem:[#allocation6 + $0x1368] sm:$0xff]  ;;  %v3690_v34 = vld [vmem:[#allocation15 + $0x128] sm:$0xff] }
 0xa73   : > { %v3309_v55 = vadd.f32 %v5975_v53, %v3303_v10  ;;  %3623 = vmatpush.msrb.mxu0 %v3438_v35  ;;  %v3436_v53 = vld [vmem:[#allocation6 + $0x1360] sm:$0xff]  ;;  %v3434_v10 = vld [vmem:[#allocation6 + $0x1350] sm:$0xff] }
 0xa75   : > { %v3313_v45 = vmax.f32 %v3309_v55, 0.0  ;;  %3624 = vmatpush.msrb.mxu0 %v3437_v33  ;;  %v3433_v55 = vld [vmem:[#allocation6 + $0x1348] sm:$0xff] }
 0xa77   : > { %3379 = vmatpush.msra.mxu2 %v3313_v45  ;;  %3505 = vmatpush.msra.mxu1 %v3313_v45 }
 0xa78   : > { %3938 = vmatpush.msrb.mxu3 %v3313_v45  ;;  %3625 = vmatpush.msrb.mxu0 %v3436_v53 }
 0xa79   : > { %3380 = vmatpush.msra.mxu2 %v3312_v41  ;;  %3506 = vmatpush.msra.mxu1 %v3312_v41 }
 0xa7a   : > { %3939 = vmatpush.msrb.mxu3 %v3312_v41  ;;  %3626 = vmatpush.msrb.mxu0 %v3435_v25 }
 0xa7b   : > { %3381 = vmatpush.msra.mxu2 %v3311_v40  ;;  %3507 = vmatpush.msra.mxu1 %v3311_v40 }
 0xa7c   : > { %3940 = vmatpush.msrb.mxu3 %v3311_v40  ;;  %3627 = vmatpush.msrb.mxu0 %v3434_v10 }
 0xa7d   : > { %3382 = vmatpush.msra.mxu2 %v3310_v3  ;;  %3508 = vmatpush.msra.mxu1 %v3310_v3 }
 0xa7e   : > { %3941 = vmatpush.msrb.mxu3 %v3310_v3  ;;  %5693 = vmatmul.msk.f32.vlgmr.msra.gmra.mxu2 %vm3327_vm4, %v3314_v14  ;;  %v3428_v14 = vld [vmem:[#allocation6 + $0x1320] sm:$0xff] }
 0xa7f   : > { %5706 = vmatmul.msk.f32.vlgmr.msra.gmra.mxu1 %vm3327_vm4, %v3441_v15  ;;  %3743 = vmatpush.msrb.mxu2 %v3313_v45  ;;  %v3431_v45 = vld [vmem:[#allocation6 + $0x1338] sm:$0xff] }
 0xa80   : > { %3804 = vmatpush.msrb.mxu1 %v3803_v17  ;;  %3628 = vmatpush.msrb.mxu0 %v3433_v55  ;;  %v3326_v15 = vld [vmem:[#allocation15 + $0x60] sm:$0xf] }
 0xa81   : > { %3744 = vmatpush.msrb.mxu2 %v3312_v41  ;;  %v3325_v41 = vld [vmem:[#allocation15 + $0x58] sm:$0xff]  ;;  %v3427_v17 = vld [vmem:[#allocation6 + $0x1318] sm:$0xff] }
 0xa82   : > { %3805 = vmatpush.msrb.mxu1 %v3802_v13  ;;  %3629 = vmatpush.msrb.mxu0 %v3432_v42  ;;  %v3453_v13 = vld [vmem:[#allocation15 + $0xc8] sm:$0xf] }
 0xa83   : > { %3745 = vmatpush.msrb.mxu2 %v3311_v40  ;;  %v3452_v40 = vld [vmem:[#allocation15 + $0xc0] sm:$0xff] }
 0xa84   : > { %3806 = vmatpush.msrb.mxu1 %v3801_v11  ;;  %3630 = vmatpush.msrb.mxu0 %v3431_v45  ;;  %v3426_v11 = vld [vmem:[#allocation6 + $0x1310] sm:$0xff] }
 0xa85   : > { %3746 = vmatpush.msrb.mxu2 %v3310_v3  ;;  %v3429_v3 = vld [vmem:[#allocation6 + $0x1328] sm:$0xff]  ;;  %v3874_v45 = vld [vmem:[#allocation15 + $0x138] sm:$0xff] }
 0xa86   : > { %3807 = vmatpush.msrb.mxu1 %v3800_v26  ;;  %5694 = vmatmul.msk.f32.gmra.mxu2 %vm3327_vm4, %v3315_v47  ;;  %v3425_v26 = vld [vmem:[#allocation6 + $0x1308] sm:$0xff]  ;;  %v3424_v47 = vld [vmem:[#allocation6 + $0x1300] sm:$0xff] }
 0xa87   : > { %5707 = vmatmul.msk.f32.gmra.mxu1 %vm3327_vm4, %v3442_v18  ;;  %3631 = vmatpush.msrb.mxu0 %v3430_v12  ;;  %v3679_v18 = vld [vmem:[#allocation15 + $0xd0] sm:$0xff] }
 0xa88   : > { %3808 = vmatpush.msrb.mxu1 %v3799_v19  ;;  %v3680_v19 = vld [vmem:[#allocation15 + $0xd8] sm:$0xff] }
 0xa89   : > { %3632 = vmatpush.msrb.mxu0 %v3429_v3  ;;  %v3876_v3 = vld [vmem:[#allocation15 + $0x148] sm:$0xff] }
 0xa8a   : > { %3809 = vmatpush.msrb.mxu1 %v3798_v20  ;;  %v3681_v20 = vld [vmem:[#allocation15 + $0xe0] sm:$0xff] }
 0xa8b   : > { %3633 = vmatpush.msrb.mxu0 %v3428_v14 }
 0xa8c   : > { %3810 = vmatpush.msrb.mxu1 %v3797_v51  ;;  %v3682_v51 = vld [vmem:[#allocation15 + $0xe8] sm:$0xff] }
 0xa8d   : > { %3634 = vmatpush.msrb.mxu0 %v3427_v17 }
 0xa8e   : > { %3811 = vmatpush.msrb.mxu1 %v3796_v16  ;;  %5695 = vmatmul.msk.f32.gmra.mxu2 %vm3327_vm4, %v3316_v22 }
 0xa8f   : > { %5708 = vmatmul.msk.f32.gmra.mxu1 %vm3327_vm4, %v3443_v28  ;;  %3635 = vmatpush.msrb.mxu0 %v3426_v11  ;;  %v3683_v28 = vld [vmem:[#allocation15 + $0xf0] sm:$0xff]  ;;  %v3878_v11 = vld [vmem:[#allocation15 + $0x158] sm:$0xff] }
 0xa90   : > { %3812 = vmatpush.msrb.mxu1 %v3795_v23 }
 0xa91   : > { %3636 = vmatpush.msrb.mxu0 %v3425_v26 }
 0xa92   : > { %3813 = vmatpush.msrb.mxu1 %v3794_v24 }
 0xa93   : > { %3637 = vmatpush.msrb.mxu0 %v3424_v47 }
 0xa94   : > { %3814 = vmatpush.msrb.mxu1 %v3793_v21  ;;  %v3684_v21 = vld [vmem:[#allocation15 + $0xf8] sm:$0xff] }
 0xa96   : > { %3815 = vmatpush.msrb.mxu1 %v3792_v43  ;;  %5696 = vmatmul.msk.f32.gmra.mxu2 %vm3327_vm4, %v3317_v44 }
 0xa97   : > { %5709 = vmatmul.msk.f32.gmra.mxu1 %vm3327_vm4, %v3444_v37  ;;  %v3685_v37 = vld [vmem:[#allocation15 + $0x100] sm:$0xff] }
 0xa98   : > { %3816 = vmatpush.msrb.mxu1 %v3791_v57 }
 0xa9a   : > { %3817 = vmatpush.msrb.mxu1 %v3790_v59 }
 0xa9c   : > { %3818 = vmatpush.msrb.mxu1 %v3789_v61  ;;  %v3686_v61 = vld [vmem:[#allocation15 + $0x108] sm:$0xff] }
 0xa9e   : > { %3819 = vmatpush.msrb.mxu1 %v3788_v63  ;;  %5697 = vmatmul.msk.f32.gmra.mxu2 %vm3327_vm4, %v3318_v7 }
 0xa9f   : > { %5710 = vmatmul.msk.f32.gmra.mxu1 %vm3327_vm4, %v3445_v39  ;;  %v3687_v39 = vld [vmem:[#allocation15 + $0x110] sm:$0xff] }
 0xaa0   : > { %5759 = vmatpush.msk.msra.mxu1 %vm686_vm1, %v6542_v48 }
 0xaa2   : > { %4183 = vmatpush.msra.mxu1 %v6544_v50 }
 0xaa4   : > { %4184 = vmatpush.msra.mxu1 %v6552_v52 }
 0xaa6   : > { %4185 = vmatpush.msra.mxu1 %v6557_v54  ;;  %5698 = vmatmul.msk.f32.gmra.mxu2 %vm3327_vm4, %v3319_v30 }
 0xaa7   : > { %5711 = vmatmul.msk.f32.gmra.mxu1 %vm3327_vm4, %v3446_v27 }
 0xaa8   : > { %4186 = vmatpush.msra.mxu1 %v6562_v56 }
 0xaaa   : > { %4187 = vmatpush.msra.mxu1 %v6568_v58 }
 0xaac   : > { %4188 = vmatpush.msra.mxu1 %v6574_v60 }
 0xaae   : > { %4189 = vmatpush.msra.mxu1 %v6580_v62  ;;  %5699 = vmatmul.msk.f32.gmra.mxu2 %vm3327_vm4, %v3320_v29  ;;  %v3688_v29 = vld [vmem:[#allocation15 + $0x118] sm:$0xff] }
 0xaaf   : > { %5712 = vmatmul.msk.f32.gmra.mxu1 %vm3327_vm4, %v3447_v9 }
 0xab0   : > { %4190 = vmatpush.msra.mxu1 %v6586_v0 }
 0xab2   : > { %4191 = vmatpush.msra.mxu1 %v6592_v2 }
 0xab4   : > { %4192 = vmatpush.msra.mxu1 %v6598_v4 }
 0xab6   : > { %4193 = vmatpush.msra.mxu1 %v6603_v5  ;;  %5700 = vmatmul.msk.f32.gmra.mxu2 %vm3327_vm4, %v3321_v49 }
 0xab7   : > { %5713 = vmatmul.msk.f32.gmra.mxu1 %vm3327_vm4, %v3448_v8  ;;  %v3689_v8 = vld [vmem:[#allocation15 + $0x120] sm:$0xff] }
 0xab8   : > { %4194 = vmatpush.msra.mxu1 %v6608_v6 }
 0xabe   : > { %5701 = vmatmul.msk.f32.gmra.mxu2 %vm3327_vm4, %v3322_v46 }
 0xabf   : > { %5714 = vmatmul.msk.f32.gmra.mxu1 %vm3327_vm4, %v3449_v32 }
 0xac6   : > { %5702 = vmatmul.msk.f32.gmra.mxu2 %vm3327_vm4, %v3323_v36 }
 0xac7   : > { %5715 = vmatmul.msk.f32.gmra.mxu1 %vm3327_vm4, %v3450_v1  ;;  %v3691_v1 = vld [vmem:[#allocation15 + $0x130] sm:$0xf] }
 0xace   : > { %5703 = vmatmul.msk.f32.gmra.mxu2 %vm3327_vm4, %v3324_v31 }
 0xacf   : > { %5716 = vmatmul.msk.f32.gmra.mxu1 %vm3327_vm4, %v3451_v38 }
 0xad6   : > { %5704 = vmatmul.msk.f32.gmra.mxu2 %vm3327_vm4, %v3325_v41  ;;  %v3875_v41 = vld [vmem:[#allocation15 + $0x140] sm:$0xff] }
 0xad7   : > { %5717 = vmatmul.msk.f32.gmra.mxu1 %vm3327_vm4, %v3452_v40 }
 0xade   : > { %5705 = vmatmul.msk.f32.gmra.mxu2 %vm3327_vm4, %v3326_v15  ;;  %v3877_v15 = vld [vmem:[#allocation15 + $0x150] sm:$0xff] }
 0xadf   : > { %5718 = vmatmul.msk.f32.gmra.mxu1 %vm3327_vm4, %v3453_v13 }
 0xae6   : > { %5719 = vmatmul.msk.f32.vlgmr.msrb.gmra.mxu2 %vm3327_vm4, %v3679_v18  ;;  %v3879_v18 = vld [vmem:[#allocation15 + $0x160] sm:$0xff] }
 0xaee   : > { %5720 = vmatmul.msk.f32.gmra.mxu2 %vm3327_vm4, %v3680_v19 }
 0xaf6   : > { %5721 = vmatmul.msk.f32.gmra.mxu2 %vm3327_vm4, %v3681_v20 }
 0xafc   : > { %v3510_v16 = vpop.f32.mrf.mxu1 }
 0xafd   : > { %3582 = vmatmul.f32.vlgmr.msra.gmra.mxu3 %v3510_v16 }
 0xafe   : > { %5722 = vmatmul.msk.f32.gmra.mxu2 %vm3327_vm4, %v3682_v51  ;;  %v3880_v51 = vld [vmem:[#allocation15 + $0x168] sm:$0xff] }
 0xb01   : > { %v3384_v22 = vpop.f32.mrf.mxu2 }
 0xb02   : > { %3638 = vmatmul.f32.vlgmr.msrb.gmra.mxu0 %v3384_v22 }
 0xb04   : > { %v3513_v23 = vpop.f32.mrf.mxu1 }
 0xb05   : > { %3585 = vmatmul.f32.gmra.mxu3 %v3513_v23 }
 0xb06   : > { %5723 = vmatmul.msk.f32.gmra.mxu2 %vm3327_vm4, %v3683_v28  ;;  %v3881_v28 = vld [vmem:[#allocation15 + $0x170] sm:$0xff] }
 0xb09   : > { %v3387_v24 = vpop.f32.mrf.mxu2 }
 0xb0a   : > { %3641 = vmatmul.f32.gmra.mxu0 %v3387_v24 }
 0xb0c   : > { %v3516_v43 = vpop.f32.mrf.mxu1 }
 0xb0d   : > { %3588 = vmatmul.f32.gmra.mxu3 %v3516_v43 }
 0xb0e   : > { %5724 = vmatmul.msk.f32.gmra.mxu2 %vm3327_vm4, %v3684_v21  ;;  %v3882_v21 = vld [vmem:[#allocation15 + $0x178] sm:$0xff] }
 0xb11   : > { %v3390_v44 = vpop.f32.mrf.mxu2 }
 0xb12   : > { %3644 = vmatmul.f32.gmra.mxu0 %v3390_v44 }
 0xb14   : > { %v3519_v57 = vpop.f32.mrf.mxu1 }
 0xb15   : > { %3591 = vmatmul.f32.gmra.mxu3 %v3519_v57  ;;  %v3997_v57 = vld [vmem:[#allocation6 + $0x14f0] sm:$0xff] }
 0xb16   : > { %5725 = vmatmul.msk.f32.gmra.mxu2 %vm3327_vm4, %v3685_v37  ;;  %v3998_v37 = vld [vmem:[#allocation6 + $0x14f8] sm:$0xff] }
 0xb17   : > { %3999 = vmatpush.msra.mxu0 %v3998_v37 }
 0xb19   : > { %v3393_v59 = vpop.f32.mrf.mxu2  ;;  %4000 = vmatpush.msra.mxu0 %v3997_v57  ;;  %v7041_v57 = vld [vmem:[#allocation16 + $0x38] sm:$0xff] }
 0xb1a   : > { %3647 = vmatmul.f32.gmra.mxu0 %v3393_v59  ;;  %v3883_v59 = vld [vmem:[#allocation15 + $0x180] sm:$0xff]  ;;  %7599 = vst [vmem:[#allocation29_spill] sm:$0xff] %v7041_v57 }
 0xb1c   : > { %v3522_v63 = vpop.f32.mrf.mxu1 }
 0xb1d   : > { %3594 = vmatmul.f32.gmra.mxu3 %v3522_v63  ;;  %v3995_v63 = vld [vmem:[#allocation6 + $0x14e0] sm:$0xff] }
 0xb1e   : > { %5726 = vmatmul.msk.f32.gmra.mxu2 %vm3327_vm4, %v3686_v61  ;;  %v3996_v61 = vld [vmem:[#allocation6 + $0x14e8] sm:$0xff] }
 0xb1f   : > { %4001 = vmatpush.msra.mxu0 %v3996_v61 }
 0xb21   : > { %v3396_v7 = vpop.f32.mrf.mxu2  ;;  %4002 = vmatpush.msra.mxu0 %v3995_v63  ;;  %v7047_v63 = vld [vmem:[#allocation16 + $0x40] sm:$0xff] }
 0xb22   : > { %3650 = vmatmul.f32.gmra.mxu0 %v3396_v7  ;;  %7600 = vst [vmem:[#allocation30_spill] sm:$0xff] %v7047_v63 }
 0xb24   : > { %v3525_v30 = vpop.f32.mrf.mxu1 }
 0xb25   : > { %3597 = vmatmul.f32.gmra.mxu3 %v3525_v30  ;;  %v3994_v30 = vld [vmem:[#allocation6 + $0x14d8] sm:$0xff] }
 0xb26   : > { %5727 = vmatmul.msk.f32.gmra.mxu2 %vm3327_vm4, %v3687_v39  ;;  %4003 = vmatpush.msra.mxu0 %v3994_v30  ;;  %v7051_v30 = vld [vmem:[#allocation16 + $0x48] sm:$0xff] }
 0xb27   : > { %7601 = vst [vmem:[#allocation31_spill] sm:$0xff] %v7051_v30 }
 0xb29   : > { %v3399_v27 = vpop.f32.mrf.mxu2 }
 0xb2a   : > { %3653 = vmatmul.f32.gmra.mxu0 %v3399_v27  ;;  %v3884_v27 = vld [vmem:[#allocation15 + $0x188] sm:$0xff] }
 0xb2c   : > { %v3528_v9 = vpop.f32.mrf.mxu1 }
 0xb2d   : > { %3600 = vmatmul.f32.gmra.mxu3 %v3528_v9  ;;  %v3992_v9 = vld [vmem:[#allocation6 + $0x14c8] sm:$0xff] }
 0xb2e   : > { %5728 = vmatmul.msk.f32.gmra.mxu2 %vm3327_vm4, %v3688_v29  ;;  %v3993_v29 = vld [vmem:[#allocation6 + $0x14d0] sm:$0xff] }
 0xb2f   : > { %4004 = vmatpush.msra.mxu0 %v3993_v29 }
 0xb31   : > { %v3402_v49 = vpop.f32.mrf.mxu2  ;;  %4005 = vmatpush.msra.mxu0 %v3992_v9  ;;  %v7057_v9 = vld [vmem:[#allocation16 + $0x50] sm:$0xff] }
 0xb32   : > { %3656 = vmatmul.f32.gmra.mxu0 %v3402_v49  ;;  %v3991_v49 = vld [vmem:[#allocation6 + $0x14c0] sm:$0xff]  ;;  %7602 = vst [vmem:[#allocation32_spill] sm:$0xff] %v7057_v9 }
 0xb33   : > { %4006 = vmatpush.msra.mxu0 %v3991_v49 }
 0xb34   : > { %v3531_v46 = vpop.f32.mrf.mxu1 }
 0xb35   : > { %3603 = vmatmul.f32.gmra.mxu3 %v3531_v46 }
 0xb36   : > { %5729 = vmatmul.msk.f32.gmra.mxu2 %vm3327_vm4, %v3689_v8 }
 0xb39   : > { %v3405_v32 = vpop.f32.mrf.mxu2 }
 0xb3a   : > { %3659 = vmatmul.f32.gmra.mxu0 %v3405_v32  ;;  %v3990_v32 = vld [vmem:[#allocation6 + $0x14b8] sm:$0xff] }
 0xb3b   : > { %4007 = vmatpush.msra.mxu0 %v3990_v32 }
 0xb3c   : > { %v3534_v35 = vpop.f32.mrf.mxu1 }
 0xb3d   : > { %3606 = vmatmul.f32.gmra.mxu3 %v3534_v35  ;;  %v3989_v35 = vld [vmem:[#allocation6 + $0x14b0] sm:$0xff] }
 0xb3e   : > { %5730 = vmatmul.msk.f32.gmra.mxu2 %vm3327_vm4, %v3690_v34  ;;  %v3885_v34 = vld [vmem:[#allocation15 + $0x190] sm:$0xff]  ;;  %4008 = vmatpush.msra.mxu0 %v3989_v35 }
 0xb41   : > { %v3408_v36 = vpop.f32.mrf.mxu2 }
 0xb42   : > { %3662 = vmatmul.f32.gmra.mxu0 %v3408_v36  ;;  %v3988_v36 = vld [vmem:[#allocation6 + $0x14a8] sm:$0xff] }
 0xb43   : > { %4009 = vmatpush.msra.mxu0 %v3988_v36 }
 0xb44   : > { %v3537_v33 = vpop.f32.mrf.mxu1 }
 0xb45   : > { %3609 = vmatmul.f32.gmra.mxu3 %v3537_v33 }
 0xb46   : > { %5731 = vmatmul.msk.f32.gmra.mxu2 %vm3327_vm4, %v3691_v1  ;;  %v3987_v1 = vld [vmem:[#allocation6 + $0x14a0] sm:$0xff] }
 0xb47   : > { %4010 = vmatpush.msra.mxu0 %v3987_v1  ;;  %v7071_v1 = vld [vmem:[#allocation16 + $0x60] sm:$0xff] }
 0xb48   : > { %7604 = vst [vmem:[#allocation34_spill] sm:$0xff] %v7071_v1 }
 0xb49   : > { %v3411_v53 = vpop.f32.mrf.mxu2 }
 0xb4a   : > { %3665 = vmatmul.f32.gmra.mxu0 %v3411_v53 }
 0xb4c   : > { %v3540_v25 = vpop.f32.mrf.mxu1 }
 0xb4d   : > { %3612 = vmatmul.f32.gmra.mxu3 %v3540_v25  ;;  %v3986_v25 = vld [vmem:[#allocation6 + $0x1498] sm:$0xff] }
 0xb4e   : > { %4011 = vmatpush.msra.mxu0 %v3986_v25 }
 0xb51   : > { %v3414_v10 = vpop.f32.mrf.mxu2 }
 0xb52   : > { %3668 = vmatmul.f32.gmra.mxu0 %v3414_v10  ;;  %v3886_v10 = vld [vmem:[#allocation15 + $0x198] sm:$0xf] }
 0xb54   : > { %v3543_v31 = vpop.f32.mrf.mxu1 }
 0xb55   : > { %3615 = vmatmul.f32.gmra.mxu3 %v3543_v31  ;;  %v3985_v31 = vld [vmem:[#allocation6 + $0x1490] sm:$0xff] }
 0xb56   : > { %4012 = vmatpush.msra.mxu0 %v3985_v31  ;;  %v7077_v31 = vld [vmem:[#allocation16 + $0x68] sm:$0xff] }
 0xb57   : > { %7605 = vst [vmem:[#allocation35_spill] sm:$0xff] %v7077_v31 }
 0xb59   : > { %v3417_v38 = vpop.f32.mrf.mxu2 }
 0xb5a   : > { %3671 = vmatmul.f32.gmra.mxu0 %v3417_v38  ;;  %v3984_v38 = vld [vmem:[#allocation6 + $0x1488] sm:$0xff] }
 0xb5b   : > { %4013 = vmatpush.msra.mxu0 %v3984_v38 }
 0xb5c   : > { %v3546_v55 = vpop.f32.mrf.mxu1 }
 0xb5d   : > { %3618 = vmatmul.f32.gmra.mxu3 %v3546_v55  ;;  %v3983_v55 = vld [vmem:[#allocation6 + $0x1480] sm:$0xff] }
 0xb5e   : > { %4014 = vmatpush.msra.mxu0 %v3983_v55 }
 0xb61   : > { %v3420_v42 = vpop.f32.mrf.mxu2 }
 0xb62   : > { %3674 = vmatmul.f32.gmra.mxu0 %v3420_v42 }
 0xb65   : > { %5732 = vmatmul.msk.f32.vlgmr.msrb.gmra.mxu3 %vm3327_vm4, %v3874_v45 }
 0xb69   : > { %v3748_v12 = vpop.f32.mrf.mxu2 }
 0xb6a   : > { %3820 = vmatmul.f32.vlgmr.msrb.gmra.mxu1 %v3748_v12  ;;  %v6985_v12 = vld [vmem:[#allocation16] sm:$0xff] }
 0xb6b   : > { %5787 = vmatpush.msk.msrb.mxu1 %vm686_vm1, %v6542_v48 }
 0xb6d   : > { %4494 = vmatpush.msrb.mxu1 %v6544_v50  ;;  %5733 = vmatmul.msk.f32.gmra.mxu3 %vm3327_vm4, %v3875_v41 }
 0xb6f   : > { %4495 = vmatpush.msrb.mxu1 %v6552_v52 }
 0xb71   : > { %4496 = vmatpush.msrb.mxu1 %v6557_v54  ;;  %v3751_v40 = vpop.f32.mrf.mxu2 }
 0xb72   : > { %3823 = vmatmul.f32.gmra.mxu1 %v3751_v40  ;;  %v6995_v40 = vld [vmem:[#allocation16 + $0x8] sm:$0xff] }
 0xb73   : > { %4497 = vmatpush.msrb.mxu1 %v6562_v56 }
 0xb75   : > { %4498 = vmatpush.msrb.mxu1 %v6568_v58  ;;  %5734 = vmatmul.msk.f32.gmra.mxu3 %vm3327_vm4, %v3876_v3 }
 0xb77   : > { %4499 = vmatpush.msrb.mxu1 %v6574_v60 }
 0xb79   : > { %4500 = vmatpush.msrb.mxu1 %v6580_v62  ;;  %v3754_v14 = vpop.f32.mrf.mxu2 }
 0xb7a   : > { %3826 = vmatmul.f32.gmra.mxu1 %v3754_v14  ;;  %v7005_v14 = vld [vmem:[#allocation16 + $0x10] sm:$0xff] }
 0xb7b   : > { %4501 = vmatpush.msrb.mxu1 %v6586_v0  ;;  %7594 = vst [vmem:[#allocation24_spill] sm:$0xff] %v7005_v14 }
 0xb7d   : > { %4502 = vmatpush.msrb.mxu1 %v6592_v2  ;;  %5735 = vmatmul.msk.f32.gmra.mxu3 %vm3327_vm4, %v3877_v15 }
 0xb7f   : > { %4503 = vmatpush.msrb.mxu1 %v6598_v4 }
 0xb80   : > { %v6954_v17 = vpop.f32.mrf.mxu3 }
 0xb81   : > { %4504 = vmatpush.msrb.mxu1 %v6603_v5  ;;  %v3757_v13 = vpop.f32.mrf.mxu2 }
 0xb82   : > { %3829 = vmatmul.f32.gmra.mxu1 %v3757_v13  ;;  %v7014_v13 = vpop.f32.mrf.mxu0 }
 0xb83   : > { %4505 = vmatpush.msrb.mxu1 %v6608_v6 }
 0xb85   : > { %5736 = vmatmul.msk.f32.gmra.mxu3 %vm3327_vm4, %v3878_v11  ;;  %v7017_v11 = vld [vmem:[#allocation16 + $0x18] sm:$0xff] }
 0xb86   : > { %7595 = vst [vmem:[#allocation25_spill] sm:$0xff] %v7017_v11 }
 0xb88   : > { %v6959_v26 = vpop.f32.mrf.mxu3 }
 0xb89   : > { %v3760_v47 = vpop.f32.mrf.mxu2 }
 0xb8a   : > { %3832 = vmatmul.f32.gmra.mxu1 %v3760_v47 }
 0xb8d   : > { %5737 = vmatmul.msk.f32.gmra.mxu3 %vm3327_vm4, %v3879_v18  ;;  %v7023_v18 = vld [vmem:[#allocation16 + $0x20] sm:$0xff] }
 0xb8e   : > { %7596 = vst [vmem:[#allocation26_spill] sm:$0xff] %v7023_v18 }
 0xb90   : > { %v6962_v19 = vpop.f32.mrf.mxu3 }
 0xb91   : > { %v3763_v20 = vpop.f32.mrf.mxu2 }
 0xb92   : > { %3835 = vmatmul.f32.gmra.mxu1 %v3763_v20  ;;  %v7025_v20 = vpop.f32.mrf.mxu0 }
 0xb95   : > { %5738 = vmatmul.msk.f32.gmra.mxu3 %vm3327_vm4, %v3880_v51 }
 0xb98   : > { %v6965_v16 = vpop.f32.mrf.mxu3 }
 0xb99   : > { %v3766_v22 = vpop.f32.mrf.mxu2 }
 0xb9a   : > { %3838 = vmatmul.f32.gmra.mxu1 %v3766_v22  ;;  %v7029_v22 = vld [vmem:[#allocation16 + $0x28] sm:$0xff] }
 0xb9b   : > { %7597 = vst [vmem:[#allocation27_spill] sm:$0xff] %v7029_v22 }
 0xb9d   : > { %5739 = vmatmul.msk.f32.gmra.mxu3 %vm3327_vm4, %v3881_v28 }
 0xba0   : > { %v6968_v23 = vpop.f32.mrf.mxu3 }
 0xba1   : > { %v3769_v24 = vpop.f32.mrf.mxu2 }
 0xba2   : > { %3841 = vmatmul.f32.gmra.mxu1 %v3769_v24  ;;  %v7033_v24 = vpop.f32.mrf.mxu0 }
 0xba5   : > { %5740 = vmatmul.msk.f32.gmra.mxu3 %vm3327_vm4, %v3882_v21  ;;  %v7035_v21 = vld [vmem:[#allocation16 + $0x30] sm:$0xff] }
 0xba6   : > { %7598 = vst [vmem:[#allocation28_spill] sm:$0xff] %v7035_v21 }
 0xba8   : > { %v6971_v43 = vpop.f32.mrf.mxu3 }
 0xba9   : > { %v3772_v44 = vpop.f32.mrf.mxu2 }
 0xbaa   : > { %3844 = vmatmul.f32.gmra.mxu1 %v3772_v44  ;;  %v7039_v37 = vpop.f32.mrf.mxu0 }
 0xbad   : > { %5741 = vmatmul.msk.f32.gmra.mxu3 %vm3327_vm4, %v3883_v59 }
 0xbb0   : > { %v6974_v7 = vpop.f32.mrf.mxu3 }
 0xbb1   : > { %v3775_v39 = vpop.f32.mrf.mxu2 }
 0xbb2   : > { %3847 = vmatmul.f32.gmra.mxu1 %v3775_v39  ;;  %v7045_v61 = vpop.f32.mrf.mxu0 }
 0xbb5   : > { %5742 = vmatmul.msk.f32.gmra.mxu3 %vm3327_vm4, %v3884_v27 }
 0xbb8   : > { %v6977_v8 = vpop.f32.mrf.mxu3 }
 0xbb9   : > { %v3778_v46 = vpop.f32.mrf.mxu2 }
 0xbba   : > { %3850 = vmatmul.f32.gmra.mxu1 %v3778_v46  ;;  %v7053_v27 = vpop.f32.mrf.mxu0 }
 0xbbd   : > { %5743 = vmatmul.msk.f32.gmra.mxu3 %vm3327_vm4, %v3885_v34  ;;  %v7065_v34 = vld [vmem:[#allocation16 + $0x58] sm:$0xff] }
 0xbbe   : > { %7603 = vst [vmem:[#allocation33_spill] sm:$0xff] %v7065_v34 }
 0xbc0   : > { %v6980_v33 = vpop.f32.mrf.mxu3 }
 0xbc1   : > { %v3781_v53 = vpop.f32.mrf.mxu2 }
 0xbc2   : > { %3853 = vmatmul.f32.gmra.mxu1 %v3781_v53  ;;  %v7061_v46 = vpop.f32.mrf.mxu0 }
 0xbc5   : > { %5744 = vmatmul.msk.f32.gmra.mxu3 %vm3327_vm4, %v3886_v10 }
 0xbc8   : > { %v6983_v42 = vpop.f32.mrf.mxu3 }
 0xbc9   : > { %v3784_v45 = vpop.f32.mrf.mxu2 }
 0xbca   : > { %3856 = vmatmul.f32.gmra.mxu1 %v3784_v45  ;;  %v7069_v36 = vpop.f32.mrf.mxu0 }
 0xbd0   : > { %v6987_v41 = vpop.f32.mrf.mxu3 }
 0xbd2   : > { %5760 = vmatmul.msk.f32.vlgmr.msra.gmra.mxu1 %vm679_vm2, %v6985_v12  ;;  %v3663_v10 = vpop.f32.mrf.mxu0 }
 0xbd3   : > { %5815 = vmatpush.msk.msra.mxu1 %vm686_vm1, %v6542_v48 }
 0xbd5   : > { %4831 = vmatpush.msra.mxu1 %v6544_v50 }
 0xbd7   : > { %4832 = vmatpush.msra.mxu1 %v6552_v52 }
 0xbd8   : > { %v6997_v3 = vpop.f32.mrf.mxu3 }
 0xbd9   : > { %4833 = vmatpush.msra.mxu1 %v6557_v54 }
 0xbda   : > { %5761 = vmatmul.msk.f32.gmra.mxu1 %vm679_vm2, %v6995_v40  ;;  %v3666_v45 = vpop.f32.mrf.mxu0 }
 0xbdb   : > { %4834 = vmatpush.msra.mxu1 %v6562_v56 }
 0xbdd   : > { %4835 = vmatpush.msra.mxu1 %v6568_v58 }
 0xbdf   : > { %4836 = vmatpush.msra.mxu1 %v6574_v60 }
 0xbe0   : > { %v7007_v15 = vpop.f32.mrf.mxu3 }
 0xbe1   : > { %4837 = vmatpush.msra.mxu1 %v6580_v62 }
 0xbe2   : > { %5762 = vmatmul.msk.f32.gmra.mxu1 %vm679_vm2, %v7005_v14  ;;  %v3664_v14 = vadd.f32 %v3663_v10, %v6980_v33  ;;  %v3655_v33 = vadd.f32 %v7053_v27, %v6971_v43  ;;  %v3646_v43 = vadd.f32 %v7033_v24, %v6962_v19  ;;  %v4268_v10 = vld [vmem:[#allocation6 + $0x15f8] sm:$0xff] }
 0xbe3   : > { %4838 = vmatpush.msra.mxu1 %v6586_v0  ;;  %4269 = vmatpush.msra.mxu3 %v4268_v10  ;;  %v7259_v10 = vld [vmem:[#allocation16 + $0xc8] sm:$0xff] }
 0xbe5   : > { %4839 = vmatpush.msra.mxu1 %v6592_v2 }
 0xbe7   : > { %4840 = vmatpush.msra.mxu1 %v6598_v4  ;;  %v7063_v32 = vpop.f32.mrf.mxu1 }
 0xbe8   : > { %v3943_v47 = vpop.f32.mrf.mxu3 }
 0xbe9   : > { %4841 = vmatpush.msra.mxu1 %v6603_v5  ;;  %4015 = vmatmul.f32.vlgmr.msra.gmra.mxu0 %v3943_v47 }
 0xbea   : > { %5763 = vmatmul.msk.f32.gmra.mxu1 %vm679_vm2, %v7017_v11 }
 0xbeb   : > { %4842 = vmatpush.msra.mxu1 %v6608_v6 }
 0xbef   : > { %v7073_v53 = vpop.f32.mrf.mxu1 }
 0xbf0   : > { %v3946_v51 = vpop.f32.mrf.mxu3 }
 0xbf1   : > { %4018 = vmatmul.f32.gmra.mxu0 %v3946_v51 }
 0xbf2   : > { %5764 = vmatmul.msk.f32.gmra.mxu1 %vm679_vm2, %v7023_v18 }
 0xbf7   : > { %v7079_v55 = vpop.f32.mrf.mxu1 }
 0xbf8   : > { %v3949_v28 = vpop.f32.mrf.mxu3 }
 0xbf9   : > { %4021 = vmatmul.f32.gmra.mxu0 %v3949_v28 }
 0xbfa   : > { %5765 = vmatmul.msk.f32.gmra.mxu1 %vm679_vm2, %v7029_v22  ;;  %v3667_v22 = vadd.f32 %v3666_v45, %v6983_v42  ;;  %v3658_v42 = vadd.f32 %v7061_v46, %v6974_v7  ;;  %v3649_v7 = vadd.f32 %v7039_v37, %v6965_v16  ;;  %v3640_v16 = vadd.f32 %v7014_v13, %v6954_v17  ;;  %v7606_v17 = vld [vmem:[#allocation24_spill] sm:$0xff]  ;;  %v7609_v13 = vld [vmem:[#allocation27_spill] sm:$0xff]  ;;  %v4266_v45 = vld [vmem:[#allocation6 + $0x15e8] sm:$0xff] }
 0xbfc   : > { %v3860_v24 = vadd.f32 %v7063_v32, %v3640_v16  ;;  %v7610_v32 = vld [vmem:[#allocation28_spill] sm:$0xff]  ;;  %v7617_v16 = vld [vmem:[#allocation35_spill] sm:$0xff] }
 0xc00   : > { %v3952_v44 = vpop.f32.mrf.mxu3 }
 0xc01   : > { %4024 = vmatmul.f32.gmra.mxu0 %v3952_v44 }
 0xc02   : > { %5766 = vmatmul.msk.f32.gmra.mxu1 %vm679_vm2, %v7035_v21 }
 0xc08   : > { %v3955_v59 = vpop.f32.mrf.mxu3 }
 0xc09   : > { %4027 = vmatmul.f32.gmra.mxu0 %v3955_v59 }
 0xc0a   : > { %5767 = vmatmul.msk.f32.gmra.mxu1 %vm679_vm2, %v7041_v57 }
 0xc10   : > { %v3958_v39 = vpop.f32.mrf.mxu3 }
 0xc11   : > { %4030 = vmatmul.f32.gmra.mxu0 %v3958_v39 }
 0xc12   : > { %5768 = vmatmul.msk.f32.gmra.mxu1 %vm679_vm2, %v7047_v63 }
 0xc18   : > { %v3961_v29 = vpop.f32.mrf.mxu3 }
 0xc19   : > { %4033 = vmatmul.f32.gmra.mxu0 %v3961_v29 }
 0xc1a   : > { %5769 = vmatmul.msk.f32.gmra.mxu1 %vm679_vm2, %v7051_v30 }
 0xc20   : > { %v3964_v49 = vpop.f32.mrf.mxu3 }
 0xc21   : > { %4036 = vmatmul.f32.gmra.mxu0 %v3964_v49 }
 0xc22   : > { %5770 = vmatmul.msk.f32.gmra.mxu1 %vm679_vm2, %v7057_v9 }
 0xc28   : > { %v3967_v35 = vpop.f32.mrf.mxu3 }
 0xc29   : > { %4039 = vmatmul.f32.gmra.mxu0 %v3967_v35 }
 0xc2a   : > { %5771 = vmatmul.msk.f32.gmra.mxu1 %vm679_vm2, %v7065_v34 }
 0xc30   : > { %v3970_v25 = vpop.f32.mrf.mxu3 }
 0xc31   : > { %4042 = vmatmul.f32.gmra.mxu0 %v3970_v25 }
 0xc32   : > { %5772 = vmatmul.msk.f32.gmra.mxu1 %vm679_vm2, %v7071_v1 }
 0xc38   : > { %v3973_v38 = vpop.f32.mrf.mxu3 }
 0xc39   : > { %4045 = vmatmul.f32.gmra.mxu0 %v3973_v38 }
 0xc3a   : > { %5788 = vmatmul.msk.f32.vlgmr.msrb.gmra.mxu1 %vm679_vm2, %v7077_v31 }
 0xc3b   : > { %5843 = vmatpush.msk.msrb.mxu1 %vm686_vm1, %v6542_v48  ;;  %v3669_v48 = vpop.f32.mrf.mxu0 }
 0xc3c   : > { %v3670_v63 = vadd.f32 %v3669_v48, %v6987_v41  ;;  %v3661_v41 = vadd.f32 %v7069_v36, %v6977_v8  ;;  %v3652_v8 = vadd.f32 %v7045_v61, %v6968_v23  ;;  %v3643_v23 = vadd.f32 %v7025_v20, %v6959_v26  ;;  %v4265_v48 = vld [vmem:[#allocation6 + $0x15e0] sm:$0xff] }
 0xc3d   : > { %5168 = vmatpush.msrb.mxu1 %v6544_v50  ;;  %v3862_v61 = vadd.f32 %v7079_v55, %v3646_v43  ;;  %v4267_v55 = vld [vmem:[#allocation6 + $0x15f0] sm:$0xff]  ;;  %v4385_v43 = vld [vmem:[#allocation16 + $0x80] sm:$0xff] }
 0xc3e   : > { %v3861_v37 = vadd.f32 %v7073_v53, %v3643_v23  ;;  %v7611_v53 = vld [vmem:[#allocation29_spill] sm:$0xff]  ;;  %4270 = vmatpush.msra.mxu3 %v4267_v55  ;;  %v4562_v55 = vld [vmem:[#allocation6 + $0x1678] sm:$0xff] }
 0xc3f   : > { %5169 = vmatpush.msrb.mxu1 %v6552_v52  ;;  %v4236_v23 = vld [vmem:[#allocation6 + $0x1500] sm:$0xff] }
 0xc40   : > { %v3976_v47 = vpop.f32.mrf.mxu3  ;;  %4271 = vmatpush.msra.mxu3 %v4266_v45  ;;  %v4561_v45 = vld [vmem:[#allocation6 + $0x1670] sm:$0xff] }
 0xc41   : > { %5170 = vmatpush.msrb.mxu1 %v6557_v54  ;;  %4048 = vmatmul.f32.gmra.mxu0 %v3976_v47 }
 0xc42   : > { %4272 = vmatpush.msra.mxu3 %v4265_v48 }
 0xc43   : > { %5171 = vmatpush.msrb.mxu1 %v6562_v56  ;;  %v3672_v50 = vpop.f32.mrf.mxu0  ;;  %v3830_v56 = vpop.f32.mrf.mxu1 }
 0xc44   : > { %v3673_v34 = vadd.f32 %v3672_v50, %v6997_v3  ;;  %v3863_v27 = vadd.f32 %v3830_v56, %v3649_v7  ;;  %v4251_v50 = vld [vmem:[#allocation6 + $0x1578] sm:$0xff]  ;;  %v4250_v56 = vld [vmem:[#allocation6 + $0x1570] sm:$0xff] }
 0xc45   : > { %5172 = vmatpush.msrb.mxu1 %v6568_v58  ;;  %4325 = vmatpush.msrb.mxu0 %v4251_v50  ;;  %v4238_v7 = vld [vmem:[#allocation6 + $0x1510] sm:$0xff]  ;;  %v7264_v50 = vld [vmem:[#allocation16 + $0xd0] sm:$0xff] }
 0xc47   : > { %5173 = vmatpush.msrb.mxu1 %v6574_v60  ;;  %4326 = vmatpush.msrb.mxu0 %v4250_v56 }
 0xc48   : > { %v3979_v51 = vpop.f32.mrf.mxu3 }
 0xc49   : > { %5174 = vmatpush.msrb.mxu1 %v6580_v62  ;;  %4051 = vmatmul.f32.gmra.mxu0 %v3979_v51 }
 0xc4b   : > { %5175 = vmatpush.msrb.mxu1 %v6586_v0  ;;  %v3675_v52 = vpop.f32.mrf.mxu0  ;;  %v3833_v60 = vpop.f32.mrf.mxu1 }
 0xc4c   : > { %v3676_v1 = vadd.f32 %v3675_v52, %v7007_v15  ;;  %v3864_v46 = vadd.f32 %v3833_v60, %v3652_v8  ;;  %v4263_v60 = vld [vmem:[#allocation6 + $0x15d0] sm:$0xff]  ;;  %v4239_v8 = vld [vmem:[#allocation6 + $0x1518] sm:$0xff] }
 0xc4d   : > { %5176 = vmatpush.msrb.mxu1 %v6592_v2 }
 0xc4f   : > { %5177 = vmatpush.msrb.mxu1 %v6598_v4 }
 0xc51   : > { %5178 = vmatpush.msrb.mxu1 %v6603_v5 }
 0xc53   : > { %5179 = vmatpush.msrb.mxu1 %v6608_v6  ;;  %v3836_v28 = vpop.f32.mrf.mxu1 }
 0xc5b   : > { %v3839_v44 = vpop.f32.mrf.mxu1 }
 0xc63   : > { %v3842_v4 = vpop.f32.mrf.mxu1 }
 0xc66   : > { %v7097_v54 = vpop.f32.mrf.mxu0 }
 0xc67   : > { %v7166_v20 = vadd.f32 %v7097_v54, %v3860_v24  ;;  %v4264_v54 = vld [vmem:[#allocation6 + $0x15d8] sm:$0xff] }
 0xc68   : > { %4273 = vmatpush.msra.mxu3 %v4264_v54  ;;  %v4560_v54 = vld [vmem:[#allocation6 + $0x1668] sm:$0xff] }
 0xc6a   : > { %4274 = vmatpush.msra.mxu3 %v4263_v60  ;;  %v4558_v60 = vld [vmem:[#allocation6 + $0x1658] sm:$0xff] }
 0xc6b   : > { %v3845_v5 = vpop.f32.mrf.mxu1 }
 0xc6c   : > { %v3868_v3 = vadd.f32 %v3845_v5, %v3664_v14  ;;  %v3865_v14 = vadd.f32 %v3836_v28, %v3655_v33  ;;  %v4262_v28 = vld [vmem:[#allocation6 + $0x15c8] sm:$0xff]  ;;  %v4240_v33 = vld [vmem:[#allocation6 + $0x1520] sm:$0xff] }
 0xc6d   : > { %4275 = vmatpush.msra.mxu3 %v4262_v28  ;;  %v4383_v5 = vld [vmem:[#allocation16 + $0x70] sm:$0xff]  ;;  %v4647_v28 = vld [vmem:[#allocation6 + $0x16f0] sm:$0xff] }
 0xc6e   : > { %v7099_v58 = vpop.f32.mrf.mxu0  ;;  %5789 = vmatmul.msk.f32.gmra.mxu1 %vm679_vm2, %v4383_v5 }
 0xc6f   : > { %v7162_v26 = vadd.f32 %v7099_v58, %v3861_v37  ;;  %v7613_v58 = vld [vmem:[#allocation31_spill] sm:$0xff]  ;;  %v4386_v37 = vld [vmem:[#allocation16 + $0x88] sm:$0xff] }
 0xc73   : > { %v3848_v6 = vpop.f32.mrf.mxu1 }
 0xc74   : > { %v3869_v15 = vadd.f32 %v3848_v6, %v3667_v22  ;;  %v4245_v6 = vld [vmem:[#allocation6 + $0x1548] sm:$0xff] }
 0xc76   : > { %v7101_v62 = vpop.f32.mrf.mxu0 }
 0xc77   : > { %v7157_v19 = vadd.f32 %v7101_v62, %v3862_v61  ;;  %v4249_v62 = vld [vmem:[#allocation6 + $0x1568] sm:$0xff] }
 0xc78   : > { %4327 = vmatpush.msrb.mxu0 %v4249_v62  ;;  %v4648_v62 = vld [vmem:[#allocation6 + $0x16f8] sm:$0xff] }
 0xc7b   : > { %v3851_v35 = vpop.f32.mrf.mxu1 }
 0xc7c   : > { %v3870_v18 = vadd.f32 %v3851_v35, %v3670_v63  ;;  %v4244_v35 = vld [vmem:[#allocation6 + $0x1540] sm:$0xff] }
 0xc7e   : > { %v4025_v0 = vpop.f32.mrf.mxu0 }
 0xc83   : > { %v3854_v47 = vpop.f32.mrf.mxu1 }
 0xc84   : > { %v3871_v57 = vadd.f32 %v3854_v47, %v3673_v34  ;;  %v4256_v47 = vld [vmem:[#allocation6 + $0x1598] sm:$0xff] }
 0xc86   : > { %v4028_v2 = vpop.f32.mrf.mxu0 }
 0xc87   : > { %v7144_v36 = vadd.f32 %v4028_v2, %v3864_v46  ;;  %v4247_v2 = vld [vmem:[#allocation6 + $0x1558] sm:$0xff]  ;;  %v7616_v46 = vld [vmem:[#allocation34_spill] sm:$0xff] }
 0xc8b   : > { %v3857_v31 = vpop.f32.mrf.mxu1 }
 0xc8c   : > { %v3872_v9 = vadd.f32 %v3857_v31, %v3676_v1  ;;  %v7150_v1 = vadd.f32 %v4025_v0, %v3863_v27  ;;  %v7612_v31 = vld [vmem:[#allocation30_spill] sm:$0xff]  ;;  %v4248_v0 = vld [vmem:[#allocation6 + $0x1560] sm:$0xff] }
 0xc8d   : > { %4328 = vmatpush.msrb.mxu0 %v4248_v0  ;;  %v4237_v27 = vld [vmem:[#allocation6 + $0x1508] sm:$0xff]  ;;  %v4557_v0 = vld [vmem:[#allocation6 + $0x1650] sm:$0xff] }
 0xc8e   : > { %v4031_v59 = vpop.f32.mrf.mxu0 }
 0xc8f   : > { %v7139_v34 = vadd.f32 %v4031_v59, %v3865_v14  ;;  %v4260_v59 = vld [vmem:[#allocation6 + $0x15b8] sm:$0xff]  ;;  %4329 = vmatpush.msrb.mxu0 %v4247_v2  ;;  %v7269_v2 = vld [vmem:[#allocation16 + $0xd8] sm:$0xff] }
 0xc93   : > { %v4196_v14 = vpop.f32.mrf.mxu1 }
 0xc96   : > { %v4034_v39 = vpop.f32.mrf.mxu0 }
 0xc9b   : > { %v4199_v61 = vpop.f32.mrf.mxu1 }
 0xc9e   : > { %v4037_v29 = vpop.f32.mrf.mxu0 }
 0xca3   : > { %v4202_v24 = vpop.f32.mrf.mxu1 }
 0xca6   : > { %v4040_v49 = vpop.f32.mrf.mxu0 }
 0xca7   : > { %v7124_v63 = vadd.f32 %v4040_v49, %v3868_v3  ;;  %v4258_v49 = vld [vmem:[#allocation6 + $0x15a8] sm:$0xff]  ;;  %v4255_v3 = vld [vmem:[#allocation6 + $0x1590] sm:$0xff] }
 0xcae   : > { %v4043_v25 = vpop.f32.mrf.mxu0 }
 0xcb6   : > { %v4046_v38 = vpop.f32.mrf.mxu0 }
 0xcb7   : > { %v7114_v52 = vadd.f32 %v4046_v38, %v3870_v18  ;;  %v3866_v18 = vadd.f32 %v3839_v44, %v3658_v42  ;;  %v4261_v44 = vld [vmem:[#allocation6 + $0x15c0] sm:$0xff]  ;;  %v4243_v38 = vld [vmem:[#allocation6 + $0x1538] sm:$0xff]  ;;  %v4241_v42 = vld [vmem:[#allocation6 + $0x1528] sm:$0xff] }
 0xcb8   : > { %4276 = vmatpush.msra.mxu3 %v4261_v44 }
 0xcba   : > { %4277 = vmatpush.msra.mxu3 %v4260_v59  ;;  %v4556_v59 = vld [vmem:[#allocation6 + $0x1648] sm:$0xff] }
 0xcbe   : > { %v4049_v51 = vpop.f32.mrf.mxu0 }
 0xcbf   : > { %v7109_v11 = vadd.f32 %v4049_v51, %v3871_v57  ;;  %v3867_v57 = vadd.f32 %v3842_v4, %v3661_v41  ;;  %v4246_v4 = vld [vmem:[#allocation6 + $0x1550] sm:$0xff] }
 0xcc0   : > { %4330 = vmatpush.msrb.mxu0 %v4246_v4  ;;  %v4242_v51 = vld [vmem:[#allocation6 + $0x1530] sm:$0xff]  ;;  %v4646_v4 = vld [vmem:[#allocation6 + $0x16e8] sm:$0xff] }
 0xcc1   : > { %v7129_v22 = vadd.f32 %v4037_v29, %v3867_v57  ;;  %v4259_v29 = vld [vmem:[#allocation6 + $0x15b0] sm:$0xff]  ;;  %v4254_v57 = vld [vmem:[#allocation6 + $0x1588] sm:$0xff] }
 0xcc2   : > { %4278 = vmatpush.msra.mxu3 %v4259_v29  ;;  %4331 = vmatpush.msrb.mxu0 %v4245_v6  ;;  %v4384_v41 = vld [vmem:[#allocation16 + $0x78] sm:$0xff]  ;;  %v4645_v29 = vld [vmem:[#allocation6 + $0x16e0] sm:$0xff]  ;;  %v4554_v6 = vld [vmem:[#allocation6 + $0x1638] sm:$0xff] }
 0xcc3   : > { %5790 = vmatmul.msk.f32.gmra.mxu1 %vm679_vm2, %v4384_v41 }
 0xcc4   : > { %4279 = vmatpush.msra.mxu3 %v4258_v49  ;;  %4332 = vmatpush.msrb.mxu0 %v4244_v35  ;;  %v4644_v49 = vld [vmem:[#allocation6 + $0x16d8] sm:$0xff]  ;;  %v4553_v35 = vld [vmem:[#allocation6 + $0x1630] sm:$0xff] }
 0xcc6   : > { %v4052_v30 = vpop.f32.mrf.mxu0  ;;  %4333 = vmatpush.msrb.mxu0 %v4243_v38 }
 0xcc7   : > { %v7106_v21 = vadd.f32 %v4052_v30, %v3872_v9  ;;  %v7119_v30 = vadd.f32 %v4043_v25, %v3869_v15  ;;  %v7134_v9 = vadd.f32 %v4034_v39, %v3866_v18  ;;  %v7614_v39 = vld [vmem:[#allocation32_spill] sm:$0xff]  ;;  %v4257_v25 = vld [vmem:[#allocation6 + $0x15a0] sm:$0xff] }
 0xcc8   : > { %4280 = vmatpush.msra.mxu3 %v4257_v25  ;;  %v7615_v15 = vld [vmem:[#allocation33_spill] sm:$0xff]  ;;  %4334 = vmatpush.msrb.mxu0 %v4242_v51  ;;  %v4643_v25 = vld [vmem:[#allocation6 + $0x16d0] sm:$0xff]  ;;  %v4552_v51 = vld [vmem:[#allocation6 + $0x1628] sm:$0xff] }
 0xcc9   : > { %5745 = vmatpush.msk.msra.mxu2 %vm686_vm1, %v7106_v21  ;;  %v4253_v18 = vld [vmem:[#allocation6 + $0x1580] sm:$0xff] }
 0xcca   : > { %4281 = vmatpush.msra.mxu3 %v4256_v47  ;;  %4335 = vmatpush.msrb.mxu0 %v4241_v42  ;;  %v4721_v47 = vld [vmem:[#allocation16 + $0xe0] sm:$0xff]  ;;  %v4641_v42 = vld [vmem:[#allocation6 + $0x16c0] sm:$0xff] }
 0xccb   : > { %4127 = vmatpush.msra.mxu2 %v7109_v11  ;;  %5791 = vmatmul.msk.f32.gmra.mxu1 %vm679_vm2, %v4385_v43 }
 0xccc   : > { %4282 = vmatpush.msra.mxu3 %v4255_v3  ;;  %4336 = vmatpush.msrb.mxu0 %v4240_v33  ;;  %v4551_v3 = vld [vmem:[#allocation6 + $0x1620] sm:$0xff]  ;;  %v4640_v33 = vld [vmem:[#allocation6 + $0x16b8] sm:$0xff] }
 0xccd   : > { %4128 = vmatpush.msra.mxu2 %v7114_v52 }
 0xcce   : > { %4283 = vmatpush.msra.mxu3 %v4254_v57  ;;  %4337 = vmatpush.msrb.mxu0 %v4239_v8  ;;  %v4550_v57 = vld [vmem:[#allocation6 + $0x1618] sm:$0xff]  ;;  %v4639_v8 = vld [vmem:[#allocation6 + $0x16b0] sm:$0xff] }
 0xccf   : > { %4129 = vmatpush.msra.mxu2 %v7119_v30 }
 0xcd0   : > { %4284 = vmatpush.msra.mxu3 %v4253_v18  ;;  %4338 = vmatpush.msrb.mxu0 %v4238_v7  ;;  %v4549_v18 = vld [vmem:[#allocation6 + $0x1610] sm:$0xff]  ;;  %v4548_v7 = vld [vmem:[#allocation6 + $0x1608] sm:$0xff] }
 0xcd1   : > { %4130 = vmatpush.msra.mxu2 %v7124_v63  ;;  %4285 = vmatmul.f32.vlgmr.msra.gmra.mxu3 %v4196_v14  ;;  %v4722_v14 = vld [vmem:[#allocation16 + $0xe8] sm:$0xff] }
 0xcd2   : > { %4339 = vmatpush.msrb.mxu0 %v4237_v27  ;;  %4563 = vmatpush.msrb.mxu3 %v4562_v55  ;;  %v4547_v27 = vld [vmem:[#allocation6 + $0x1600] sm:$0xff]  ;;  %v4729_v55 = vld [vmem:[#allocation16 + $0x120] sm:$0xff] }
 0xcd3   : > { %4131 = vmatpush.msra.mxu2 %v7129_v22  ;;  %5792 = vmatmul.msk.f32.gmra.mxu1 %vm679_vm2, %v4386_v37 }
 0xcd4   : > { %4340 = vmatpush.msrb.mxu0 %v4236_v23  ;;  %4564 = vmatpush.msrb.mxu3 %v4561_v45  ;;  %v4637_v23 = vld [vmem:[#allocation6 + $0x16a0] sm:$0xff] }
 0xcd5   : > { %4132 = vmatpush.msra.mxu2 %v7134_v9 }
 0xcd6   : > { %4565 = vmatpush.msrb.mxu3 %v4560_v54  ;;  %4649 = vmatpush.msra.mxu0 %v4648_v62 }
 0xcd7   : > { %4133 = vmatpush.msra.mxu2 %v7139_v34 }
 0xcd8   : > { %4650 = vmatpush.msra.mxu0 %v4647_v28 }
 0xcd9   : > { %4134 = vmatpush.msra.mxu2 %v7144_v36  ;;  %4288 = vmatmul.f32.gmra.mxu3 %v4199_v61  ;;  %v4636_v61 = vld [vmem:[#allocation6 + $0x1698] sm:$0xff] }
 0xcda   : > { %4651 = vmatpush.msra.mxu0 %v4646_v4  ;;  %v4898_v4 = vld [vmem:[#allocation6 + $0x1770] sm:$0xff] }
 0xcdb   : > { %4135 = vmatpush.msra.mxu2 %v7150_v1 }
 0xcdc   : > { %4652 = vmatpush.msra.mxu0 %v4645_v29  ;;  %v7325_v29 = vld [vmem:[#allocation16 + $0x138] sm:$0xff] }
 0xcdd   : > { %4136 = vmatpush.msra.mxu2 %v7157_v19 }
 0xcde   : > { %4653 = vmatpush.msra.mxu0 %v4644_v49 }
 0xcdf   : > { %4137 = vmatpush.msra.mxu2 %v7162_v26 }
 0xce0   : > { %4654 = vmatpush.msra.mxu0 %v4643_v25  ;;  %v4896_v25 = vld [vmem:[#allocation6 + $0x1760] sm:$0xff] }
 0xce1   : > { %4138 = vmatpush.msra.mxu2 %v7166_v20  ;;  %4291 = vmatmul.f32.gmra.mxu3 %v4202_v24  ;;  %v4634_v24 = vld [vmem:[#allocation6 + $0x1688] sm:$0xff] }
 0xce2   : > { %5746 = vmatmul.msk.f32.vlgmr.msra.gmra.mxu2 %vm679_vm2, %v6985_v12  ;;  %v7607_v12 = vld [vmem:[#allocation25_spill] sm:$0xff] }
 0xce3   : > { %5773 = vmatpush.msk.msrb.mxu2 %vm686_vm1, %v7106_v21 }
 0xce5   : > { %4438 = vmatpush.msrb.mxu2 %v7109_v11 }
 0xce7   : > { %4439 = vmatpush.msrb.mxu2 %v7114_v52 }
 0xce9   : > { %4440 = vmatpush.msrb.mxu2 %v7119_v30 }
 0xcea   : > { %5747 = vmatmul.msk.f32.gmra.mxu2 %vm679_vm2, %v6995_v40  ;;  %v7608_v40 = vld [vmem:[#allocation26_spill] sm:$0xff] }
 0xceb   : > { %4441 = vmatpush.msrb.mxu2 %v7124_v63 }
 0xced   : > { %4442 = vmatpush.msrb.mxu2 %v7129_v22 }
 0xcef   : > { %4443 = vmatpush.msrb.mxu2 %v7134_v9 }
 0xcf1   : > { %4444 = vmatpush.msrb.mxu2 %v7139_v34 }
 0xcf2   : > { %5748 = vmatmul.msk.f32.gmra.mxu2 %vm679_vm2, %v7606_v17  ;;  %v4387_v17 = vld [vmem:[#allocation16 + $0x90] sm:$0xff] }
 0xcf3   : > { %4445 = vmatpush.msrb.mxu2 %v7144_v36  ;;  %5793 = vmatmul.msk.f32.gmra.mxu1 %vm679_vm2, %v4387_v17 }
 0xcf5   : > { %4446 = vmatpush.msrb.mxu2 %v7150_v1 }
 0xcf7   : > { %4447 = vmatpush.msrb.mxu2 %v7157_v19 }
 0xcf9   : > { %4448 = vmatpush.msrb.mxu2 %v7162_v26 }
 0xcfa   : > { %5749 = vmatmul.msk.f32.gmra.mxu2 %vm679_vm2, %v7607_v12 }
 0xcfb   : > { %4449 = vmatpush.msrb.mxu2 %v7166_v20 }
 0xcfd   : > { %5801 = vmatpush.msk.msra.mxu2 %vm686_vm1, %v7106_v21 }
 0xcff   : > { %4775 = vmatpush.msra.mxu2 %v7109_v11 }
 0xd01   : > { %4776 = vmatpush.msra.mxu2 %v7114_v52 }
 0xd02   : > { %5750 = vmatmul.msk.f32.gmra.mxu2 %vm679_vm2, %v7608_v40 }
 0xd03   : > { %4777 = vmatpush.msra.mxu2 %v7119_v30 }
 0xd05   : > { %4778 = vmatpush.msra.mxu2 %v7124_v63 }
 0xd07   : > { %4779 = vmatpush.msra.mxu2 %v7129_v22 }
 0xd09   : > { %4780 = vmatpush.msra.mxu2 %v7134_v9 }
 0xd0a   : > { %5751 = vmatmul.msk.f32.gmra.mxu2 %vm679_vm2, %v7609_v13  ;;  %v4393_v13 = vld [vmem:[#allocation16 + $0xc0] sm:$0xff] }
 0xd0b   : > { %4781 = vmatpush.msra.mxu2 %v7139_v34 }
 0xd0d   : > { %4782 = vmatpush.msra.mxu2 %v7144_v36 }
 0xd0f   : > { %4783 = vmatpush.msra.mxu2 %v7150_v1 }
 0xd11   : > { %4784 = vmatpush.msra.mxu2 %v7157_v19 }
 0xd12   : > { %5752 = vmatmul.msk.f32.gmra.mxu2 %vm679_vm2, %v7610_v32 }
 0xd13   : > { %4785 = vmatpush.msra.mxu2 %v7162_v26 }
 0xd15   : > { %4786 = vmatpush.msra.mxu2 %v7166_v20 }
 0xd1a   : > { %5753 = vmatmul.msk.f32.gmra.mxu2 %vm679_vm2, %v7611_v53 }
 0xd22   : > { %5754 = vmatmul.msk.f32.gmra.mxu2 %vm679_vm2, %v7612_v31 }
 0xd2a   : > { %5755 = vmatmul.msk.f32.gmra.mxu2 %vm679_vm2, %v7613_v58  ;;  %v4559_v58 = vld [vmem:[#allocation6 + $0x1660] sm:$0xff] }
 0xd2b   : > { %4566 = vmatpush.msrb.mxu3 %v4559_v58 }
 0xd2d   : > { %4567 = vmatpush.msrb.mxu3 %v4558_v60 }
 0xd2f   : > { %4568 = vmatpush.msrb.mxu3 %v4557_v0  ;;  %v7314_v0 = vld [vmem:[#allocation16 + $0x130] sm:$0xff] }
 0xd31   : > { %4569 = vmatpush.msrb.mxu3 %v4556_v59  ;;  %v4899_v59 = vld [vmem:[#allocation6 + $0x1778] sm:$0xff] }
 0xd32   : > { %5756 = vmatmul.msk.f32.gmra.mxu2 %vm679_vm2, %v7614_v39 }
 0xd3a   : > { %5757 = vmatmul.msk.f32.gmra.mxu2 %vm679_vm2, %v7615_v15  ;;  %v4642_v15 = vld [vmem:[#allocation6 + $0x16c8] sm:$0xff] }
 0xd3b   : > { %4655 = vmatpush.msra.mxu0 %v4642_v15  ;;  %v4894_v15 = vld [vmem:[#allocation6 + $0x1750] sm:$0xff] }
 0xd3d   : > { %4656 = vmatpush.msra.mxu0 %v4641_v42  ;;  %v4983_v42 = vld [vmem:[#allocation6 + $0x17e8] sm:$0xff] }
 0xd3f   : > { %4657 = vmatpush.msra.mxu0 %v4640_v33  ;;  %v7336_v33 = vld [vmem:[#allocation16 + $0x140] sm:$0xff] }
 0xd41   : > { %4658 = vmatpush.msra.mxu0 %v4639_v8 }
 0xd42   : > { %5758 = vmatmul.msk.f32.gmra.mxu2 %vm679_vm2, %v7616_v46  ;;  %v4638_v46 = vld [vmem:[#allocation6 + $0x16a8] sm:$0xff] }
 0xd43   : > { %4659 = vmatpush.msra.mxu0 %v4638_v46  ;;  %v4891_v46 = vld [vmem:[#allocation6 + $0x1738] sm:$0xff] }
 0xd45   : > { %4660 = vmatpush.msra.mxu0 %v4637_v23  ;;  %v4980_v23 = vld [vmem:[#allocation6 + $0x17d0] sm:$0xff] }
 0xd47   : > { %4661 = vmatpush.msra.mxu0 %v4636_v61  ;;  %v4889_v61 = vld [vmem:[#allocation6 + $0x1728] sm:$0xff] }
 0xd4a   : > { %5774 = vmatmul.msk.f32.vlgmr.msrb.gmra.mxu2 %vm679_vm2, %v7617_v16  ;;  %v4635_v16 = vld [vmem:[#allocation6 + $0x1690] sm:$0xff] }
 0xd4b   : > { %5829 = vmatpush.msk.msrb.mxu2 %vm686_vm1, %v7106_v21  ;;  %v4205_v21 = vpop.f32.mrf.mxu1  ;;  %4662 = vmatpush.msra.mxu0 %v4635_v16  ;;  %v4979_v16 = vld [vmem:[#allocation6 + $0x17c8] sm:$0xff] }
 0xd4c   : > { %4294 = vmatmul.f32.gmra.mxu3 %v4205_v21 }
 0xd4d   : > { %5112 = vmatpush.msrb.mxu2 %v7109_v11  ;;  %v4388_v11 = vld [vmem:[#allocation16 + $0x98] sm:$0xff]  ;;  %4663 = vmatpush.msra.mxu0 %v4634_v24  ;;  %v7346_v24 = vld [vmem:[#allocation16 + $0x148] sm:$0xff] }
 0xd4e   : > { %5794 = vmatmul.msk.f32.gmra.mxu1 %vm679_vm2, %v4388_v11 }
 0xd4f   : > { %5113 = vmatpush.msrb.mxu2 %v7114_v52 }
 0xd51   : > { %5114 = vmatpush.msrb.mxu2 %v7119_v30  ;;  %v4389_v30 = vld [vmem:[#allocation16 + $0xa0] sm:$0xff] }
 0xd52   : > { %5775 = vmatmul.msk.f32.gmra.mxu2 %vm679_vm2, %v4383_v5  ;;  %v4555_v5 = vld [vmem:[#allocation6 + $0x1640] sm:$0xff] }
 0xd53   : > { %5115 = vmatpush.msrb.mxu2 %v7124_v63  ;;  %v4208_v52 = vpop.f32.mrf.mxu1  ;;  %4570 = vmatpush.msrb.mxu3 %v4555_v5 }
 0xd54   : > { %4297 = vmatmul.f32.gmra.mxu3 %v4208_v52  ;;  %v4724_v52 = vld [vmem:[#allocation16 + $0xf8] sm:$0xff] }
 0xd55   : > { %5116 = vmatpush.msrb.mxu2 %v7129_v22  ;;  %4571 = vmatpush.msrb.mxu3 %v4554_v6  ;;  %v4897_v6 = vld [vmem:[#allocation6 + $0x1768] sm:$0xff] }
 0xd56   : > { %5795 = vmatmul.msk.f32.gmra.mxu1 %vm679_vm2, %v4389_v30 }
 0xd57   : > { %5117 = vmatpush.msrb.mxu2 %v7134_v9  ;;  %v4390_v9 = vld [vmem:[#allocation16 + $0xa8] sm:$0xff]  ;;  %4572 = vmatpush.msrb.mxu3 %v4553_v35 }
 0xd59   : > { %5118 = vmatpush.msrb.mxu2 %v7139_v34  ;;  %4573 = vmatpush.msrb.mxu3 %v4552_v51  ;;  %v4984_v51 = vld [vmem:[#allocation6 + $0x17f0] sm:$0xff] }
 0xd5a   : > { %5776 = vmatmul.msk.f32.gmra.mxu2 %vm679_vm2, %v4384_v41 }
 0xd5b   : > { %5119 = vmatpush.msrb.mxu2 %v7144_v36  ;;  %v4211_v22 = vpop.f32.mrf.mxu1  ;;  %4574 = vmatpush.msrb.mxu3 %v4551_v3  ;;  %v4893_v3 = vld [vmem:[#allocation6 + $0x1748] sm:$0xff] }
 0xd5c   : > { %4300 = vmatmul.f32.gmra.mxu3 %v4211_v22  ;;  %v4725_v22 = vld [vmem:[#allocation16 + $0x100] sm:$0xff] }
 0xd5d   : > { %5120 = vmatpush.msrb.mxu2 %v7150_v1  ;;  %v4391_v1 = vld [vmem:[#allocation16 + $0xb0] sm:$0xff]  ;;  %4575 = vmatpush.msrb.mxu3 %v4550_v57 }
 0xd5e   : > { %5796 = vmatmul.msk.f32.gmra.mxu1 %vm679_vm2, %v4390_v9 }
 0xd5f   : > { %5121 = vmatpush.msrb.mxu2 %v7157_v19  ;;  %4576 = vmatpush.msrb.mxu3 %v4549_v18 }
 0xd61   : > { %5122 = vmatpush.msrb.mxu2 %v7162_v26  ;;  %4577 = vmatpush.msrb.mxu3 %v4548_v7  ;;  %v4982_v7 = vld [vmem:[#allocation6 + $0x17e0] sm:$0xff] }
 0xd62   : > { %5777 = vmatmul.msk.f32.gmra.mxu2 %vm679_vm2, %v4385_v43 }
 0xd63   : > { %5123 = vmatpush.msrb.mxu2 %v7166_v20  ;;  %v4214_v36 = vpop.f32.mrf.mxu1  ;;  %v4392_v20 = vld [vmem:[#allocation16 + $0xb8] sm:$0xff]  ;;  %4578 = vmatpush.msrb.mxu3 %v4547_v27 }
 0xd64   : > { %4303 = vmatmul.f32.gmra.mxu3 %v4214_v36  ;;  %v4726_v36 = vld [vmem:[#allocation16 + $0x108] sm:$0xff]  ;;  %v4890_v27 = vld [vmem:[#allocation6 + $0x1730] sm:$0xff] }
 0xd65   : > { %v4140_v63 = vpop.f32.mrf.mxu2  ;;  %4900 = vmatpush.msra.mxu3 %v4899_v59 }
 0xd66   : > { %4341 = vmatmul.f32.vlgmr.msrb.gmra.mxu0 %v4140_v63  ;;  %5797 = vmatmul.msk.f32.gmra.mxu1 %vm679_vm2, %v4391_v1 }
 0xd67   : > { %4901 = vmatpush.msra.mxu3 %v4898_v4  ;;  %v5061_v4 = vld [vmem:[#allocation16 + $0x160] sm:$0xff] }
 0xd69   : > { %4902 = vmatpush.msra.mxu3 %v4897_v6 }
 0xd6a   : > { %5778 = vmatmul.msk.f32.gmra.mxu2 %vm679_vm2, %v4386_v37  ;;  %v4723_v37 = vld [vmem:[#allocation16 + $0xf0] sm:$0xff] }
 0xd6b   : > { %v4217_v26 = vpop.f32.mrf.mxu1  ;;  %4903 = vmatpush.msra.mxu3 %v4896_v25  ;;  %v5062_v25 = vld [vmem:[#allocation16 + $0x168] sm:$0xff] }
 0xd6c   : > { %4306 = vmatmul.f32.gmra.mxu3 %v4217_v26  ;;  %v7288_v26 = vpop.f32.mrf.mxu3 }
 0xd6d   : > { %v4143_v34 = vpop.f32.mrf.mxu2 }
 0xd6e   : > { %4344 = vmatmul.f32.gmra.mxu0 %v4143_v34  ;;  %5798 = vmatmul.msk.f32.gmra.mxu1 %vm679_vm2, %v4392_v20 }
 0xd72   : > { %5779 = vmatmul.msk.f32.gmra.mxu2 %vm679_vm2, %v4387_v17 }
 0xd73   : > { %v4220_v40 = vpop.f32.mrf.mxu1 }
 0xd74   : > { %4309 = vmatmul.f32.gmra.mxu3 %v4220_v40 }
 0xd75   : > { %v4146_v19 = vpop.f32.mrf.mxu2 }
 0xd76   : > { %4347 = vmatmul.f32.gmra.mxu0 %v4146_v19  ;;  %5799 = vmatmul.msk.f32.gmra.mxu1 %vm679_vm2, %v4393_v13 }
 0xd7a   : > { %5780 = vmatmul.msk.f32.gmra.mxu2 %vm679_vm2, %v4388_v11  ;;  %v4633_v11 = vld [vmem:[#allocation6 + $0x1680] sm:$0xff] }
 0xd7b   : > { %v4223_v53 = vpop.f32.mrf.mxu1  ;;  %4664 = vmatpush.msra.mxu0 %v4633_v11 }
 0xd7c   : > { %4312 = vmatmul.f32.gmra.mxu3 %v4223_v53 }
 0xd7d   : > { %v4149_v12 = vpop.f32.mrf.mxu2 }
 0xd7e   : > { %4350 = vmatmul.f32.gmra.mxu0 %v4149_v12  ;;  %5800 = vmatmul.msk.f32.gmra.mxu1 %vm679_vm2, %v7259_v10 }
 0xd82   : > { %5781 = vmatmul.msk.f32.gmra.mxu2 %vm679_vm2, %v4389_v30 }
 0xd83   : > { %v4226_v48 = vpop.f32.mrf.mxu1 }
 0xd84   : > { %4315 = vmatmul.f32.gmra.mxu3 %v4226_v48 }
 0xd85   : > { %v4152_v32 = vpop.f32.mrf.mxu2 }
 0xd86   : > { %4353 = vmatmul.f32.gmra.mxu0 %v4152_v32  ;;  %5816 = vmatmul.msk.f32.vlgmr.msra.gmra.mxu1 %vm679_vm2, %v7264_v50  ;;  %v4728_v32 = vld [vmem:[#allocation16 + $0x118] sm:$0xff] }
 0xd8a   : > { %5782 = vmatmul.msk.f32.gmra.mxu2 %vm679_vm2, %v4390_v9 }
 0xd8b   : > { %v4229_v44 = vpop.f32.mrf.mxu1 }
 0xd8c   : > { %4318 = vmatmul.f32.gmra.mxu3 %v4229_v44 }
 0xd8d   : > { %v4155_v31 = vpop.f32.mrf.mxu2 }
 0xd8e   : > { %4356 = vmatmul.f32.gmra.mxu0 %v4155_v31  ;;  %5817 = vmatmul.msk.f32.gmra.mxu1 %vm679_vm2, %v7269_v2 }
 0xd92   : > { %5783 = vmatmul.msk.f32.gmra.mxu2 %vm679_vm2, %v4391_v1 }
 0xd93   : > { %v4232_v38 = vpop.f32.mrf.mxu1 }
 0xd94   : > { %4321 = vmatmul.f32.gmra.mxu3 %v4232_v38  ;;  %v4895_v38 = vld [vmem:[#allocation6 + $0x1758] sm:$0xff] }
 0xd95   : > { %v4158_v56 = vpop.f32.mrf.mxu2  ;;  %4904 = vmatpush.msra.mxu3 %v4895_v38 }
 0xd96   : > { %4359 = vmatmul.f32.gmra.mxu0 %v4158_v56  ;;  %5818 = vmatmul.msk.f32.gmra.mxu1 %vm679_vm2, %v4721_v47  ;;  %v7305_v56 = vld [vmem:[#allocation16 + $0x128] sm:$0xff] }
 0xd97   : > { %4905 = vmatpush.msra.mxu3 %v4894_v15  ;;  %v5063_v15 = vld [vmem:[#allocation16 + $0x170] sm:$0xff] }
 0xd99   : > { %4906 = vmatpush.msra.mxu3 %v4893_v3 }
 0xd9a   : > { %5784 = vmatmul.msk.f32.gmra.mxu2 %vm679_vm2, %v4392_v20  ;;  %v4727_v20 = vld [vmem:[#allocation16 + $0x110] sm:$0xff] }
 0xd9b   : > { %v4507_v21 = vpop.f32.mrf.mxu1 }
 0xd9d   : > { %v4161_v39 = vpop.f32.mrf.mxu2 }
 0xd9e   : > { %4362 = vmatmul.f32.gmra.mxu0 %v4161_v39  ;;  %5819 = vmatmul.msk.f32.gmra.mxu1 %vm679_vm2, %v4722_v14 }
 0xda2   : > { %5785 = vmatmul.msk.f32.gmra.mxu2 %vm679_vm2, %v4393_v13  ;;  %v7293_v13 = vpop.f32.mrf.mxu3 }
 0xda3   : > { %v4510_v63 = vpop.f32.mrf.mxu1 }
 0xda5   : > { %v4164_v41 = vpop.f32.mrf.mxu2 }
 0xda6   : > { %4365 = vmatmul.f32.gmra.mxu0 %v4164_v41  ;;  %5820 = vmatmul.msk.f32.gmra.mxu1 %vm679_vm2, %v4723_v37 }
 0xdaa   : > { %5786 = vmatmul.msk.f32.gmra.mxu2 %vm679_vm2, %v7259_v10  ;;  %v7300_v45 = vpop.f32.mrf.mxu3 }
 0xdab   : > { %v4513_v34 = vpop.f32.mrf.mxu1 }
 0xdad   : > { %v4167_v43 = vpop.f32.mrf.mxu2 }
 0xdae   : > { %4368 = vmatmul.f32.gmra.mxu0 %v4167_v43  ;;  %5821 = vmatmul.msk.f32.gmra.mxu1 %vm679_vm2, %v4724_v52  ;;  %v4981_v43 = vld [vmem:[#allocation6 + $0x17d8] sm:$0xff] }
 0xdb2   : > { %5802 = vmatmul.msk.f32.vlgmr.msra.gmra.mxu2 %vm679_vm2, %v7264_v50 }
 0xdb3   : > { %v4516_v19 = vpop.f32.mrf.mxu1 }
 0xdb5   : > { %v4170_v17 = vpop.f32.mrf.mxu2 }
 0xdb6   : > { %4371 = vmatmul.f32.gmra.mxu0 %v4170_v17  ;;  %5822 = vmatmul.msk.f32.gmra.mxu1 %vm679_vm2, %v4725_v22 }
 0xdba   : > { %5803 = vmatmul.msk.f32.gmra.mxu2 %vm679_vm2, %v7269_v2 }
 0xdbb   : > { %v4519_v40 = vpop.f32.mrf.mxu1 }
 0xdbd   : > { %v4173_v30 = vpop.f32.mrf.mxu2 }
 0xdbe   : > { %4374 = vmatmul.f32.gmra.mxu0 %v4173_v30  ;;  %5823 = vmatmul.msk.f32.gmra.mxu1 %vm679_vm2, %v4726_v36  ;;  %v4978_v30 = vld [vmem:[#allocation6 + $0x17c0] sm:$0xff] }
 0xdc2   : > { %5804 = vmatmul.msk.f32.gmra.mxu2 %vm679_vm2, %v4721_v47  ;;  %v4985_v47 = vld [vmem:[#allocation6 + $0x17f8] sm:$0xff] }
 0xdc3   : > { %v4522_v10 = vpop.f32.mrf.mxu1  ;;  %4986 = vmatpush.msrb.mxu0 %v4985_v47 }
 0xdc5   : > { %v4176_v9 = vpop.f32.mrf.mxu2  ;;  %4987 = vmatpush.msrb.mxu0 %v4984_v51 }
 0xdc6   : > { %4377 = vmatmul.f32.gmra.mxu0 %v4176_v9  ;;  %5824 = vmatmul.msk.f32.gmra.mxu1 %vm679_vm2, %v4727_v20  ;;  %v4886_v9 = vld [vmem:[#allocation6 + $0x1710] sm:$0xff] }
 0xdc7   : > { %4988 = vmatpush.msrb.mxu0 %v4983_v42 }
 0xdc9   : > { %4989 = vmatpush.msrb.mxu0 %v4982_v7 }
 0xdca   : > { %5805 = vmatmul.msk.f32.gmra.mxu2 %vm679_vm2, %v4722_v14  ;;  %v4892_v14 = vld [vmem:[#allocation6 + $0x1740] sm:$0xff] }
 0xdcb   : > { %v4525_v50 = vpop.f32.mrf.mxu1  ;;  %4907 = vmatpush.msra.mxu3 %v4892_v14  ;;  %4990 = vmatpush.msrb.mxu0 %v4981_v43 }
 0xdcd   : > { %v4451_v1 = vpop.f32.mrf.mxu2  ;;  %4908 = vmatpush.msra.mxu3 %v4891_v46  ;;  %4991 = vmatpush.msrb.mxu0 %v4980_v23 }
 0xdce   : > { %4579 = vmatmul.f32.vlgmr.msrb.gmra.mxu3 %v4451_v1  ;;  %4665 = vmatmul.f32.vlgmr.msra.gmra.mxu0 %v4507_v21  ;;  %v4975_v1 = vld [vmem:[#allocation6 + $0x17a8] sm:$0xff] }
 0xdcf   : > { %5825 = vmatmul.msk.f32.gmra.mxu1 %vm679_vm2, %v4728_v32  ;;  %v7309_v62 = vpop.f32.mrf.mxu3  ;;  %4909 = vmatpush.msra.mxu3 %v4890_v27  ;;  %v5065_v27 = vld [vmem:[#allocation16 + $0x180] sm:$0xff] }
 0xdd0   : > { %4992 = vmatpush.msrb.mxu0 %v4979_v16 }
 0xdd1   : > { %4910 = vmatpush.msra.mxu3 %v4889_v61 }
 0xdd2   : > { %5806 = vmatmul.msk.f32.gmra.mxu2 %vm679_vm2, %v4723_v37  ;;  %4993 = vmatpush.msrb.mxu0 %v4978_v30 }
 0xdd3   : > { %v4528_v60 = vpop.f32.mrf.mxu1 }
 0xdd5   : > { %v4454_v12 = vpop.f32.mrf.mxu2 }
 0xdd6   : > { %4582 = vmatmul.f32.gmra.mxu3 %v4454_v12  ;;  %4668 = vmatmul.f32.gmra.mxu0 %v4510_v63  ;;  %v4887_v63 = vld [vmem:[#allocation6 + $0x1718] sm:$0xff] }
 0xdd7   : > { %5826 = vmatmul.msk.f32.gmra.mxu1 %vm679_vm2, %v4729_v55  ;;  %v7320_v39 = vpop.f32.mrf.mxu3 }
 0xdda   : > { %5807 = vmatmul.msk.f32.gmra.mxu2 %vm679_vm2, %v4724_v52  ;;  %v4888_v52 = vld [vmem:[#allocation6 + $0x1720] sm:$0xff] }
 0xddb   : > { %v7318_v2 = vpop.f32.mrf.mxu1  ;;  %4911 = vmatpush.msra.mxu3 %v4888_v52 }
 0xddd   : > { %v4457_v53 = vpop.f32.mrf.mxu2  ;;  %4912 = vmatpush.msra.mxu3 %v4887_v63 }
 0xdde   : > { %4585 = vmatmul.f32.gmra.mxu3 %v4457_v53  ;;  %4671 = vmatmul.f32.gmra.mxu0 %v4513_v34  ;;  %v4976_v34 = vld [vmem:[#allocation6 + $0x17b0] sm:$0xff]  ;;  %v4974_v53 = vld [vmem:[#allocation6 + $0x17a0] sm:$0xff] }
 0xddf   : > { %5827 = vmatmul.msk.f32.gmra.mxu1 %vm679_vm2, %v7305_v56  ;;  %v7332_v41 = vpop.f32.mrf.mxu3  ;;  %4913 = vmatpush.msra.mxu3 %v4886_v9 }
 0xde2   : > { %5808 = vmatmul.msk.f32.gmra.mxu2 %vm679_vm2, %v4725_v22  ;;  %v4977_v22 = vld [vmem:[#allocation6 + $0x17b8] sm:$0xff] }
 0xde3   : > { %v7297_v31 = vpop.f32.mrf.mxu0  ;;  %v7329_v35 = vpop.f32.mrf.mxu1  ;;  %4994 = vmatpush.msrb.mxu0 %v4977_v22 }
 0xde4   : > { %v4343_v30 = vadd.f32 %v7297_v31, %v7288_v26 }
 0xde5   : > { %v4460_v48 = vpop.f32.mrf.mxu2  ;;  %4995 = vmatpush.msrb.mxu0 %v4976_v34  ;;  %v7404_v34 = vld [vmem:[#allocation16 + $0x190] sm:$0xff] }
 0xde6   : > { %4588 = vmatmul.f32.gmra.mxu3 %v4460_v48  ;;  %4674 = vmatmul.f32.gmra.mxu0 %v4516_v19  ;;  %v4972_v48 = vld [vmem:[#allocation6 + $0x1790] sm:$0xff] }
 0xde7   : > { %5828 = vmatmul.msk.f32.gmra.mxu1 %vm679_vm2, %v7314_v0  ;;  %v7348_v17 = vpop.f32.mrf.mxu3  ;;  %4996 = vmatpush.msrb.mxu0 %v4975_v1 }
 0xde9   : > { %4997 = vmatpush.msrb.mxu0 %v4974_v53 }
 0xdea   : > { %5809 = vmatmul.msk.f32.gmra.mxu2 %vm679_vm2, %v4726_v36  ;;  %v4885_v36 = vld [vmem:[#allocation6 + $0x1708] sm:$0xff] }
 0xdeb   : > { %v7303_v54 = vpop.f32.mrf.mxu0  ;;  %v7340_v8 = vpop.f32.mrf.mxu1  ;;  %4914 = vmatpush.msra.mxu3 %v4885_v36 }
 0xded   : > { %v4463_v58 = vpop.f32.mrf.mxu2 }
 0xdee   : > { %4591 = vmatmul.f32.gmra.mxu3 %v4463_v58  ;;  %4677 = vmatmul.f32.gmra.mxu0 %v4519_v40  ;;  %v5060_v58 = vld [vmem:[#allocation16 + $0x158] sm:$0xff] }
 0xdef   : > { %5844 = vmatmul.msk.f32.vlgmr.msrb.gmra.mxu1 %vm679_vm2, %v7325_v29 }
 0xdf2   : > { %5810 = vmatmul.msk.f32.gmra.mxu2 %vm679_vm2, %v4727_v20  ;;  %v5059_v20 = vld [vmem:[#allocation16 + $0x150] sm:$0xff] }
 0xdf3   : > { %v7312_v28 = vpop.f32.mrf.mxu0  ;;  %v4540_v11 = vpop.f32.mrf.mxu1 }
 0xdf5   : > { %v4466_v44 = vpop.f32.mrf.mxu2 }
 0xdf6   : > { %4594 = vmatmul.f32.gmra.mxu3 %v4466_v44  ;;  %4680 = vmatmul.f32.gmra.mxu0 %v4522_v10  ;;  %v7359_v10 = vpop.f32.mrf.mxu3  ;;  %v4970_v44 = vld [vmem:[#allocation6 + $0x1780] sm:$0xff] }
 0xdf7   : > { %5845 = vmatmul.msk.f32.gmra.mxu1 %vm679_vm2, %v7336_v33 }
 0xdfa   : > { %5811 = vmatmul.msk.f32.gmra.mxu2 %vm679_vm2, %v4728_v32  ;;  %v4884_v32 = vld [vmem:[#allocation6 + $0x1700] sm:$0xff] }
 0xdfb   : > { %v7323_v5 = vpop.f32.mrf.mxu0  ;;  %v4543_v40 = vpop.f32.mrf.mxu1  ;;  %4915 = vmatpush.msra.mxu3 %v4884_v32  ;;  %v7413_v32 = vld [vmem:[#allocation16 + $0x198] sm:$0xff] }
 0xdfd   : > { %v4469_v49 = vpop.f32.mrf.mxu2 }
 0xdfe   : > { %4597 = vmatmul.f32.gmra.mxu3 %v4469_v49  ;;  %4683 = vmatmul.f32.gmra.mxu0 %v4525_v50  ;;  %v4971_v50 = vld [vmem:[#allocation6 + $0x1788] sm:$0xff] }
 0xdff   : > { %5846 = vmatmul.msk.f32.gmra.mxu1 %vm679_vm2, %v7346_v24 }
 0xe02   : > { %5812 = vmatmul.msk.f32.gmra.mxu2 %vm679_vm2, %v4729_v55  ;;  %v4973_v55 = vld [vmem:[#allocation6 + $0x1798] sm:$0xff] }
 0xe03   : > { %v7334_v57 = vpop.f32.mrf.mxu0  ;;  %4998 = vmatpush.msrb.mxu0 %v4973_v55 }
 0xe05   : > { %v4472_v18 = vpop.f32.mrf.mxu2  ;;  %4999 = vmatpush.msrb.mxu0 %v4972_v48 }
 0xe06   : > { %4600 = vmatmul.f32.gmra.mxu3 %v4472_v18  ;;  %4686 = vmatmul.f32.gmra.mxu0 %v4528_v60 }
 0xe07   : > { %5847 = vmatmul.msk.f32.gmra.mxu1 %vm679_vm2, %v5059_v20  ;;  %5000 = vmatpush.msrb.mxu0 %v4971_v50  ;;  %v5236_v50 = vld [vmem:[#allocation6 + $0x1878] sm:$0xff] }
 0xe08   : > { %5237 = vmatpush.msrb.mxu3 %v5236_v50 }
 0xe09   : > { %5001 = vmatpush.msrb.mxu0 %v4970_v44  ;;  %v5234_v44 = vld [vmem:[#allocation6 + $0x1868] sm:$0xff] }
 0xe0a   : > { %5813 = vmatmul.msk.f32.gmra.mxu2 %vm679_vm2, %v7305_v56 }
 0xe0b   : > { %v7344_v37 = vpop.f32.mrf.mxu0 }
 0xe0d   : > { %v4475_v21 = vpop.f32.mrf.mxu2 }
 0xe0e   : > { %4603 = vmatmul.f32.gmra.mxu3 %v4475_v21  ;;  %4689 = vmatmul.f32.gmra.mxu0 %v7318_v2  ;;  %v7367_v2 = vpop.f32.mrf.mxu3  ;;  %v5066_v21 = vld [vmem:[#allocation16 + $0x188] sm:$0xff] }
 0xe0f   : > { %5848 = vmatmul.msk.f32.gmra.mxu1 %vm679_vm2, %v5060_v58 }
 0xe12   : > { %5814 = vmatmul.msk.f32.gmra.mxu2 %vm679_vm2, %v7314_v0  ;;  %v4844_v0 = vpop.f32.mrf.mxu1 }
 0xe13   : > { %v7355_v19 = vpop.f32.mrf.mxu0 }
 0xe15   : > { %v4478_v12 = vpop.f32.mrf.mxu2 }
 0xe16   : > { %4606 = vmatmul.f32.gmra.mxu3 %v4478_v12  ;;  %4692 = vmatmul.f32.gmra.mxu0 %v7329_v35  ;;  %v7376_v49 = vpop.f32.mrf.mxu3  ;;  %v4346_v12 = vadd.f32 %v7303_v54, %v7293_v13  ;;  %v4349_v13 = vadd.f32 %v7312_v28, %v7300_v45  ;;  %v4352_v45 = vadd.f32 %v7323_v5, %v7309_v62  ;;  %v5229_v62 = vld [vmem:[#allocation6 + $0x1840] sm:$0xff] }
 0xe17   : > { %5849 = vmatmul.msk.f32.gmra.mxu1 %vm679_vm2, %v5061_v4  ;;  %v5319_v5 = vld [vmem:[#allocation6 + $0x18e0] sm:$0xff] }
 0xe1a   : > { %5830 = vmatmul.msk.f32.vlgmr.msrb.gmra.mxu2 %vm679_vm2, %v7325_v29  ;;  %v4847_v6 = vpop.f32.mrf.mxu1 }
 0xe1b   : > { %v7363_v56 = vpop.f32.mrf.mxu0 }
 0xe1d   : > { %v4481_v60 = vpop.f32.mrf.mxu2 }
 0xe1e   : > { %4609 = vmatmul.f32.gmra.mxu3 %v4481_v60  ;;  %4695 = vmatmul.f32.gmra.mxu0 %v7340_v8  ;;  %v7384_v3 = vpop.f32.mrf.mxu3  ;;  %v5064_v8 = vld [vmem:[#allocation16 + $0x178] sm:$0xff] }
 0xe1f   : > { %5850 = vmatmul.msk.f32.gmra.mxu1 %vm679_vm2, %v5062_v25 }
 0xe22   : > { %5831 = vmatmul.msk.f32.gmra.mxu2 %vm679_vm2, %v7336_v33  ;;  %v4850_v47 = vpop.f32.mrf.mxu1 }
 0xe23   : > { %v7371_v59 = vpop.f32.mrf.mxu0 }
 0xe25   : > { %v4484_v29 = vpop.f32.mrf.mxu2 }
 0xe26   : > { %4612 = vmatmul.f32.gmra.mxu3 %v4484_v29  ;;  %4698 = vmatmul.f32.gmra.mxu0 %v4540_v11  ;;  %v7391_v46 = vpop.f32.mrf.mxu3 }
 0xe27   : > { %5851 = vmatmul.msk.f32.gmra.mxu1 %vm679_vm2, %v5063_v15 }
 0xe2a   : > { %5832 = vmatmul.msk.f32.gmra.mxu2 %vm679_vm2, %v7346_v24  ;;  %v4853_v33 = vpop.f32.mrf.mxu1 }
 0xe2b   : > { %v7378_v35 = vpop.f32.mrf.mxu0 }
 0xe2d   : > { %v4487_v38 = vpop.f32.mrf.mxu2 }
 0xe2e   : > { %4615 = vmatmul.f32.gmra.mxu3 %v4487_v38  ;;  %4701 = vmatmul.f32.gmra.mxu0 %v4543_v40  ;;  %v7397_v16 = vpop.f32.mrf.mxu3  ;;  %v5232_v38 = vld [vmem:[#allocation6 + $0x1858] sm:$0xff] }
 0xe2f   : > { %5852 = vmatmul.msk.f32.gmra.mxu1 %vm679_vm2, %v5064_v8 }
 0xe32   : > { %5833 = vmatmul.msk.f32.gmra.mxu2 %vm679_vm2, %v5059_v20  ;;  %v4856_v7 = vpop.f32.mrf.mxu1 }
 0xe33   : > { %v7382_v51 = vpop.f32.mrf.mxu0 }
 0xe35   : > { %v4788_v42 = vpop.f32.mrf.mxu2 }
 0xe36   : > { %4916 = vmatmul.f32.vlgmr.msra.gmra.mxu3 %v4788_v42  ;;  %5002 = vmatmul.f32.vlgmr.msrb.gmra.mxu0 %v4844_v0  ;;  %v5321_v42 = vld [vmem:[#allocation6 + $0x18f0] sm:$0xff] }
 0xe37   : > { %5853 = vmatmul.msk.f32.gmra.mxu1 %vm679_vm2, %v5065_v27 }
 0xe3a   : > { %5834 = vmatmul.msk.f32.gmra.mxu2 %vm679_vm2, %v5060_v58  ;;  %v4859_v61 = vpop.f32.mrf.mxu1  ;;  %v5235_v58 = vld [vmem:[#allocation6 + $0x1870] sm:$0xff] }
 0xe3b   : > { %v7388_v18 = vpop.f32.mrf.mxu0  ;;  %5238 = vmatpush.msrb.mxu3 %v5235_v58 }
 0xe3d   : > { %v4791_v14 = vpop.f32.mrf.mxu2  ;;  %5239 = vmatpush.msrb.mxu3 %v5234_v44 }
 0xe3e   : > { %4919 = vmatmul.f32.gmra.mxu3 %v4791_v14  ;;  %5005 = vmatmul.f32.gmra.mxu0 %v4847_v6  ;;  %v5230_v14 = vld [vmem:[#allocation6 + $0x1848] sm:$0xff] }
 0xe3f   : > { %5854 = vmatmul.msk.f32.gmra.mxu1 %vm679_vm2, %v5066_v21 }
 0xe42   : > { %5835 = vmatmul.msk.f32.gmra.mxu2 %vm679_vm2, %v5061_v4  ;;  %v4862_v52 = vpop.f32.mrf.mxu1 }
 0xe43   : > { %v7394_v43 = vpop.f32.mrf.mxu0 }
 0xe45   : > { %v4794_v23 = vpop.f32.mrf.mxu2 }
 0xe46   : > { %4922 = vmatmul.f32.gmra.mxu3 %v4794_v23  ;;  %5008 = vmatmul.f32.gmra.mxu0 %v4850_v47  ;;  %v5322_v47 = vld [vmem:[#allocation6 + $0x18f8] sm:$0xff] }
 0xe47   : > { %5855 = vmatmul.msk.f32.gmra.mxu1 %vm679_vm2, %v7404_v34  ;;  %5323 = vmatpush.msra.mxu0 %v5322_v47 }
 0xe49   : > { %5324 = vmatpush.msra.mxu0 %v5321_v42  ;;  %v5308_v42 = vld [vmem:[#allocation6 + $0x1888] sm:$0xff] }
 0xe4a   : > { %5836 = vmatmul.msk.f32.gmra.mxu2 %vm679_vm2, %v5062_v25  ;;  %v4865_v20 = vpop.f32.mrf.mxu1  ;;  %v5233_v25 = vld [vmem:[#allocation6 + $0x1860] sm:$0xff] }
 0xe4b   : > { %v4666_v24 = vpop.f32.mrf.mxu0  ;;  %5240 = vmatpush.msrb.mxu3 %v5233_v25  ;;  %v5311_v25 = vld [vmem:[#allocation6 + $0x18a0] sm:$0xff] }
 0xe4d   : > { %v4797_v11 = vpop.f32.mrf.mxu2  ;;  %5241 = vmatpush.msrb.mxu3 %v5232_v38  ;;  %v5310_v38 = vld [vmem:[#allocation6 + $0x1898] sm:$0xff] }
 0xe4e   : > { %4925 = vmatmul.f32.gmra.mxu3 %v4797_v11  ;;  %5011 = vmatmul.f32.gmra.mxu0 %v4853_v33  ;;  %v5318_v11 = vld [vmem:[#allocation6 + $0x18d8] sm:$0xff] }
 0xe4f   : > { %5856 = vmatmul.msk.f32.gmra.mxu1 %vm679_vm2, %v7413_v32 }
 0xe51   : > { %v4580_v63 = vpop.f32.mrf.mxu3 }
 0xe52   : > { %v4619_v22 = vadd.f32 %v4580_v63, %v4343_v30  ;;  %5837 = vmatmul.msk.f32.gmra.mxu2 %vm679_vm2, %v5063_v15  ;;  %v7419_v48 = vpop.f32.mrf.mxu1  ;;  %v5231_v15 = vld [vmem:[#allocation6 + $0x1850] sm:$0xff] }
 0xe53   : > { %v4669_v9 = vpop.f32.mrf.mxu0  ;;  %5242 = vmatpush.msrb.mxu3 %v5231_v15  ;;  %v5227_v30 = vld [vmem:[#allocation6 + $0x1830] sm:$0xff] }
 0xe54   : > { %v7406_v36 = vadd.f32 %v4666_v24, %v4619_v22  ;;  %v5228_v24 = vld [vmem:[#allocation6 + $0x1838] sm:$0xff]  ;;  %v5317_v63 = vld [vmem:[#allocation6 + $0x18d0] sm:$0xff] }
 0xe55   : > { %v4800_v1 = vpop.f32.mrf.mxu2  ;;  %5243 = vmatpush.msrb.mxu3 %v5230_v14 }
 0xe56   : > { %4928 = vmatmul.f32.gmra.mxu3 %v4800_v1  ;;  %5014 = vmatmul.f32.gmra.mxu0 %v4856_v7  ;;  %v5320_v7 = vld [vmem:[#allocation6 + $0x18e8] sm:$0xff] }
 0xe57   : > { %5325 = vmatpush.msra.mxu0 %v5320_v7  ;;  %5244 = vmatpush.msrb.mxu3 %v5229_v62  ;;  %v5226_v1 = vld [vmem:[#allocation6 + $0x1828] sm:$0xff]  ;;  %v5307_v7 = vld [vmem:[#allocation6 + $0x1880] sm:$0xff] }
 0xe59   : > { %v4583_v26 = vpop.f32.mrf.mxu3  ;;  %5326 = vmatpush.msra.mxu0 %v5319_v5  ;;  %5245 = vmatpush.msrb.mxu3 %v5228_v24 }
 0xe5a   : > { %v4620_v31 = vadd.f32 %v4583_v26, %v4346_v12  ;;  %5838 = vmatmul.msk.f32.gmra.mxu2 %vm679_vm2, %v5064_v8  ;;  %v7426_v6 = vpop.f32.mrf.mxu1 }
 0xe5b   : > { %v4672_v40 = vpop.f32.mrf.mxu0  ;;  %5327 = vmatpush.msra.mxu0 %v5318_v11  ;;  %5246 = vmatpush.msrb.mxu3 %v5227_v30  ;;  %v4367_v11 = vadd.f32 %v7371_v59, %v7367_v2  ;;  %v4373_v2 = vadd.f32 %v7382_v51, %v7384_v3  ;;  %v4379_v51 = vadd.f32 %v7394_v43, %v7397_v16 }
 0xe5c   : > { %v7415_v53 = vadd.f32 %v4669_v9, %v4620_v31  ;;  %v5315_v31 = vld [vmem:[#allocation6 + $0x18c0] sm:$0xff] }
 0xe5d   : > { %v4803_v55 = vpop.f32.mrf.mxu2  ;;  %5328 = vmatpush.msra.mxu0 %v5317_v63  ;;  %5247 = vmatpush.msrb.mxu3 %v5226_v1 }
 0xe5e   : > { %4931 = vmatmul.f32.gmra.mxu3 %v4803_v55  ;;  %5017 = vmatmul.f32.gmra.mxu0 %v4859_v61  ;;  %v5314_v55 = vld [vmem:[#allocation6 + $0x18b8] sm:$0xff] }
 0xe61   : > { %v4586_v54 = vpop.f32.mrf.mxu3 }
 0xe62   : > { %v4621_v60 = vadd.f32 %v4586_v54, %v4349_v13  ;;  %5839 = vmatmul.msk.f32.gmra.mxu2 %vm679_vm2, %v5065_v27  ;;  %v7433_v61 = vpop.f32.mrf.mxu1  ;;  %v5223_v13 = vld [vmem:[#allocation6 + $0x1810] sm:$0xff] }
 0xe63   : > { %v4675_v0 = vpop.f32.mrf.mxu0  ;;  %v5313_v54 = vld [vmem:[#allocation6 + $0x18b0] sm:$0xff] }
 0xe64   : > { %v7424_v4 = vadd.f32 %v4672_v40, %v4621_v60  ;;  %v5224_v40 = vld [vmem:[#allocation6 + $0x1818] sm:$0xff] }
 0xe65   : > { %v4806_v29 = vpop.f32.mrf.mxu2 }
 0xe66   : > { %4934 = vmatmul.f32.gmra.mxu3 %v4806_v29  ;;  %5020 = vmatmul.f32.gmra.mxu0 %v4862_v52 }
 0xe69   : > { %v4589_v28 = vpop.f32.mrf.mxu3 }
 0xe6a   : > { %v4622_v33 = vadd.f32 %v4589_v28, %v4352_v45  ;;  %5840 = vmatmul.msk.f32.gmra.mxu2 %vm679_vm2, %v5066_v21  ;;  %v4355_v21 = vadd.f32 %v7334_v57, %v7320_v39  ;;  %v4877_v39 = vpop.f32.mrf.mxu1  ;;  %v5225_v57 = vld [vmem:[#allocation6 + $0x1820] sm:$0xff]  ;;  %v5309_v45 = vld [vmem:[#allocation6 + $0x1890] sm:$0xff] }
 0xe6b   : > { %v4678_v8 = vpop.f32.mrf.mxu0  ;;  %5248 = vmatpush.msrb.mxu3 %v5225_v57 }
 0xe6c   : > { %v7431_v27 = vadd.f32 %v4675_v0, %v4622_v33  ;;  %v5312_v0 = vld [vmem:[#allocation6 + $0x18a8] sm:$0xff] }
 0xe6d   : > { %v4809_v23 = vpop.f32.mrf.mxu2  ;;  %5249 = vmatpush.msrb.mxu3 %v5224_v40 }
 0xe6e   : > { %4937 = vmatmul.f32.gmra.mxu3 %v4809_v23  ;;  %5023 = vmatmul.f32.gmra.mxu0 %v4865_v20  ;;  %v5316_v20 = vld [vmem:[#allocation6 + $0x18c8] sm:$0xff] }
 0xe6f   : > { %5329 = vmatpush.msra.mxu0 %v5316_v20  ;;  %5250 = vmatpush.msrb.mxu3 %v5223_v13 }
 0xe71   : > { %v4592_v52 = vpop.f32.mrf.mxu3  ;;  %5330 = vmatpush.msra.mxu0 %v5315_v31 }
 0xe72   : > { %v4623_v22 = vadd.f32 %v4592_v52, %v4355_v21  ;;  %5841 = vmatmul.msk.f32.gmra.mxu2 %vm679_vm2, %v7404_v34  ;;  %v4358_v34 = vadd.f32 %v7344_v37, %v7332_v41  ;;  %v4880_v41 = vpop.f32.mrf.mxu1  ;;  %v5221_v37 = vld [vmem:[#allocation6 + $0x1800] sm:$0xff] }
 0xe73   : > { %v4681_v9 = vpop.f32.mrf.mxu0  ;;  %5331 = vmatpush.msra.mxu0 %v5314_v55 }
 0xe74   : > { %v7439_v12 = vadd.f32 %v4678_v8, %v4623_v22 }
 0xe75   : > { %v4812_v26 = vpop.f32.mrf.mxu2  ;;  %5332 = vmatpush.msra.mxu0 %v5313_v54 }
 0xe76   : > { %4940 = vmatmul.f32.gmra.mxu3 %v4812_v26  ;;  %5026 = vmatmul.f32.gmra.mxu0 %v7419_v48  ;;  %v5222_v48 = vld [vmem:[#allocation6 + $0x1808] sm:$0xff] }
 0xe77   : > { %5251 = vmatpush.msrb.mxu3 %v5222_v48  ;;  %5333 = vmatpush.msra.mxu0 %v5312_v0 }
 0xe79   : > { %v4595_v50 = vpop.f32.mrf.mxu3  ;;  %5252 = vmatpush.msrb.mxu3 %v5221_v37  ;;  %5334 = vmatpush.msra.mxu0 %v5311_v25 }
 0xe7a   : > { %v4624_v58 = vadd.f32 %v4595_v50, %v4358_v34  ;;  %5842 = vmatmul.msk.f32.gmra.mxu2 %vm679_vm2, %v7413_v32  ;;  %v4361_v32 = vadd.f32 %v7355_v19, %v7348_v17  ;;  %v5181_v14 = vpop.f32.mrf.mxu1  ;;  %v4364_v17 = vadd.f32 %v7363_v56, %v7359_v10  ;;  %v4370_v56 = vadd.f32 %v7378_v35, %v7376_v49 }
 0xe7b   : > { %v4684_v60 = vpop.f32.mrf.mxu0  ;;  %5335 = vmatpush.msra.mxu0 %v5310_v38  ;;  %v4376_v49 = vadd.f32 %v7388_v18, %v7391_v46 }
 0xe7c   : > { %v7446_v44 = vadd.f32 %v4681_v9, %v4624_v58 }
 0xe7d   : > { %v4815_v29 = vpop.f32.mrf.mxu2  ;;  %5336 = vmatpush.msra.mxu0 %v5309_v45 }
 0xe7e   : > { %4943 = vmatmul.f32.gmra.mxu3 %v4815_v29  ;;  %5029 = vmatmul.f32.gmra.mxu0 %v7426_v6 }
 0xe7f   : > { %5337 = vmatpush.msra.mxu0 %v5308_v42 }
 0xe81   : > { %v4598_v47 = vpop.f32.mrf.mxu3  ;;  %5338 = vmatpush.msra.mxu0 %v5307_v7 }
 0xe82   : > { %v4625_v28 = vadd.f32 %v4598_v47, %v4361_v32  ;;  %v5184_v24 = vpop.f32.mrf.mxu1 }
 0xe83   : > { %v4687_v15 = vpop.f32.mrf.mxu0 }
 0xe84   : > { %v7451_v33 = vadd.f32 %v4684_v60, %v4625_v28 }
 0xe85   : > { %v4818_v8 = vpop.f32.mrf.mxu2 }
 0xe86   : > { %4946 = vmatmul.f32.gmra.mxu3 %v4818_v8  ;;  %5032 = vmatmul.f32.gmra.mxu0 %v7433_v61 }
 0xe89   : > { %v4601_v19 = vpop.f32.mrf.mxu3 }
 0xe8a   : > { %v4626_v6 = vadd.f32 %v4601_v19, %v4364_v17  ;;  %v5187_v10 = vpop.f32.mrf.mxu1 }
 0xe8b   : > { %v4690_v23 = vpop.f32.mrf.mxu0 }
 0xe8c   : > { %v7456_v62 = vadd.f32 %v4687_v15, %v4626_v6 }
 0xe8d   : > { %v4821_v5 = vpop.f32.mrf.mxu2 }
 0xe8e   : > { %4949 = vmatmul.f32.gmra.mxu3 %v4821_v5  ;;  %5035 = vmatmul.f32.gmra.mxu0 %v4877_v39 }
 0xe91   : > { %v4604_v21 = vpop.f32.mrf.mxu3 }
 0xe92   : > { %v4627_v52 = vadd.f32 %v4604_v21, %v4367_v11  ;;  %v5190_v39 = vpop.f32.mrf.mxu1 }
 0xe93   : > { %v4693_v30 = vpop.f32.mrf.mxu0 }
 0xe94   : > { %v7460_v61 = vadd.f32 %v4690_v23, %v4627_v52 }
 0xe95   : > { %v4824_v63 = vpop.f32.mrf.mxu2 }
 0xe96   : > { %4952 = vmatmul.f32.gmra.mxu3 %v4824_v63  ;;  %5038 = vmatmul.f32.gmra.mxu0 %v4880_v41 }
 0xe99   : > { %v4607_v22 = vpop.f32.mrf.mxu3 }
 0xe9a   : > { %v4628_v9 = vadd.f32 %v4607_v22, %v4370_v56  ;;  %v5193_v13 = vpop.f32.mrf.mxu1 }
 0xe9b   : > { %v4696_v1 = vpop.f32.mrf.mxu0 }
 0xe9c   : > { %v7464_v20 = vadd.f32 %v4693_v30, %v4628_v9 }
 0xe9d   : > { %v5125_v26 = vpop.f32.mrf.mxu2 }
 0xe9e   : > { %5253 = vmatmul.f32.vlgmr.msrb.gmra.mxu3 %v5125_v26  ;;  %5339 = vmatmul.f32.vlgmr.msra.gmra.mxu0 %v5181_v14 }
 0xea1   : > { %v4610_v59 = vpop.f32.mrf.mxu3 }
 0xea2   : > { %v4629_v57 = vadd.f32 %v4610_v59, %v4373_v2  ;;  %v5196_v41 = vpop.f32.mrf.mxu1 }
 0xea3   : > { %v4699_v31 = vpop.f32.mrf.mxu0 }
 0xea4   : > { %v7468_v40 = vadd.f32 %v4696_v1, %v4629_v57 }
 0xea5   : > { %v5128_v55 = vpop.f32.mrf.mxu2 }
 0xea6   : > { %5256 = vmatmul.f32.gmra.mxu3 %v5128_v55  ;;  %5342 = vmatmul.f32.gmra.mxu0 %v5184_v24 }
 0xea9   : > { %v4613_v35 = vpop.f32.mrf.mxu3 }
 0xeaa   : > { %v4630_v34 = vadd.f32 %v4613_v35, %v4376_v49  ;;  %v5199_v32 = vpop.f32.mrf.mxu1 }
 0xeab   : > { %v4702_v50 = vpop.f32.mrf.mxu0 }
 0xeac   : > { %v7472_v54 = vadd.f32 %v4699_v31, %v4630_v34 }
 0xead   : > { %v5131_v58 = vpop.f32.mrf.mxu2 }
 0xeae   : > { %5259 = vmatmul.f32.gmra.mxu3 %v5131_v58  ;;  %5345 = vmatmul.f32.gmra.mxu0 %v5187_v10 }
 0xeb1   : > { %v4616_v3 = vpop.f32.mrf.mxu3 }
 0xeb2   : > { %v4631_v60 = vadd.f32 %v4616_v3, %v4379_v51  ;;  %v5202_v42 = vpop.f32.mrf.mxu1 }
 0xeb3   : > { %v5003_v48 = vpop.f32.mrf.mxu0 }
 0xeb4   : > { %v7476_v0 = vadd.f32 %v4702_v50, %v4631_v60 }
 0xeb5   : > { %v5134_v29 = vpop.f32.mrf.mxu2 }
 0xeb6   : > { %5262 = vmatmul.f32.gmra.mxu3 %v5134_v29  ;;  %5348 = vmatmul.f32.gmra.mxu0 %v5190_v39 }
 0xeb9   : > { %v4917_v18 = vpop.f32.mrf.mxu3 }
 0xeba   : > { %v4956_v46 = vadd.f32 %v4917_v18, %v7406_v36  ;;  %v5205_v6 = vpop.f32.mrf.mxu1 }
 0xebb   : > { %v5006_v37 = vpop.f32.mrf.mxu0 }
 0xebc   : > { %v7479_v25 = vadd.f32 %v5003_v48, %v4956_v46 }
 0xebd   : > { %v5137_v38 = vpop.f32.mrf.mxu2 }
 0xebe   : > { %5265 = vmatmul.f32.gmra.mxu3 %v5137_v38  ;;  %5351 = vmatmul.f32.gmra.mxu0 %v5193_v13 }
 0xec1   : > { %v4920_v43 = vpop.f32.mrf.mxu3 }
 0xec2   : > { %v4957_v16 = vadd.f32 %v4920_v43, %v7415_v53  ;;  %v5208_v30 = vpop.f32.mrf.mxu1 }
 0xec3   : > { %v5009_v47 = vpop.f32.mrf.mxu0 }
 0xec4   : > { %v7482_v45 = vadd.f32 %v5006_v37, %v4957_v16 }
 0xec5   : > { %v5140_v28 = vpop.f32.mrf.mxu2 }
 0xec6   : > { %5268 = vmatmul.f32.gmra.mxu3 %v5140_v28  ;;  %5354 = vmatmul.f32.gmra.mxu0 %v5196_v41 }
 0xec9   : > { %v4923_v15 = vpop.f32.mrf.mxu3 }
 0xeca   : > { %v4958_v36 = vadd.f32 %v4923_v15, %v7424_v4  ;;  %v5211_v9 = vpop.f32.mrf.mxu1 }
 0xecb   : > { %v5012_v8 = vpop.f32.mrf.mxu0 }
 0xecc   : > { %v7485_v14 = vadd.f32 %v5009_v47, %v4958_v36 }
 0xecd   : > { %v5143_v7 = vpop.f32.mrf.mxu2 }
 0xece   : > { %5271 = vmatmul.f32.gmra.mxu3 %v5143_v7  ;;  %5357 = vmatmul.f32.gmra.mxu0 %v5199_v32 }
 0xed1   : > { %v4926_v17 = vpop.f32.mrf.mxu3 }
 0xed2   : > { %v4959_v19 = vadd.f32 %v4926_v17, %v7431_v27  ;;  %v5214_v57 = vpop.f32.mrf.mxu1 }
 0xed3   : > { %v5015_v53 = vpop.f32.mrf.mxu0 }
 0xed4   : > { %v7488_v23 = vadd.f32 %v5012_v8, %v4959_v19 }
 0xed5   : > { %v5146_v5 = vpop.f32.mrf.mxu2 }
 0xed6   : > { %5274 = vmatmul.f32.gmra.mxu3 %v5146_v5  ;;  %5360 = vmatmul.f32.gmra.mxu0 %v5202_v42 }
 0xed9   : > { %v4929_v24 = vpop.f32.mrf.mxu3 }
 0xeda   : > { %v4960_v11 = vadd.f32 %v4929_v24, %v7439_v12  ;;  %v5217_v50 = vpop.f32.mrf.mxu1 }
 0xedb   : > { %v5018_v4 = vpop.f32.mrf.mxu0 }
 0xedc   : > { %v7491_v21 = vadd.f32 %v5015_v53, %v4960_v11 }
 0xedd   : > { %v5149_v52 = vpop.f32.mrf.mxu2 }
 0xede   : > { %5277 = vmatmul.f32.gmra.mxu3 %v5149_v52  ;;  %5363 = vmatmul.f32.gmra.mxu0 %v5205_v6 }
 0xee1   : > { %v4932_v63 = vpop.f32.mrf.mxu3 }
 0xee2   : > { %v4961_v27 = vadd.f32 %v4932_v63, %v7446_v44 }
 0xee3   : > { %v5021_v10 = vpop.f32.mrf.mxu0 }
 0xee4   : > { %v7494_v56 = vadd.f32 %v5018_v4, %v4961_v27 }
 0xee5   : > { %v5152_v22 = vpop.f32.mrf.mxu2 }
 0xee6   : > { %5280 = vmatmul.f32.gmra.mxu3 %v5152_v22  ;;  %5366 = vmatmul.f32.gmra.mxu0 %v5208_v30 }
 0xee9   : > { %v4935_v1 = vpop.f32.mrf.mxu3 }
 0xeea   : > { %v4962_v12 = vadd.f32 %v4935_v1, %v7451_v33 }
 0xeeb   : > { %v5024_v26 = vpop.f32.mrf.mxu0 }
 0xeec   : > { %v7497_v2 = vadd.f32 %v5021_v10, %v4962_v12 }
 0xeed   : > { %v5155_v59 = vpop.f32.mrf.mxu2 }
 0xeee   : > { %5283 = vmatmul.f32.gmra.mxu3 %v5155_v59  ;;  %5369 = vmatmul.f32.gmra.mxu0 %v5211_v9 }
 0xef1   : > { %v4938_v39 = vpop.f32.mrf.mxu3 }
 0xef2   : > { %v4963_v44 = vadd.f32 %v4938_v39, %v7456_v62 }
 0xef3   : > { %v5027_v31 = vpop.f32.mrf.mxu0 }
 0xef4   : > { %v7500_v55 = vadd.f32 %v5024_v26, %v4963_v44 }
 0xef5   : > { %v5158_v49 = vpop.f32.mrf.mxu2 }
 0xef6   : > { %5286 = vmatmul.f32.gmra.mxu3 %v5158_v49  ;;  %5372 = vmatmul.f32.gmra.mxu0 %v5214_v57 }
 0xef9   : > { %v4941_v35 = vpop.f32.mrf.mxu3 }
 0xefa   : > { %v4964_v34 = vadd.f32 %v4941_v35, %v7460_v61 }
 0xefb   : > { %v5030_v33 = vpop.f32.mrf.mxu0 }
 0xefc   : > { %v7503_v13 = vadd.f32 %v5027_v31, %v4964_v34 }
 0xefd   : > { %v5161_v58 = vpop.f32.mrf.mxu2 }
 0xefe   : > { %5289 = vmatmul.f32.gmra.mxu3 %v5161_v58  ;;  %5375 = vmatmul.f32.gmra.mxu0 %v5217_v50 }
 0xf01   : > { %v4944_v51 = vpop.f32.mrf.mxu3 }
 0xf02   : > { %v4965_v3 = vadd.f32 %v4944_v51, %v7464_v20 }
 0xf03   : > { %v5033_v62 = vpop.f32.mrf.mxu0 }
 0xf04   : > { %v7506_v60 = vadd.f32 %v5030_v33, %v4965_v3 }
 0xf09   : > { %v4947_v48 = vpop.f32.mrf.mxu3 }
 0xf0a   : > { %v4966_v29 = vadd.f32 %v4947_v48, %v7468_v40  ;;  %v7518_v40 = vld [vmem:[#allocation4 + $0x5] ss:$0 sm:$0xff] }
 0xf0b   : > { %v5036_v41 = vpop.f32.mrf.mxu0 }
 0xf0c   : > { %v7509_v18 = vadd.f32 %v5033_v62, %v4966_v29 }
 0xf11   : > { %v4950_v61 = vpop.f32.mrf.mxu3 }
 0xf12   : > { %v4967_v46 = vadd.f32 %v4950_v61, %v7472_v54 }
 0xf13   : > { %v5039_v37 = vpop.f32.mrf.mxu0 }
 0xf14   : > { %v7512_v38 = vadd.f32 %v5036_v41, %v4967_v46 }
 0xf19   : > { %v4953_v32 = vpop.f32.mrf.mxu3 }
 0xf1a   : > { %v4968_v43 = vadd.f32 %v4953_v32, %v7476_v0 }
 0xf1b   : > { %v5340_v20 = vpop.f32.mrf.mxu0 }
 0xf1c   : > { %v7515_v16 = vadd.f32 %v5039_v37, %v4968_v43 }
 0xf21   : > { %v5254_v47 = vpop.f32.mrf.mxu3 }
 0xf22   : > { %v5293_v28 = vadd.f32 %v5254_v47, %v7479_v25 }
 0xf23   : > { %v5343_v15 = vpop.f32.mrf.mxu0 }
 0xf24   : > { %v5379_v42 = vadd.f32 %v5340_v20, %v5293_v28 }
 0xf26   : > { %v5394_v54 = vadd.f32 %v7518_v40, %v5379_v42 }
 0xf28   : > { %5407 = vst [vmem:[%s7525_s23] sm:$0xff] %v5394_v54 }
 0xf29   : > { %v5257_v0 = vpop.f32.mrf.mxu3 }
 0xf2a   : > { %v5294_v36 = vadd.f32 %v5257_v0, %v7482_v45 }
 0xf2b   : > { %v5346_v25 = vpop.f32.mrf.mxu0 }
 0xf2c   : > { %v5380_v8 = vadd.f32 %v5343_v15, %v5294_v36 }
 0xf2e   : > { %v5395_v7 = vadd.f32 %v7518_v40, %v5380_v8 }
 0xf30   : > { %5408 = vst [vmem:[%s7525_s23 + $0x8] sm:$0xff] %v5395_v7 }
 0xf31   : > { %v5260_v17 = vpop.f32.mrf.mxu3 }
 0xf32   : > { %v5295_v19 = vadd.f32 %v5260_v17, %v7485_v14 }
 0xf33   : > { %v5349_v53 = vpop.f32.mrf.mxu0 }
 0xf34   : > { %v5381_v6 = vadd.f32 %v5346_v25, %v5295_v19 }
 0xf36   : > { %v5396_v5 = vadd.f32 %v7518_v40, %v5381_v6 }
 0xf38   : > { %5409 = vst [vmem:[%s7525_s23 + $0x10] sm:$0xff] %v5396_v5 }
 0xf39   : > { %v5263_v24 = vpop.f32.mrf.mxu3 }
 0xf3a   : > { %v5296_v11 = vadd.f32 %v5263_v24, %v7488_v23 }
 0xf3b   : > { %v5352_v45 = vpop.f32.mrf.mxu0 }
 0xf3c   : > { %v5382_v4 = vadd.f32 %v5349_v53, %v5296_v11 }
 0xf3e   : > { %v5397_v52 = vadd.f32 %v7518_v40, %v5382_v4 }
 0xf40   : > { %5410 = vst [vmem:[%s7525_s23 + $0x18] sm:$0xff] %v5397_v52 }
 0xf41   : > { %v5266_v30 = vpop.f32.mrf.mxu3 }
 0xf42   : > { %v5297_v63 = vadd.f32 %v5266_v30, %v7491_v21 }
 0xf43   : > { %v5355_v14 = vpop.f32.mrf.mxu0 }
 0xf44   : > { %v5383_v27 = vadd.f32 %v5352_v45, %v5297_v63 }
 0xf46   : > { %v5398_v10 = vadd.f32 %v7518_v40, %v5383_v27 }
 0xf48   : > { %5411 = vst [vmem:[%s7525_s23 + $0x20] sm:$0xff] %v5398_v10 }
 0xf49   : > { %v5269_v22 = vpop.f32.mrf.mxu3 }
 0xf4a   : > { %v5298_v9 = vadd.f32 %v5269_v22, %v7494_v56 }
 0xf4b   : > { %v5358_v23 = vpop.f32.mrf.mxu0 }
 0xf4c   : > { %v5384_v1 = vadd.f32 %v5355_v14, %v5298_v9 }
 0xf4e   : > { %v5399_v12 = vadd.f32 %v7518_v40, %v5384_v1 }
 0xf50   : > { %5412 = vst [vmem:[%s7525_s23 + $0x28] sm:$0xff] %v5399_v12 }
 0xf51   : > { %v5272_v26 = vpop.f32.mrf.mxu3 }
 0xf52   : > { %v5299_v59 = vadd.f32 %v5272_v26, %v7497_v2 }
 0xf53   : > { %v5361_v21 = vpop.f32.mrf.mxu0 }
 0xf54   : > { %v5385_v39 = vadd.f32 %v5358_v23, %v5299_v59 }
 0xf56   : > { %v5400_v57 = vadd.f32 %v7518_v40, %v5385_v39 }
 0xf58   : > { %5413 = vst [vmem:[%s7525_s23 + $0x30] sm:$0xff] %v5400_v57 }
 0xf59   : > { %v5275_v44 = vpop.f32.mrf.mxu3 }
 0xf5a   : > { %v5300_v31 = vadd.f32 %v5275_v44, %v7500_v55 }
 0xf5b   : > { %v5364_v56 = vpop.f32.mrf.mxu0 }
 0xf5c   : > { %v5386_v49 = vadd.f32 %v5361_v21, %v5300_v31 }
 0xf5e   : > { %v5401_v35 = vadd.f32 %v7518_v40, %v5386_v49 }
 0xf60   : > { %5414 = vst [vmem:[%s7525_s23 + $0x38] sm:$0xff] %v5401_v35 }
 0xf61   : > { %v5278_v34 = vpop.f32.mrf.mxu3 }
 0xf62   : > { %v5301_v33 = vadd.f32 %v5278_v34, %v7503_v13 }
 0xf63   : > { %v5367_v2 = vpop.f32.mrf.mxu0 }
 0xf64   : > { %v5387_v50 = vadd.f32 %v5364_v56, %v5301_v33 }
 0xf66   : > { %v5402_v58 = vadd.f32 %v7518_v40, %v5387_v50 }
 0xf68   : > { %5415 = vst [vmem:[%s7525_s23 + $0x40] sm:$0xff] %v5402_v58 }
 0xf69   : > { %v5281_v51 = vpop.f32.mrf.mxu3 }
 0xf6a   : > { %v5302_v3 = vadd.f32 %v5281_v51, %v7506_v60 }
 0xf6b   : > { %v5370_v62 = vpop.f32.mrf.mxu0 }
 0xf6c   : > { %v5388_v55 = vadd.f32 %v5367_v2, %v5302_v3 }
 0xf6e   : > { %v5403_v48 = vadd.f32 %v7518_v40, %v5388_v55 }
 0xf70   : > { %5416 = vst [vmem:[%s7525_s23 + $0x48] sm:$0xff] %v5403_v48 }
 0xf71   : > { %v5284_v29 = vpop.f32.mrf.mxu3 }
 0xf72   : > { %v5303_v41 = vadd.f32 %v5284_v29, %v7509_v18 }
 0xf73   : > { %v5373_v46 = vpop.f32.mrf.mxu0 }
 0xf74   : > { %v5389_v13 = vadd.f32 %v5370_v62, %v5303_v41 }
 0xf76   : > { %v5404_v61 = vadd.f32 %v7518_v40, %v5389_v13 }
 0xf78   : > { %5417 = vst [vmem:[%s7525_s23 + $0x50] sm:$0xff] %v5404_v61 }
 0xf79   : > { %v5287_v37 = vpop.f32.mrf.mxu3 }
 0xf7a   : > { %v5304_v32 = vadd.f32 %v5287_v37, %v7512_v38 }
 0xf7b   : > { %v5376_v47 = vpop.f32.mrf.mxu0 }
 0xf7c   : > { %v5390_v43 = vadd.f32 %v5373_v46, %v5304_v32 }
 0xf7e   : > { %v5405_v60 = vadd.f32 %v7518_v40, %v5390_v43 }
 0xf80   : > { %5418 = vst [vmem:[%s7525_s23 + $0x58] sm:$0xff] %v5405_v60 }
 0xf81   : > { %v5290_v20 = vpop.f32.mrf.mxu3 }
 0xf82   : > { %v5305_v28 = vadd.f32 %v5290_v20, %v7515_v16 }
 0xf84   : > { %v5391_v15 = vadd.f32 %v5376_v47, %v5305_v28 }
 0xf86   : > { %v5406_v42 = vadd.f32 %v7518_v40, %v5391_v15 }
 0xf88   : > { %5419 = vst [vmem:[%s7525_s23 + $0x60] sm:$0xff] %v5406_v42 }
 0xf89 PF: > { %s27_s17 = sadd.s32 1, %s6307_s17  }
 0xf8a   : > { %p24_p7 = scmp.ge.s32.totalorder %s27_s17, 4  }
 0xf8c   :  { %26 = sbr.rel (!%p24_p7) target bundleno = 6 (0x6), region = 215 }
 0xf91   :  { %5441 = vsyncpa [#allocation3], 1 }
 0xf92   :  { %5443 = vsyncpa [#allocation3 + $0x1], 1 }
 0xf93   :  { %5444 = vsyncpa [#allocation5], 1 }
 0xf94   :  { %5445 = vsyncpa [#allocation8], 1 }
 0xf95   :  { %5446 = vsyncpa [#allocation11], 1 }
 0xf96   :  { %5447 = vsyncpa [#allocation14], 1 }
 0xf97   :  { %5448 = vsyncpa [#allocation17], 1 }

</bundles_post_ra>
